<compile_context>
chip_gen: v7x
topology: tpu7x:2x2x1
jax: 0.10.0
libtpu: 0.0.40
codegen_flags: <defaults>
</compile_context>

<pallas_src>
import jax
import jax.numpy as jnp
from jax.experimental import pallas as pl
from jax.experimental.pallas import tpu as pltpu

HIDDEN = 256
ROW_TILE = 512   # samples per grid step, mapped onto lanes (500 -> 1 step)


def _pinn_kernel(t_ref,
                 w1_ref, b1_ref,
                 w2_ref, b2_ref,
                 w3_hbm, b3_ref,
                 w4_hbm, b4_ref,
                 w5_hbm, b5_ref,
                 w6_ref, b6_ref,
                 o_ref,
                 w3_buf, w4_buf, w5_buf, sem):
    # Kick off the deep-layer weight fetches immediately; they overlap with
    # layer-1/2 compute and each other.
    cp3 = pltpu.make_async_copy(w3_hbm, w3_buf, sem.at[0])
    cp4 = pltpu.make_async_copy(w4_hbm, w4_buf, sem.at[1])
    cp5 = pltpu.make_async_copy(w5_hbm, w5_buf, sem.at[2])
    cp3.start()
    cp4.start()
    cp5.start()

    # t_ref: (1, ROW_TILE) f32 -- one lane per sample.
    t_row = t_ref[...]

    # Layer 1: Linear(1, 256). Degenerate K=1 -> VPU outer product.
    # (256,1) * (1,TM) + (256,1) -> (256, TM)
    h = jnp.maximum(w1_ref[...] * t_row + b1_ref[...], 0.0)

    # Layer 2: resident bf16 weights (auto-pipelined), bf16 x bf16 -> f32 MXU.
    z = jnp.dot(w2_ref[...], h.astype(jnp.bfloat16),
                preferred_element_type=jnp.float32)
    h = jnp.maximum(z + b2_ref[...], 0.0)

    # Layer 3: manually DMA'd weights; wait right before use.
    cp3.wait()
    z = jnp.dot(w3_buf[...], h.astype(jnp.bfloat16),
                preferred_element_type=jnp.float32)
    h = jnp.maximum(z + b3_ref[...], 0.0)

    # Layer 4.
    cp4.wait()
    z = jnp.dot(w4_buf[...], h.astype(jnp.bfloat16),
                preferred_element_type=jnp.float32)
    h = jnp.maximum(z + b4_ref[...], 0.0)

    # Layer 5.
    cp5.wait()
    z = jnp.dot(w5_buf[...], h.astype(jnp.bfloat16),
                preferred_element_type=jnp.float32)
    h = jnp.maximum(z + b5_ref[...], 0.0)

    # Layer 6: Linear(256, 1), no activation. N=1 -> VPU multiply + sublane
    # (XLU) reduction; result is lane-dense (1, TM).
    out = jnp.sum(w6_ref[...] * h, axis=0, keepdims=True) + b6_ref[...]
    o_ref[...] = out.astype(o_ref.dtype)


def _resident(shape):
    # Whole-array block, same block every grid step (small weights / biases).
    return pl.BlockSpec(shape, lambda i: (0, 0))


@jax.jit
def pinn_forward(t, kparams):
    """Forward pass. t: any shape; flattened like torch .view(-1, 1)."""
    (w1, b1, w2, b2, w3, b3, w4, b4, w5, b5, w6, b6) = kparams

    t_flat = jnp.reshape(t, (-1,)).astype(jnp.float32)
    n = t_flat.shape[0]
    n_pad = ((n + ROW_TILE - 1) // ROW_TILE) * ROW_TILE
    t_row = jnp.pad(t_flat, (0, n_pad - n)).reshape(1, n_pad)
    n_tiles = n_pad // ROW_TILE      # == 1 for the 500-sample problem

    in_specs = [
        pl.BlockSpec((1, ROW_TILE), lambda i: (0, i)),        # t tile (lane-dense)
        _resident((HIDDEN, 1)), _resident((HIDDEN, 1)),       # w1, b1
        _resident((HIDDEN, HIDDEN)), _resident((HIDDEN, 1)),  # w2, b2
        pl.BlockSpec(memory_space=pl.ANY), _resident((HIDDEN, 1)),  # w3 (HBM), b3
        pl.BlockSpec(memory_space=pl.ANY), _resident((HIDDEN, 1)),  # w4 (HBM), b4
        pl.BlockSpec(memory_space=pl.ANY), _resident((HIDDEN, 1)),  # w5 (HBM), b5
        _resident((HIDDEN, 1)), _resident((1, 1)),             # w6, b6
    ]

    scratch_shapes = [
        pltpu.VMEM((HIDDEN, HIDDEN), jnp.bfloat16),   # w3 buffer
        pltpu.VMEM((HIDDEN, HIDDEN), jnp.bfloat16),   # w4 buffer
        pltpu.VMEM((HIDDEN, HIDDEN), jnp.bfloat16),   # w5 buffer
        pltpu.SemaphoreType.DMA((3,)),
    ]

    # Advisory cost hint so XLA schedules the surrounding pad/slice sensibly.
    flops = 2 * n_pad * (4 * HIDDEN * HIDDEN + 2 * HIDDEN)
    bytes_accessed = (4 * HIDDEN * HIDDEN * 2          # bf16 hidden weights
                      + (7 * HIDDEN + 1) * 4           # f32 w1/w6/biases
                      + 2 * n_pad * 4)                 # input + output rows
    cost = pl.CostEstimate(flops=flops, transcendentals=0,
                           bytes_accessed=bytes_accessed)

    out = pl.pallas_call(
        _pinn_kernel,
        out_shape=jax.ShapeDtypeStruct((1, n_pad), jnp.float32),
        grid_spec=pltpu.PrefetchScalarGridSpec(
            num_scalar_prefetch=0,
            grid=(n_tiles,),
            in_specs=in_specs,
            out_specs=pl.BlockSpec((1, ROW_TILE), lambda i: (0, i)),
            scratch_shapes=scratch_shapes,
        ),
        compiler_params=pltpu.CompilerParams(
            dimension_semantics=("arbitrary",)),
        cost_estimate=cost,
    )(t_row, w1, b1, w2, b2, w3, b3, w4, b4, w5, b5, w6, b6)

    return out[0, :n].reshape(-1, 1)


def init_params(key):
    """PyTorch nn.Linear default init: W,b ~ U(-1/sqrt(fan_in), +1/sqrt(fan_in)),
    weights stored (out_features, in_features) like PyTorch."""
    dims = [(1, HIDDEN), (HIDDEN, HIDDEN), (HIDDEN, HIDDEN),
            (HIDDEN, HIDDEN), (HIDDEN, HIDDEN), (HIDDEN, 1)]
    params = []
    for fan_in, fan_out in dims:
        key, kw, kb = jax.random.split(key, 3)
        bound = 1.0 / float(fan_in) ** 0.5
        w = jax.random.uniform(kw, (fan_out, fan_in), jnp.float32, -bound, bound)
        b = jax.random.uniform(kb, (fan_out,), jnp.float32, -bound, bound)
        params.extend([w, b])
    return tuple(params)


def prepare_kernel_params(params):
    """Convert PyTorch-layout f32 params into the kernel's layout/dtypes.
    Hidden 256x256 weights -> bf16 (MXU-native, half the DMA); biases -> (256,1)
    columns; w6 -> (256,1) column; b6 -> (1,1)."""
    (w1, b1, w2, b2, w3, b3, w4, b4, w5, b5, w6, b6) = params
    return (
        w1.reshape(HIDDEN, 1), b1.reshape(HIDDEN, 1),
        w2.astype(jnp.bfloat16), b2.reshape(HIDDEN, 1),
        w3.astype(jnp.bfloat16), b3.reshape(HIDDEN, 1),
        w4.astype(jnp.bfloat16), b4.reshape(HIDDEN, 1),
        w5.astype(jnp.bfloat16), b5.reshape(HIDDEN, 1),
        w6.reshape(HIDDEN, 1), b6.reshape(1, 1),
    )


def reference_forward_matched(t, kparams):
    """Plain-JAX reference matching the kernel's numerics (same bf16 weights,
    bf16 operands, f32 accumulation), in the same transposed orientation."""
    (w1, b1, w2, b2, w3, b3, w4, b4, w5, b5, w6, b6) = kparams
    x = jnp.reshape(t, (1, -1)).astype(jnp.float32)
    h = jnp.maximum(w1 * x + b1, 0.0)
    for w, b in ((w2, b2), (w3, b3), (w4, b4), (w5, b5)):
        h = jnp.maximum(
            jnp.dot(w, h.astype(jnp.bfloat16),
                    preferred_element_type=jnp.float32) + b, 0.0)
    out = jnp.sum(w6 * h, axis=0, keepdims=True) + b6
    return out.T


def reference_forward_f32(t, params):
    """Exact f32 equivalent of the PyTorch module (no bf16 quantization)."""
    (w1, b1, w2, b2, w3, b3, w4, b4, w5, b5, w6, b6) = params
    x = jnp.reshape(t, (-1, 1)).astype(jnp.float32)
    h = jnp.maximum(x @ w1.T + b1, 0.0)
    for w, b in ((w2, b2), (w3, b3), (w4, b4), (w5, b5)):
        h = jnp.maximum(h @ w.T + b, 0.0)
    return h @ w6.T + b6


if __name__ == "__main__":
    key = jax.random.PRNGKey(0)
    params = init_params(key)                 # PyTorch-layout f32 params
    kparams = prepare_kernel_params(params)   # kernel layout (bf16 hidden W)

    # t = np.linspace(0, 100, 500) in the original script.
    t = jnp.linspace(0.0, 100.0, 500, dtype=jnp.float32)

    sol = pinn_forward(t, kparams)
    sol = jax.block_until_ready(sol)
    assert sol.shape == (500, 1), sol.shape

    # (1) Tight check: kernel vs. a reference with identical bf16 numerics.
    ref_m = reference_forward_matched(t, kparams)
    assert jnp.allclose(sol, ref_m, atol=1e-2, rtol=1e-3), (
        float(jnp.max(jnp.abs(sol - ref_m))))

    # (2) Loose check vs. the true f32 PyTorch model: bounds the bf16
    # weight-quantization error relative to the output scale.
    ref32 = reference_forward_f32(t, params)
    scale = jnp.maximum(jnp.max(jnp.abs(ref32)), 1.0)
    rel = float(jnp.max(jnp.abs(sol - ref32)) / scale)
    assert rel < 0.15, rel

    print("KERNEL_OK")
</pallas_src>

<mosaic_0001>
module attributes {stable_mosaic.version = 11 : i64} {
  func.func @_pinn_kernel(%arg0: i32, %arg1: memref<1x512xf32, #tpu.memory_space<vmem>>, %arg2: memref<256x1xf32, #tpu.memory_space<vmem>>, %arg3: memref<256x1xf32, #tpu.memory_space<vmem>>, %arg4: memref<256x256xbf16, #tpu.memory_space<vmem>>, %arg5: memref<256x1xf32, #tpu.memory_space<vmem>>, %arg6: memref<256x256xbf16, #tpu.memory_space<any>>, %arg7: memref<256x1xf32, #tpu.memory_space<vmem>>, %arg8: memref<256x256xbf16, #tpu.memory_space<any>>, %arg9: memref<256x1xf32, #tpu.memory_space<vmem>>, %arg10: memref<256x256xbf16, #tpu.memory_space<any>>, %arg11: memref<256x1xf32, #tpu.memory_space<vmem>>, %arg12: memref<256x1xf32, #tpu.memory_space<vmem>>, %arg13: memref<1x1xf32, #tpu.memory_space<vmem>>, %arg14: memref<1x512xf32, #tpu.memory_space<vmem>>, %arg15: memref<256x256xbf16, #tpu.memory_space<vmem>>, %arg16: memref<256x256xbf16, #tpu.memory_space<vmem>>, %arg17: memref<256x256xbf16, #tpu.memory_space<vmem>>, %arg18: memref<3x!tpu.dma_semaphore, #tpu.memory_space<semaphore_mem>>) attributes {dimension_semantics = [#tpu.dimension_semantics<arbitrary>], iteration_bounds = array<i64: 1>, scalar_prefetch = 0 : i64, scratch_operands = 4 : i64, tpu.core_type = #tpu.core_type<tc>, window_params = [{transform_indices = @transform_0, window_bounds = array<i64: 1, 512>}, {pipeline_mode = #tpu.pipeline_mode<synchronous>, transform_indices = @transform_1, window_bounds = array<i64: 256, 1>}, {pipeline_mode = #tpu.pipeline_mode<synchronous>, transform_indices = @transform_2, window_bounds = array<i64: 256, 1>}, {pipeline_mode = #tpu.pipeline_mode<synchronous>, transform_indices = @transform_3, window_bounds = array<i64: 256, 256>}, {pipeline_mode = #tpu.pipeline_mode<synchronous>, transform_indices = @transform_4, window_bounds = array<i64: 256, 1>}, {}, {pipeline_mode = #tpu.pipeline_mode<synchronous>, transform_indices = @transform_6, window_bounds = array<i64: 256, 1>}, {}, {pipeline_mode = #tpu.pipeline_mode<synchronous>, transform_indices = @transform_8, window_bounds = array<i64: 256, 1>}, {}, {pipeline_mode = #tpu.pipeline_mode<synchronous>, transform_indices = @transform_10, window_bounds = array<i64: 256, 1>}, {pipeline_mode = #tpu.pipeline_mode<synchronous>, transform_indices = @transform_11, window_bounds = array<i64: 256, 1>}, {pipeline_mode = #tpu.pipeline_mode<synchronous>, transform_indices = @transform_12, window_bounds = array<i64: 1, 1>}, {transform_indices = @transform_13, window_bounds = array<i64: 1, 512>}]} {
    %c0_i32 = arith.constant 0 : i32
    %0 = tpu.memref_slice %arg18[%c0_i32] : memref<3x!tpu.dma_semaphore, #tpu.memory_space<semaphore_mem>> -> memref<1x!tpu.dma_semaphore, #tpu.memory_space<semaphore_mem>>
    %1 = tpu.memref_squeeze %0 : memref<1x!tpu.dma_semaphore, #tpu.memory_space<semaphore_mem>> -> memref<!tpu.dma_semaphore, #tpu.memory_space<semaphore_mem>>
    tpu.enqueue_dma source(%arg6 : memref<256x256xbf16, #tpu.memory_space<any>>) target(%arg15 : memref<256x256xbf16, #tpu.memory_space<vmem>>) target_semaphore(%1 : memref<!tpu.dma_semaphore, #tpu.memory_space<semaphore_mem>>)
    %c1_i32 = arith.constant 1 : i32
    %2 = tpu.memref_slice %arg18[%c1_i32] : memref<3x!tpu.dma_semaphore, #tpu.memory_space<semaphore_mem>> -> memref<1x!tpu.dma_semaphore, #tpu.memory_space<semaphore_mem>>
    %3 = tpu.memref_squeeze %2 : memref<1x!tpu.dma_semaphore, #tpu.memory_space<semaphore_mem>> -> memref<!tpu.dma_semaphore, #tpu.memory_space<semaphore_mem>>
    tpu.enqueue_dma source(%arg8 : memref<256x256xbf16, #tpu.memory_space<any>>) target(%arg16 : memref<256x256xbf16, #tpu.memory_space<vmem>>) target_semaphore(%3 : memref<!tpu.dma_semaphore, #tpu.memory_space<semaphore_mem>>)
    %c2_i32 = arith.constant 2 : i32
    %4 = tpu.memref_slice %arg18[%c2_i32] : memref<3x!tpu.dma_semaphore, #tpu.memory_space<semaphore_mem>> -> memref<1x!tpu.dma_semaphore, #tpu.memory_space<semaphore_mem>>
    %5 = tpu.memref_squeeze %4 : memref<1x!tpu.dma_semaphore, #tpu.memory_space<semaphore_mem>> -> memref<!tpu.dma_semaphore, #tpu.memory_space<semaphore_mem>>
    tpu.enqueue_dma source(%arg10 : memref<256x256xbf16, #tpu.memory_space<any>>) target(%arg17 : memref<256x256xbf16, #tpu.memory_space<vmem>>) target_semaphore(%5 : memref<!tpu.dma_semaphore, #tpu.memory_space<semaphore_mem>>)
    %c0 = arith.constant 0 : index
    %c0_0 = arith.constant 0 : index
    %6 = vector.load %arg1[%c0, %c0_0] : memref<1x512xf32, #tpu.memory_space<vmem>>, vector<1x512xf32>
    %c0_1 = arith.constant 0 : index
    %c0_2 = arith.constant 0 : index
    %7 = vector.load %arg2[%c0_1, %c0_2] : memref<256x1xf32, #tpu.memory_space<vmem>>, vector<256x1xf32>
    %8 = vector.broadcast %7 : vector<256x1xf32> to vector<256x512xf32>
    %9 = vector.broadcast %6 : vector<1x512xf32> to vector<256x512xf32>
    %10 = arith.mulf %8, %9 : vector<256x512xf32>
    %c0_3 = arith.constant 0 : index
    %c0_4 = arith.constant 0 : index
    %11 = vector.load %arg3[%c0_3, %c0_4] : memref<256x1xf32, #tpu.memory_space<vmem>>, vector<256x1xf32>
    %12 = vector.broadcast %11 : vector<256x1xf32> to vector<256x512xf32>
    %13 = arith.addf %10, %12 : vector<256x512xf32>
    %cst = arith.constant 0.000000e+00 : f32
    %14 = vector.broadcast %cst : f32 to vector<256x512xf32>
    %15 = arith.maximumf %13, %14 : vector<256x512xf32>
    %c0_5 = arith.constant 0 : index
    %c0_6 = arith.constant 0 : index
    %16 = vector.load %arg4[%c0_5, %c0_6] : memref<256x256xbf16, #tpu.memory_space<vmem>>, vector<256x256xbf16>
    %17 = arith.truncf %15 : vector<256x512xf32> to vector<256x512xbf16>
    %cst_7 = arith.constant dense<0.000000e+00> : vector<256x512xf32>
    %18 = tpu.matmul %16, %17, %cst_7 {dimension_numbers = #tpu.dot_dimension_numbers<[1], [0], [0], [1], [0, 0, 1, 1], [], []>} : vector<256x256xbf16>, vector<256x512xbf16>, vector<256x512xf32> -> vector<256x512xf32>
    %c0_8 = arith.constant 0 : index
    %c0_9 = arith.constant 0 : index
    %19 = vector.load %arg5[%c0_8, %c0_9] : memref<256x1xf32, #tpu.memory_space<vmem>>, vector<256x1xf32>
    %20 = vector.broadcast %19 : vector<256x1xf32> to vector<256x512xf32>
    %21 = arith.addf %18, %20 : vector<256x512xf32>
    %cst_10 = arith.constant 0.000000e+00 : f32
    %22 = vector.broadcast %cst_10 : f32 to vector<256x512xf32>
    %23 = arith.maximumf %21, %22 : vector<256x512xf32>
    %c0_i32_11 = arith.constant 0 : i32
    %24 = tpu.memref_slice %arg18[%c0_i32_11] : memref<3x!tpu.dma_semaphore, #tpu.memory_space<semaphore_mem>> -> memref<1x!tpu.dma_semaphore, #tpu.memory_space<semaphore_mem>>
    %25 = tpu.memref_squeeze %24 : memref<1x!tpu.dma_semaphore, #tpu.memory_space<semaphore_mem>> -> memref<!tpu.dma_semaphore, #tpu.memory_space<semaphore_mem>>
    tpu.wait_dma2 semaphore(%25 : memref<!tpu.dma_semaphore, #tpu.memory_space<semaphore_mem>>) src(%arg6 : memref<256x256xbf16, #tpu.memory_space<any>>) dst(%arg15 : memref<256x256xbf16, #tpu.memory_space<vmem>>)
    %c0_12 = arith.constant 0 : index
    %c0_13 = arith.constant 0 : index
    %26 = vector.load %arg15[%c0_12, %c0_13] : memref<256x256xbf16, #tpu.memory_space<vmem>>, vector<256x256xbf16>
    %27 = arith.truncf %23 : vector<256x512xf32> to vector<256x512xbf16>
    %cst_14 = arith.constant dense<0.000000e+00> : vector<256x512xf32>
    %28 = tpu.matmul %26, %27, %cst_14 {dimension_numbers = #tpu.dot_dimension_numbers<[1], [0], [0], [1], [0, 0, 1, 1], [], []>} : vector<256x256xbf16>, vector<256x512xbf16>, vector<256x512xf32> -> vector<256x512xf32>
    %c0_15 = arith.constant 0 : index
    %c0_16 = arith.constant 0 : index
    %29 = vector.load %arg7[%c0_15, %c0_16] : memref<256x1xf32, #tpu.memory_space<vmem>>, vector<256x1xf32>
    %30 = vector.broadcast %29 : vector<256x1xf32> to vector<256x512xf32>
    %31 = arith.addf %28, %30 : vector<256x512xf32>
    %cst_17 = arith.constant 0.000000e+00 : f32
    %32 = vector.broadcast %cst_17 : f32 to vector<256x512xf32>
    %33 = arith.maximumf %31, %32 : vector<256x512xf32>
    %c1_i32_18 = arith.constant 1 : i32
    %34 = tpu.memref_slice %arg18[%c1_i32_18] : memref<3x!tpu.dma_semaphore, #tpu.memory_space<semaphore_mem>> -> memref<1x!tpu.dma_semaphore, #tpu.memory_space<semaphore_mem>>
    %35 = tpu.memref_squeeze %34 : memref<1x!tpu.dma_semaphore, #tpu.memory_space<semaphore_mem>> -> memref<!tpu.dma_semaphore, #tpu.memory_space<semaphore_mem>>
    tpu.wait_dma2 semaphore(%35 : memref<!tpu.dma_semaphore, #tpu.memory_space<semaphore_mem>>) src(%arg8 : memref<256x256xbf16, #tpu.memory_space<any>>) dst(%arg16 : memref<256x256xbf16, #tpu.memory_space<vmem>>)
    %c0_19 = arith.constant 0 : index
    %c0_20 = arith.constant 0 : index
    %36 = vector.load %arg16[%c0_19, %c0_20] : memref<256x256xbf16, #tpu.memory_space<vmem>>, vector<256x256xbf16>
    %37 = arith.truncf %33 : vector<256x512xf32> to vector<256x512xbf16>
    %cst_21 = arith.constant dense<0.000000e+00> : vector<256x512xf32>
    %38 = tpu.matmul %36, %37, %cst_21 {dimension_numbers = #tpu.dot_dimension_numbers<[1], [0], [0], [1], [0, 0, 1, 1], [], []>} : vector<256x256xbf16>, vector<256x512xbf16>, vector<256x512xf32> -> vector<256x512xf32>
    %c0_22 = arith.constant 0 : index
    %c0_23 = arith.constant 0 : index
    %39 = vector.load %arg9[%c0_22, %c0_23] : memref<256x1xf32, #tpu.memory_space<vmem>>, vector<256x1xf32>
    %40 = vector.broadcast %39 : vector<256x1xf32> to vector<256x512xf32>
    %41 = arith.addf %38, %40 : vector<256x512xf32>
    %cst_24 = arith.constant 0.000000e+00 : f32
    %42 = vector.broadcast %cst_24 : f32 to vector<256x512xf32>
    %43 = arith.maximumf %41, %42 : vector<256x512xf32>
    %c2_i32_25 = arith.constant 2 : i32
    %44 = tpu.memref_slice %arg18[%c2_i32_25] : memref<3x!tpu.dma_semaphore, #tpu.memory_space<semaphore_mem>> -> memref<1x!tpu.dma_semaphore, #tpu.memory_space<semaphore_mem>>
    %45 = tpu.memref_squeeze %44 : memref<1x!tpu.dma_semaphore, #tpu.memory_space<semaphore_mem>> -> memref<!tpu.dma_semaphore, #tpu.memory_space<semaphore_mem>>
    tpu.wait_dma2 semaphore(%45 : memref<!tpu.dma_semaphore, #tpu.memory_space<semaphore_mem>>) src(%arg10 : memref<256x256xbf16, #tpu.memory_space<any>>) dst(%arg17 : memref<256x256xbf16, #tpu.memory_space<vmem>>)
    %c0_26 = arith.constant 0 : index
    %c0_27 = arith.constant 0 : index
    %46 = vector.load %arg17[%c0_26, %c0_27] : memref<256x256xbf16, #tpu.memory_space<vmem>>, vector<256x256xbf16>
    %47 = arith.truncf %43 : vector<256x512xf32> to vector<256x512xbf16>
    %cst_28 = arith.constant dense<0.000000e+00> : vector<256x512xf32>
    %48 = tpu.matmul %46, %47, %cst_28 {dimension_numbers = #tpu.dot_dimension_numbers<[1], [0], [0], [1], [0, 0, 1, 1], [], []>} : vector<256x256xbf16>, vector<256x512xbf16>, vector<256x512xf32> -> vector<256x512xf32>
    %c0_29 = arith.constant 0 : index
    %c0_30 = arith.constant 0 : index
    %49 = vector.load %arg11[%c0_29, %c0_30] : memref<256x1xf32, #tpu.memory_space<vmem>>, vector<256x1xf32>
    %50 = vector.broadcast %49 : vector<256x1xf32> to vector<256x512xf32>
    %51 = arith.addf %48, %50 : vector<256x512xf32>
    %cst_31 = arith.constant 0.000000e+00 : f32
    %52 = vector.broadcast %cst_31 : f32 to vector<256x512xf32>
    %53 = arith.maximumf %51, %52 : vector<256x512xf32>
    %c0_32 = arith.constant 0 : index
    %c0_33 = arith.constant 0 : index
    %54 = vector.load %arg12[%c0_32, %c0_33] : memref<256x1xf32, #tpu.memory_space<vmem>>, vector<256x1xf32>
    %55 = vector.broadcast %54 : vector<256x1xf32> to vector<256x512xf32>
    %56 = arith.mulf %55, %53 : vector<256x512xf32>
    %cst_34 = arith.constant dense<0.000000e+00> : vector<512xf32>
    %57 = vector.multi_reduction <add>, %56, %cst_34 [0] : vector<256x512xf32> to vector<512xf32>
    %58 = vector.shape_cast %57 : vector<512xf32> to vector<1x512xf32>
    %c0_35 = arith.constant 0 : index
    %c0_36 = arith.constant 0 : index
    %59 = vector.load %arg13[%c0_35, %c0_36] : memref<1x1xf32, #tpu.memory_space<vmem>>, vector<1x1xf32>
    %60 = vector.broadcast %59 : vector<1x1xf32> to vector<1x512xf32>
    %61 = arith.addf %58, %60 : vector<1x512xf32>
    %c0_37 = arith.constant 0 : index
    %c0_38 = arith.constant 0 : index
    %62 = vector.load %arg14[%c0_37, %c0_38] : memref<1x512xf32, #tpu.memory_space<vmem>>, vector<1x512xf32>
    tpu.vector_store %arg14[%c0_37, %c0_38], %61 {strides = array<i32>} : memref<1x512xf32, #tpu.memory_space<vmem>>, vector<1x512xf32>,
    return
  }
  func.func @transform_0(%arg0: i32) -> (i32, i32) {
    %c0_i32 = arith.constant 0 : i32
    %c0_i32_0 = arith.constant 0 : i32
    return %c0_i32, %arg0 : i32, i32
  }
  func.func @transform_1(%arg0: i32) -> (i32, i32) {
    %c0_i32 = arith.constant 0 : i32
    %c0_i32_0 = arith.constant 0 : i32
    %c0_i32_1 = arith.constant 0 : i32
    return %c0_i32, %c0_i32_0 : i32, i32
  }
  func.func @transform_2(%arg0: i32) -> (i32, i32) {
    %c0_i32 = arith.constant 0 : i32
    %c0_i32_0 = arith.constant 0 : i32
    %c0_i32_1 = arith.constant 0 : i32
    return %c0_i32, %c0_i32_0 : i32, i32
  }
  func.func @transform_3(%arg0: i32) -> (i32, i32) {
    %c0_i32 = arith.constant 0 : i32
    %c0_i32_0 = arith.constant 0 : i32
    %c0_i32_1 = arith.constant 0 : i32
    return %c0_i32, %c0_i32_0 : i32, i32
  }
  func.func @transform_4(%arg0: i32) -> (i32, i32) {
    %c0_i32 = arith.constant 0 : i32
    %c0_i32_0 = arith.constant 0 : i32
    %c0_i32_1 = arith.constant 0 : i32
    return %c0_i32, %c0_i32_0 : i32, i32
  }
  func.func @transform_6(%arg0: i32) -> (i32, i32) {
    %c0_i32 = arith.constant 0 : i32
    %c0_i32_0 = arith.constant 0 : i32
    %c0_i32_1 = arith.constant 0 : i32
    return %c0_i32, %c0_i32_0 : i32, i32
  }
  func.func @transform_8(%arg0: i32) -> (i32, i32) {
    %c0_i32 = arith.constant 0 : i32
    %c0_i32_0 = arith.constant 0 : i32
    %c0_i32_1 = arith.constant 0 : i32
    return %c0_i32, %c0_i32_0 : i32, i32
  }
  func.func @transform_10(%arg0: i32) -> (i32, i32) {
    %c0_i32 = arith.constant 0 : i32
    %c0_i32_0 = arith.constant 0 : i32
    %c0_i32_1 = arith.constant 0 : i32
    return %c0_i32, %c0_i32_0 : i32, i32
  }
  func.func @transform_11(%arg0: i32) -> (i32, i32) {
    %c0_i32 = arith.constant 0 : i32
    %c0_i32_0 = arith.constant 0 : i32
    %c0_i32_1 = arith.constant 0 : i32
    return %c0_i32, %c0_i32_0 : i32, i32
  }
  func.func @transform_12(%arg0: i32) -> (i32, i32) {
    %c0_i32 = arith.constant 0 : i32
    %c0_i32_0 = arith.constant 0 : i32
    %c0_i32_1 = arith.constant 0 : i32
    return %c0_i32, %c0_i32_0 : i32, i32
  }
  func.func @transform_13(%arg0: i32) -> (i32, i32) {
    %c0_i32 = arith.constant 0 : i32
    %c0_i32_0 = arith.constant 0 : i32
    return %c0_i32, %arg0 : i32, i32
  }
}

</mosaic_0001>

<bundles_post_ra>
// kernel: pinn_forward.1
= control target key start
LH: loop header
LB: loop body
LE: loop exit
PB: predicated region body
PF: predicated region fallthrough
CT: control target
= control target key end

     0   :  { %s9492_s0 = inlined_call_operand.vmem [shape: f32[1,512], index: 0, kind: input, shape index: {}]   ;;  %s9493_s1 = inlined_call_operand.vmem [shape: f32[256,1], index: 1, kind: input, shape index: {}]   ;;  %s9494_s2 = inlined_call_operand.vmem [shape: f32[256,1], index: 2, kind: input, shape index: {}]   ;;  %s9495_s3 = inlined_call_operand.vmem [shape: bf16[256,256], index: 3, kind: input, shape index: {}]   ;;  %s9496_s4 = inlined_call_operand.vmem [shape: f32[256,1], index: 4, kind: input, shape index: {}]   ;;  %s9497_s6 = inlined_call_operand.vmem [shape: f32[256,1], index: 6, kind: input, shape index: {}]   ;;  %s9498_s7 = inlined_call_operand.vmem [shape: bf16[256,256], index: 7, kind: input, shape index: {}]   ;;  %s9499_s8 = inlined_call_operand.vmem [shape: f32[256,1], index: 8, kind: input, shape index: {}]   ;;  %s9500_s9 = inlined_call_operand.vmem [shape: bf16[256,256], index: 9, kind: input, shape index: {}]   ;;  %s9501_s10 = inlined_call_operand.vmem [shape: f32[256,1], index: 10, kind: input, shape index: {}]   ;;  %s9502_s11 = inlined_call_operand.vmem [shape: f32[256,1], index: 11, kind: input, shape index: {}]   ;;  %s9503_s12 = inlined_call_operand.<no memory space> [shape: f32[1,1], index: 12, kind: input, shape index: {}]   ;;  %s9504_s13 = inlined_call_operand.vmem [shape: f32[1,512], index: 13, kind: output, shape index: {}]   ;;  %s9505_s5 = inlined_call_operand.vmem [shape: bf16[256,256], index: 5, kind: input, shape index: {}]  }
   0x1   :  { %v18_v0 = vstv %s9503_s12  ;;  %v57_v1 = vld [vmem:[%s9505_s5] sm:$0xf]  ;;  %v59_v2 = vld [vmem:[%s9505_s5 + $0x8] sm:$0xf]  ;;  %v61_v3 = vld [vmem:[%s9505_s5 + $0x4] sm:$0xf] }
   0x2   :  { %19 = vst [vmem:[#allocation6] sm:$0x1] %v18_v0  ;;  %58 = vst [vmem:[#allocation2] sm:$0xf] %v57_v1  ;;  %v63_v4 = vld [vmem:[%s9505_s5 + $0xc] sm:$0xff]   ;;  %v71_v7 = vld [vmem:[%s9505_s5 + $0x1c] sm:$0xff]  }
   0x3   :  { %60 = vst [vmem:[#allocation2 + $0x4] sm:$0xf] %v59_v2  ;;  %62 = vst [vmem:[#allocation2 + $0x8] sm:$0xf] %v61_v3  ;;  %v67_v5 = vld [vmem:[%s9505_s5 + $0x18] sm:$0xf] }
   0x4   :  { %v69_v6 = vld [vmem:[%s9505_s5 + $0x14] sm:$0xf]  ;;  %64 = vst [vmem:[#allocation2 + $0xc] sm:$0xff] %v63_v4   ;;  %68 = vst [vmem:[#allocation2 + $0x14] sm:$0xf] %v67_v5  ;;  %v79_v10 = vld [vmem:[%s9505_s5 + $0x2c] sm:$0xff]  }
   0x5   :  { %70 = vst [vmem:[#allocation2 + $0x18] sm:$0xf] %v69_v6  ;;  %v75_v8 = vld [vmem:[%s9505_s5 + $0x28] sm:$0xf]  ;;  %v77_v9 = vld [vmem:[%s9505_s5 + $0x24] sm:$0xf] }
   0x6   :  { %72 = vst [vmem:[#allocation2 + $0x1c] sm:$0xff] %v71_v7   ;;  %76 = vst [vmem:[#allocation2 + $0x24] sm:$0xf] %v75_v8  ;;  %v83_v11 = vld [vmem:[%s9505_s5 + $0x38] sm:$0xf]  ;;  %v87_v13 = vld [vmem:[%s9505_s5 + $0x3c] sm:$0xff]  }
   0x7   :  { %78 = vst [vmem:[#allocation2 + $0x28] sm:$0xf] %v77_v9  ;;  %v85_v12 = vld [vmem:[%s9505_s5 + $0x34] sm:$0xf]  ;;  %80 = vst [vmem:[#allocation2 + $0x2c] sm:$0xff] %v79_v10   ;;  %v95_v16 = vld [vmem:[%s9505_s5 + $0x4c] sm:$0xff]  }
   0x8   :  { %84 = vst [vmem:[#allocation2 + $0x34] sm:$0xf] %v83_v11  ;;  %86 = vst [vmem:[#allocation2 + $0x38] sm:$0xf] %v85_v12  ;;  %v91_v14 = vld [vmem:[%s9505_s5 + $0x48] sm:$0xf] }
   0x9   :  { %v93_v15 = vld [vmem:[%s9505_s5 + $0x44] sm:$0xf]  ;;  %88 = vst [vmem:[#allocation2 + $0x3c] sm:$0xff] %v87_v13   ;;  %92 = vst [vmem:[#allocation2 + $0x44] sm:$0xf] %v91_v14  ;;  %v103_v19 = vld [vmem:[%s9505_s5 + $0x5c] sm:$0xff]  }
   0xa   :  { %94 = vst [vmem:[#allocation2 + $0x48] sm:$0xf] %v93_v15  ;;  %v99_v17 = vld [vmem:[%s9505_s5 + $0x58] sm:$0xf]  ;;  %v101_v18 = vld [vmem:[%s9505_s5 + $0x54] sm:$0xf] }
   0xb   :  { %96 = vst [vmem:[#allocation2 + $0x4c] sm:$0xff] %v95_v16   ;;  %100 = vst [vmem:[#allocation2 + $0x54] sm:$0xf] %v99_v17  ;;  %v107_v20 = vld [vmem:[%s9505_s5 + $0x68] sm:$0xf]  ;;  %v111_v22 = vld [vmem:[%s9505_s5 + $0x6c] sm:$0xff]  }
   0xc   :  { %102 = vst [vmem:[#allocation2 + $0x58] sm:$0xf] %v101_v18  ;;  %v109_v21 = vld [vmem:[%s9505_s5 + $0x64] sm:$0xf]  ;;  %104 = vst [vmem:[#allocation2 + $0x5c] sm:$0xff] %v103_v19   ;;  %v119_v25 = vld [vmem:[%s9505_s5 + $0x7c] sm:$0xff]  }
   0xd   :  { %108 = vst [vmem:[#allocation2 + $0x64] sm:$0xf] %v107_v20  ;;  %110 = vst [vmem:[#allocation2 + $0x68] sm:$0xf] %v109_v21  ;;  %v115_v23 = vld [vmem:[%s9505_s5 + $0x78] sm:$0xf] }
   0xe   :  { %v117_v24 = vld [vmem:[%s9505_s5 + $0x74] sm:$0xf]  ;;  %112 = vst [vmem:[#allocation2 + $0x6c] sm:$0xff] %v111_v22   ;;  %116 = vst [vmem:[#allocation2 + $0x74] sm:$0xf] %v115_v23  ;;  %v127_v28 = vld [vmem:[%s9505_s5 + $0x8c] sm:$0xff]  }
   0xf   :  { %118 = vst [vmem:[#allocation2 + $0x78] sm:$0xf] %v117_v24  ;;  %v123_v26 = vld [vmem:[%s9505_s5 + $0x88] sm:$0xf]  ;;  %v125_v27 = vld [vmem:[%s9505_s5 + $0x84] sm:$0xf] }
  0x10   :  { %120 = vst [vmem:[#allocation2 + $0x7c] sm:$0xff] %v119_v25   ;;  %124 = vst [vmem:[#allocation2 + $0x84] sm:$0xf] %v123_v26  ;;  %v131_v29 = vld [vmem:[%s9505_s5 + $0x98] sm:$0xf]  ;;  %v135_v31 = vld [vmem:[%s9505_s5 + $0x9c] sm:$0xff]  }
  0x11   :  { %126 = vst [vmem:[#allocation2 + $0x88] sm:$0xf] %v125_v27  ;;  %v133_v30 = vld [vmem:[%s9505_s5 + $0x94] sm:$0xf]  ;;  %128 = vst [vmem:[#allocation2 + $0x8c] sm:$0xff] %v127_v28   ;;  %v143_v34 = vld [vmem:[%s9505_s5 + $0xac] sm:$0xff]  }
  0x12   :  { %132 = vst [vmem:[#allocation2 + $0x94] sm:$0xf] %v131_v29  ;;  %134 = vst [vmem:[#allocation2 + $0x98] sm:$0xf] %v133_v30  ;;  %v139_v32 = vld [vmem:[%s9505_s5 + $0xa8] sm:$0xf] }
  0x13   :  { %v141_v33 = vld [vmem:[%s9505_s5 + $0xa4] sm:$0xf]  ;;  %136 = vst [vmem:[#allocation2 + $0x9c] sm:$0xff] %v135_v31   ;;  %140 = vst [vmem:[#allocation2 + $0xa4] sm:$0xf] %v139_v32  ;;  %v151_v37 = vld [vmem:[%s9505_s5 + $0xbc] sm:$0xff]  }
  0x14   :  { %142 = vst [vmem:[#allocation2 + $0xa8] sm:$0xf] %v141_v33  ;;  %v147_v35 = vld [vmem:[%s9505_s5 + $0xb8] sm:$0xf]  ;;  %v149_v36 = vld [vmem:[%s9505_s5 + $0xb4] sm:$0xf] }
  0x15   :  { %144 = vst [vmem:[#allocation2 + $0xac] sm:$0xff] %v143_v34   ;;  %148 = vst [vmem:[#allocation2 + $0xb4] sm:$0xf] %v147_v35  ;;  %v155_v38 = vld [vmem:[%s9505_s5 + $0xc8] sm:$0xf]  ;;  %v159_v40 = vld [vmem:[%s9505_s5 + $0xcc] sm:$0xff]  }
  0x16   :  { %150 = vst [vmem:[#allocation2 + $0xb8] sm:$0xf] %v149_v36  ;;  %v157_v39 = vld [vmem:[%s9505_s5 + $0xc4] sm:$0xf]  ;;  %152 = vst [vmem:[#allocation2 + $0xbc] sm:$0xff] %v151_v37   ;;  %v167_v43 = vld [vmem:[%s9505_s5 + $0xdc] sm:$0xff]  }
  0x17   :  { %156 = vst [vmem:[#allocation2 + $0xc4] sm:$0xf] %v155_v38  ;;  %158 = vst [vmem:[#allocation2 + $0xc8] sm:$0xf] %v157_v39  ;;  %v163_v41 = vld [vmem:[%s9505_s5 + $0xd8] sm:$0xf] }
  0x18   :  { %v165_v42 = vld [vmem:[%s9505_s5 + $0xd4] sm:$0xf]  ;;  %160 = vst [vmem:[#allocation2 + $0xcc] sm:$0xff] %v159_v40   ;;  %164 = vst [vmem:[#allocation2 + $0xd4] sm:$0xf] %v163_v41  ;;  %v175_v46 = vld [vmem:[%s9505_s5 + $0xec] sm:$0xff]  }
  0x19   :  { %166 = vst [vmem:[#allocation2 + $0xd8] sm:$0xf] %v165_v42  ;;  %v171_v44 = vld [vmem:[%s9505_s5 + $0xe8] sm:$0xf]  ;;  %v173_v45 = vld [vmem:[%s9505_s5 + $0xe4] sm:$0xf] }
  0x1a   :  { %168 = vst [vmem:[#allocation2 + $0xdc] sm:$0xff] %v167_v43   ;;  %172 = vst [vmem:[#allocation2 + $0xe4] sm:$0xf] %v171_v44  ;;  %v179_v47 = vld [vmem:[%s9505_s5 + $0xf8] sm:$0xf] }
  0x1b   :  { %174 = vst [vmem:[#allocation2 + $0xe8] sm:$0xf] %v173_v45  ;;  %v181_v48 = vld [vmem:[%s9505_s5 + $0xf4] sm:$0xf]  ;;  %176 = vst [vmem:[#allocation2 + $0xec] sm:$0xff] %v175_v46  }
  0x1c   :  { %180 = vst [vmem:[#allocation2 + $0xf4] sm:$0xf] %v179_v47  ;;  %182 = vst [vmem:[#allocation2 + $0xf8] sm:$0xf] %v181_v48  ;;  %v183_v49 = vld [vmem:[%s9505_s5 + $0xfc] sm:$0xf] }
  0x1d   :  { %184 = vst [vmem:[#allocation2 + $0xfc] sm:$0xf] %v183_v49 }
  0x1e   :  { %343 = vsyncadd [#allocation5], 4096  ;;  %v362_v50 = vld [vmem:[%s9498_s7] sm:$0xf]  ;;  %v364_v51 = vld [vmem:[%s9498_s7 + $0x8] sm:$0xf] }
  0x1f   :  { %363 = vst [vmem:[#allocation3] sm:$0xf] %v362_v50  ;;  %365 = vst [vmem:[#allocation3 + $0x4] sm:$0xf] %v364_v51  ;;  %v366_v52 = vld [vmem:[%s9498_s7 + $0x4] sm:$0xf] }
  0x20   :  { %v368_v53 = vld [vmem:[%s9498_s7 + $0xc] sm:$0xff]   ;;  %v372_v54 = vld [vmem:[%s9498_s7 + $0x18] sm:$0xf]  ;;  %367 = vst [vmem:[#allocation3 + $0x8] sm:$0xf] %v366_v52  ;;  %v376_v56 = vld [vmem:[%s9498_s7 + $0x1c] sm:$0xff]  }
  0x21   :  { %369 = vst [vmem:[#allocation3 + $0xc] sm:$0xff] %v368_v53   ;;  %373 = vst [vmem:[#allocation3 + $0x14] sm:$0xf] %v372_v54  ;;  %v374_v55 = vld [vmem:[%s9498_s7 + $0x14] sm:$0xf]  ;;  %v384_v59 = vld [vmem:[%s9498_s7 + $0x2c] sm:$0xff]  }
  0x22   :  { %v380_v57 = vld [vmem:[%s9498_s7 + $0x28] sm:$0xf]  ;;  %375 = vst [vmem:[#allocation3 + $0x18] sm:$0xf] %v374_v55  ;;  %377 = vst [vmem:[#allocation3 + $0x1c] sm:$0xff] %v376_v56   ;;  %v392_v62 = vld [vmem:[%s9498_s7 + $0x3c] sm:$0xff]  }
  0x23   :  { %381 = vst [vmem:[#allocation3 + $0x24] sm:$0xf] %v380_v57  ;;  %v382_v58 = vld [vmem:[%s9498_s7 + $0x24] sm:$0xf]  ;;  %v388_v60 = vld [vmem:[%s9498_s7 + $0x38] sm:$0xf] }
  0x24   :  { %383 = vst [vmem:[#allocation3 + $0x28] sm:$0xf] %v382_v58  ;;  %385 = vst [vmem:[#allocation3 + $0x2c] sm:$0xff] %v384_v59   ;;  %v390_v61 = vld [vmem:[%s9498_s7 + $0x34] sm:$0xf]  ;;  %v400_v1 = vld [vmem:[%s9498_s7 + $0x4c] sm:$0xff]  }
  0x25   :  { %389 = vst [vmem:[#allocation3 + $0x34] sm:$0xf] %v388_v60  ;;  %v396_v63 = vld [vmem:[%s9498_s7 + $0x48] sm:$0xf]  ;;  %391 = vst [vmem:[#allocation3 + $0x38] sm:$0xf] %v390_v61 }
  0x26   :  { %393 = vst [vmem:[#allocation3 + $0x3c] sm:$0xff] %v392_v62   ;;  %397 = vst [vmem:[#allocation3 + $0x44] sm:$0xf] %v396_v63  ;;  %v398_v0 = vld [vmem:[%s9498_s7 + $0x44] sm:$0xf]  ;;  %v408_v4 = vld [vmem:[%s9498_s7 + $0x5c] sm:$0xff]  }
  0x27   :  { %v404_v2 = vld [vmem:[%s9498_s7 + $0x58] sm:$0xf]  ;;  %399 = vst [vmem:[#allocation3 + $0x48] sm:$0xf] %v398_v0  ;;  %401 = vst [vmem:[#allocation3 + $0x4c] sm:$0xff] %v400_v1   ;;  %v416_v7 = vld [vmem:[%s9498_s7 + $0x6c] sm:$0xff]  }
  0x28   :  { %405 = vst [vmem:[#allocation3 + $0x54] sm:$0xf] %v404_v2  ;;  %v406_v3 = vld [vmem:[%s9498_s7 + $0x54] sm:$0xf]  ;;  %v412_v5 = vld [vmem:[%s9498_s7 + $0x68] sm:$0xf] }
  0x29   :  { %407 = vst [vmem:[#allocation3 + $0x58] sm:$0xf] %v406_v3  ;;  %409 = vst [vmem:[#allocation3 + $0x5c] sm:$0xff] %v408_v4   ;;  %v414_v6 = vld [vmem:[%s9498_s7 + $0x64] sm:$0xf]  ;;  %v424_v10 = vld [vmem:[%s9498_s7 + $0x7c] sm:$0xff]  }
  0x2a   :  { %413 = vst [vmem:[#allocation3 + $0x64] sm:$0xf] %v412_v5  ;;  %v420_v8 = vld [vmem:[%s9498_s7 + $0x78] sm:$0xf]  ;;  %415 = vst [vmem:[#allocation3 + $0x68] sm:$0xf] %v414_v6 }
  0x2b   :  { %417 = vst [vmem:[#allocation3 + $0x6c] sm:$0xff] %v416_v7   ;;  %421 = vst [vmem:[#allocation3 + $0x74] sm:$0xf] %v420_v8  ;;  %v422_v9 = vld [vmem:[%s9498_s7 + $0x74] sm:$0xf]  ;;  %v432_v13 = vld [vmem:[%s9498_s7 + $0x8c] sm:$0xff]  }
  0x2c   :  { %v428_v11 = vld [vmem:[%s9498_s7 + $0x88] sm:$0xf]  ;;  %423 = vst [vmem:[#allocation3 + $0x78] sm:$0xf] %v422_v9  ;;  %425 = vst [vmem:[#allocation3 + $0x7c] sm:$0xff] %v424_v10   ;;  %v440_v16 = vld [vmem:[%s9498_s7 + $0x9c] sm:$0xff]  }
  0x2d   :  { %429 = vst [vmem:[#allocation3 + $0x84] sm:$0xf] %v428_v11  ;;  %v430_v12 = vld [vmem:[%s9498_s7 + $0x84] sm:$0xf]  ;;  %v436_v14 = vld [vmem:[%s9498_s7 + $0x98] sm:$0xf] }
  0x2e   :  { %431 = vst [vmem:[#allocation3 + $0x88] sm:$0xf] %v430_v12  ;;  %433 = vst [vmem:[#allocation3 + $0x8c] sm:$0xff] %v432_v13   ;;  %v438_v15 = vld [vmem:[%s9498_s7 + $0x94] sm:$0xf]  ;;  %v448_v19 = vld [vmem:[%s9498_s7 + $0xac] sm:$0xff]  }
  0x2f   :  { %437 = vst [vmem:[#allocation3 + $0x94] sm:$0xf] %v436_v14  ;;  %v444_v17 = vld [vmem:[%s9498_s7 + $0xa8] sm:$0xf]  ;;  %439 = vst [vmem:[#allocation3 + $0x98] sm:$0xf] %v438_v15 }
  0x30   :  { %441 = vst [vmem:[#allocation3 + $0x9c] sm:$0xff] %v440_v16   ;;  %445 = vst [vmem:[#allocation3 + $0xa4] sm:$0xf] %v444_v17  ;;  %v446_v18 = vld [vmem:[%s9498_s7 + $0xa4] sm:$0xf]  ;;  %v456_v22 = vld [vmem:[%s9498_s7 + $0xbc] sm:$0xff]  }
  0x31   :  { %v452_v20 = vld [vmem:[%s9498_s7 + $0xb8] sm:$0xf]  ;;  %447 = vst [vmem:[#allocation3 + $0xa8] sm:$0xf] %v446_v18  ;;  %449 = vst [vmem:[#allocation3 + $0xac] sm:$0xff] %v448_v19   ;;  %v464_v25 = vld [vmem:[%s9498_s7 + $0xcc] sm:$0xff]  }
  0x32   :  { %453 = vst [vmem:[#allocation3 + $0xb4] sm:$0xf] %v452_v20  ;;  %v454_v21 = vld [vmem:[%s9498_s7 + $0xb4] sm:$0xf]  ;;  %v460_v23 = vld [vmem:[%s9498_s7 + $0xc8] sm:$0xf] }
  0x33   :  { %455 = vst [vmem:[#allocation3 + $0xb8] sm:$0xf] %v454_v21  ;;  %457 = vst [vmem:[#allocation3 + $0xbc] sm:$0xff] %v456_v22   ;;  %v462_v24 = vld [vmem:[%s9498_s7 + $0xc4] sm:$0xf]  ;;  %v472_v28 = vld [vmem:[%s9498_s7 + $0xdc] sm:$0xff]  }
  0x34   :  { %461 = vst [vmem:[#allocation3 + $0xc4] sm:$0xf] %v460_v23  ;;  %v468_v26 = vld [vmem:[%s9498_s7 + $0xd8] sm:$0xf]  ;;  %463 = vst [vmem:[#allocation3 + $0xc8] sm:$0xf] %v462_v24 }
  0x35   :  { %465 = vst [vmem:[#allocation3 + $0xcc] sm:$0xff] %v464_v25   ;;  %469 = vst [vmem:[#allocation3 + $0xd4] sm:$0xf] %v468_v26  ;;  %v470_v27 = vld [vmem:[%s9498_s7 + $0xd4] sm:$0xf]  ;;  %v480_v31 = vld [vmem:[%s9498_s7 + $0xec] sm:$0xff]  }
  0x36   :  { %v476_v29 = vld [vmem:[%s9498_s7 + $0xe8] sm:$0xf]  ;;  %471 = vst [vmem:[#allocation3 + $0xd8] sm:$0xf] %v470_v27  ;;  %473 = vst [vmem:[#allocation3 + $0xdc] sm:$0xff] %v472_v28  }
  0x37   :  { %477 = vst [vmem:[#allocation3 + $0xe4] sm:$0xf] %v476_v29  ;;  %v478_v30 = vld [vmem:[%s9498_s7 + $0xe4] sm:$0xf]  ;;  %v484_v32 = vld [vmem:[%s9498_s7 + $0xf8] sm:$0xf] }
  0x38   :  { %479 = vst [vmem:[#allocation3 + $0xe8] sm:$0xf] %v478_v30  ;;  %481 = vst [vmem:[#allocation3 + $0xec] sm:$0xff] %v480_v31   ;;  %v486_v33 = vld [vmem:[%s9498_s7 + $0xf4] sm:$0xf] }
  0x39   :  { %485 = vst [vmem:[#allocation3 + $0xf4] sm:$0xf] %v484_v32  ;;  %v488_v34 = vld [vmem:[%s9498_s7 + $0xfc] sm:$0xf]  ;;  %487 = vst [vmem:[#allocation3 + $0xf8] sm:$0xf] %v486_v33 }
  0x3a   :  { %489 = vst [vmem:[#allocation3 + $0xfc] sm:$0xf] %v488_v34 }
  0x3b   :  { %648 = vsyncadd [#allocation5 + $0x1], 4096  ;;  %v667_v35 = vld [vmem:[%s9500_s9] sm:$0xf]  ;;  %v669_v36 = vld [vmem:[%s9500_s9 + $0x8] sm:$0xf] }
  0x3c   :  { %668 = vst [vmem:[#allocation4] sm:$0xf] %v667_v35  ;;  %670 = vst [vmem:[#allocation4 + $0x4] sm:$0xf] %v669_v36  ;;  %v671_v37 = vld [vmem:[%s9500_s9 + $0x4] sm:$0xf] }
  0x3d   :  { %v673_v38 = vld [vmem:[%s9500_s9 + $0xc] sm:$0xff]   ;;  %v677_v39 = vld [vmem:[%s9500_s9 + $0x18] sm:$0xf]  ;;  %672 = vst [vmem:[#allocation4 + $0x8] sm:$0xf] %v671_v37  ;;  %v681_v41 = vld [vmem:[%s9500_s9 + $0x1c] sm:$0xff]  }
  0x3e   :  { %674 = vst [vmem:[#allocation4 + $0xc] sm:$0xff] %v673_v38   ;;  %678 = vst [vmem:[#allocation4 + $0x14] sm:$0xf] %v677_v39  ;;  %v679_v40 = vld [vmem:[%s9500_s9 + $0x14] sm:$0xf]  ;;  %v689_v44 = vld [vmem:[%s9500_s9 + $0x2c] sm:$0xff]  }
  0x3f   :  { %v685_v42 = vld [vmem:[%s9500_s9 + $0x28] sm:$0xf]  ;;  %680 = vst [vmem:[#allocation4 + $0x18] sm:$0xf] %v679_v40  ;;  %682 = vst [vmem:[#allocation4 + $0x1c] sm:$0xff] %v681_v41   ;;  %v697_v47 = vld [vmem:[%s9500_s9 + $0x3c] sm:$0xff]  }
  0x40   :  { %686 = vst [vmem:[#allocation4 + $0x24] sm:$0xf] %v685_v42  ;;  %v687_v43 = vld [vmem:[%s9500_s9 + $0x24] sm:$0xf]  ;;  %v693_v45 = vld [vmem:[%s9500_s9 + $0x38] sm:$0xf] }
  0x41   :  { %688 = vst [vmem:[#allocation4 + $0x28] sm:$0xf] %v687_v43  ;;  %690 = vst [vmem:[#allocation4 + $0x2c] sm:$0xff] %v689_v44   ;;  %v695_v46 = vld [vmem:[%s9500_s9 + $0x34] sm:$0xf]  ;;  %v705_v50 = vld [vmem:[%s9500_s9 + $0x4c] sm:$0xff]  }
  0x42   :  { %694 = vst [vmem:[#allocation4 + $0x34] sm:$0xf] %v693_v45  ;;  %v701_v48 = vld [vmem:[%s9500_s9 + $0x48] sm:$0xf]  ;;  %696 = vst [vmem:[#allocation4 + $0x38] sm:$0xf] %v695_v46 }
  0x43   :  { %698 = vst [vmem:[#allocation4 + $0x3c] sm:$0xff] %v697_v47   ;;  %702 = vst [vmem:[#allocation4 + $0x44] sm:$0xf] %v701_v48  ;;  %v703_v49 = vld [vmem:[%s9500_s9 + $0x44] sm:$0xf]  ;;  %v713_v53 = vld [vmem:[%s9500_s9 + $0x5c] sm:$0xff]  }
  0x44   :  { %v709_v51 = vld [vmem:[%s9500_s9 + $0x58] sm:$0xf]  ;;  %704 = vst [vmem:[#allocation4 + $0x48] sm:$0xf] %v703_v49  ;;  %706 = vst [vmem:[#allocation4 + $0x4c] sm:$0xff] %v705_v50   ;;  %v721_v56 = vld [vmem:[%s9500_s9 + $0x6c] sm:$0xff]  }
  0x45   :  { %710 = vst [vmem:[#allocation4 + $0x54] sm:$0xf] %v709_v51  ;;  %v711_v52 = vld [vmem:[%s9500_s9 + $0x54] sm:$0xf]  ;;  %v717_v54 = vld [vmem:[%s9500_s9 + $0x68] sm:$0xf] }
  0x46   :  { %712 = vst [vmem:[#allocation4 + $0x58] sm:$0xf] %v711_v52  ;;  %714 = vst [vmem:[#allocation4 + $0x5c] sm:$0xff] %v713_v53   ;;  %v719_v55 = vld [vmem:[%s9500_s9 + $0x64] sm:$0xf]  ;;  %v729_v59 = vld [vmem:[%s9500_s9 + $0x7c] sm:$0xff]  }
  0x47   :  { %718 = vst [vmem:[#allocation4 + $0x64] sm:$0xf] %v717_v54  ;;  %v725_v57 = vld [vmem:[%s9500_s9 + $0x78] sm:$0xf]  ;;  %720 = vst [vmem:[#allocation4 + $0x68] sm:$0xf] %v719_v55 }
  0x48   :  { %722 = vst [vmem:[#allocation4 + $0x6c] sm:$0xff] %v721_v56   ;;  %726 = vst [vmem:[#allocation4 + $0x74] sm:$0xf] %v725_v57  ;;  %v727_v58 = vld [vmem:[%s9500_s9 + $0x74] sm:$0xf]  ;;  %v737_v62 = vld [vmem:[%s9500_s9 + $0x8c] sm:$0xff]  }
  0x49   :  { %v733_v60 = vld [vmem:[%s9500_s9 + $0x88] sm:$0xf]  ;;  %728 = vst [vmem:[#allocation4 + $0x78] sm:$0xf] %v727_v58  ;;  %730 = vst [vmem:[#allocation4 + $0x7c] sm:$0xff] %v729_v59   ;;  %v745_v1 = vld [vmem:[%s9500_s9 + $0x9c] sm:$0xff]  }
  0x4a   :  { %734 = vst [vmem:[#allocation4 + $0x84] sm:$0xf] %v733_v60  ;;  %v735_v61 = vld [vmem:[%s9500_s9 + $0x84] sm:$0xf]  ;;  %v741_v63 = vld [vmem:[%s9500_s9 + $0x98] sm:$0xf] }
  0x4b   :  { %736 = vst [vmem:[#allocation4 + $0x88] sm:$0xf] %v735_v61  ;;  %738 = vst [vmem:[#allocation4 + $0x8c] sm:$0xff] %v737_v62   ;;  %v743_v0 = vld [vmem:[%s9500_s9 + $0x94] sm:$0xf]  ;;  %v753_v4 = vld [vmem:[%s9500_s9 + $0xac] sm:$0xff]  }
  0x4c   :  { %742 = vst [vmem:[#allocation4 + $0x94] sm:$0xf] %v741_v63  ;;  %v749_v2 = vld [vmem:[%s9500_s9 + $0xa8] sm:$0xf]  ;;  %744 = vst [vmem:[#allocation4 + $0x98] sm:$0xf] %v743_v0 }
  0x4d   :  { %746 = vst [vmem:[#allocation4 + $0x9c] sm:$0xff] %v745_v1   ;;  %750 = vst [vmem:[#allocation4 + $0xa4] sm:$0xf] %v749_v2  ;;  %v751_v3 = vld [vmem:[%s9500_s9 + $0xa4] sm:$0xf]  ;;  %v761_v7 = vld [vmem:[%s9500_s9 + $0xbc] sm:$0xff]  }
  0x4e   :  { %v757_v5 = vld [vmem:[%s9500_s9 + $0xb8] sm:$0xf]  ;;  %752 = vst [vmem:[#allocation4 + $0xa8] sm:$0xf] %v751_v3  ;;  %754 = vst [vmem:[#allocation4 + $0xac] sm:$0xff] %v753_v4   ;;  %v769_v10 = vld [vmem:[%s9500_s9 + $0xcc] sm:$0xff]  }
  0x4f   :  { %758 = vst [vmem:[#allocation4 + $0xb4] sm:$0xf] %v757_v5  ;;  %v759_v6 = vld [vmem:[%s9500_s9 + $0xb4] sm:$0xf]  ;;  %v765_v8 = vld [vmem:[%s9500_s9 + $0xc8] sm:$0xf] }
  0x50   :  { %760 = vst [vmem:[#allocation4 + $0xb8] sm:$0xf] %v759_v6  ;;  %762 = vst [vmem:[#allocation4 + $0xbc] sm:$0xff] %v761_v7   ;;  %v767_v9 = vld [vmem:[%s9500_s9 + $0xc4] sm:$0xf]  ;;  %v777_v13 = vld [vmem:[%s9500_s9 + $0xdc] sm:$0xff]  }
  0x51   :  { %766 = vst [vmem:[#allocation4 + $0xc4] sm:$0xf] %v765_v8  ;;  %v773_v11 = vld [vmem:[%s9500_s9 + $0xd8] sm:$0xf]  ;;  %768 = vst [vmem:[#allocation4 + $0xc8] sm:$0xf] %v767_v9 }
  0x52   :  { %770 = vst [vmem:[#allocation4 + $0xcc] sm:$0xff] %v769_v10   ;;  %774 = vst [vmem:[#allocation4 + $0xd4] sm:$0xf] %v773_v11  ;;  %v775_v12 = vld [vmem:[%s9500_s9 + $0xd4] sm:$0xf]  ;;  %v785_v16 = vld [vmem:[%s9500_s9 + $0xec] sm:$0xff]  }
  0x53   :  { %v781_v14 = vld [vmem:[%s9500_s9 + $0xe8] sm:$0xf]  ;;  %776 = vst [vmem:[#allocation4 + $0xd8] sm:$0xf] %v775_v12  ;;  %778 = vst [vmem:[#allocation4 + $0xdc] sm:$0xff] %v777_v13   ;;  %v1296_v20 = vld [vmem:[%s9494_s2] sm:$0xff] }
  0x54   :  { %782 = vst [vmem:[#allocation4 + $0xe4] sm:$0xf] %v781_v14  ;;  %v783_v15 = vld [vmem:[%s9500_s9 + $0xe4] sm:$0xf]  ;;  %v789_v17 = vld [vmem:[%s9500_s9 + $0xf8] sm:$0xf] }
  0x55   :  { %784 = vst [vmem:[#allocation4 + $0xe8] sm:$0xf] %v783_v15  ;;  %786 = vst [vmem:[#allocation4 + $0xec] sm:$0xff] %v785_v16   ;;  %v791_v18 = vld [vmem:[%s9500_s9 + $0xf4] sm:$0xf]  ;;  %v955_v21 = vld [vmem:[%s9493_s1] sm:$0xff] }
  0x56   :  { %790 = vst [vmem:[#allocation4 + $0xf4] sm:$0xf] %v789_v17  ;;  %v793_v19 = vld [vmem:[%s9500_s9 + $0xfc] sm:$0xf]  ;;  %792 = vst [vmem:[#allocation4 + $0xf8] sm:$0xf] %v791_v18 }
  0x57   :  { %794 = vst [vmem:[#allocation4 + $0xfc] sm:$0xf] %v793_v19  ;;  %v9508_v22 = vmov 0   ;;  %v1297_v23 = vld [vmem:[%s9494_s2 + $0x8] sm:$0xff]  ;;  %v958_v25 = vld [vmem:[%s9493_s1 + $0x18] sm:$0xff]  ;;  %v957_v26 = vld [vmem:[%s9493_s1 + $0x10] sm:$0xff] }
  0x58   :  { %5740 = vset.pattern.permute.xlu1 %v9508_v22  ;;  %5739 = vset.pattern.permute.xlu0 %v9508_v22  ;;  %v956_v24 = vld [vmem:[%s9493_s1 + $0x8] sm:$0xff]  ;;  %v1299_v27 = vld [vmem:[%s9494_s2 + $0x18] sm:$0xff]  ;;  %v1298_v28 = vld [vmem:[%s9494_s2 + $0x10] sm:$0xff] }
  0x59   :  { %1330 = vperm.xlu1 %5740, %v1296_v20   ;;  %989 = vperm.xlu0 %5739, %v955_v21   ;;  %v960_v29 = vld [vmem:[%s9493_s1 + $0x28] sm:$0xff]  ;;  %v959_v30 = vld [vmem:[%s9493_s1 + $0x20] sm:$0xff]  ;;  %v962_v33 = vld [vmem:[%s9493_s1 + $0x38] sm:$0xff] }
  0x5a   :  { %v1301_v31 = vld [vmem:[%s9494_s2 + $0x28] sm:$0xff]  ;;  %v1300_v32 = vld [vmem:[%s9494_s2 + $0x20] sm:$0xff]  ;;  %v961_v34 = vld [vmem:[%s9493_s1 + $0x30] sm:$0xff] }
  0x5d   :  { %1335 = vperm.xlu1 %5740, %v1297_v23   ;;  %994 = vperm.xlu0 %5739, %v956_v24  }
  0x61   :  { %1004 = vperm.xlu1 %5740, %v958_v25   ;;  %999 = vperm.xlu0 %5739, %v957_v26  }
  0x65   :  { %1345 = vperm.xlu1 %5740, %v1299_v27   ;;  %1340 = vperm.xlu0 %5739, %v1298_v28  }
  0x69   :  { %1014 = vperm.xlu1 %5740, %v960_v29   ;;  %1009 = vperm.xlu0 %5739, %v959_v30  }
  0x6d   :  { %1355 = vperm.xlu1 %5740, %v1301_v31   ;;  %1350 = vperm.xlu0 %5739, %v1300_v32  }
  0x6e   :  { %953 = vsyncadd [#allocation5 + $0x2], 4096  ;;  %v1303_v35 = vld [vmem:[%s9494_s2 + $0x38] sm:$0xff]  ;;  %v1302_v36 = vld [vmem:[%s9494_s2 + $0x30] sm:$0xff]  ;;  %v9506_v15 = vlaneseq }
  0x6f   :  { %v964_v37 = vld [vmem:[%s9493_s1 + $0x48] sm:$0xff]  ;;  %v963_v38 = vld [vmem:[%s9493_s1 + $0x40] sm:$0xff]  ;;  %v966_v41 = vld [vmem:[%s9493_s1 + $0x58] sm:$0xff] }
  0x70   :  { %v1305_v39 = vld [vmem:[%s9494_s2 + $0x48] sm:$0xff]  ;;  %v1304_v40 = vld [vmem:[%s9494_s2 + $0x40] sm:$0xff]  ;;  %v965_v42 = vld [vmem:[%s9493_s1 + $0x50] sm:$0xff]  ;;  %v6500_v18 = vshrl.u32 %v9506_v15, 7 }
  0x71   :  { %1024 = vperm.xlu1 %5740, %v962_v33   ;;  %1019 = vperm.xlu0 %5739, %v961_v34   ;;  %v1307_v43 = vld [vmem:[%s9494_s2 + $0x58] sm:$0xff]  ;;  %v1306_v44 = vld [vmem:[%s9494_s2 + $0x50] sm:$0xff]  ;;  %v968_v45 = vld [vmem:[%s9493_s1 + $0x68] sm:$0xff] }
  0x72   :  { %v967_v46 = vld [vmem:[%s9493_s1 + $0x60] sm:$0xff]  ;;  %v1309_v47 = vld [vmem:[%s9494_s2 + $0x68] sm:$0xff]  ;;  %v970_v49 = vld [vmem:[%s9493_s1 + $0x78] sm:$0xff]  ;;  %9742 = vst [vmem:[#allocation13_spill] sm:$0xff] %v6500_v18  ;;  %v9507_v21 = vsub.s32 0, %v6500_v18  ;;  %v1158_v23 = vsub.s32 2, %v6500_v18 }
  0x73   :  { %v1308_v48 = vld [vmem:[%s9494_s2 + $0x60] sm:$0xff]  ;;  %v969_v50 = vld [vmem:[%s9493_s1 + $0x70] sm:$0xff]  ;;  %v1311_v51 = vld [vmem:[%s9494_s2 + $0x78] sm:$0xff]  ;;  %v1154_v24 = vsub.s32 1, %v6500_v18  ;;  %v1162_v28 = vsub.s32 3, %v6500_v18 }
  0x74   :  { %v1310_v52 = vld [vmem:[%s9494_s2 + $0x70] sm:$0xff]  ;;  %v972_v53 = vld [vmem:[%s9493_s1 + $0x88] sm:$0xff]  ;;  %v971_v54 = vld [vmem:[%s9493_s1 + $0x80] sm:$0xff] }
  0x75   :  { %1365 = vperm.xlu1 %5740, %v1303_v35   ;;  %1360 = vperm.xlu0 %5739, %v1302_v36   ;;  %v1313_v55 = vld [vmem:[%s9494_s2 + $0x88] sm:$0xff]  ;;  %v1312_v56 = vld [vmem:[%s9494_s2 + $0x80] sm:$0xff]  ;;  %v974_v57 = vld [vmem:[%s9493_s1 + $0x98] sm:$0xff] }
  0x76   :  { %v973_v58 = vld [vmem:[%s9493_s1 + $0x90] sm:$0xff]  ;;  %v1315_v59 = vld [vmem:[%s9494_s2 + $0x98] sm:$0xff]  ;;  %v976_v61 = vld [vmem:[%s9493_s1 + $0xa8] sm:$0xff] }
  0x77   :  { %v1314_v60 = vld [vmem:[%s9494_s2 + $0x90] sm:$0xff]  ;;  %v975_v62 = vld [vmem:[%s9493_s1 + $0xa0] sm:$0xff]  ;;  %v1317_v63 = vld [vmem:[%s9494_s2 + $0xa8] sm:$0xff] }
  0x78   :  { %v1316_v0 = vld [vmem:[%s9494_s2 + $0xa0] sm:$0xff]  ;;  %v978_v1 = vld [vmem:[%s9493_s1 + $0xb8] sm:$0xff]  ;;  %v977_v2 = vld [vmem:[%s9493_s1 + $0xb0] sm:$0xff] }
  0x79   :  { %1034 = vperm.xlu1 %5740, %v964_v37   ;;  %1029 = vperm.xlu0 %5739, %v963_v38   ;;  %v1319_v3 = vld [vmem:[%s9494_s2 + $0xb8] sm:$0xff]  ;;  %v1318_v4 = vld [vmem:[%s9494_s2 + $0xb0] sm:$0xff]  ;;  %v980_v5 = vld [vmem:[%s9493_s1 + $0xc8] sm:$0xff] }
  0x7a   :  { %v979_v6 = vld [vmem:[%s9493_s1 + $0xc0] sm:$0xff]  ;;  %v1321_v7 = vld [vmem:[%s9494_s2 + $0xc8] sm:$0xff]  ;;  %v982_v9 = vld [vmem:[%s9493_s1 + $0xd8] sm:$0xff] }
  0x7b   :  { %v1320_v8 = vld [vmem:[%s9494_s2 + $0xc0] sm:$0xff]  ;;  %v981_v10 = vld [vmem:[%s9493_s1 + $0xd0] sm:$0xff]  ;;  %v1323_v11 = vld [vmem:[%s9494_s2 + $0xd8] sm:$0xff] }
  0x7c   :  { %v1322_v12 = vld [vmem:[%s9494_s2 + $0xd0] sm:$0xff]  ;;  %v984_v13 = vld [vmem:[%s9493_s1 + $0xe8] sm:$0xff]  ;;  %v983_v14 = vld [vmem:[%s9493_s1 + $0xe0] sm:$0xff] }
  0x7d   :  { %1375 = vperm.xlu1 %5740, %v1305_v39   ;;  %1370 = vperm.xlu0 %5739, %v1304_v40   ;;  %v1325_v16 = vld [vmem:[%s9494_s2 + $0xe8] sm:$0xff]  ;;  %v1324_v17 = vld [vmem:[%s9494_s2 + $0xe0] sm:$0xff]  ;;  %v986_v19 = vld [vmem:[%s9493_s1 + $0xf8] sm:$0xff] }
  0x7e   :  { %v985_v20 = vld [vmem:[%s9493_s1 + $0xf0] sm:$0xff]  ;;  %v1327_v25 = vld [vmem:[%s9494_s2 + $0xf8] sm:$0xff]  ;;  %v954_v27 = vld [vmem:[%s9492_s0] sm:$0xf] }
  0x7f   :  { %v1326_v26 = vld [vmem:[%s9494_s2 + $0xf0] sm:$0xff]  ;;  %v6523_v29 = vrot.slane %v954_v27, %v9507_v21  ;;  %v6525_v30 = vrot.slane %v954_v27, %v1158_v23  ;;  %v6527_v31 = vrot.slane %v954_v27, %v1154_v24  ;;  %v1841_v32 = vld [vmem:[%s9496_s4 + $0x8] sm:$0xff]  ;;  %v1840_v33 = vld [vmem:[%s9496_s4] sm:$0xff]  ;;  %v6535_v34 = vrot.slane %v954_v27, %v1162_v28 }
  0x80   :  { %v1843_v40 = vld [vmem:[%s9496_s4 + $0x18] sm:$0xff] }
  0x81   :  { %1044 = vperm.xlu1 %5740, %v966_v41   ;;  %1039 = vperm.xlu0 %5739, %v965_v42   ;;  %v1842_v41 = vld [vmem:[%s9496_s4 + $0x10] sm:$0xff] }
  0x85   :  { %1385 = vperm.xlu1 %5740, %v1307_v43   ;;  %1380 = vperm.xlu0 %5739, %v1306_v44  }
  0x89   :  { %1054 = vperm.xlu1 %5740, %v968_v45   ;;  %1049 = vperm.xlu0 %5739, %v967_v46  }
  0x8d   :  { %1395 = vperm.xlu1 %5740, %v1309_v47   ;;  %1390 = vperm.xlu0 %5739, %v1308_v48  }
  0x91   :  { %1064 = vperm.xlu1 %5740, %v970_v49   ;;  %1059 = vperm.xlu0 %5739, %v969_v50  }
  0x95   :  { %1405 = vperm.xlu1 %5740, %v1311_v51   ;;  %1400 = vperm.xlu0 %5739, %v1310_v52   ;;  %v1845_v52 = vld [vmem:[%s9496_s4 + $0x28] sm:$0xff] }
  0x99   :  { %1074 = vperm.xlu1 %5740, %v972_v53   ;;  %1069 = vperm.xlu0 %5739, %v971_v54   ;;  %v1844_v54 = vld [vmem:[%s9496_s4 + $0x20] sm:$0xff] }
  0x9d   :  { %1415 = vperm.xlu1 %5740, %v1313_v55   ;;  %1410 = vperm.xlu0 %5739, %v1312_v56  }
  0xa1   :  { %1084 = vperm.xlu1 %5740, %v974_v57   ;;  %1079 = vperm.xlu0 %5739, %v973_v58   ;;  %v5743_v58 = vld [vmem:[%s9495_s3 + $0x4] ss:$8 sps:$4 sm:$0xff]  }
  0xa2   :  { %2224 = vmatprep.mubr.bf16.mxu0 %v5743_v58  ;;  %2417 = vmatprep.mubr.bf16.mxu1 %v5743_v58 }
  0xa5   :  { %1425 = vperm.xlu1 %5740, %v1315_v59   ;;  %1420 = vperm.xlu0 %5739, %v1314_v60  }
  0xa9   :  { %1094 = vperm.xlu1 %5740, %v976_v61   ;;  %1089 = vperm.xlu0 %5739, %v975_v62  }
  0xad   :  { %1435 = vperm.xlu1 %5740, %v1317_v63   ;;  %1430 = vperm.xlu0 %5739, %v1316_v0  }
  0xb1   :  { %1104 = vperm.xlu1 %5740, %v978_v1   ;;  %1099 = vperm.xlu0 %5739, %v977_v2  }
  0xb5   :  { %1445 = vperm.xlu1 %5740, %v1319_v3   ;;  %1440 = vperm.xlu0 %5739, %v1318_v4  }
  0xb9   :  { %1114 = vperm.xlu1 %5740, %v980_v5   ;;  %1109 = vperm.xlu0 %5739, %v979_v6   ;;  %v1847_v6 = vld [vmem:[%s9496_s4 + $0x38] sm:$0xff] }
  0xbd   :  { %1455 = vperm.xlu1 %5740, %v1321_v7   ;;  %1450 = vperm.xlu0 %5739, %v1320_v8   ;;  %v1846_v7 = vld [vmem:[%s9496_s4 + $0x30] sm:$0xff] }
  0xc1   :  { %1124 = vperm.xlu1 %5740, %v982_v9   ;;  %1119 = vperm.xlu0 %5739, %v981_v10  }
  0xc5   :  { %1465 = vperm.xlu1 %5740, %v1323_v11   ;;  %1460 = vperm.xlu0 %5739, %v1322_v12  }
  0xc9   :  { %1134 = vperm.xlu1 %5740, %v984_v13   ;;  %1129 = vperm.xlu0 %5739, %v983_v14  }
  0xcd   :  { %1475 = vperm.xlu1 %5740, %v1325_v16   ;;  %1470 = vperm.xlu0 %5739, %v1324_v17  }
  0xd1   :  { %1144 = vperm.xlu1 %5740, %v986_v19   ;;  %1139 = vperm.xlu0 %5739, %v985_v20  }
  0xd5   :  { %1485 = vperm.xlu1 %5740, %v1327_v25   ;;  %1480 = vperm.xlu0 %5739, %v1326_v26  }
  0xd8   :  { %v1331_v35 = vpop.permute.xlu1 %1330  ;;  %v990_v36 = vpop.permute.xlu0 %989 }
  0xd9   :  { %v1168_v37 = vmul.f32 %v6523_v29, %v990_v36  ;;  %v1170_v38 = vmul.f32 %v6525_v30, %v990_v36  ;;  %1879 = vperm.xlu1 %5740, %v1841_v32   ;;  %1874 = vperm.xlu0 %5739, %v1840_v33   ;;  %v1169_v39 = vmul.f32 %v6527_v31, %v990_v36 }
  0xda   :  { %v1171_v42 = vmul.f32 %v6535_v34, %v990_v36 }
  0xdb   :  { %v1489_v45 = vadd.f32 %v1331_v35, %v1169_v39  ;;  %v1488_v47 = vadd.f32 %v1331_v35, %v1168_v37  ;;  %v1490_v48 = vadd.f32 %v1331_v35, %v1170_v38 }
  0xdc   :  { %v1336_v43 = vpop.permute.xlu1 %1335  ;;  %v995_v44 = vpop.permute.xlu0 %994  ;;  %v1491_v46 = vadd.f32 %v1331_v35, %v1171_v42 }
  0xdd   :  { %v1172_v49 = vmul.f32 %v6523_v29, %v995_v44  ;;  %v1174_v50 = vmul.f32 %v6525_v30, %v995_v44  ;;  %1889 = vperm.xlu1 %5740, %v1843_v40   ;;  %1884 = vperm.xlu0 %5739, %v1842_v41   ;;  %v1173_v51 = vmul.f32 %v6527_v31, %v995_v44  ;;  %v1617_v62 = vmax.f32 %v1489_v45, 0.0  ;;  %v1849_v40 = vld [vmem:[%s9496_s4 + $0x48] sm:$0xff]  ;;  %v1848_v41 = vld [vmem:[%s9496_s4 + $0x40] sm:$0xff] }
  0xde   :  { %v1175_v53 = vmul.f32 %v6535_v34, %v995_v44  ;;  %v1619_v63 = vmax.f32 %v1491_v46, 0.0  ;;  %v1616_v0 = vmax.f32 %v1488_v47, 0.0  ;;  %v1618_v1 = vmax.f32 %v1490_v48, 0.0 }
  0xdf   :  { %v1493_v55 = vadd.f32 %v1336_v43, %v1173_v51  ;;  %v1492_v56 = vadd.f32 %v1336_v43, %v1172_v49  ;;  %v1494_v57 = vadd.f32 %v1336_v43, %v1174_v50 }
  0xe0   :  { %v1005_v59 = vpop.permute.xlu1 %1004  ;;  %v1000_v60 = vpop.permute.xlu0 %999  ;;  %v1495_v61 = vadd.f32 %v1336_v43, %v1175_v53 }
  0xe1   :  { %1899 = vperm.xlu1 %5740, %v1845_v52   ;;  %v1180_v2 = vmul.f32 %v6523_v29, %v1005_v59  ;;  %v1181_v3 = vmul.f32 %v6527_v31, %v1005_v59  ;;  %v1182_v4 = vmul.f32 %v6525_v30, %v1005_v59  ;;  %v1183_v5 = vmul.f32 %v6535_v34, %v1005_v59 }
  0xe2   :  { %1894 = vperm.xlu0 %5739, %v1844_v54   ;;  %v1621_v8 = vmax.f32 %v1493_v55, 0.0  ;;  %v1623_v9 = vmax.f32 %v1495_v61, 0.0  ;;  %v1620_v10 = vmax.f32 %v1492_v56, 0.0  ;;  %v1622_v11 = vmax.f32 %v1494_v57, 0.0 }
  0xe3   :  { %v1176_v12 = vmul.f32 %v6523_v29, %v1000_v60  ;;  %v1177_v13 = vmul.f32 %v6527_v31, %v1000_v60  ;;  %v1178_v14 = vmul.f32 %v6525_v30, %v1000_v60  ;;  %v1179_v16 = vmul.f32 %v6535_v34, %v1000_v60 }
  0xe4   :  { %v1346_v17 = vpop.permute.xlu1 %1345  ;;  %v1341_v19 = vpop.permute.xlu0 %1340  ;;  %v1777_v33 = vpack.c.bf16 %v1621_v8, %v1617_v62  ;;  %v1779_v35 = vpack.c.bf16 %v1623_v9, %v1619_v63  ;;  %v1776_v36 = vpack.c.bf16 %v1620_v10, %v1616_v0  ;;  %v1778_v37 = vpack.c.bf16 %v1622_v11, %v1618_v1  ;;  %v1851_v63 = vld [vmem:[%s9496_s4 + $0x58] sm:$0xff] }
  0xe5   :  { %v1500_v20 = vadd.f32 %v1346_v17, %v1180_v2  ;;  %v1501_v23 = vadd.f32 %v1346_v17, %v1181_v3  ;;  %v1502_v24 = vadd.f32 %v1346_v17, %v1182_v4  ;;  %v1503_v25 = vadd.f32 %v1346_v17, %v1183_v5  ;;  %1909 = vperm.xlu1 %5740, %v1847_v6   ;;  %v1850_v4 = vld [vmem:[%s9496_s4 + $0x50] sm:$0xff] }
  0xe6   :  { %v1496_v26 = vadd.f32 %v1341_v19, %v1176_v12  ;;  %v1497_v27 = vadd.f32 %v1341_v19, %v1177_v13  ;;  %v1498_v28 = vadd.f32 %v1341_v19, %v1178_v14  ;;  %v1499_v32 = vadd.f32 %v1341_v19, %v1179_v16  ;;  %1904 = vperm.xlu0 %5739, %v1846_v7   ;;  %v1853_v16 = vld [vmem:[%s9496_s4 + $0x68] sm:$0xff] }
  0xe7   :  { %v1629_v43 = vmax.f32 %v1501_v23, 0.0  ;;  %v1631_v45 = vmax.f32 %v1503_v25, 0.0  ;;  %2192 = vmatprep.subr.bf16.mxu0 %v1777_v33  ;;  %2385 = vmatprep.subr.bf16.mxu1 %v1779_v35  ;;  %v1628_v52 = vmax.f32 %v1500_v20, 0.0  ;;  %v1630_v62 = vmax.f32 %v1502_v24, 0.0  ;;  %v1852_v23 = vld [vmem:[%s9496_s4 + $0x60] sm:$0xff] }
  0xe8   :  { %v1015_v38 = vpop.permute.xlu1 %1014  ;;  %v1010_v39 = vpop.permute.xlu0 %1009  ;;  %v1625_v42 = vmax.f32 %v1497_v27, 0.0  ;;  %v1627_v44 = vmax.f32 %v1499_v32, 0.0  ;;  %v1624_v48 = vmax.f32 %v1496_v26, 0.0  ;;  %2193 = vmatpush1.bf16.msra.mxu0 %v1776_v36  ;;  %2386 = vmatpush1.bf16.msra.mxu1 %v1778_v37  ;;  %v1626_v56 = vmax.f32 %v1498_v28, 0.0 }
  0xe9   :  { %v1188_v46 = vmul.f32 %v6523_v29, %v1015_v38  ;;  %v1189_v47 = vmul.f32 %v6527_v31, %v1015_v38  ;;  %v1190_v49 = vmul.f32 %v6525_v30, %v1015_v38  ;;  %v1191_v50 = vmul.f32 %v6535_v34, %v1015_v38  ;;  %1919 = vperm.xlu1 %5740, %v1849_v40  }
  0xea   :  { %v1184_v51 = vmul.f32 %v6523_v29, %v1010_v39  ;;  %v1185_v53 = vmul.f32 %v6527_v31, %v1010_v39  ;;  %v1186_v54 = vmul.f32 %v6525_v30, %v1010_v39  ;;  %1914 = vperm.xlu0 %5739, %v1848_v41   ;;  %v1781_v55 = vpack.c.bf16 %v1629_v43, %v1625_v42  ;;  %v1855_v43 = vld [vmem:[%s9496_s4 + $0x78] sm:$0xff] }
  0xeb   :  { %v1187_v57 = vmul.f32 %v6535_v34, %v1010_v39  ;;  %v1783_v58 = vpack.c.bf16 %v1631_v45, %v1627_v44  ;;  %v1780_v61 = vpack.c.bf16 %v1628_v52, %v1624_v48  ;;  %v1782_v9 = vpack.c.bf16 %v1630_v62, %v1626_v56 }
  0xec   :  { %v1356_v59 = vpop.permute.xlu1 %1355  ;;  %v1351_v60 = vpop.permute.xlu0 %1350  ;;  %2194 = vmatprep.subr.bf16.mxu0 %v1781_v55 }
  0xed   :  { %v1508_v0 = vadd.f32 %v1356_v59, %v1188_v46  ;;  %v1509_v1 = vadd.f32 %v1356_v59, %v1189_v47  ;;  %v1510_v2 = vadd.f32 %v1356_v59, %v1190_v49  ;;  %v1511_v3 = vadd.f32 %v1356_v59, %v1191_v50  ;;  %2387 = vmatprep.subr.bf16.mxu1 %v1783_v58  ;;  %v1854_v47 = vld [vmem:[%s9496_s4 + $0x70] sm:$0xff]  ;;  %v1857_v58 = vld [vmem:[%s9496_s4 + $0x88] sm:$0xff] }
  0xee   :  { %v1504_v5 = vadd.f32 %v1351_v60, %v1184_v51  ;;  %v1505_v6 = vadd.f32 %v1351_v60, %v1185_v53  ;;  %v1506_v7 = vadd.f32 %v1351_v60, %v1186_v54  ;;  %v1507_v8 = vadd.f32 %v1351_v60, %v1187_v57  ;;  %2195 = vmatpush1.bf16.msra.mxu0 %v1780_v61  ;;  %v1856_v61 = vld [vmem:[%s9496_s4 + $0x80] sm:$0xff] }
  0xef   :  { %1929 = vperm.xlu1 %5740, %v1851_v63   ;;  %v1637_v10 = vmax.f32 %v1509_v1, 0.0  ;;  %v1639_v11 = vmax.f32 %v1511_v3, 0.0  ;;  %v1636_v12 = vmax.f32 %v1508_v0, 0.0  ;;  %1924 = vperm.xlu0 %5739, %v1850_v4   ;;  %v1638_v36 = vmax.f32 %v1510_v2, 0.0 }
  0xf0   :  { %v1025_v13 = vpop.permute.xlu1 %1024  ;;  %v1020_v14 = vpop.permute.xlu0 %1019  ;;  %v1633_v17 = vmax.f32 %v1505_v6, 0.0  ;;  %v1635_v19 = vmax.f32 %v1507_v8, 0.0  ;;  %v1632_v20 = vmax.f32 %v1504_v5, 0.0  ;;  %2388 = vmatpush1.bf16.msra.mxu1 %v1782_v9  ;;  %v1634_v24 = vmax.f32 %v1506_v7, 0.0 }
  0xf1   :  { %v1196_v25 = vmul.f32 %v6523_v29, %v1025_v13  ;;  %v1197_v26 = vmul.f32 %v6527_v31, %v1025_v13  ;;  %v1198_v27 = vmul.f32 %v6525_v30, %v1025_v13  ;;  %v1199_v28 = vmul.f32 %v6535_v34, %v1025_v13 }
  0xf2   :  { %v1785_v32 = vpack.c.bf16 %v1637_v10, %v1633_v17  ;;  %v1787_v33 = vpack.c.bf16 %v1639_v11, %v1635_v19  ;;  %v1784_v35 = vpack.c.bf16 %v1636_v12, %v1632_v20  ;;  %v1192_v37 = vmul.f32 %v6523_v29, %v1020_v14 }
  0xf3   :  { %1939 = vperm.xlu1 %5740, %v1853_v16   ;;  %v1193_v38 = vmul.f32 %v6527_v31, %v1020_v14  ;;  %v1194_v39 = vmul.f32 %v6525_v30, %v1020_v14  ;;  %v1195_v40 = vmul.f32 %v6535_v34, %v1020_v14  ;;  %1934 = vperm.xlu0 %5739, %v1852_v23   ;;  %v1859_v14 = vld [vmem:[%s9496_s4 + $0x98] sm:$0xff]  ;;  %v1858_v23 = vld [vmem:[%s9496_s4 + $0x90] sm:$0xff] }
  0xf4   :  { %v1366_v41 = vpop.permute.xlu1 %1365  ;;  %v1361_v42 = vpop.permute.xlu0 %1360  ;;  %2196 = vmatprep.subr.bf16.mxu0 %v1785_v32  ;;  %2389 = vmatprep.subr.bf16.mxu1 %v1787_v33  ;;  %v1786_v53 = vpack.c.bf16 %v1638_v36, %v1634_v24 }
  0xf5   :  { %v1516_v44 = vadd.f32 %v1366_v41, %v1196_v25  ;;  %v1517_v45 = vadd.f32 %v1366_v41, %v1197_v26  ;;  %v1518_v46 = vadd.f32 %v1366_v41, %v1198_v27  ;;  %v1519_v48 = vadd.f32 %v1366_v41, %v1199_v28  ;;  %2197 = vmatpush1.bf16.msra.mxu0 %v1784_v35  ;;  %v1860_v41 = vld [vmem:[%s9496_s4 + $0xa0] sm:$0xff] }
  0xf6   :  { %v1512_v49 = vadd.f32 %v1361_v42, %v1192_v37  ;;  %v1513_v50 = vadd.f32 %v1361_v42, %v1193_v38  ;;  %v1514_v51 = vadd.f32 %v1361_v42, %v1194_v39  ;;  %v1515_v52 = vadd.f32 %v1361_v42, %v1195_v40  ;;  %2390 = vmatpush1.bf16.msra.mxu1 %v1786_v53  ;;  %v1861_v38 = vld [vmem:[%s9496_s4 + $0xa8] sm:$0xff] }
  0xf7   :  { %1949 = vperm.xlu1 %5740, %v1855_v43   ;;  %v1645_v54 = vmax.f32 %v1517_v45, 0.0  ;;  %v1644_v55 = vmax.f32 %v1516_v44, 0.0  ;;  %1944 = vperm.xlu0 %5739, %v1854_v47   ;;  %v1647_v62 = vmax.f32 %v1519_v48, 0.0  ;;  %v1646_v7 = vmax.f32 %v1518_v46, 0.0 }
  0xf8   :  { %v1035_v56 = vpop.permute.xlu1 %1034  ;;  %v1030_v57 = vpop.permute.xlu0 %1029  ;;  %v1641_v59 = vmax.f32 %v1513_v50, 0.0  ;;  %v1640_v60 = vmax.f32 %v1512_v49, 0.0  ;;  %v1642_v63 = vmax.f32 %v1514_v51, 0.0  ;;  %v1643_v5 = vmax.f32 %v1515_v52, 0.0 }
  0xf9   :  { %v1204_v0 = vmul.f32 %v6523_v29, %v1035_v56  ;;  %v1205_v1 = vmul.f32 %v6527_v31, %v1035_v56  ;;  %v1206_v2 = vmul.f32 %v6525_v30, %v1035_v56  ;;  %v1207_v3 = vmul.f32 %v6535_v34, %v1035_v56 }
  0xfa   :  { %v1789_v4 = vpack.c.bf16 %v1645_v54, %v1641_v59  ;;  %v1788_v6 = vpack.c.bf16 %v1644_v55, %v1640_v60  ;;  %v1200_v8 = vmul.f32 %v6523_v29, %v1030_v57  ;;  %v1201_v9 = vmul.f32 %v6527_v31, %v1030_v57 }
  0xfb   :  { %1959 = vperm.xlu1 %5740, %v1857_v58   ;;  %v1202_v10 = vmul.f32 %v6525_v30, %v1030_v57  ;;  %v1203_v11 = vmul.f32 %v6535_v34, %v1030_v57  ;;  %1954 = vperm.xlu0 %5739, %v1856_v61   ;;  %v1791_v16 = vpack.c.bf16 %v1647_v62, %v1643_v5  ;;  %v1863_v58 = vld [vmem:[%s9496_s4 + $0xb8] sm:$0xff] }
  0xfc   :  { %v1376_v12 = vpop.permute.xlu1 %1375  ;;  %v1371_v13 = vpop.permute.xlu0 %1370  ;;  %2198 = vmatprep.subr.bf16.mxu0 %v1789_v4  ;;  %v1790_v32 = vpack.c.bf16 %v1646_v7, %v1642_v63  ;;  %v1862_v63 = vld [vmem:[%s9496_s4 + $0xb0] sm:$0xff] }
  0xfd   :  { %v1524_v17 = vadd.f32 %v1376_v12, %v1204_v0  ;;  %v1525_v19 = vadd.f32 %v1376_v12, %v1205_v1  ;;  %v1526_v20 = vadd.f32 %v1376_v12, %v1206_v2  ;;  %v1527_v24 = vadd.f32 %v1376_v12, %v1207_v3  ;;  %2199 = vmatpush1.bf16.msra.mxu0 %v1788_v6 }
  0xfe   :  { %v1520_v25 = vadd.f32 %v1371_v13, %v1200_v8  ;;  %v1521_v26 = vadd.f32 %v1371_v13, %v1201_v9  ;;  %v1522_v27 = vadd.f32 %v1371_v13, %v1202_v10  ;;  %2391 = vmatprep.subr.bf16.mxu1 %v1791_v16  ;;  %v1523_v28 = vadd.f32 %v1371_v13, %v1203_v11  ;;  %v1865_v10 = vld [vmem:[%s9496_s4 + $0xc8] sm:$0xff]  ;;  %v1864_v13 = vld [vmem:[%s9496_s4 + $0xc0] sm:$0xff] }
  0xff   :  { %1969 = vperm.xlu1 %5740, %v1859_v14   ;;  %v1653_v33 = vmax.f32 %v1525_v19, 0.0  ;;  %v1652_v35 = vmax.f32 %v1524_v17, 0.0  ;;  %1964 = vperm.xlu0 %5739, %v1858_v23   ;;  %v1655_v42 = vmax.f32 %v1527_v24, 0.0  ;;  %v1654_v51 = vmax.f32 %v1526_v20, 0.0 }
 0x100   :  { %v1045_v36 = vpop.permute.xlu1 %1044  ;;  %v1040_v37 = vpop.permute.xlu0 %1039  ;;  %v1649_v39 = vmax.f32 %v1521_v26, 0.0  ;;  %v1648_v40 = vmax.f32 %v1520_v25, 0.0  ;;  %2392 = vmatpush1.bf16.msra.mxu1 %v1790_v32  ;;  %v1650_v43 = vmax.f32 %v1522_v27, 0.0  ;;  %v1651_v49 = vmax.f32 %v1523_v28, 0.0 }
 0x101   :  { %v1212_v44 = vmul.f32 %v6523_v29, %v1045_v36  ;;  %v1213_v45 = vmul.f32 %v6527_v31, %v1045_v36  ;;  %v1214_v46 = vmul.f32 %v6525_v30, %v1045_v36  ;;  %v1215_v47 = vmul.f32 %v6535_v34, %v1045_v36 }
 0x102   :  { %v1793_v48 = vpack.c.bf16 %v1653_v33, %v1649_v39  ;;  %v1792_v50 = vpack.c.bf16 %v1652_v35, %v1648_v40  ;;  %v1208_v52 = vmul.f32 %v6523_v29, %v1040_v37  ;;  %v1209_v53 = vmul.f32 %v6527_v31, %v1040_v37 }
 0x103   :  { %1979 = vperm.xlu1 %5740, %v1861_v38   ;;  %v1210_v54 = vmul.f32 %v6525_v30, %v1040_v37  ;;  %v1211_v55 = vmul.f32 %v6535_v34, %v1040_v37  ;;  %1974 = vperm.xlu0 %5739, %v1860_v41   ;;  %v1795_v59 = vpack.c.bf16 %v1655_v42, %v1651_v49  ;;  %v1867_v38 = vld [vmem:[%s9496_s4 + $0xd8] sm:$0xff] }
 0x104   :  { %v1386_v56 = vpop.permute.xlu1 %1385  ;;  %v1381_v57 = vpop.permute.xlu0 %1380  ;;  %2200 = vmatprep.subr.bf16.mxu0 %v1793_v48  ;;  %v1794_v5 = vpack.c.bf16 %v1654_v51, %v1650_v43  ;;  %v1866_v43 = vld [vmem:[%s9496_s4 + $0xd0] sm:$0xff] }
 0x105   :  { %v1532_v60 = vadd.f32 %v1386_v56, %v1212_v44  ;;  %v1533_v61 = vadd.f32 %v1386_v56, %v1213_v45  ;;  %v1534_v62 = vadd.f32 %v1386_v56, %v1214_v46  ;;  %v1535_v0 = vadd.f32 %v1386_v56, %v1215_v47  ;;  %2201 = vmatpush1.bf16.msra.mxu0 %v1792_v50 }
 0x106   :  { %v1528_v1 = vadd.f32 %v1381_v57, %v1208_v52  ;;  %v1529_v2 = vadd.f32 %v1381_v57, %v1209_v53  ;;  %v1530_v3 = vadd.f32 %v1381_v57, %v1210_v54  ;;  %2393 = vmatprep.subr.bf16.mxu1 %v1795_v59  ;;  %v1531_v4 = vadd.f32 %v1381_v57, %v1211_v55  ;;  %v1869_v54 = vld [vmem:[%s9496_s4 + $0xe8] sm:$0xff]  ;;  %v1868_v57 = vld [vmem:[%s9496_s4 + $0xe0] sm:$0xff] }
 0x107   :  { %1989 = vperm.xlu1 %5740, %v1863_v58   ;;  %v1661_v6 = vmax.f32 %v1533_v61, 0.0  ;;  %v1660_v7 = vmax.f32 %v1532_v60, 0.0  ;;  %1984 = vperm.xlu0 %5739, %v1862_v63   ;;  %v1663_v14 = vmax.f32 %v1535_v0, 0.0  ;;  %v1662_v27 = vmax.f32 %v1534_v62, 0.0 }
 0x108   :  { %v1055_v8 = vpop.permute.xlu1 %1054  ;;  %v1050_v9 = vpop.permute.xlu0 %1049  ;;  %v1657_v11 = vmax.f32 %v1529_v2, 0.0  ;;  %v1656_v12 = vmax.f32 %v1528_v1, 0.0  ;;  %2394 = vmatpush1.bf16.msra.mxu1 %v1794_v5  ;;  %v1658_v16 = vmax.f32 %v1530_v3, 0.0  ;;  %v1659_v25 = vmax.f32 %v1531_v4, 0.0 }
 0x109   :  { %v1220_v17 = vmul.f32 %v6523_v29, %v1055_v8  ;;  %v1221_v19 = vmul.f32 %v6527_v31, %v1055_v8  ;;  %v1222_v20 = vmul.f32 %v6525_v30, %v1055_v8  ;;  %v1223_v23 = vmul.f32 %v6535_v34, %v1055_v8 }
 0x10a   :  { %v1797_v24 = vpack.c.bf16 %v1661_v6, %v1657_v11  ;;  %v1796_v26 = vpack.c.bf16 %v1660_v7, %v1656_v12  ;;  %v1216_v28 = vmul.f32 %v6523_v29, %v1050_v9  ;;  %v1217_v32 = vmul.f32 %v6527_v31, %v1050_v9 }
 0x10b   :  { %1999 = vperm.xlu1 %5740, %v1865_v10   ;;  %v1218_v33 = vmul.f32 %v6525_v30, %v1050_v9  ;;  %v1219_v35 = vmul.f32 %v6535_v34, %v1050_v9  ;;  %1994 = vperm.xlu0 %5739, %v1864_v13   ;;  %v1799_v39 = vpack.c.bf16 %v1663_v14, %v1659_v25  ;;  %v1871_v10 = vld [vmem:[%s9496_s4 + $0xf8] sm:$0xff] }
 0x10c   :  { %v1396_v36 = vpop.permute.xlu1 %1395  ;;  %v1391_v37 = vpop.permute.xlu0 %1390  ;;  %2202 = vmatprep.subr.bf16.mxu0 %v1797_v24  ;;  %v1798_v49 = vpack.c.bf16 %v1662_v27, %v1658_v16  ;;  %v1870_v16 = vld [vmem:[%s9496_s4 + $0xf0] sm:$0xff] }
 0x10d   :  { %v1540_v40 = vadd.f32 %v1396_v36, %v1220_v17  ;;  %v1541_v41 = vadd.f32 %v1396_v36, %v1221_v19  ;;  %v1542_v42 = vadd.f32 %v1396_v36, %v1222_v20  ;;  %v1543_v44 = vadd.f32 %v1396_v36, %v1223_v23  ;;  %2203 = vmatpush1.bf16.msra.mxu0 %v1796_v26 }
 0x10e   :  { %v1536_v45 = vadd.f32 %v1391_v37, %v1216_v28  ;;  %v1537_v46 = vadd.f32 %v1391_v37, %v1217_v32  ;;  %v1538_v47 = vadd.f32 %v1391_v37, %v1218_v33  ;;  %2395 = vmatprep.subr.bf16.mxu1 %v1799_v39  ;;  %v1539_v48 = vadd.f32 %v1391_v37, %v1219_v35 }
 0x10f   :  { %2009 = vperm.xlu1 %5740, %v1867_v38   ;;  %v1669_v50 = vmax.f32 %v1541_v41, 0.0  ;;  %v1668_v51 = vmax.f32 %v1540_v40, 0.0  ;;  %2004 = vperm.xlu0 %5739, %v1866_v43   ;;  %v1671_v58 = vmax.f32 %v1543_v44, 0.0  ;;  %v1670_v3 = vmax.f32 %v1542_v42, 0.0 }
 0x110   :  { %v1065_v52 = vpop.permute.xlu1 %1064  ;;  %v1060_v53 = vpop.permute.xlu0 %1059  ;;  %v1665_v55 = vmax.f32 %v1537_v46, 0.0  ;;  %v1664_v56 = vmax.f32 %v1536_v45, 0.0  ;;  %2396 = vmatpush1.bf16.msra.mxu1 %v1798_v49  ;;  %v1666_v59 = vmax.f32 %v1538_v47, 0.0  ;;  %v1667_v1 = vmax.f32 %v1539_v48, 0.0 }
 0x111   :  { %v1228_v60 = vmul.f32 %v6523_v29, %v1065_v52  ;;  %v1229_v61 = vmul.f32 %v6527_v31, %v1065_v52  ;;  %v1230_v62 = vmul.f32 %v6525_v30, %v1065_v52  ;;  %v1231_v63 = vmul.f32 %v6535_v34, %v1065_v52 }
 0x112   :  { %v1801_v0 = vpack.c.bf16 %v1669_v50, %v1665_v55  ;;  %v1800_v2 = vpack.c.bf16 %v1668_v51, %v1664_v56  ;;  %v1224_v4 = vmul.f32 %v6523_v29, %v1060_v53  ;;  %v1225_v5 = vmul.f32 %v6527_v31, %v1060_v53 }
 0x113   :  { %2019 = vperm.xlu1 %5740, %v1869_v54   ;;  %v1226_v6 = vmul.f32 %v6525_v30, %v1060_v53  ;;  %v1227_v7 = vmul.f32 %v6535_v34, %v1060_v53  ;;  %2014 = vperm.xlu0 %5739, %v1868_v57   ;;  %v1803_v11 = vpack.c.bf16 %v1671_v58, %v1667_v1 }
 0x114   :  { %v1406_v8 = vpop.permute.xlu1 %1405  ;;  %v1401_v9 = vpop.permute.xlu0 %1400  ;;  %2204 = vmatprep.subr.bf16.mxu0 %v1801_v0  ;;  %v1802_v25 = vpack.c.bf16 %v1670_v3, %v1666_v59 }
 0x115   :  { %v1548_v12 = vadd.f32 %v1406_v8, %v1228_v60  ;;  %v1549_v13 = vadd.f32 %v1406_v8, %v1229_v61  ;;  %v1550_v14 = vadd.f32 %v1406_v8, %v1230_v62  ;;  %v1551_v17 = vadd.f32 %v1406_v8, %v1231_v63  ;;  %2205 = vmatpush1.bf16.msra.mxu0 %v1800_v2 }
 0x116   :  { %v1544_v19 = vadd.f32 %v1401_v9, %v1224_v4  ;;  %v1545_v20 = vadd.f32 %v1401_v9, %v1225_v5  ;;  %v1546_v23 = vadd.f32 %v1401_v9, %v1226_v6  ;;  %2397 = vmatprep.subr.bf16.mxu1 %v1803_v11  ;;  %v1547_v24 = vadd.f32 %v1401_v9, %v1227_v7 }
 0x117   :  { %2029 = vperm.xlu1 %5740, %v1871_v10   ;;  %v1677_v26 = vmax.f32 %v1549_v13, 0.0  ;;  %v1676_v27 = vmax.f32 %v1548_v12, 0.0  ;;  %2024 = vperm.xlu0 %5739, %v1870_v16   ;;  %v1679_v36 = vmax.f32 %v1551_v17, 0.0  ;;  %v1678_v45 = vmax.f32 %v1550_v14, 0.0 }
 0x118   :  { %v1075_v28 = vpop.permute.xlu1 %1074  ;;  %v1070_v32 = vpop.permute.xlu0 %1069  ;;  %v1673_v33 = vmax.f32 %v1545_v20, 0.0  ;;  %v1672_v35 = vmax.f32 %v1544_v19, 0.0  ;;  %2398 = vmatpush1.bf16.msra.mxu1 %v1802_v25  ;;  %v1674_v37 = vmax.f32 %v1546_v23, 0.0  ;;  %v1675_v43 = vmax.f32 %v1547_v24, 0.0 }
 0x119   :  { %v1236_v38 = vmul.f32 %v6523_v29, %v1075_v28  ;;  %v1237_v39 = vmul.f32 %v6527_v31, %v1075_v28  ;;  %v1238_v40 = vmul.f32 %v6525_v30, %v1075_v28  ;;  %v1239_v41 = vmul.f32 %v6535_v34, %v1075_v28 }
 0x11a   :  { %v1805_v42 = vpack.c.bf16 %v1677_v26, %v1673_v33  ;;  %v1804_v44 = vpack.c.bf16 %v1676_v27, %v1672_v35  ;;  %v1232_v46 = vmul.f32 %v6523_v29, %v1070_v32  ;;  %v1233_v47 = vmul.f32 %v6527_v31, %v1070_v32 }
 0x11b   :  { %v1234_v48 = vmul.f32 %v6525_v30, %v1070_v32  ;;  %v1235_v49 = vmul.f32 %v6535_v34, %v1070_v32  ;;  %v1807_v52 = vpack.c.bf16 %v1679_v36, %v1675_v43  ;;  %v1806_v61 = vpack.c.bf16 %v1678_v45, %v1674_v37 }
 0x11c   :  { %v1416_v50 = vpop.permute.xlu1 %1415  ;;  %v1411_v51 = vpop.permute.xlu0 %1410  ;;  %2206 = vmatprep.subr.bf16.mxu0 %v1805_v42 }
 0x11d   :  { %v1556_v53 = vadd.f32 %v1416_v50, %v1236_v38  ;;  %v1557_v54 = vadd.f32 %v1416_v50, %v1237_v39  ;;  %v1558_v55 = vadd.f32 %v1416_v50, %v1238_v40  ;;  %v1559_v56 = vadd.f32 %v1416_v50, %v1239_v41  ;;  %2207 = vmatpush1.bf16.msra.mxu0 %v1804_v44 }
 0x11e   :  { %v1552_v57 = vadd.f32 %v1411_v51, %v1232_v46  ;;  %v1553_v58 = vadd.f32 %v1411_v51, %v1233_v47  ;;  %v1554_v59 = vadd.f32 %v1411_v51, %v1234_v48  ;;  %2399 = vmatprep.subr.bf16.mxu1 %v1807_v52  ;;  %v1555_v60 = vadd.f32 %v1411_v51, %v1235_v49 }
 0x11f   :  { %v1685_v62 = vmax.f32 %v1557_v54, 0.0  ;;  %v1684_v63 = vmax.f32 %v1556_v53, 0.0  ;;  %2400 = vmatpush1.bf16.msra.mxu1 %v1806_v61  ;;  %v1687_v4 = vmax.f32 %v1559_v56, 0.0  ;;  %v1686_v13 = vmax.f32 %v1558_v55, 0.0 }
 0x120   :  { %v1085_v0 = vpop.permute.xlu1 %1084  ;;  %v1080_v1 = vpop.permute.xlu0 %1079  ;;  %v1681_v2 = vmax.f32 %v1553_v58, 0.0  ;;  %v1680_v3 = vmax.f32 %v1552_v57, 0.0  ;;  %v1682_v5 = vmax.f32 %v1554_v59, 0.0  ;;  %v1683_v11 = vmax.f32 %v1555_v60, 0.0 }
 0x121   :  { %v1244_v6 = vmul.f32 %v6523_v29, %v1085_v0  ;;  %v1245_v7 = vmul.f32 %v6527_v31, %v1085_v0  ;;  %v1246_v8 = vmul.f32 %v6525_v30, %v1085_v0  ;;  %v1247_v9 = vmul.f32 %v6535_v34, %v1085_v0 }
 0x122   :  { %v1809_v10 = vpack.c.bf16 %v1685_v62, %v1681_v2  ;;  %v1808_v12 = vpack.c.bf16 %v1684_v63, %v1680_v3  ;;  %v1240_v14 = vmul.f32 %v6523_v29, %v1080_v1  ;;  %v1241_v16 = vmul.f32 %v6527_v31, %v1080_v1 }
 0x123   :  { %v1242_v17 = vmul.f32 %v6525_v30, %v1080_v1  ;;  %v1243_v19 = vmul.f32 %v6535_v34, %v1080_v1  ;;  %v1811_v24 = vpack.c.bf16 %v1687_v4, %v1683_v11  ;;  %v1810_v37 = vpack.c.bf16 %v1686_v13, %v1682_v5 }
 0x124   :  { %v1426_v20 = vpop.permute.xlu1 %1425  ;;  %v1421_v23 = vpop.permute.xlu0 %1420  ;;  %2208 = vmatprep.subr.bf16.mxu0 %v1809_v10 }
 0x125   :  { %v1564_v25 = vadd.f32 %v1426_v20, %v1244_v6  ;;  %v1565_v26 = vadd.f32 %v1426_v20, %v1245_v7  ;;  %v1566_v27 = vadd.f32 %v1426_v20, %v1246_v8  ;;  %v1567_v28 = vadd.f32 %v1426_v20, %v1247_v9  ;;  %2209 = vmatpush1.bf16.msra.mxu0 %v1808_v12 }
 0x126   :  { %v1560_v32 = vadd.f32 %v1421_v23, %v1240_v14  ;;  %v1561_v33 = vadd.f32 %v1421_v23, %v1241_v16  ;;  %v1562_v35 = vadd.f32 %v1421_v23, %v1242_v17  ;;  %2401 = vmatprep.subr.bf16.mxu1 %v1811_v24  ;;  %v1563_v36 = vadd.f32 %v1421_v23, %v1243_v19 }
 0x127   :  { %v1693_v38 = vmax.f32 %v1565_v26, 0.0  ;;  %v1692_v39 = vmax.f32 %v1564_v25, 0.0  ;;  %2402 = vmatpush1.bf16.msra.mxu1 %v1810_v37  ;;  %v1695_v44 = vmax.f32 %v1567_v28, 0.0  ;;  %v1694_v53 = vmax.f32 %v1566_v27, 0.0 }
 0x128   :  { %v1095_v40 = vpop.permute.xlu1 %1094  ;;  %v1090_v41 = vpop.permute.xlu0 %1089  ;;  %v1689_v42 = vmax.f32 %v1561_v33, 0.0  ;;  %v1688_v43 = vmax.f32 %v1560_v32, 0.0  ;;  %v1690_v45 = vmax.f32 %v1562_v35, 0.0  ;;  %v1691_v51 = vmax.f32 %v1563_v36, 0.0 }
 0x129   :  { %v1252_v46 = vmul.f32 %v6523_v29, %v1095_v40  ;;  %v1253_v47 = vmul.f32 %v6527_v31, %v1095_v40  ;;  %v1254_v48 = vmul.f32 %v6525_v30, %v1095_v40  ;;  %v1255_v49 = vmul.f32 %v6535_v34, %v1095_v40 }
 0x12a   :  { %v1813_v50 = vpack.c.bf16 %v1693_v38, %v1689_v42  ;;  %v1812_v52 = vpack.c.bf16 %v1692_v39, %v1688_v43  ;;  %v1248_v54 = vmul.f32 %v6523_v29, %v1090_v41  ;;  %v1249_v55 = vmul.f32 %v6527_v31, %v1090_v41 }
 0x12b   :  { %v1250_v56 = vmul.f32 %v6525_v30, %v1090_v41  ;;  %v1251_v57 = vmul.f32 %v6535_v34, %v1090_v41  ;;  %v1815_v60 = vpack.c.bf16 %v1695_v44, %v1691_v51  ;;  %v1814_v5 = vpack.c.bf16 %v1694_v53, %v1690_v45 }
 0x12c   :  { %v1436_v58 = vpop.permute.xlu1 %1435  ;;  %v1431_v59 = vpop.permute.xlu0 %1430  ;;  %2210 = vmatprep.subr.bf16.mxu0 %v1813_v50 }
 0x12d   :  { %v1572_v61 = vadd.f32 %v1436_v58, %v1252_v46  ;;  %v1573_v62 = vadd.f32 %v1436_v58, %v1253_v47  ;;  %v1574_v63 = vadd.f32 %v1436_v58, %v1254_v48  ;;  %v1575_v0 = vadd.f32 %v1436_v58, %v1255_v49  ;;  %2211 = vmatpush1.bf16.msra.mxu0 %v1812_v52 }
 0x12e   :  { %v1568_v1 = vadd.f32 %v1431_v59, %v1248_v54  ;;  %v1569_v2 = vadd.f32 %v1431_v59, %v1249_v55  ;;  %v1570_v3 = vadd.f32 %v1431_v59, %v1250_v56  ;;  %2403 = vmatprep.subr.bf16.mxu1 %v1815_v60  ;;  %v1571_v4 = vadd.f32 %v1431_v59, %v1251_v57 }
 0x12f   :  { %v1701_v6 = vmax.f32 %v1573_v62, 0.0  ;;  %v1700_v7 = vmax.f32 %v1572_v61, 0.0  ;;  %2404 = vmatpush1.bf16.msra.mxu1 %v1814_v5  ;;  %v1703_v12 = vmax.f32 %v1575_v0, 0.0  ;;  %v1702_v25 = vmax.f32 %v1574_v63, 0.0 }
 0x130   :  { %v1105_v8 = vpop.permute.xlu1 %1104  ;;  %v1100_v9 = vpop.permute.xlu0 %1099  ;;  %v1697_v10 = vmax.f32 %v1569_v2, 0.0  ;;  %v1696_v11 = vmax.f32 %v1568_v1, 0.0  ;;  %v1698_v13 = vmax.f32 %v1570_v3, 0.0  ;;  %v1699_v23 = vmax.f32 %v1571_v4, 0.0 }
 0x131   :  { %v1260_v14 = vmul.f32 %v6523_v29, %v1105_v8  ;;  %v1261_v16 = vmul.f32 %v6527_v31, %v1105_v8  ;;  %v1262_v17 = vmul.f32 %v6525_v30, %v1105_v8  ;;  %v1263_v19 = vmul.f32 %v6535_v34, %v1105_v8 }
 0x132   :  { %v1817_v20 = vpack.c.bf16 %v1701_v6, %v1697_v10  ;;  %v1816_v24 = vpack.c.bf16 %v1700_v7, %v1696_v11  ;;  %v1256_v26 = vmul.f32 %v6523_v29, %v1100_v9  ;;  %v1257_v27 = vmul.f32 %v6527_v31, %v1100_v9 }
 0x133   :  { %v1258_v28 = vmul.f32 %v6525_v30, %v1100_v9  ;;  %v1259_v32 = vmul.f32 %v6535_v34, %v1100_v9  ;;  %v1819_v36 = vpack.c.bf16 %v1703_v12, %v1699_v23  ;;  %v1818_v45 = vpack.c.bf16 %v1702_v25, %v1698_v13 }
 0x134   :  { %v1446_v33 = vpop.permute.xlu1 %1445  ;;  %v1441_v35 = vpop.permute.xlu0 %1440  ;;  %2212 = vmatprep.subr.bf16.mxu0 %v1817_v20 }
 0x135   :  { %v1580_v37 = vadd.f32 %v1446_v33, %v1260_v14  ;;  %v1581_v38 = vadd.f32 %v1446_v33, %v1261_v16  ;;  %v1582_v39 = vadd.f32 %v1446_v33, %v1262_v17  ;;  %v1583_v40 = vadd.f32 %v1446_v33, %v1263_v19  ;;  %2213 = vmatpush1.bf16.msra.mxu0 %v1816_v24 }
 0x136   :  { %v1576_v41 = vadd.f32 %v1441_v35, %v1256_v26  ;;  %v1577_v42 = vadd.f32 %v1441_v35, %v1257_v27  ;;  %v1578_v43 = vadd.f32 %v1441_v35, %v1258_v28  ;;  %2405 = vmatprep.subr.bf16.mxu1 %v1819_v36  ;;  %v1579_v44 = vadd.f32 %v1441_v35, %v1259_v32 }
 0x137   :  { %v1709_v46 = vmax.f32 %v1581_v38, 0.0  ;;  %v1708_v47 = vmax.f32 %v1580_v37, 0.0  ;;  %2406 = vmatpush1.bf16.msra.mxu1 %v1818_v45  ;;  %v1711_v52 = vmax.f32 %v1583_v40, 0.0  ;;  %v1710_v61 = vmax.f32 %v1582_v39, 0.0 }
 0x138   :  { %v1115_v48 = vpop.permute.xlu1 %1114  ;;  %v1110_v49 = vpop.permute.xlu0 %1109  ;;  %v1705_v50 = vmax.f32 %v1577_v42, 0.0  ;;  %v1704_v51 = vmax.f32 %v1576_v41, 0.0  ;;  %v1706_v53 = vmax.f32 %v1578_v43, 0.0  ;;  %v1707_v59 = vmax.f32 %v1579_v44, 0.0 }
 0x139   :  { %v1268_v54 = vmul.f32 %v6523_v29, %v1115_v48  ;;  %v1269_v55 = vmul.f32 %v6527_v31, %v1115_v48  ;;  %v1270_v56 = vmul.f32 %v6525_v30, %v1115_v48  ;;  %v1271_v57 = vmul.f32 %v6535_v34, %v1115_v48 }
 0x13a   :  { %v1821_v58 = vpack.c.bf16 %v1709_v46, %v1705_v50  ;;  %v1820_v60 = vpack.c.bf16 %v1708_v47, %v1704_v51  ;;  %v1264_v62 = vmul.f32 %v6523_v29, %v1110_v49  ;;  %v1265_v63 = vmul.f32 %v6527_v31, %v1110_v49 }
 0x13b   :  { %v1266_v0 = vmul.f32 %v6525_v30, %v1110_v49  ;;  %v1267_v1 = vmul.f32 %v6535_v34, %v1110_v49  ;;  %v1823_v4 = vpack.c.bf16 %v1711_v52, %v1707_v59  ;;  %v1822_v13 = vpack.c.bf16 %v1710_v61, %v1706_v53 }
 0x13c   :  { %v1456_v2 = vpop.permute.xlu1 %1455  ;;  %v1451_v3 = vpop.permute.xlu0 %1450  ;;  %2214 = vmatprep.subr.bf16.mxu0 %v1821_v58 }
 0x13d   :  { %v1588_v5 = vadd.f32 %v1456_v2, %v1268_v54  ;;  %v1589_v6 = vadd.f32 %v1456_v2, %v1269_v55  ;;  %v1590_v7 = vadd.f32 %v1456_v2, %v1270_v56  ;;  %v1591_v8 = vadd.f32 %v1456_v2, %v1271_v57  ;;  %2215 = vmatpush1.bf16.msra.mxu0 %v1820_v60 }
 0x13e   :  { %v1584_v9 = vadd.f32 %v1451_v3, %v1264_v62  ;;  %v1585_v10 = vadd.f32 %v1451_v3, %v1265_v63  ;;  %v1586_v11 = vadd.f32 %v1451_v3, %v1266_v0  ;;  %2407 = vmatprep.subr.bf16.mxu1 %v1823_v4  ;;  %v1587_v12 = vadd.f32 %v1451_v3, %v1267_v1 }
 0x13f   :  { %v1717_v14 = vmax.f32 %v1589_v6, 0.0  ;;  %v1716_v16 = vmax.f32 %v1588_v5, 0.0  ;;  %2408 = vmatpush1.bf16.msra.mxu1 %v1822_v13  ;;  %v1719_v24 = vmax.f32 %v1591_v8, 0.0  ;;  %v1718_v37 = vmax.f32 %v1590_v7, 0.0 }
 0x140   :  { %v1125_v17 = vpop.permute.xlu1 %1124  ;;  %v1120_v19 = vpop.permute.xlu0 %1119  ;;  %v1713_v20 = vmax.f32 %v1585_v10, 0.0  ;;  %v1712_v23 = vmax.f32 %v1584_v9, 0.0  ;;  %v1714_v25 = vmax.f32 %v1586_v11, 0.0  ;;  %v1715_v35 = vmax.f32 %v1587_v12, 0.0 }
 0x141   :  { %v1276_v26 = vmul.f32 %v6523_v29, %v1125_v17  ;;  %v1277_v27 = vmul.f32 %v6527_v31, %v1125_v17  ;;  %v1278_v28 = vmul.f32 %v6525_v30, %v1125_v17  ;;  %v1279_v32 = vmul.f32 %v6535_v34, %v1125_v17 }
 0x142   :  { %v1825_v33 = vpack.c.bf16 %v1717_v14, %v1713_v20  ;;  %v1824_v36 = vpack.c.bf16 %v1716_v16, %v1712_v23  ;;  %v1272_v38 = vmul.f32 %v6523_v29, %v1120_v19  ;;  %v1273_v39 = vmul.f32 %v6527_v31, %v1120_v19 }
 0x143   :  { %v1274_v40 = vmul.f32 %v6525_v30, %v1120_v19  ;;  %v1275_v41 = vmul.f32 %v6535_v34, %v1120_v19  ;;  %v1827_v44 = vpack.c.bf16 %v1719_v24, %v1715_v35  ;;  %v1826_v53 = vpack.c.bf16 %v1718_v37, %v1714_v25 }
 0x144   :  { %v1466_v42 = vpop.permute.xlu1 %1465  ;;  %v1461_v43 = vpop.permute.xlu0 %1460  ;;  %2216 = vmatprep.subr.bf16.mxu0 %v1825_v33 }
 0x145   :  { %v1596_v45 = vadd.f32 %v1466_v42, %v1276_v26  ;;  %v1597_v46 = vadd.f32 %v1466_v42, %v1277_v27  ;;  %v1598_v47 = vadd.f32 %v1466_v42, %v1278_v28  ;;  %v1599_v48 = vadd.f32 %v1466_v42, %v1279_v32  ;;  %2217 = vmatpush1.bf16.msra.mxu0 %v1824_v36 }
 0x146   :  { %v1592_v49 = vadd.f32 %v1461_v43, %v1272_v38  ;;  %v1593_v50 = vadd.f32 %v1461_v43, %v1273_v39  ;;  %v1594_v51 = vadd.f32 %v1461_v43, %v1274_v40  ;;  %2409 = vmatprep.subr.bf16.mxu1 %v1827_v44  ;;  %v1595_v52 = vadd.f32 %v1461_v43, %v1275_v41 }
 0x147   :  { %v1725_v54 = vmax.f32 %v1597_v46, 0.0  ;;  %v1724_v55 = vmax.f32 %v1596_v45, 0.0  ;;  %2410 = vmatpush1.bf16.msra.mxu1 %v1826_v53  ;;  %v1727_v60 = vmax.f32 %v1599_v48, 0.0  ;;  %v1726_v5 = vmax.f32 %v1598_v47, 0.0 }
 0x148   :  { %v1135_v56 = vpop.permute.xlu1 %1134  ;;  %v1130_v57 = vpop.permute.xlu0 %1129  ;;  %v1721_v58 = vmax.f32 %v1593_v50, 0.0  ;;  %v1720_v59 = vmax.f32 %v1592_v49, 0.0  ;;  %v1722_v61 = vmax.f32 %v1594_v51, 0.0  ;;  %v1723_v3 = vmax.f32 %v1595_v52, 0.0 }
 0x149   :  { %v1284_v62 = vmul.f32 %v6523_v29, %v1135_v56  ;;  %v1285_v63 = vmul.f32 %v6527_v31, %v1135_v56  ;;  %v1286_v0 = vmul.f32 %v6525_v30, %v1135_v56  ;;  %v1287_v1 = vmul.f32 %v6535_v34, %v1135_v56 }
 0x14a   :  { %v1829_v2 = vpack.c.bf16 %v1725_v54, %v1721_v58  ;;  %v1828_v4 = vpack.c.bf16 %v1724_v55, %v1720_v59  ;;  %v1280_v6 = vmul.f32 %v6523_v29, %v1130_v57  ;;  %v1281_v7 = vmul.f32 %v6527_v31, %v1130_v57 }
 0x14b   :  { %v1282_v8 = vmul.f32 %v6525_v30, %v1130_v57  ;;  %v1283_v9 = vmul.f32 %v6535_v34, %v1130_v57  ;;  %v1831_v12 = vpack.c.bf16 %v1727_v60, %v1723_v3  ;;  %v1830_v25 = vpack.c.bf16 %v1726_v5, %v1722_v61 }
 0x14c   :  { %v1476_v10 = vpop.permute.xlu1 %1475  ;;  %v1471_v11 = vpop.permute.xlu0 %1470  ;;  %2218 = vmatprep.subr.bf16.mxu0 %v1829_v2 }
 0x14d   :  { %v1604_v13 = vadd.f32 %v1476_v10, %v1284_v62  ;;  %v1605_v14 = vadd.f32 %v1476_v10, %v1285_v63  ;;  %v1606_v16 = vadd.f32 %v1476_v10, %v1286_v0  ;;  %v1607_v17 = vadd.f32 %v1476_v10, %v1287_v1  ;;  %2219 = vmatpush1.bf16.msra.mxu0 %v1828_v4  ;;  %v5749_v10 = vld [vmem:[%s9495_s3 + $0x20] ss:$8 sps:$4 sm:$0xff]  }
 0x14e   :  { %v1600_v19 = vadd.f32 %v1471_v11, %v1280_v6  ;;  %v1601_v20 = vadd.f32 %v1471_v11, %v1281_v7  ;;  %v1602_v23 = vadd.f32 %v1471_v11, %v1282_v8  ;;  %2411 = vmatprep.subr.bf16.mxu1 %v1831_v12  ;;  %v1603_v24 = vadd.f32 %v1471_v11, %v1283_v9  ;;  %v5741_v6 = vld [vmem:[%s9495_s3] ss:$8 sps:$4 sm:$0xff]   ;;  %v5744_v7 = vld [vmem:[%s9495_s3 + $0x14] ss:$8 sps:$4 sm:$0xff]   ;;  %v5746_v8 = vld [vmem:[%s9495_s3 + $0x10] ss:$8 sps:$4 sm:$0xff]  }
 0x14f   :  { %v1733_v26 = vmax.f32 %v1605_v14, 0.0  ;;  %v1732_v27 = vmax.f32 %v1604_v13, 0.0  ;;  %2412 = vmatpush1.bf16.msra.mxu1 %v1830_v25  ;;  %v1735_v36 = vmax.f32 %v1607_v17, 0.0  ;;  %v1734_v45 = vmax.f32 %v1606_v16, 0.0  ;;  %v5747_v9 = vld [vmem:[%s9495_s3 + $0x24] ss:$8 sps:$4 sm:$0xff]  }
 0x150   :  { %v1145_v28 = vpop.permute.xlu1 %1144  ;;  %v1140_v32 = vpop.permute.xlu0 %1139  ;;  %v1729_v33 = vmax.f32 %v1601_v20, 0.0  ;;  %v1728_v35 = vmax.f32 %v1600_v19, 0.0  ;;  %v1730_v37 = vmax.f32 %v1602_v23, 0.0  ;;  %v1731_v43 = vmax.f32 %v1603_v24, 0.0  ;;  %v5750_v11 = vld [vmem:[%s9495_s3 + $0x34] ss:$8 sps:$4 sm:$0xff]  }
 0x151   :  { %v1292_v38 = vmul.f32 %v6523_v29, %v1145_v28  ;;  %v1293_v39 = vmul.f32 %v6527_v31, %v1145_v28  ;;  %v1294_v40 = vmul.f32 %v6525_v30, %v1145_v28  ;;  %v1295_v41 = vmul.f32 %v6535_v34, %v1145_v28  ;;  %v5752_v12 = vld [vmem:[%s9495_s3 + $0x30] ss:$8 sps:$4 sm:$0xff]   ;;  %v5753_v13 = vld [vmem:[%s9495_s3 + $0x44] ss:$8 sps:$4 sm:$0xff]   ;;  %v5755_v14 = vld [vmem:[%s9495_s3 + $0x40] ss:$8 sps:$4 sm:$0xff]  }
 0x152   :  { %v1833_v42 = vpack.c.bf16 %v1733_v26, %v1729_v33  ;;  %v1832_v44 = vpack.c.bf16 %v1732_v27, %v1728_v35  ;;  %v1288_v46 = vmul.f32 %v6523_v29, %v1140_v32  ;;  %v1289_v47 = vmul.f32 %v6527_v31, %v1140_v32  ;;  %v5756_v16 = vld [vmem:[%s9495_s3 + $0x54] ss:$8 sps:$4 sm:$0xff]   ;;  %v5758_v17 = vld [vmem:[%s9495_s3 + $0x50] ss:$8 sps:$4 sm:$0xff]   ;;  %v5759_v19 = vld [vmem:[%s9495_s3 + $0x64] ss:$8 sps:$4 sm:$0xff]  }
 0x153   :  { %v1290_v48 = vmul.f32 %v6525_v30, %v1140_v32  ;;  %v1291_v49 = vmul.f32 %v6535_v34, %v1140_v32  ;;  %v1835_v52 = vpack.c.bf16 %v1735_v36, %v1731_v43  ;;  %v1834_v60 = vpack.c.bf16 %v1734_v45, %v1730_v37  ;;  %v5761_v20 = vld [vmem:[%s9495_s3 + $0x60] ss:$8 sps:$4 sm:$0xff]   ;;  %v5762_v23 = vld [vmem:[%s9495_s3 + $0x74] ss:$8 sps:$4 sm:$0xff]   ;;  %v5764_v24 = vld [vmem:[%s9495_s3 + $0x70] ss:$8 sps:$4 sm:$0xff]  }
 0x154   :  { %v1486_v50 = vpop.permute.xlu1 %1485  ;;  %v1481_v51 = vpop.permute.xlu0 %1480  ;;  %2220 = vmatprep.subr.bf16.mxu0 %v1833_v42  ;;  %v5765_v25 = vld [vmem:[%s9495_s3 + $0x84] ss:$8 sps:$4 sm:$0xff]   ;;  %v5767_v26 = vld [vmem:[%s9495_s3 + $0x80] ss:$8 sps:$4 sm:$0xff]   ;;  %v5768_v27 = vld [vmem:[%s9495_s3 + $0x94] ss:$8 sps:$4 sm:$0xff]  }
 0x155   :  { %v1612_v53 = vadd.f32 %v1486_v50, %v1292_v38  ;;  %v1613_v54 = vadd.f32 %v1486_v50, %v1293_v39  ;;  %v1614_v55 = vadd.f32 %v1486_v50, %v1294_v40  ;;  %v1615_v56 = vadd.f32 %v1486_v50, %v1295_v41  ;;  %2221 = vmatpush1.bf16.msra.mxu0 %v1832_v44  ;;  %v5770_v28 = vld [vmem:[%s9495_s3 + $0x90] ss:$8 sps:$4 sm:$0xff]   ;;  %v5771_v32 = vld [vmem:[%s9495_s3 + $0xa4] ss:$8 sps:$4 sm:$0xff]   ;;  %v5773_v33 = vld [vmem:[%s9495_s3 + $0xa0] ss:$8 sps:$4 sm:$0xff]  }
 0x156   :  { %v1608_v57 = vadd.f32 %v1481_v51, %v1288_v46  ;;  %v1609_v58 = vadd.f32 %v1481_v51, %v1289_v47  ;;  %v1610_v59 = vadd.f32 %v1481_v51, %v1290_v48  ;;  %2413 = vmatprep.subr.bf16.mxu1 %v1835_v52  ;;  %v1611_v29 = vadd.f32 %v1481_v51, %v1291_v49  ;;  %v5774_v35 = vld [vmem:[%s9495_s3 + $0xb4] ss:$8 sps:$4 sm:$0xff]   ;;  %v5776_v36 = vld [vmem:[%s9495_s3 + $0xb0] ss:$8 sps:$4 sm:$0xff]   ;;  %v5777_v37 = vld [vmem:[%s9495_s3 + $0xc4] ss:$8 sps:$4 sm:$0xff]  }
 0x157   :  { %v1741_v31 = vmax.f32 %v1613_v54, 0.0  ;;  %v1740_v61 = vmax.f32 %v1612_v53, 0.0  ;;  %v1743_v62 = vmax.f32 %v1615_v56, 0.0  ;;  %2414 = vmatpush1.bf16.msra.mxu1 %v1834_v60  ;;  %v1742_v1 = vmax.f32 %v1614_v55, 0.0  ;;  %v5779_v38 = vld [vmem:[%s9495_s3 + $0xc0] ss:$8 sps:$4 sm:$0xff]  }
 0x158   :  { %v1737_v30 = vmax.f32 %v1609_v58, 0.0  ;;  %v1736_v34 = vmax.f32 %v1608_v57, 0.0  ;;  %v1738_v63 = vmax.f32 %v1610_v59, 0.0  ;;  %v1739_v0 = vmax.f32 %v1611_v29, 0.0  ;;  %v5780_v39 = vld [vmem:[%s9495_s3 + $0xd4] ss:$8 sps:$4 sm:$0xff]   ;;  %v1880_v45 = vpop.permute.xlu1 %1879  ;;  %v1875_v46 = vpop.permute.xlu0 %1874 }
 0x159   :  { %v5782_v40 = vld [vmem:[%s9495_s3 + $0xd0] ss:$8 sps:$4 sm:$0xff]   ;;  %v5783_v41 = vld [vmem:[%s9495_s3 + $0xe4] ss:$8 sps:$4 sm:$0xff]   ;;  %v5785_v42 = vld [vmem:[%s9495_s3 + $0xe0] ss:$8 sps:$4 sm:$0xff]  }
 0x15a   :  { %v1837_v2 = vpack.c.bf16 %v1741_v31, %v1737_v30  ;;  %v1836_v3 = vpack.c.bf16 %v1740_v61, %v1736_v34  ;;  %v1839_v4 = vpack.c.bf16 %v1743_v62, %v1739_v0  ;;  %v1838_v5 = vpack.c.bf16 %v1742_v1, %v1738_v63  ;;  %v5786_v43 = vld [vmem:[%s9495_s3 + $0xf4] ss:$8 sps:$4 sm:$0xff]   ;;  %v5788_v44 = vld [vmem:[%s9495_s3 + $0xf0] ss:$8 sps:$4 sm:$0xff]  }
 0x15c   :  { %2222 = vmatprep.subr.bf16.mxu0 %v1837_v2  ;;  %2415 = vmatprep.subr.bf16.mxu1 %v1839_v4  ;;  %v1890_v2 = vpop.permute.xlu1 %1889  ;;  %v1885_v4 = vpop.permute.xlu0 %1884 }
 0x15d   :  { %2223 = vmatpush1.bf16.msra.mxu0 %v1836_v3  ;;  %2416 = vmatpush1.bf16.msra.mxu1 %v1838_v5 }
 0x160   :  { %2225 = vmatmul.mubr.bf16.vlgmr.msra.gmra.mrb[0].mxu0 %v5741_v6  ;;  %2418 = vmatmul.mubr.bf16.vlgmr.msra.gmra.mrb[0].mxu1 %v5741_v6 }
 0x161   :  { %2234 = vmatprep.mubr.bf16.mxu0 %v5744_v7  ;;  %2427 = vmatprep.mubr.bf16.mxu1 %v5744_v7 }
 0x168   :  { %2235 = vmatmul.mubr.bf16.gmra.mrb[4].mxu0 %v5746_v8  ;;  %2428 = vmatmul.mubr.bf16.gmra.mrb[4].mxu1 %v5746_v8 }
 0x169   :  { %2244 = vmatprep.mubr.bf16.mxu0 %v5747_v9  ;;  %2437 = vmatprep.mubr.bf16.mxu1 %v5747_v9 }
 0x170   :  { %2245 = vmatmul.mubr.bf16.gmra.mrb[8].mxu0 %v5749_v10  ;;  %2438 = vmatmul.mubr.bf16.gmra.mrb[8].mxu1 %v5749_v10 }
 0x171   :  { %2254 = vmatprep.mubr.bf16.mxu0 %v5750_v11  ;;  %2447 = vmatprep.mubr.bf16.mxu1 %v5750_v11 }
 0x178   :  { %2255 = vmatmul.mubr.bf16.gmra.mrb[12].mxu0 %v5752_v12  ;;  %2448 = vmatmul.mubr.bf16.gmra.mrb[12].mxu1 %v5752_v12 }
 0x179   :  { %2264 = vmatprep.mubr.bf16.mxu0 %v5753_v13  ;;  %2457 = vmatprep.mubr.bf16.mxu1 %v5753_v13 }
 0x180   :  { %2265 = vmatmul.mubr.bf16.gmra.mrb[16].mxu0 %v5755_v14  ;;  %2458 = vmatmul.mubr.bf16.gmra.mrb[16].mxu1 %v5755_v14 }
 0x181   :  { %2274 = vmatprep.mubr.bf16.mxu0 %v5756_v16  ;;  %2467 = vmatprep.mubr.bf16.mxu1 %v5756_v16 }
 0x188   :  { %2275 = vmatmul.mubr.bf16.gmra.mrb[20].mxu0 %v5758_v17  ;;  %2468 = vmatmul.mubr.bf16.gmra.mrb[20].mxu1 %v5758_v17 }
 0x189   :  { %2284 = vmatprep.mubr.bf16.mxu0 %v5759_v19  ;;  %2477 = vmatprep.mubr.bf16.mxu1 %v5759_v19 }
 0x190   :  { %2285 = vmatmul.mubr.bf16.gmra.mrb[24].mxu0 %v5761_v20  ;;  %2478 = vmatmul.mubr.bf16.gmra.mrb[24].mxu1 %v5761_v20 }
 0x191   :  { %2294 = vmatprep.mubr.bf16.mxu0 %v5762_v23  ;;  %2487 = vmatprep.mubr.bf16.mxu1 %v5762_v23 }
 0x198   :  { %2295 = vmatmul.mubr.bf16.gmra.mrb[28].mxu0 %v5764_v24  ;;  %2488 = vmatmul.mubr.bf16.gmra.mrb[28].mxu1 %v5764_v24 }
 0x199   :  { %2304 = vmatprep.mubr.bf16.mxu0 %v5765_v25  ;;  %2497 = vmatprep.mubr.bf16.mxu1 %v5765_v25 }
 0x1a0   :  { %2305 = vmatmul.mubr.bf16.gmra.mrb[32].mxu0 %v5767_v26  ;;  %2498 = vmatmul.mubr.bf16.gmra.mrb[32].mxu1 %v5767_v26 }
 0x1a1   :  { %2314 = vmatprep.mubr.bf16.mxu0 %v5768_v27  ;;  %2507 = vmatprep.mubr.bf16.mxu1 %v5768_v27 }
 0x1a8   :  { %2315 = vmatmul.mubr.bf16.gmra.mrb[36].mxu0 %v5770_v28  ;;  %2508 = vmatmul.mubr.bf16.gmra.mrb[36].mxu1 %v5770_v28 }
 0x1a9   :  { %2324 = vmatprep.mubr.bf16.mxu0 %v5771_v32  ;;  %2517 = vmatprep.mubr.bf16.mxu1 %v5771_v32 }
 0x1b0   :  { %2325 = vmatmul.mubr.bf16.gmra.mrb[40].mxu0 %v5773_v33  ;;  %2518 = vmatmul.mubr.bf16.gmra.mrb[40].mxu1 %v5773_v33 }
 0x1b1   :  { %2334 = vmatprep.mubr.bf16.mxu0 %v5774_v35  ;;  %2527 = vmatprep.mubr.bf16.mxu1 %v5774_v35 }
 0x1b8   :  { %2335 = vmatmul.mubr.bf16.gmra.mrb[44].mxu0 %v5776_v36  ;;  %2528 = vmatmul.mubr.bf16.gmra.mrb[44].mxu1 %v5776_v36  ;;  %v1900_v36 = vpop.permute.xlu1 %1899 }
 0x1b9   :  { %2344 = vmatprep.mubr.bf16.mxu0 %v5777_v37  ;;  %2537 = vmatprep.mubr.bf16.mxu1 %v5777_v37 }
 0x1c0   :  { %2345 = vmatmul.mubr.bf16.gmra.mrb[48].mxu0 %v5779_v38  ;;  %2538 = vmatmul.mubr.bf16.gmra.mrb[48].mxu1 %v5779_v38  ;;  %v1895_v38 = vpop.permute.xlu0 %1894 }
 0x1c1   :  { %2354 = vmatprep.mubr.bf16.mxu0 %v5780_v39  ;;  %2547 = vmatprep.mubr.bf16.mxu1 %v5780_v39 }
 0x1c8   :  { %2355 = vmatmul.mubr.bf16.gmra.mrb[52].mxu0 %v5782_v40  ;;  %2548 = vmatmul.mubr.bf16.gmra.mrb[52].mxu1 %v5782_v40 }
 0x1c9   :  { %2364 = vmatprep.mubr.bf16.mxu0 %v5783_v41  ;;  %2557 = vmatprep.mubr.bf16.mxu1 %v5783_v41 }
 0x1d0   :  { %2365 = vmatmul.mubr.bf16.gmra.mrb[56].mxu0 %v5785_v42  ;;  %2558 = vmatmul.mubr.bf16.gmra.mrb[56].mxu1 %v5785_v42 }
 0x1d1   :  { %2374 = vmatprep.mubr.bf16.mxu0 %v5786_v43  ;;  %2567 = vmatprep.mubr.bf16.mxu1 %v5786_v43 }
 0x1d8   :  { %2375 = vmatmul.mubr.bf16.gmra.mrb[60].mxu0 %v5788_v44  ;;  %2568 = vmatmul.mubr.bf16.gmra.mrb[60].mxu1 %v5788_v44 }
 0x233   :  { %v2226_v47 = vpop.f32.mrb[0].mxu0  ;;  %v2419_v49 = vpop.f32.mrb[0].mxu1 }
 0x234   :  { %v6851_v48 = vadd.f32 %v2226_v47, %v1875_v46  ;;  %v2228_v50 = vpop.f32.mrb[1].mxu0  ;;  %v6853_v51 = vadd.f32 %v2419_v49, %v1875_v46  ;;  %v2421_v53 = vpop.f32.mrb[1].mxu1 }
 0x235   :  { %v6855_v52 = vadd.f32 %v2228_v50, %v1875_v46  ;;  %v2230_v54 = vpop.f32.mrb[2].mxu0  ;;  %v6858_v56 = vadd.f32 %v2421_v53, %v1875_v46  ;;  %v2423_v58 = vpop.f32.mrb[2].mxu1 }
 0x236   :  { %v6860_v57 = vadd.f32 %v2230_v54, %v1880_v45  ;;  %v2232_v59 = vpop.f32.mrb[3].mxu0  ;;  %v6864_v31 = vadd.f32 %v2423_v58, %v1880_v45  ;;  %v2425_v30 = vpop.f32.mrb[3].mxu1 }
 0x237   :  { %v6866_v61 = vadd.f32 %v2232_v59, %v1880_v45  ;;  %v6870_v63 = vadd.f32 %v2425_v30, %v1880_v45 }
 0x23b   :  { %v2236_v5 = vpop.f32.mrb[4].mxu0  ;;  %v2429_v7 = vpop.f32.mrb[4].mxu1 }
 0x23c   :  { %v6875_v6 = vadd.f32 %v2236_v5, %v1885_v4  ;;  %v2238_v8 = vpop.f32.mrb[5].mxu0  ;;  %v6877_v9 = vadd.f32 %v2429_v7, %v1885_v4  ;;  %v2431_v11 = vpop.f32.mrb[5].mxu1 }
 0x23d   :  { %v6879_v10 = vadd.f32 %v2238_v8, %v1885_v4  ;;  %v2240_v12 = vpop.f32.mrb[6].mxu0  ;;  %v6882_v14 = vadd.f32 %v2431_v11, %v1885_v4  ;;  %v2433_v17 = vpop.f32.mrb[6].mxu1 }
 0x23e   :  { %v6884_v16 = vadd.f32 %v2240_v12, %v1890_v2  ;;  %v2242_v19 = vpop.f32.mrb[7].mxu0  ;;  %v6888_v24 = vadd.f32 %v2433_v17, %v1890_v2  ;;  %v2435_v26 = vpop.f32.mrb[7].mxu1 }
 0x23f   :  { %v6890_v25 = vadd.f32 %v2242_v19, %v1890_v2  ;;  %v6894_v32 = vadd.f32 %v2435_v26, %v1890_v2  ;;  %v1910_v17 = vpop.permute.xlu1 %1909  ;;  %v1905_v26 = vpop.permute.xlu0 %1904 }
 0x243   :  { %v2246_v39 = vpop.f32.mrb[8].mxu0  ;;  %v2439_v41 = vpop.f32.mrb[8].mxu1 }
 0x244   :  { %v6899_v40 = vadd.f32 %v2246_v39, %v1895_v38  ;;  %v2248_v42 = vpop.f32.mrb[9].mxu0  ;;  %v6901_v43 = vadd.f32 %v2439_v41, %v1895_v38  ;;  %v2441_v45 = vpop.f32.mrb[9].mxu1 }
 0x245   :  { %v6903_v44 = vadd.f32 %v2248_v42, %v1895_v38  ;;  %v2250_v46 = vpop.f32.mrb[10].mxu0  ;;  %v6906_v49 = vadd.f32 %v2441_v45, %v1895_v38  ;;  %v2443_v53 = vpop.f32.mrb[10].mxu1 }
 0x246   :  { %v6908_v50 = vadd.f32 %v2250_v46, %v1900_v36  ;;  %v2252_v54 = vpop.f32.mrb[11].mxu0  ;;  %v6912_v30 = vadd.f32 %v2443_v53, %v1900_v36  ;;  %v2445_v4 = vpop.f32.mrb[11].mxu1 }
 0x247   :  { %v6914_v2 = vadd.f32 %v2252_v54, %v1900_v36  ;;  %v6918_v8 = vadd.f32 %v2445_v4, %v1900_v36  ;;  %v1915_v5 = vpop.permute.xlu0 %1914 }
 0x24b   :  { %v2256_v38 = vpop.f32.mrb[12].mxu0  ;;  %v2449_v41 = vpop.f32.mrb[12].mxu1 }
 0x24c   :  { %v6923_v39 = vadd.f32 %v2256_v38, %v1905_v26  ;;  %v2258_v42 = vpop.f32.mrb[13].mxu0  ;;  %v6925_v45 = vadd.f32 %v2449_v41, %v1905_v26  ;;  %v2451_v53 = vpop.f32.mrb[13].mxu1 }
 0x24d   :  { %v6927_v46 = vadd.f32 %v2258_v42, %v1905_v26  ;;  %v2260_v36 = vpop.f32.mrb[14].mxu0  ;;  %v6930_v4 = vadd.f32 %v2451_v53, %v1905_v26  ;;  %v2453_v21 = vpop.f32.mrb[14].mxu1 }
 0x24e   :  { %v6932_v15 = vadd.f32 %v2260_v36, %v1910_v17  ;;  %v2262_v11 = vpop.f32.mrb[15].mxu0  ;;  %v6936_v7 = vadd.f32 %v2453_v21, %v1910_v17  ;;  %v2455_v42 = vpop.f32.mrb[15].mxu1 }
 0x24f   :  { %v6938_v41 = vadd.f32 %v2262_v11, %v1910_v17  ;;  %v6942_v54 = vadd.f32 %v2455_v42, %v1910_v17  ;;  %v1920_v36 = vpop.permute.xlu1 %1919  ;;  %v1925_v27 = vpop.permute.xlu0 %1924 }
 0x253   :  { %v2266_v38 = vpop.f32.mrb[16].mxu0  ;;  %v2459_v11 = vpop.f32.mrb[16].mxu1 }
 0x254   :  { %v6947_v21 = vadd.f32 %v2266_v38, %v1915_v5  ;;  %v2268_v12 = vpop.f32.mrb[17].mxu0  ;;  %v6949_v59 = vadd.f32 %v2459_v11, %v1915_v5  ;;  %v2461_v19 = vpop.f32.mrb[17].mxu1 }
 0x255   :  { %v6951_v47 = vadd.f32 %v2268_v12, %v1915_v5  ;;  %v2270_v17 = vpop.f32.mrb[18].mxu0  ;;  %v6954_v26 = vadd.f32 %v2461_v19, %v1915_v5  ;;  %v2463_v33 = vpop.f32.mrb[18].mxu1 }
 0x256   :  { %v6956_v53 = vadd.f32 %v2270_v17, %v1920_v36  ;;  %v2272_v58 = vpop.f32.mrb[19].mxu0  ;;  %v6960_v28 = vadd.f32 %v2463_v33, %v1920_v36  ;;  %v2465_v12 = vpop.f32.mrb[19].mxu1 }
 0x257   :  { %v6962_v11 = vadd.f32 %v2272_v58, %v1920_v36  ;;  %v6966_v42 = vadd.f32 %v2465_v12, %v1920_v36  ;;  %v1930_v17 = vpop.permute.xlu1 %1929  ;;  %v1935_v3 = vpop.permute.xlu0 %1934 }
 0x25b   :  { %v2276_v38 = vpop.f32.mrb[20].mxu0  ;;  %v2469_v58 = vpop.f32.mrb[20].mxu1 }
 0x25c   :  { %v6971_v33 = vadd.f32 %v2276_v38, %v1925_v27  ;;  %v2278_v35 = vpop.f32.mrb[21].mxu0  ;;  %v6973_v23 = vadd.f32 %v2469_v58, %v1925_v27  ;;  %v2471_v37 = vpop.f32.mrb[21].mxu1 }
 0x25d   :  { %v6975_v13 = vadd.f32 %v2278_v35, %v1925_v27  ;;  %v2280_v36 = vpop.f32.mrb[22].mxu0  ;;  %v6978_v5 = vadd.f32 %v2471_v37, %v1925_v27  ;;  %v2473_v22 = vpop.f32.mrb[22].mxu1 }
 0x25e   :  { %9743 = vst [vmem:[#allocation14_spill] sm:$0xff] %v6973_v23  ;;  %v6980_v19 = vadd.f32 %v2280_v36, %v1930_v17  ;;  %v2282_v20 = vpop.f32.mrb[23].mxu0  ;;  %v6984_v29 = vadd.f32 %v2473_v22, %v1930_v17  ;;  %v2475_v35 = vpop.f32.mrb[23].mxu1 }
 0x25f   :  { %v6986_v58 = vadd.f32 %v2282_v20, %v1930_v17  ;;  %v6990_v12 = vadd.f32 %v2475_v35, %v1930_v17  ;;  %v1940_v36 = vpop.permute.xlu1 %1939 }
 0x260   :  { %9744 = vst [vmem:[#allocation15_spill] sm:$0xff] %v6980_v19  ;;  %9745 = vst [vmem:[#allocation16_spill] sm:$0xff] %v6984_v29 }
 0x263   :  { %v2286_v38 = vpop.f32.mrb[24].mxu0  ;;  %v2479_v20 = vpop.f32.mrb[24].mxu1 }
 0x264   :  { %v6995_v22 = vadd.f32 %v2286_v38, %v1935_v3  ;;  %v2288_v62 = vpop.f32.mrb[25].mxu0  ;;  %v6997_v1 = vadd.f32 %v2479_v20, %v1935_v3  ;;  %v2481_v55 = vpop.f32.mrb[25].mxu1 }
 0x265   :  { %v6999_v34 = vadd.f32 %v2288_v62, %v1935_v3  ;;  %v2290_v17 = vpop.f32.mrb[26].mxu0  ;;  %v7002_v27 = vadd.f32 %v2481_v55, %v1935_v3  ;;  %v2483_v60 = vpop.f32.mrb[26].mxu1 }
 0x266   :  { %9746 = vst [vmem:[#allocation17_spill] sm:$0xff] %v6995_v22  ;;  %9747 = vst [vmem:[#allocation18_spill] sm:$0xff] %v6997_v1  ;;  %v7004_v37 = vadd.f32 %v2290_v17, %v1940_v36  ;;  %v2292_v0 = vpop.f32.mrb[27].mxu0  ;;  %v7008_v29 = vadd.f32 %v2483_v60, %v1940_v36  ;;  %v2485_v62 = vpop.f32.mrb[27].mxu1 }
 0x267   :  { %9748 = vst [vmem:[#allocation19_spill] sm:$0xff] %v6999_v34  ;;  %9749 = vst [vmem:[#allocation20_spill] sm:$0xff] %v7002_v27  ;;  %v7010_v20 = vadd.f32 %v2292_v0, %v1940_v36  ;;  %v7014_v35 = vadd.f32 %v2485_v62, %v1940_v36  ;;  %v1950_v17 = vpop.permute.xlu1 %1949  ;;  %v1945_v1 = vpop.permute.xlu0 %1944 }
 0x268   :  { %9750 = vst [vmem:[#allocation21_spill] sm:$0xff] %v7004_v37  ;;  %9751 = vst [vmem:[#allocation22_spill] sm:$0xff] %v7008_v29 }
 0x269   :  { %9752 = vst [vmem:[#allocation23_spill] sm:$0xff] %v7010_v20  ;;  %9753 = vst [vmem:[#allocation24_spill] sm:$0xff] %v7014_v35 }
 0x26b   :  { %v2296_v38 = vpop.f32.mrb[28].mxu0  ;;  %v2489_v0 = vpop.f32.mrb[28].mxu1 }
 0x26c   :  { %v7019_v60 = vadd.f32 %v2296_v38, %v1945_v1  ;;  %v2298_v22 = vpop.f32.mrb[29].mxu0  ;;  %v7021_v34 = vadd.f32 %v2489_v0, %v1945_v1  ;;  %v2491_v19 = vpop.f32.mrb[29].mxu1 }
 0x26d   :  { %v7023_v23 = vadd.f32 %v2298_v22, %v1945_v1  ;;  %v2300_v36 = vpop.f32.mrb[30].mxu0  ;;  %v7026_v55 = vadd.f32 %v2491_v19, %v1945_v1  ;;  %v2493_v29 = vpop.f32.mrb[30].mxu1 }
 0x26e   :  { %9754 = vst [vmem:[#allocation25_spill] sm:$0xff] %v7019_v60  ;;  %9755 = vst [vmem:[#allocation26_spill] sm:$0xff] %v7021_v34  ;;  %v7028_v3 = vadd.f32 %v2300_v36, %v1950_v17  ;;  %v2302_v18 = vpop.f32.mrb[31].mxu0  ;;  %v7032_v35 = vadd.f32 %v2493_v29, %v1950_v17  ;;  %v2495_v22 = vpop.f32.mrb[31].mxu1 }
 0x26f   :  { %9756 = vst [vmem:[#allocation27_spill] sm:$0xff] %v7023_v23  ;;  %9757 = vst [vmem:[#allocation28_spill] sm:$0xff] %v7026_v55  ;;  %v7034_v0 = vadd.f32 %v2302_v18, %v1950_v17  ;;  %v7038_v62 = vadd.f32 %v2495_v22, %v1950_v17  ;;  %v1960_v36 = vpop.permute.xlu1 %1959  ;;  %v1955_v34 = vpop.permute.xlu0 %1954 }
 0x270   :  { %9758 = vst [vmem:[#allocation29_spill] sm:$0xff] %v7028_v3  ;;  %9759 = vst [vmem:[#allocation30_spill] sm:$0xff] %v7032_v35 }
 0x271   :  { %9760 = vst [vmem:[#allocation31_spill] sm:$0xff] %v7034_v0  ;;  %9761 = vst [vmem:[#allocation32_spill] sm:$0xff] %v7038_v62 }
 0x273   :  { %v2306_v38 = vpop.f32.mrb[32].mxu0  ;;  %v2499_v18 = vpop.f32.mrb[32].mxu1 }
 0x274   :  { %v7043_v29 = vadd.f32 %v2306_v38, %v1955_v34  ;;  %v2308_v60 = vpop.f32.mrb[33].mxu0  ;;  %v7045_v23 = vadd.f32 %v2499_v18, %v1955_v34  ;;  %v2501_v20 = vpop.f32.mrb[33].mxu1 }
 0x275   :  { %v7047_v27 = vadd.f32 %v2308_v60, %v1955_v34  ;;  %v2310_v17 = vpop.f32.mrb[34].mxu0  ;;  %v7050_v1 = vadd.f32 %v2501_v20, %v1955_v34  ;;  %v2503_v35 = vpop.f32.mrb[34].mxu1 }
 0x276   :  { %9762 = vst [vmem:[#allocation33_spill] sm:$0xff] %v7043_v29  ;;  %9763 = vst [vmem:[#allocation34_spill] sm:$0xff] %v7045_v23  ;;  %v7052_v19 = vadd.f32 %v2310_v17, %v1960_v36  ;;  %v2312_v37 = vpop.f32.mrb[35].mxu0  ;;  %v7056_v62 = vadd.f32 %v2503_v35, %v1960_v36  ;;  %v2505_v60 = vpop.f32.mrb[35].mxu1 }
 0x277   :  { %9764 = vst [vmem:[#allocation35_spill] sm:$0xff] %v7047_v27  ;;  %9765 = vst [vmem:[#allocation36_spill] sm:$0xff] %v7050_v1  ;;  %v7058_v18 = vadd.f32 %v2312_v37, %v1960_v36  ;;  %v7062_v22 = vadd.f32 %v2505_v60, %v1960_v36  ;;  %v1970_v17 = vpop.permute.xlu1 %1969  ;;  %v1965_v23 = vpop.permute.xlu0 %1964 }
 0x278   :  { %9766 = vst [vmem:[#allocation37_spill] sm:$0xff] %v7052_v19  ;;  %9767 = vst [vmem:[#allocation38_spill] sm:$0xff] %v7056_v62 }
 0x279   :  { %9768 = vst [vmem:[#allocation39_spill] sm:$0xff] %v7058_v18  ;;  %9769 = vst [vmem:[#allocation40_spill] sm:$0xff] %v7062_v22 }
 0x27b   :  { %v2316_v38 = vpop.f32.mrb[36].mxu0  ;;  %v2509_v37 = vpop.f32.mrb[36].mxu1 }
 0x27c   :  { %v7067_v35 = vadd.f32 %v2316_v38, %v1965_v23  ;;  %v2318_v29 = vpop.f32.mrb[37].mxu0  ;;  %v7069_v27 = vadd.f32 %v2509_v37, %v1965_v23  ;;  %v2511_v0 = vpop.f32.mrb[37].mxu1 }
 0x27d   :  { %v7071_v55 = vadd.f32 %v2318_v29, %v1965_v23  ;;  %v2320_v36 = vpop.f32.mrb[38].mxu0  ;;  %v7074_v34 = vadd.f32 %v2511_v0, %v1965_v23  ;;  %v2513_v62 = vpop.f32.mrb[38].mxu1 }
 0x27e   :  { %9770 = vst [vmem:[#allocation41_spill] sm:$0xff] %v7067_v35  ;;  %9771 = vst [vmem:[#allocation42_spill] sm:$0xff] %v7069_v27  ;;  %v7076_v20 = vadd.f32 %v2320_v36, %v1970_v17  ;;  %v2322_v3 = vpop.f32.mrb[39].mxu0  ;;  %v7080_v22 = vadd.f32 %v2513_v62, %v1970_v17  ;;  %v2515_v29 = vpop.f32.mrb[39].mxu1 }
 0x27f   :  { %9772 = vst [vmem:[#allocation43_spill] sm:$0xff] %v7071_v55  ;;  %9773 = vst [vmem:[#allocation44_spill] sm:$0xff] %v7074_v34  ;;  %v7082_v37 = vadd.f32 %v2322_v3, %v1970_v17  ;;  %v7086_v60 = vadd.f32 %v2515_v29, %v1970_v17  ;;  %v1980_v36 = vpop.permute.xlu1 %1979  ;;  %v1975_v27 = vpop.permute.xlu0 %1974 }
 0x280   :  { %9774 = vst [vmem:[#allocation45_spill] sm:$0xff] %v7076_v20  ;;  %9775 = vst [vmem:[#allocation46_spill] sm:$0xff] %v7080_v22 }
 0x281   :  { %9776 = vst [vmem:[#allocation47_spill] sm:$0xff] %v7082_v37  ;;  %9777 = vst [vmem:[#allocation48_spill] sm:$0xff] %v7086_v60 }
 0x283   :  { %v2326_v38 = vpop.f32.mrb[40].mxu0  ;;  %v2519_v3 = vpop.f32.mrb[40].mxu1 }
 0x284   :  { %v7091_v62 = vadd.f32 %v2326_v38, %v1975_v27  ;;  %v2328_v35 = vpop.f32.mrb[41].mxu0  ;;  %v7093_v55 = vadd.f32 %v2519_v3, %v1975_v27  ;;  %v2521_v18 = vpop.f32.mrb[41].mxu1 }
 0x285   :  { %v7095_v1 = vadd.f32 %v2328_v35, %v1975_v27  ;;  %v2330_v17 = vpop.f32.mrb[42].mxu0  ;;  %v7098_v23 = vadd.f32 %v2521_v18, %v1975_v27  ;;  %v2523_v22 = vpop.f32.mrb[42].mxu1 }
 0x286   :  { %9778 = vst [vmem:[#allocation49_spill] sm:$0xff] %v7091_v62  ;;  %9779 = vst [vmem:[#allocation50_spill] sm:$0xff] %v7093_v55  ;;  %v7100_v0 = vadd.f32 %v2330_v17, %v1980_v36  ;;  %v2332_v19 = vpop.f32.mrb[43].mxu0  ;;  %v7104_v60 = vadd.f32 %v2523_v22, %v1980_v36  ;;  %v2525_v35 = vpop.f32.mrb[43].mxu1 }
 0x287   :  { %9780 = vst [vmem:[#allocation51_spill] sm:$0xff] %v7095_v1  ;;  %9781 = vst [vmem:[#allocation52_spill] sm:$0xff] %v7098_v23  ;;  %v7106_v3 = vadd.f32 %v2332_v19, %v1980_v36  ;;  %v7110_v29 = vadd.f32 %v2525_v35, %v1980_v36  ;;  %v1990_v17 = vpop.permute.xlu1 %1989  ;;  %v1985_v55 = vpop.permute.xlu0 %1984 }
 0x288   :  { %9782 = vst [vmem:[#allocation53_spill] sm:$0xff] %v7100_v0  ;;  %9783 = vst [vmem:[#allocation54_spill] sm:$0xff] %v7104_v60 }
 0x289   :  { %9784 = vst [vmem:[#allocation55_spill] sm:$0xff] %v7106_v3  ;;  %9785 = vst [vmem:[#allocation56_spill] sm:$0xff] %v7110_v29 }
 0x28b   :  { %v2336_v38 = vpop.f32.mrb[44].mxu0  ;;  %v2529_v19 = vpop.f32.mrb[44].mxu1 }
 0x28c   :  { %v7115_v22 = vadd.f32 %v2336_v38, %v1985_v55  ;;  %v2338_v62 = vpop.f32.mrb[45].mxu0  ;;  %v7117_v1 = vadd.f32 %v2529_v19, %v1985_v55  ;;  %v2531_v37 = vpop.f32.mrb[45].mxu1 }
 0x28d   :  { %v7119_v34 = vadd.f32 %v2338_v62, %v1985_v55  ;;  %v2340_v36 = vpop.f32.mrb[46].mxu0  ;;  %v7122_v27 = vadd.f32 %v2531_v37, %v1985_v55  ;;  %v2533_v60 = vpop.f32.mrb[46].mxu1 }
 0x28e   :  { %9786 = vst [vmem:[#allocation57_spill] sm:$0xff] %v7115_v22  ;;  %9787 = vst [vmem:[#allocation58_spill] sm:$0xff] %v7117_v1  ;;  %v7124_v18 = vadd.f32 %v2340_v36, %v1990_v17  ;;  %v2342_v20 = vpop.f32.mrb[47].mxu0  ;;  %v7128_v29 = vadd.f32 %v2533_v60, %v1990_v17  ;;  %v2535_v62 = vpop.f32.mrb[47].mxu1 }
 0x28f   :  { %9788 = vst [vmem:[#allocation59_spill] sm:$0xff] %v7119_v34  ;;  %9789 = vst [vmem:[#allocation60_spill] sm:$0xff] %v7122_v27  ;;  %v7130_v19 = vadd.f32 %v2342_v20, %v1990_v17  ;;  %v7134_v35 = vadd.f32 %v2535_v62, %v1990_v17  ;;  %v2000_v36 = vpop.permute.xlu1 %1999  ;;  %v1995_v1 = vpop.permute.xlu0 %1994 }
 0x290   :  { %9790 = vst [vmem:[#allocation61_spill] sm:$0xff] %v7124_v18  ;;  %9791 = vst [vmem:[#allocation62_spill] sm:$0xff] %v7128_v29 }
 0x291   :  { %9792 = vst [vmem:[#allocation63_spill] sm:$0xff] %v7130_v19  ;;  %9793 = vst [vmem:[#allocation64_spill] sm:$0xff] %v7134_v35 }
 0x293   :  { %v2346_v38 = vpop.f32.mrb[48].mxu0  ;;  %v2539_v20 = vpop.f32.mrb[48].mxu1 }
 0x294   :  { %v7139_v60 = vadd.f32 %v2346_v38, %v1995_v1  ;;  %v2348_v22 = vpop.f32.mrb[49].mxu0  ;;  %v7141_v34 = vadd.f32 %v2539_v20, %v1995_v1  ;;  %v2541_v3 = vpop.f32.mrb[49].mxu1 }
 0x295   :  { %v7143_v23 = vadd.f32 %v2348_v22, %v1995_v1  ;;  %v2350_v17 = vpop.f32.mrb[50].mxu0  ;;  %v7146_v55 = vadd.f32 %v2541_v3, %v1995_v1  ;;  %v2543_v29 = vpop.f32.mrb[50].mxu1 }
 0x296   :  { %9794 = vst [vmem:[#allocation65_spill] sm:$0xff] %v7139_v60  ;;  %9795 = vst [vmem:[#allocation66_spill] sm:$0xff] %v7141_v34  ;;  %v7148_v37 = vadd.f32 %v2350_v17, %v2000_v36  ;;  %v2352_v0 = vpop.f32.mrb[51].mxu0  ;;  %v7152_v35 = vadd.f32 %v2543_v29, %v2000_v36  ;;  %v2545_v22 = vpop.f32.mrb[51].mxu1 }
 0x297   :  { %9796 = vst [vmem:[#allocation67_spill] sm:$0xff] %v7143_v23  ;;  %9797 = vst [vmem:[#allocation68_spill] sm:$0xff] %v7146_v55  ;;  %v7154_v20 = vadd.f32 %v2352_v0, %v2000_v36  ;;  %v7158_v62 = vadd.f32 %v2545_v22, %v2000_v36  ;;  %v2010_v17 = vpop.permute.xlu1 %2009  ;;  %v2005_v34 = vpop.permute.xlu0 %2004 }
 0x298   :  { %9798 = vst [vmem:[#allocation69_spill] sm:$0xff] %v7148_v37  ;;  %9799 = vst [vmem:[#allocation70_spill] sm:$0xff] %v7152_v35 }
 0x299   :  { %9800 = vst [vmem:[#allocation71_spill] sm:$0xff] %v7154_v20  ;;  %9801 = vst [vmem:[#allocation72_spill] sm:$0xff] %v7158_v62 }
 0x29b   :  { %v2356_v38 = vpop.f32.mrb[52].mxu0  ;;  %v2549_v0 = vpop.f32.mrb[52].mxu1 }
 0x29c   :  { %v7163_v29 = vadd.f32 %v2356_v38, %v2005_v34  ;;  %v2358_v60 = vpop.f32.mrb[53].mxu0  ;;  %v7165_v23 = vadd.f32 %v2549_v0, %v2005_v34  ;;  %v2551_v19 = vpop.f32.mrb[53].mxu1 }
 0x29d   :  { %v7167_v27 = vadd.f32 %v2358_v60, %v2005_v34  ;;  %v2360_v36 = vpop.f32.mrb[54].mxu0  ;;  %v7170_v1 = vadd.f32 %v2551_v19, %v2005_v34  ;;  %v2553_v35 = vpop.f32.mrb[54].mxu1 }
 0x29e   :  { %9802 = vst [vmem:[#allocation73_spill] sm:$0xff] %v7163_v29  ;;  %9803 = vst [vmem:[#allocation74_spill] sm:$0xff] %v7165_v23  ;;  %v7172_v3 = vadd.f32 %v2360_v36, %v2010_v17  ;;  %v2362_v18 = vpop.f32.mrb[55].mxu0  ;;  %v7176_v62 = vadd.f32 %v2553_v35, %v2010_v17  ;;  %v2555_v60 = vpop.f32.mrb[55].mxu1 }
 0x29f   :  { %9804 = vst [vmem:[#allocation75_spill] sm:$0xff] %v7167_v27  ;;  %9805 = vst [vmem:[#allocation76_spill] sm:$0xff] %v7170_v1  ;;  %v7178_v0 = vadd.f32 %v2362_v18, %v2010_v17  ;;  %v7182_v22 = vadd.f32 %v2555_v60, %v2010_v17  ;;  %v2020_v36 = vpop.permute.xlu1 %2019  ;;  %v2015_v23 = vpop.permute.xlu0 %2014 }
 0x2a0   :  { %9806 = vst [vmem:[#allocation77_spill] sm:$0xff] %v7172_v3  ;;  %9807 = vst [vmem:[#allocation78_spill] sm:$0xff] %v7176_v62 }
 0x2a1   :  { %9808 = vst [vmem:[#allocation79_spill] sm:$0xff] %v7178_v0  ;;  %9809 = vst [vmem:[#allocation80_spill] sm:$0xff] %v7182_v22 }
 0x2a3   :  { %v2366_v38 = vpop.f32.mrb[56].mxu0  ;;  %v2559_v18 = vpop.f32.mrb[56].mxu1 }
 0x2a4   :  { %v7187_v35 = vadd.f32 %v2366_v38, %v2015_v23  ;;  %v2368_v29 = vpop.f32.mrb[57].mxu0  ;;  %v7189_v27 = vadd.f32 %v2559_v18, %v2015_v23  ;;  %v2561_v20 = vpop.f32.mrb[57].mxu1 }
 0x2a5   :  { %v7191_v55 = vadd.f32 %v2368_v29, %v2015_v23  ;;  %v2370_v17 = vpop.f32.mrb[58].mxu0  ;;  %v7194_v34 = vadd.f32 %v2561_v20, %v2015_v23  ;;  %v2563_v62 = vpop.f32.mrb[58].mxu1 }
 0x2a6   :  { %9810 = vst [vmem:[#allocation81_spill] sm:$0xff] %v7187_v35  ;;  %9811 = vst [vmem:[#allocation82_spill] sm:$0xff] %v7189_v27  ;;  %v7196_v19 = vadd.f32 %v2370_v17, %v2020_v36  ;;  %v2372_v37 = vpop.f32.mrb[59].mxu0  ;;  %v7200_v22 = vadd.f32 %v2563_v62, %v2020_v36  ;;  %v2565_v29 = vpop.f32.mrb[59].mxu1 }
 0x2a7   :  { %9812 = vst [vmem:[#allocation83_spill] sm:$0xff] %v7191_v55  ;;  %9813 = vst [vmem:[#allocation84_spill] sm:$0xff] %v7194_v34  ;;  %v7202_v18 = vadd.f32 %v2372_v37, %v2020_v36  ;;  %v7206_v60 = vadd.f32 %v2565_v29, %v2020_v36  ;;  %v2030_v17 = vpop.permute.xlu1 %2029  ;;  %v2025_v27 = vpop.permute.xlu0 %2024 }
 0x2a8   :  { %9814 = vst [vmem:[#allocation85_spill] sm:$0xff] %v7196_v19  ;;  %9815 = vst [vmem:[#allocation86_spill] sm:$0xff] %v7200_v22  ;;  %v9819_v19 = vmax.f32 %v6855_v52, 0.0 }
 0x2a9   :  { %9816 = vst [vmem:[#allocation87_spill] sm:$0xff] %v7202_v18  ;;  %9817 = vst [vmem:[#allocation88_spill] sm:$0xff] %v7206_v60  ;;  %v9823_v18 = vmax.f32 %v6851_v48, 0.0 }
 0x2ab   :  { %v2376_v38 = vpop.f32.mrb[60].mxu0  ;;  %v2569_v37 = vpop.f32.mrb[60].mxu1 }
 0x2ac   :  { %v7211_v62 = vadd.f32 %v2376_v38, %v2025_v27  ;;  %v2378_v35 = vpop.f32.mrb[61].mxu0  ;;  %v7213_v55 = vadd.f32 %v2569_v37, %v2025_v27  ;;  %v2571_v0 = vpop.f32.mrb[61].mxu1 }
 0x2ad   :  { %v7215_v1 = vadd.f32 %v2378_v35, %v2025_v27  ;;  %v2380_v36 = vpop.f32.mrb[62].mxu0  ;;  %v7218_v23 = vadd.f32 %v2571_v0, %v2025_v27  ;;  %v2573_v22 = vpop.f32.mrb[62].mxu1  ;;  %v9825_v27 = vmax.f32 %v6853_v51, 0.0  ;;  %v9826_v0 = vmax.f32 %v6864_v31, 0.0 }
 0x2ae   :  { %9818 = vst [vmem:[#allocation89_spill] sm:$0xff] %v7213_v55  ;;  %v7220_v20 = vadd.f32 %v2380_v36, %v2030_v17  ;;  %v2382_v3 = vpop.f32.mrb[63].mxu0  ;;  %v7224_v60 = vadd.f32 %v2573_v22, %v2030_v17  ;;  %v2575_v35 = vpop.f32.mrb[63].mxu1  ;;  %v9820_v22 = vmax.f32 %v6866_v61, 0.0  ;;  %v9822_v55 = vmax.f32 %v6870_v63, 0.0 }
 0x2af   :  { %v7226_v37 = vadd.f32 %v2382_v3, %v2030_v17  ;;  %v7230_v29 = vadd.f32 %v2575_v35, %v2030_v17  ;;  %v9821_v3 = vmax.f32 %v6858_v56, 0.0  ;;  %v9824_v17 = vmax.f32 %v6860_v57, 0.0 }
 0x2b0   :  { %v2743_v38 = vpack.c.bf16 %v9820_v22, %v9819_v19  ;;  %v2744_v36 = vpack.c.bf16 %v9826_v0, %v9825_v27 }
 0x2b1   :  { %v2745_v34 = vpack.c.bf16 %v9822_v55, %v9821_v3  ;;  %v2742_v35 = vpack.c.bf16 %v9824_v17, %v9823_v18 }
 0x2b2   :  { %5795 = dma.done.wait [#allocation5], 4096 }
 0x2b3   :  { %5796 = vsyncadd [#allocation5], 4294963200  ;;  %v9827_v52 = vmov 0   ;;  %v9828_v61 = vmax.f32 %v6879_v10, 0.0  ;;  %v9829_v56 = vmax.f32 %v6890_v25, 0.0  ;;  %v9830_v55 = vmax.f32 %v6882_v14, 0.0  ;;  %2998 = vmatprep.subr.bf16.mxu0 %v2743_v38  ;;  %3191 = vmatprep.subr.bf16.mxu1 %v2745_v34 }
 0x2b4   :  { %5789 = vset.pattern.permute.xlu0 %v9827_v52  ;;  %v9831_v48 = vmax.f32 %v6894_v32, 0.0  ;;  %5790 = vset.pattern.permute.xlu1 %v9827_v52  ;;  %v9832_v51 = vmax.f32 %v6875_v6, 0.0  ;;  %v9833_v31 = vmax.f32 %v6884_v16, 0.0  ;;  %v9834_v10 = vmax.f32 %v6877_v9, 0.0  ;;  %v2711_v22 = vld [vmem:[#allocation2 + $0x8] sm:$0xff] }
 0x2b5   :  { %v2747_v63 = vpack.c.bf16 %v9829_v56, %v9828_v61  ;;  %2999 = vmatpush1.bf16.msra.mxu0 %v2742_v35  ;;  %3192 = vmatpush1.bf16.msra.mxu1 %v2744_v36  ;;  %v9835_v25 = vmax.f32 %v6888_v24, 0.0  ;;  %v9836_v14 = vmax.f32 %v6903_v44, 0.0  ;;  %v9837_v32 = vmax.f32 %v6914_v2, 0.0 }
 0x2b6   :  { %v2749_v57 = vpack.c.bf16 %v9831_v48, %v9830_v55  ;;  %v2746_v19 = vpack.c.bf16 %v9833_v31, %v9832_v51  ;;  %v9838_v34 = vmax.f32 %v6906_v49, 0.0  ;;  %v9839_v27 = vmax.f32 %v6918_v8, 0.0  ;;  %3030 = vmatprep.mubr.bf16.mxu0 %v2711_v22  ;;  %3223 = vmatprep.mubr.bf16.mxu1 %v2711_v22 }
 0x2b7   :  { %v2748_v18 = vpack.c.bf16 %v9835_v25, %v9834_v10  ;;  %3000 = vmatprep.subr.bf16.mxu0 %v2747_v63  ;;  %v2751_v38 = vpack.c.bf16 %v9837_v32, %v9836_v14  ;;  %v9840_v16 = vmax.f32 %v6899_v40, 0.0  ;;  %v9841_v9 = vmax.f32 %v6908_v50, 0.0  ;;  %v9869_v10 = vld [vmem:[#allocation16_spill] sm:$0xff]  ;;  %v9873_v32 = vld [vmem:[#allocation23_spill] sm:$0xff] }
 0x2b8   :  { %3193 = vmatprep.subr.bf16.mxu1 %v2749_v57  ;;  %v2753_v6 = vpack.c.bf16 %v9839_v27, %v9838_v34  ;;  %v9842_v0 = vmax.f32 %v6901_v43, 0.0  ;;  %v9843_v36 = vmax.f32 %v6912_v30, 0.0  ;;  %v9844_v49 = vmax.f32 %v6927_v46, 0.0  ;;  %v9875_v27 = vld [vmem:[#allocation20_spill] sm:$0xff] }
 0x2b9   :  { %3001 = vmatpush1.bf16.msra.mxu0 %v2746_v19  ;;  %3194 = vmatpush1.bf16.msra.mxu1 %v2748_v18  ;;  %v2750_v24 = vpack.c.bf16 %v9841_v9, %v9840_v16  ;;  %v9845_v2 = vmax.f32 %v6938_v41, 0.0  ;;  %v9846_v3 = vmax.f32 %v6930_v4, 0.0  ;;  %v9847_v40 = vmax.f32 %v6942_v54, 0.0  ;;  %v9867_v19 = vld [vmem:[#allocation14_spill] sm:$0xff]  ;;  %v9871_v18 = vld [vmem:[#allocation19_spill] sm:$0xff]  ;;  %v9877_v16 = vld [vmem:[#allocation24_spill] sm:$0xff] }
 0x2ba   :  { %v2752_v44 = vpack.c.bf16 %v9843_v36, %v9842_v0  ;;  %3002 = vmatprep.subr.bf16.mxu0 %v2751_v38  ;;  %3195 = vmatprep.subr.bf16.mxu1 %v2753_v6  ;;  %v9848_v43 = vmax.f32 %v6923_v39, 0.0  ;;  %v9849_v50 = vmax.f32 %v6932_v15, 0.0  ;;  %v9850_v35 = vmax.f32 %v6925_v45, 0.0  ;;  %v9879_v0 = vld [vmem:[#allocation17_spill] sm:$0xff] }
 0x2bb   :  { %v2755_v8 = vpack.c.bf16 %v9845_v2, %v9844_v49  ;;  %v2757_v17 = vpack.c.bf16 %v9847_v40, %v9846_v3  ;;  %v9851_v46 = vmax.f32 %v6936_v7, 0.0  ;;  %v9852_v4 = vmax.f32 %v6951_v47, 0.0  ;;  %v9883_v2 = vld [vmem:[#allocation18_spill] sm:$0xff] }
 0x2bc   :  { %v2754_v30 = vpack.c.bf16 %v9849_v50, %v9848_v43  ;;  %v9853_v54 = vmax.f32 %v6962_v11, 0.0  ;;  %v9854_v56 = vmax.f32 %v6954_v26, 0.0  ;;  %v9855_v63 = vmax.f32 %v6966_v42, 0.0  ;;  %v9885_v3 = vld [vmem:[#allocation22_spill] sm:$0xff]  ;;  %v9887_v43 = vld [vmem:[#allocation27_spill] sm:$0xff] }
 0x2bd   :  { %3003 = vmatpush1.bf16.msra.mxu0 %v2750_v24  ;;  %3196 = vmatpush1.bf16.msra.mxu1 %v2752_v44  ;;  %v2756_v41 = vpack.c.bf16 %v9851_v46, %v9850_v35  ;;  %v9856_v15 = vmax.f32 %v6947_v21, 0.0  ;;  %v9857_v45 = vmax.f32 %v6956_v53, 0.0  ;;  %v9858_v55 = vmax.f32 %v6949_v59, 0.0  ;;  %v2806_v53 = vld [vmem:[%s9497_s6] sm:$0xff]  ;;  %v9865_v59 = vld [vmem:[#allocation15_spill] sm:$0xff]  ;;  %v2807_v24 = vld [vmem:[%s9497_s6 + $0x8] sm:$0xff] }
 0x2be   :  { %3004 = vmatprep.subr.bf16.mxu0 %v2755_v8  ;;  %3197 = vmatprep.subr.bf16.mxu1 %v2757_v17  ;;  %v2759_v61 = vpack.c.bf16 %v9853_v54, %v9852_v4  ;;  %v2761_v39 = vpack.c.bf16 %v9855_v63, %v9854_v56  ;;  %v9859_v48 = vmax.f32 %v6960_v28, 0.0  ;;  %v9860_v11 = vmax.f32 %v6975_v13, 0.0  ;;  %v2808_v28 = vld [vmem:[%s9497_s6 + $0x10] sm:$0xff]  ;;  %v9881_v44 = vld [vmem:[#allocation21_spill] sm:$0xff]  ;;  %v9893_v54 = vld [vmem:[#allocation32_spill] sm:$0xff] }
 0x2bf   :  { %v2758_v7 = vpack.c.bf16 %v9857_v45, %v9856_v15  ;;  %v9861_v26 = vmax.f32 %v6986_v58, 0.0  ;;  %v9862_v57 = vmax.f32 %v6978_v5, 0.0  ;;  %v9863_v51 = vmax.f32 %v6990_v12, 0.0  ;;  %2840 = vperm.xlu0 %5789, %v2806_v53   ;;  %2850 = vperm.xlu1 %5790, %v2808_v28   ;;  %v2809_v63 = vld [vmem:[%s9497_s6 + $0x18] sm:$0xff]  ;;  %v9895_v15 = vld [vmem:[#allocation25_spill] sm:$0xff] }
 0x2c0   :  { %v2760_v47 = vpack.c.bf16 %v9859_v48, %v9858_v55  ;;  %v9864_v13 = vmax.f32 %v6971_v33, 0.0  ;;  %v9866_v58 = vmax.f32 %v9865_v59, 0.0  ;;  %v9868_v5 = vmax.f32 %v9867_v19, 0.0  ;;  %v9905_v53 = vld [vmem:[#allocation39_spill] sm:$0xff]  ;;  %v9907_v59 = vld [vmem:[#allocation36_spill] sm:$0xff] }
 0x2c1   :  { %3005 = vmatpush1.bf16.msra.mxu0 %v2754_v30  ;;  %3198 = vmatpush1.bf16.msra.mxu1 %v2756_v41  ;;  %v2763_v42 = vpack.c.bf16 %v9861_v26, %v9860_v11  ;;  %v2765_v21 = vpack.c.bf16 %v9863_v51, %v9862_v57  ;;  %v9870_v12 = vmax.f32 %v9869_v10, 0.0  ;;  %v9872_v14 = vmax.f32 %v9871_v18, 0.0  ;;  %v9889_v30 = vld [vmem:[#allocation31_spill] sm:$0xff]  ;;  %v9891_v41 = vld [vmem:[#allocation28_spill] sm:$0xff]  ;;  %v9901_v26 = vld [vmem:[#allocation30_spill] sm:$0xff] }
 0x2c2   :  { %3006 = vmatprep.subr.bf16.mxu0 %v2759_v61  ;;  %3199 = vmatprep.subr.bf16.mxu1 %v2761_v39  ;;  %v2762_v31 = vpack.c.bf16 %v9866_v58, %v9864_v13  ;;  %v9874_v38 = vmax.f32 %v9873_v32, 0.0  ;;  %v9876_v6 = vmax.f32 %v9875_v27, 0.0  ;;  %v9878_v9 = vmax.f32 %v9877_v16, 0.0  ;;  %v2810_v39 = vld [vmem:[%s9497_s6 + $0x20] sm:$0xff]  ;;  %v9903_v51 = vld [vmem:[#allocation35_spill] sm:$0xff]  ;;  %v2811_v10 = vld [vmem:[%s9497_s6 + $0x28] sm:$0xff] }
 0x2c3   :  { %v2764_v25 = vpack.c.bf16 %v9870_v12, %v9868_v5  ;;  %v9880_v36 = vmax.f32 %v9879_v0, 0.0  ;;  %v9882_v22 = vmax.f32 %v9881_v44, 0.0  ;;  %v9884_v8 = vmax.f32 %v9883_v2, 0.0  ;;  %2845 = vperm.xlu0 %5789, %v2807_v24   ;;  %2855 = vperm.xlu1 %5790, %v2809_v63   ;;  %v9911_v12 = vld [vmem:[#allocation33_spill] sm:$0xff]  ;;  %v9917_v27 = vld [vmem:[#allocation38_spill] sm:$0xff]  ;;  %v9921_v24 = vld [vmem:[#allocation47_spill] sm:$0xff] }
 0x2c4   :  { %v2767_v34 = vpack.c.bf16 %v9874_v38, %v9872_v14  ;;  %v2769_v33 = vpack.c.bf16 %v9878_v9, %v9876_v6  ;;  %v9886_v40 = vmax.f32 %v9885_v3, 0.0  ;;  %v9888_v50 = vmax.f32 %v9887_v43, 0.0  ;;  %v9913_v18 = vld [vmem:[#allocation37_spill] sm:$0xff]  ;;  %v9915_v38 = vld [vmem:[#allocation34_spill] sm:$0xff]  ;;  %v9919_v9 = vld [vmem:[#allocation43_spill] sm:$0xff] }
 0x2c5   :  { %3007 = vmatpush1.bf16.msra.mxu0 %v2758_v7  ;;  %3200 = vmatpush1.bf16.msra.mxu1 %v2760_v47  ;;  %v2766_v49 = vpack.c.bf16 %v9882_v22, %v9880_v36  ;;  %v9890_v35 = vmax.f32 %v9889_v30, 0.0  ;;  %v9892_v4 = vmax.f32 %v9891_v41, 0.0  ;;  %v9894_v61 = vmax.f32 %v9893_v54, 0.0  ;;  %v9897_v7 = vld [vmem:[#allocation29_spill] sm:$0xff]  ;;  %v9899_v47 = vld [vmem:[#allocation26_spill] sm:$0xff]  ;;  %v9923_v44 = vld [vmem:[#allocation44_spill] sm:$0xff] }
 0x2c6   :  { %3008 = vmatprep.subr.bf16.mxu0 %v2763_v42  ;;  %3201 = vmatprep.subr.bf16.mxu1 %v2765_v21  ;;  %v2768_v17 = vpack.c.bf16 %v9886_v40, %v9884_v8  ;;  %v9896_v45 = vmax.f32 %v9895_v15, 0.0  ;;  %v9898_v55 = vmax.f32 %v9897_v7, 0.0  ;;  %v9900_v11 = vmax.f32 %v9899_v47, 0.0  ;;  %v2813_v3 = vld [vmem:[%s9497_s6 + $0x38] sm:$0xff]  ;;  %v2812_v40 = vld [vmem:[%s9497_s6 + $0x30] sm:$0xff] }
 0x2c7   :  { %v2771_v46 = vpack.c.bf16 %v9890_v35, %v9888_v50  ;;  %v2773_v56 = vpack.c.bf16 %v9894_v61, %v9892_v4  ;;  %v9902_v42 = vmax.f32 %v9901_v26, 0.0  ;;  %v9904_v21 = vmax.f32 %v9903_v51, 0.0  ;;  %2860 = vperm.xlu0 %5789, %v2810_v39   ;;  %2865 = vperm.xlu1 %5790, %v2811_v10   ;;  %v9929_v50 = vld [vmem:[#allocation45_spill] sm:$0xff]  ;;  %v9933_v4 = vld [vmem:[#allocation46_spill] sm:$0xff]  ;;  %v9937_v39 = vld [vmem:[#allocation55_spill] sm:$0xff] }
 0x2c8   :  { %v2770_v48 = vpack.c.bf16 %v9898_v55, %v9896_v45  ;;  %v9906_v28 = vmax.f32 %v9905_v53, 0.0  ;;  %v9908_v58 = vmax.f32 %v9907_v59, 0.0  ;;  %v9914_v14 = vmax.f32 %v9913_v18, 0.0  ;;  %v9939_v7 = vld [vmem:[#allocation52_spill] sm:$0xff]  ;;  %v2815_v26 = vld [vmem:[%s9497_s6 + $0x48] sm:$0xff] }
 0x2c9   :  { %3009 = vmatpush1.bf16.msra.mxu0 %v2762_v31  ;;  %3202 = vmatpush1.bf16.msra.mxu1 %v2764_v25  ;;  %v2772_v57 = vpack.c.bf16 %v9902_v42, %v9900_v11  ;;  %v9909_v31 = vld [vmem:[#allocation40_spill] sm:$0xff]  ;;  %v9912_v25 = vmax.f32 %v9911_v12, 0.0  ;;  %v9918_v6 = vmax.f32 %v9917_v27, 0.0  ;;  %v9922_v0 = vmax.f32 %v9921_v24, 0.0  ;;  %v9953_v12 = vld [vmem:[#allocation63_spill] sm:$0xff]  ;;  %v9961_v24 = vld [vmem:[#allocation61_spill] sm:$0xff] }
 0x2ca   :  { %3010 = vmatprep.subr.bf16.mxu0 %v2767_v34  ;;  %3203 = vmatprep.subr.bf16.mxu1 %v2769_v33  ;;  %v2775_v13 = vpack.c.bf16 %v9906_v28, %v9904_v21  ;;  %v9910_v19 = vmax.f32 %v9909_v31, 0.0  ;;  %v9916_v34 = vmax.f32 %v9915_v38, 0.0  ;;  %v9920_v33 = vmax.f32 %v9919_v9, 0.0  ;;  %v2814_v42 = vld [vmem:[%s9497_s6 + $0x40] sm:$0xff] }
 0x2cb   :  { %v2774_v32 = vpack.c.bf16 %v9914_v14, %v9912_v25  ;;  %v9924_v22 = vmax.f32 %v9923_v44, 0.0  ;;  %v9930_v30 = vmax.f32 %v9929_v50, 0.0  ;;  %v9934_v54 = vmax.f32 %v9933_v4, 0.0  ;;  %2875 = vperm.xlu1 %5790, %v2813_v3   ;;  %2870 = vperm.xlu0 %5789, %v2812_v40   ;;  %v9945_v21 = vld [vmem:[#allocation53_spill] sm:$0xff]  ;;  %v9955_v14 = vld [vmem:[#allocation60_spill] sm:$0xff]  ;;  %v9963_v44 = vld [vmem:[#allocation58_spill] sm:$0xff] }
 0x2cc   :  { %v2777_v5 = vpack.c.bf16 %v9910_v19, %v9908_v58  ;;  %v2776_v16 = vpack.c.bf16 %v9918_v6, %v9916_v34  ;;  %v2779_v36 = vpack.c.bf16 %v9922_v0, %v9920_v33  ;;  %v9938_v15 = vmax.f32 %v9937_v39, 0.0  ;;  %v9949_v58 = vld [vmem:[#allocation54_spill] sm:$0xff]  ;;  %v9957_v38 = vld [vmem:[#allocation64_spill] sm:$0xff]  ;;  %v9959_v9 = vld [vmem:[#allocation57_spill] sm:$0xff] }
 0x2cd   :  { %3011 = vmatpush1.bf16.msra.mxu0 %v2766_v49  ;;  %3204 = vmatpush1.bf16.msra.mxu1 %v2768_v17  ;;  %v9925_v49 = vld [vmem:[#allocation48_spill] sm:$0xff]  ;;  %v9927_v17 = vld [vmem:[#allocation41_spill] sm:$0xff]  ;;  %v9940_v55 = vmax.f32 %v9939_v7, 0.0  ;;  %v9946_v53 = vmax.f32 %v9945_v21, 0.0  ;;  %v9950_v31 = vmax.f32 %v9949_v58, 0.0  ;;  %v9954_v25 = vmax.f32 %v9953_v12, 0.0 }
 0x2ce   :  { %3012 = vmatprep.subr.bf16.mxu0 %v2771_v46  ;;  %3205 = vmatprep.subr.bf16.mxu1 %v2773_v56  ;;  %v9926_v2 = vmax.f32 %v9925_v49, 0.0  ;;  %v9928_v43 = vmax.f32 %v9927_v17, 0.0  ;;  %v9931_v46 = vld [vmem:[#allocation42_spill] sm:$0xff]  ;;  %v9935_v56 = vld [vmem:[#allocation51_spill] sm:$0xff]  ;;  %v9958_v34 = vmax.f32 %v9957_v38, 0.0  ;;  %v9960_v33 = vmax.f32 %v9959_v9, 0.0 }
 0x2cf   :  { %v9932_v41 = vmax.f32 %v9931_v46, 0.0  ;;  %v9936_v63 = vmax.f32 %v9935_v56, 0.0  ;;  %2885 = vperm.xlu1 %5790, %v2815_v26   ;;  %2880 = vperm.xlu0 %5789, %v2814_v42   ;;  %v2817_v6 = vld [vmem:[%s9497_s6 + $0x58] sm:$0xff]  ;;  %v9962_v0 = vmax.f32 %v9961_v24, 0.0  ;;  %v9965_v49 = vld [vmem:[#allocation62_spill] sm:$0xff]  ;;  %v9975_v56 = vld [vmem:[#allocation65_spill] sm:$0xff] }
 0x2d0   :  { %v2781_v8 = vpack.c.bf16 %v9926_v2, %v9924_v22  ;;  %v2778_v35 = vpack.c.bf16 %v9930_v30, %v9928_v43  ;;  %v9964_v22 = vmax.f32 %v9963_v44, 0.0  ;;  %v9966_v2 = vmax.f32 %v9965_v49, 0.0  ;;  %v9967_v3 = vld [vmem:[#allocation67_spill] sm:$0xff]  ;;  %v9971_v30 = vld [vmem:[#allocation68_spill] sm:$0xff]  ;;  %v9977_v39 = vld [vmem:[#allocation69_spill] sm:$0xff] }
 0x2d1   :  { %3013 = vmatpush1.bf16.msra.mxu0 %v2770_v48  ;;  %3206 = vmatpush1.bf16.msra.mxu1 %v2772_v57  ;;  %v2780_v61 = vpack.c.bf16 %v9934_v54, %v9932_v41  ;;  %v2783_v45 = vpack.c.bf16 %v9938_v15, %v9936_v63  ;;  %v9941_v48 = vld [vmem:[#allocation56_spill] sm:$0xff]  ;;  %v9943_v57 = vld [vmem:[#allocation49_spill] sm:$0xff]  ;;  %v9968_v40 = vmax.f32 %v9967_v3, 0.0  ;;  %v9969_v17 = vld [vmem:[#allocation71_spill] sm:$0xff]  ;;  %v9976_v63 = vmax.f32 %v9975_v56, 0.0 }
 0x2d2   :  { %3014 = vmatprep.subr.bf16.mxu0 %v2775_v13  ;;  %3207 = vmatprep.subr.bf16.mxu1 %v2777_v5  ;;  %v9942_v47 = vmax.f32 %v9941_v48, 0.0  ;;  %v9944_v51 = vmax.f32 %v9943_v57, 0.0  ;;  %v9947_v13 = vld [vmem:[#allocation50_spill] sm:$0xff]  ;;  %v9951_v5 = vld [vmem:[#allocation59_spill] sm:$0xff]  ;;  %v9970_v43 = vmax.f32 %v9969_v17, 0.0  ;;  %v9973_v46 = vld [vmem:[#allocation72_spill] sm:$0xff] }
 0x2d3   :  { %v9948_v59 = vmax.f32 %v9947_v13, 0.0  ;;  %v9952_v10 = vmax.f32 %v9951_v5, 0.0  ;;  %v9974_v41 = vmax.f32 %v9973_v46, 0.0  ;;  %2895 = vperm.xlu1 %5790, %v2817_v6   ;;  %v2819_v54 = vld [vmem:[%s9497_s6 + $0x68] sm:$0xff]  ;;  %v9978_v15 = vmax.f32 %v9977_v39, 0.0  ;;  %v9983_v26 = vld [vmem:[#allocation75_spill] sm:$0xff] }
 0x2d4   :  { %v2785_v11 = vpack.c.bf16 %v9942_v47, %v9940_v55  ;;  %v2782_v28 = vpack.c.bf16 %v9946_v53, %v9944_v51  ;;  %v2791_v50 = vpack.c.bf16 %v9970_v43, %v9968_v40  ;;  %v9979_v7 = vld [vmem:[#allocation66_spill] sm:$0xff]  ;;  %v9984_v42 = vmax.f32 %v9983_v26, 0.0  ;;  %v9985_v57 = vld [vmem:[#allocation79_spill] sm:$0xff]  ;;  %v9987_v53 = vld [vmem:[#allocation76_spill] sm:$0xff] }
 0x2d5   :  { %3015 = vmatpush1.bf16.msra.mxu0 %v2774_v32  ;;  %3208 = vmatpush1.bf16.msra.mxu1 %v2776_v16  ;;  %v2784_v19 = vpack.c.bf16 %v9950_v31, %v9948_v59  ;;  %v2787_v18 = vpack.c.bf16 %v9954_v25, %v9952_v10  ;;  %v9956_v32 = vmax.f32 %v9955_v14, 0.0  ;;  %v2816_v16 = vld [vmem:[%s9497_s6 + $0x50] sm:$0xff]  ;;  %v9980_v55 = vmax.f32 %v9979_v7, 0.0  ;;  %v9989_v13 = vld [vmem:[#allocation80_spill] sm:$0xff]  ;;  %v9991_v5 = vld [vmem:[#allocation73_spill] sm:$0xff] }
 0x2d6   :  { %3016 = vmatprep.subr.bf16.mxu0 %v2779_v36  ;;  %3209 = vmatprep.subr.bf16.mxu1 %v2781_v8  ;;  %v2786_v36 = vpack.c.bf16 %v9962_v0, %v9960_v33  ;;  %v2788_v8 = vpack.c.bf16 %v9966_v2, %v9964_v22  ;;  %v9981_v48 = vld [vmem:[#allocation70_spill] sm:$0xff]  ;;  %v9986_v51 = vmax.f32 %v9985_v57, 0.0  ;;  %v9990_v59 = vmax.f32 %v9989_v13, 0.0  ;;  %v2821_v31 = vld [vmem:[%s9497_s6 + $0x78] sm:$0xff]  ;;  %v9993_v12 = vld [vmem:[#allocation77_spill] sm:$0xff] }
 0x2d7   :  { %v2789_v27 = vpack.c.bf16 %v9958_v34, %v9956_v32  ;;  %2890 = vperm.xlu0 %5789, %v2816_v16   ;;  %v9982_v47 = vmax.f32 %v9981_v48, 0.0  ;;  %2905 = vperm.xlu1 %5790, %v2819_v54   ;;  %v9992_v10 = vmax.f32 %v9991_v5, 0.0  ;;  %v9994_v25 = vmax.f32 %v9993_v12, 0.0  ;;  %v9995_v14 = vld [vmem:[#allocation74_spill] sm:$0xff]  ;;  %v9999_v6 = vld [vmem:[#allocation83_spill] sm:$0xff]  ;;  %v10003_v0 = vld [vmem:[#allocation84_spill] sm:$0xff] }
 0x2d8   :  { %v2795_v21 = vpack.c.bf16 %v9986_v51, %v9984_v42  ;;  %v9996_v32 = vmax.f32 %v9995_v14, 0.0  ;;  %v9997_v38 = vld [vmem:[#allocation78_spill] sm:$0xff]  ;;  %v10000_v16 = vmax.f32 %v9999_v6, 0.0  ;;  %v10001_v9 = vld [vmem:[#allocation87_spill] sm:$0xff]  ;;  %v10005_v44 = vld [vmem:[#allocation88_spill] sm:$0xff]  ;;  %v10015_v54 = vmax.f32 %v7215_v1, 0.0 }
 0x2d9   :  { %3017 = vmatpush1.bf16.msra.mxu0 %v2778_v35  ;;  %3210 = vmatpush1.bf16.msra.mxu1 %v2780_v61  ;;  %v9972_v35 = vmax.f32 %v9971_v30, 0.0  ;;  %v2818_v61 = vld [vmem:[%s9497_s6 + $0x60] sm:$0xff]  ;;  %v9998_v34 = vmax.f32 %v9997_v38, 0.0  ;;  %v10002_v33 = vmax.f32 %v10001_v9, 0.0  ;;  %v10006_v22 = vmax.f32 %v10005_v44, 0.0  ;;  %v2823_v2 = vld [vmem:[%s9497_s6 + $0x88] sm:$0xff] }
 0x2da   :  { %3018 = vmatprep.subr.bf16.mxu0 %v2783_v45  ;;  %3211 = vmatprep.subr.bf16.mxu1 %v2785_v11  ;;  %v2790_v45 = vpack.c.bf16 %v9978_v15, %v9976_v63  ;;  %v2792_v11 = vpack.c.bf16 %v9982_v47, %v9980_v55  ;;  %v10007_v3 = vld [vmem:[#allocation81_spill] sm:$0xff]  ;;  %v10011_v30 = vld [vmem:[#allocation82_spill] sm:$0xff]  ;;  %v10017_v63 = vmax.f32 %v7218_v23, 0.0  ;;  %v10018_v39 = vmax.f32 %v7230_v29, 0.0  ;;  %v2713_v26 = vld [vmem:[#allocation2 + $0x18] sm:$0xff] }
 0x2db   :  { %v2793_v4 = vpack.c.bf16 %v9974_v41, %v9972_v35  ;;  %2900 = vperm.xlu0 %5789, %v2818_v61   ;;  %v2799_v24 = vpack.c.bf16 %v10002_v33, %v10000_v16  ;;  %2915 = vperm.xlu1 %5790, %v2821_v31   ;;  %v10008_v40 = vmax.f32 %v10007_v3, 0.0  ;;  %v10009_v17 = vld [vmem:[#allocation85_spill] sm:$0xff]  ;;  %v10012_v35 = vmax.f32 %v10011_v30, 0.0  ;;  %v10013_v46 = vld [vmem:[#allocation86_spill] sm:$0xff]  ;;  %v2837_v5 = vld [vmem:[%s9497_s6 + $0xf8] sm:$0xff] }
 0x2dc   :  { %v10010_v43 = vmax.f32 %v10009_v17, 0.0  ;;  %v10014_v41 = vmax.f32 %v10013_v46, 0.0  ;;  %v10016_v61 = vmax.f32 %v7226_v37, 0.0  ;;  %v2805_v15 = vpack.c.bf16 %v10018_v39, %v10017_v63  ;;  %v2824_v7 = vld [vmem:[%s9497_s6 + $0x90] sm:$0xff]  ;;  %v10021_v55 = vld [vmem:[#allocation89_spill] sm:$0xff]  ;;  %v2721_v14 = vld [vmem:[#allocation2 + $0x58] sm:$0xff] }
 0x2dd   :  { %3019 = vmatpush1.bf16.msra.mxu0 %v2782_v28  ;;  %3212 = vmatpush1.bf16.msra.mxu1 %v2784_v19  ;;  %v9988_v28 = vmax.f32 %v9987_v53, 0.0  ;;  %v2820_v19 = vld [vmem:[%s9497_s6 + $0x70] sm:$0xff]  ;;  %v10019_v1 = vmax.f32 %v7211_v62, 0.0  ;;  %v10020_v37 = vmax.f32 %v7220_v20, 0.0  ;;  %v10022_v29 = vmax.f32 %v10021_v55, 0.0  ;;  %v2826_v62 = vld [vmem:[%s9497_s6 + $0xa0] sm:$0xff] }
 0x2de   :  { %3020 = vmatprep.subr.bf16.mxu0 %v2787_v18  ;;  %3213 = vmatprep.subr.bf16.mxu1 %v2789_v27  ;;  %v2794_v18 = vpack.c.bf16 %v9994_v25, %v9992_v10  ;;  %v2796_v27 = vpack.c.bf16 %v9998_v34, %v9996_v32  ;;  %v2803_v56 = vpack.c.bf16 %v10016_v61, %v10015_v54  ;;  %v10023_v48 = vmax.f32 %v7224_v60, 0.0  ;;  %v2710_v20 = vld [vmem:[#allocation2] sm:$0xff]  ;;  %v2829_v60 = vld [vmem:[%s9497_s6 + $0xb8] sm:$0xff]  ;;  %v2828_v42 = vld [vmem:[%s9497_s6 + $0xb0] sm:$0xff] }
 0x2df   :  { %v2797_v58 = vpack.c.bf16 %v9990_v59, %v9988_v28  ;;  %2910 = vperm.xlu0 %5789, %v2820_v19   ;;  %2925 = vperm.xlu1 %5790, %v2823_v2   ;;  %v2802_v23 = vpack.c.bf16 %v10020_v37, %v10019_v1  ;;  %v2831_v57 = vld [vmem:[%s9497_s6 + $0xc8] sm:$0xff]  ;;  %v2830_v51 = vld [vmem:[%s9497_s6 + $0xc0] sm:$0xff]  ;;  %v2833_v28 = vld [vmem:[%s9497_s6 + $0xd8] sm:$0xff] }
 0x2e0   :  { %v2804_v47 = vpack.c.bf16 %v10023_v48, %v10022_v29  ;;  %v2715_v53 = vld [vmem:[#allocation2 + $0x28] sm:$0xff]  ;;  %v2832_v13 = vld [vmem:[%s9497_s6 + $0xd0] sm:$0xff]  ;;  %v2714_v31 = vld [vmem:[#allocation2 + $0x20] sm:$0xff] }
 0x2e1   :  { %3021 = vmatpush1.bf16.msra.mxu0 %v2786_v36  ;;  %3214 = vmatpush1.bf16.msra.mxu1 %v2788_v8  ;;  %v10004_v36 = vmax.f32 %v10003_v0, 0.0  ;;  %v2822_v8 = vld [vmem:[%s9497_s6 + $0x80] sm:$0xff]  ;;  %v2835_v59 = vld [vmem:[%s9497_s6 + $0xe8] sm:$0xff]  ;;  %v2717_v19 = vld [vmem:[#allocation2 + $0x38] sm:$0xff] }
 0x2e2   :  { %3022 = vmatprep.subr.bf16.mxu0 %v2791_v50  ;;  %3215 = vmatprep.subr.bf16.mxu1 %v2793_v4  ;;  %v2798_v50 = vpack.c.bf16 %v10010_v43, %v10008_v40  ;;  %v2800_v4 = vpack.c.bf16 %v10014_v41, %v10012_v35  ;;  %v2836_v10 = vld [vmem:[%s9497_s6 + $0xf0] sm:$0xff]  ;;  %v2719_v25 = vld [vmem:[#allocation2 + $0x48] sm:$0xff]  ;;  %v2722_v34 = vld [vmem:[#allocation2 + $0x60] sm:$0xff] }
 0x2e3   :  { %v2801_v49 = vpack.c.bf16 %v10006_v22, %v10004_v36  ;;  %2920 = vperm.xlu0 %5789, %v2822_v8   ;;  %v2716_v12 = vld [vmem:[#allocation2 + $0x30] sm:$0xff]  ;;  %v2723_v38 = vld [vmem:[#allocation2 + $0x68] sm:$0xff]  ;;  %v2726_v9 = vld [vmem:[#allocation2 + $0x80] sm:$0xff] }
 0x2e4   :  { %v2720_v32 = vld [vmem:[#allocation2 + $0x50] sm:$0xff]  ;;  %v2727_v16 = vld [vmem:[#allocation2 + $0x88] sm:$0xff]  ;;  %v2729_v33 = vld [vmem:[#allocation2 + $0x98] sm:$0xff] }
 0x2e5   :  { %3023 = vmatpush1.bf16.msra.mxu0 %v2790_v45  ;;  %3216 = vmatpush1.bf16.msra.mxu1 %v2792_v11  ;;  %v2825_v45 = vld [vmem:[%s9497_s6 + $0x98] sm:$0xff]  ;;  %v2827_v11 = vld [vmem:[%s9497_s6 + $0xa8] sm:$0xff]  ;;  %v2724_v6 = vld [vmem:[#allocation2 + $0x70] sm:$0xff] }
 0x2e6   :  { %3024 = vmatprep.subr.bf16.mxu0 %v2795_v21  ;;  %3217 = vmatprep.subr.bf16.mxu1 %v2797_v58  ;;  %v2712_v21 = vld [vmem:[#allocation2 + $0x10] sm:$0xff]  ;;  %v2834_v58 = vld [vmem:[%s9497_s6 + $0xe0] sm:$0xff]  ;;  %v2731_v0 = vld [vmem:[#allocation2 + $0xa8] sm:$0xff] }
 0x2e7   :  { %2935 = vperm.xlu1 %5790, %v2825_v45   ;;  %2930 = vperm.xlu0 %5789, %v2824_v7   ;;  %v2730_v36 = vld [vmem:[#allocation2 + $0xa0] sm:$0xff]  ;;  %v2733_v44 = vld [vmem:[#allocation2 + $0xb8] sm:$0xff]  ;;  %v2732_v22 = vld [vmem:[#allocation2 + $0xb0] sm:$0xff] }
 0x2e8   :  { %v2734_v2 = vld [vmem:[#allocation2 + $0xc0] sm:$0xff]  ;;  %v2737_v8 = vld [vmem:[#allocation2 + $0xd8] sm:$0xff]  ;;  %v2736_v3 = vld [vmem:[#allocation2 + $0xd0] sm:$0xff] }
 0x2e9   :  { %3025 = vmatpush1.bf16.msra.mxu0 %v2794_v18  ;;  %3218 = vmatpush1.bf16.msra.mxu1 %v2796_v27  ;;  %v2718_v18 = vld [vmem:[#allocation2 + $0x40] sm:$0xff]  ;;  %v2725_v27 = vld [vmem:[#allocation2 + $0x78] sm:$0xff]  ;;  %v2739_v40 = vld [vmem:[#allocation2 + $0xe8] sm:$0xff] }
 0x2ea   :  { %3026 = vmatprep.subr.bf16.mxu0 %v2799_v24  ;;  %3219 = vmatprep.subr.bf16.mxu1 %v2801_v49  ;;  %v2728_v24 = vld [vmem:[#allocation2 + $0x90] sm:$0xff]  ;;  %v2735_v49 = vld [vmem:[#allocation2 + $0xc8] sm:$0xff]  ;;  %v2738_v17 = vld [vmem:[#allocation2 + $0xe0] sm:$0xff] }
 0x2eb   :  { %2945 = vperm.xlu1 %5790, %v2827_v11   ;;  %2940 = vperm.xlu0 %5789, %v2826_v62   ;;  %v2741_v43 = vld [vmem:[#allocation2 + $0xf8] sm:$0xff] }
 0x2ed   :  { %3027 = vmatpush1.bf16.msra.mxu0 %v2798_v50  ;;  %3220 = vmatpush1.bf16.msra.mxu1 %v2800_v4  ;;  %v2740_v50 = vld [vmem:[#allocation2 + $0xf0] sm:$0xff] }
 0x2ee   :  { %3028 = vmatprep.subr.bf16.mxu0 %v2803_v56  ;;  %3221 = vmatprep.subr.bf16.mxu1 %v2805_v15 }
 0x2ef   :  { %2955 = vperm.xlu1 %5790, %v2829_v60   ;;  %2950 = vperm.xlu0 %5789, %v2828_v42  }
 0x2f1   :  { %3029 = vmatpush1.bf16.msra.mxu0 %v2802_v23  ;;  %3222 = vmatpush1.bf16.msra.mxu1 %v2804_v47 }
 0x2f3   :  { %2965 = vperm.xlu1 %5790, %v2831_v57   ;;  %2960 = vperm.xlu0 %5789, %v2830_v51  }
 0x2f4   :  { %3031 = vmatmul.mubr.bf16.vlgmr.msra.gmra.mrb[64].mxu0 %v2710_v20  ;;  %3224 = vmatmul.mubr.bf16.vlgmr.msra.gmra.mrb[64].mxu1 %v2710_v20 }
 0x2f5   :  { %3040 = vmatprep.mubr.bf16.mxu0 %v2713_v26  ;;  %3233 = vmatprep.mubr.bf16.mxu1 %v2713_v26 }
 0x2f7   :  { %2975 = vperm.xlu1 %5790, %v2833_v28   ;;  %2970 = vperm.xlu0 %5789, %v2832_v13  }
 0x2fb   :  { %2985 = vperm.xlu1 %5790, %v2835_v59   ;;  %2980 = vperm.xlu0 %5789, %v2834_v58  }
 0x2fc   :  { %3041 = vmatmul.mubr.bf16.gmra.mrb[68].mxu0 %v2712_v21  ;;  %3234 = vmatmul.mubr.bf16.gmra.mrb[68].mxu1 %v2712_v21 }
 0x2fd   :  { %3050 = vmatprep.mubr.bf16.mxu0 %v2715_v53  ;;  %3243 = vmatprep.mubr.bf16.mxu1 %v2715_v53 }
 0x2ff   :  { %2995 = vperm.xlu1 %5790, %v2837_v5   ;;  %2990 = vperm.xlu0 %5789, %v2836_v10  }
 0x304   :  { %3051 = vmatmul.mubr.bf16.gmra.mrb[72].mxu0 %v2714_v31  ;;  %3244 = vmatmul.mubr.bf16.gmra.mrb[72].mxu1 %v2714_v31 }
 0x305   :  { %3060 = vmatprep.mubr.bf16.mxu0 %v2717_v19  ;;  %3253 = vmatprep.mubr.bf16.mxu1 %v2717_v19 }
 0x30c   :  { %3061 = vmatmul.mubr.bf16.gmra.mrb[76].mxu0 %v2716_v12  ;;  %3254 = vmatmul.mubr.bf16.gmra.mrb[76].mxu1 %v2716_v12 }
 0x30d   :  { %3070 = vmatprep.mubr.bf16.mxu0 %v2719_v25  ;;  %3263 = vmatprep.mubr.bf16.mxu1 %v2719_v25 }
 0x314   :  { %3071 = vmatmul.mubr.bf16.gmra.mrb[80].mxu0 %v2718_v18  ;;  %3264 = vmatmul.mubr.bf16.gmra.mrb[80].mxu1 %v2718_v18 }
 0x315   :  { %3080 = vmatprep.mubr.bf16.mxu0 %v2721_v14  ;;  %3273 = vmatprep.mubr.bf16.mxu1 %v2721_v14 }
 0x31c   :  { %3081 = vmatmul.mubr.bf16.gmra.mrb[84].mxu0 %v2720_v32  ;;  %3274 = vmatmul.mubr.bf16.gmra.mrb[84].mxu1 %v2720_v32 }
 0x31d   :  { %3090 = vmatprep.mubr.bf16.mxu0 %v2723_v38  ;;  %3283 = vmatprep.mubr.bf16.mxu1 %v2723_v38 }
 0x324   :  { %3091 = vmatmul.mubr.bf16.gmra.mrb[88].mxu0 %v2722_v34  ;;  %3284 = vmatmul.mubr.bf16.gmra.mrb[88].mxu1 %v2722_v34 }
 0x325   :  { %3100 = vmatprep.mubr.bf16.mxu0 %v2725_v27  ;;  %3293 = vmatprep.mubr.bf16.mxu1 %v2725_v27 }
 0x32c   :  { %3101 = vmatmul.mubr.bf16.gmra.mrb[92].mxu0 %v2724_v6  ;;  %3294 = vmatmul.mubr.bf16.gmra.mrb[92].mxu1 %v2724_v6 }
 0x32d   :  { %3110 = vmatprep.mubr.bf16.mxu0 %v2727_v16  ;;  %3303 = vmatprep.mubr.bf16.mxu1 %v2727_v16 }
 0x334   :  { %3111 = vmatmul.mubr.bf16.gmra.mrb[96].mxu0 %v2726_v9  ;;  %3304 = vmatmul.mubr.bf16.gmra.mrb[96].mxu1 %v2726_v9 }
 0x335   :  { %3120 = vmatprep.mubr.bf16.mxu0 %v2729_v33  ;;  %3313 = vmatprep.mubr.bf16.mxu1 %v2729_v33 }
 0x33c   :  { %3121 = vmatmul.mubr.bf16.gmra.mrb[100].mxu0 %v2728_v24  ;;  %3314 = vmatmul.mubr.bf16.gmra.mrb[100].mxu1 %v2728_v24 }
 0x33d   :  { %3130 = vmatprep.mubr.bf16.mxu0 %v2731_v0  ;;  %3323 = vmatprep.mubr.bf16.mxu1 %v2731_v0 }
 0x33e   :  { %v2841_v30 = vpop.permute.xlu0 %2840  ;;  %v2851_v46 = vpop.permute.xlu1 %2850 }
 0x342   :  { %v2846_v35 = vpop.permute.xlu0 %2845  ;;  %v2856_v51 = vpop.permute.xlu1 %2855 }
 0x344   :  { %3131 = vmatmul.mubr.bf16.gmra.mrb[104].mxu0 %v2730_v36  ;;  %3324 = vmatmul.mubr.bf16.gmra.mrb[104].mxu1 %v2730_v36 }
 0x345   :  { %3140 = vmatprep.mubr.bf16.mxu0 %v2733_v44  ;;  %3333 = vmatprep.mubr.bf16.mxu1 %v2733_v44 }
 0x346   :  { %v2866_v36 = vpop.permute.xlu1 %2865  ;;  %v2861_v44 = vpop.permute.xlu0 %2860 }
 0x34c   :  { %3141 = vmatmul.mubr.bf16.gmra.mrb[108].mxu0 %v2732_v22  ;;  %3334 = vmatmul.mubr.bf16.gmra.mrb[108].mxu1 %v2732_v22 }
 0x34d   :  { %3150 = vmatprep.mubr.bf16.mxu0 %v2735_v49  ;;  %3343 = vmatprep.mubr.bf16.mxu1 %v2735_v49 }
 0x354   :  { %3151 = vmatmul.mubr.bf16.gmra.mrb[112].mxu0 %v2734_v2  ;;  %3344 = vmatmul.mubr.bf16.gmra.mrb[112].mxu1 %v2734_v2 }
 0x355   :  { %3160 = vmatprep.mubr.bf16.mxu0 %v2737_v8  ;;  %3353 = vmatprep.mubr.bf16.mxu1 %v2737_v8 }
 0x35c   :  { %3161 = vmatmul.mubr.bf16.gmra.mrb[116].mxu0 %v2736_v3  ;;  %3354 = vmatmul.mubr.bf16.gmra.mrb[116].mxu1 %v2736_v3 }
 0x35d   :  { %3170 = vmatprep.mubr.bf16.mxu0 %v2739_v40  ;;  %3363 = vmatprep.mubr.bf16.mxu1 %v2739_v40 }
 0x364   :  { %3171 = vmatmul.mubr.bf16.gmra.mrb[120].mxu0 %v2738_v17  ;;  %3364 = vmatmul.mubr.bf16.gmra.mrb[120].mxu1 %v2738_v17 }
 0x365   :  { %3180 = vmatprep.mubr.bf16.mxu0 %v2741_v43  ;;  %3373 = vmatprep.mubr.bf16.mxu1 %v2741_v43 }
 0x36c   :  { %3181 = vmatmul.mubr.bf16.gmra.mrb[124].mxu0 %v2740_v50  ;;  %3374 = vmatmul.mubr.bf16.gmra.mrb[124].mxu1 %v2740_v50 }
 0x3c7   :  { %v3032_v41 = vpop.f32.mrb[64].mxu0  ;;  %v3225_v4 = vpop.f32.mrb[64].mxu1 }
 0x3c8   :  { %v7589_v54 = vadd.f32 %v3032_v41, %v2841_v30  ;;  %v7591_v61 = vadd.f32 %v3225_v4, %v2841_v30  ;;  %v3034_v56 = vpop.f32.mrb[65].mxu0  ;;  %v3227_v63 = vpop.f32.mrb[65].mxu1 }
 0x3c9   :  { %v7593_v39 = vadd.f32 %v3034_v56, %v2841_v30  ;;  %v7595_v15 = vadd.f32 %v3227_v63, %v2841_v30  ;;  %v3036_v45 = vpop.f32.mrb[66].mxu0  ;;  %v3229_v7 = vpop.f32.mrb[66].mxu1 }
 0x3ca   :  { %v7599_v23 = vadd.f32 %v3036_v45, %v2846_v35  ;;  %v7601_v55 = vadd.f32 %v3229_v7, %v2846_v35  ;;  %v3038_v29 = vpop.f32.mrb[67].mxu0  ;;  %v3231_v48 = vpop.f32.mrb[67].mxu1 }
 0x3cb   :  { %v7605_v62 = vadd.f32 %v3038_v29, %v2846_v35  ;;  %v7607_v20 = vadd.f32 %v3231_v48, %v2846_v35 }
 0x3cf   :  { %v3042_v21 = vpop.f32.mrb[68].mxu0  ;;  %v3235_v53 = vpop.f32.mrb[68].mxu1 }
 0x3d0   :  { %v7613_v28 = vadd.f32 %v3042_v21, %v2851_v46  ;;  %v7615_v13 = vadd.f32 %v3235_v53, %v2851_v46  ;;  %v3044_v59 = vpop.f32.mrb[69].mxu0  ;;  %v3237_v58 = vpop.f32.mrb[69].mxu1 }
 0x3d1   :  { %v7617_v31 = vadd.f32 %v3044_v59, %v2851_v46  ;;  %v7619_v19 = vadd.f32 %v3237_v58, %v2851_v46  ;;  %v3046_v5 = vpop.f32.mrb[70].mxu0  ;;  %v3239_v10 = vpop.f32.mrb[70].mxu1 }
 0x3d2   :  { %v7623_v18 = vadd.f32 %v3046_v5, %v2856_v51  ;;  %v7625_v14 = vadd.f32 %v3239_v10, %v2856_v51  ;;  %v3048_v32 = vpop.f32.mrb[71].mxu0  ;;  %v3241_v38 = vpop.f32.mrb[71].mxu1 }
 0x3d3   :  { %v7629_v6 = vadd.f32 %v3048_v32, %v2856_v51  ;;  %v7631_v16 = vadd.f32 %v3241_v38, %v2856_v51  ;;  %v2876_v58 = vpop.permute.xlu1 %2875  ;;  %v2871_v5 = vpop.permute.xlu0 %2870 }
 0x3d7   :  { %v3052_v22 = vpop.f32.mrb[72].mxu0  ;;  %v3245_v49 = vpop.f32.mrb[72].mxu1 }
 0x3d8   :  { %v7637_v2 = vadd.f32 %v3052_v22, %v2861_v44  ;;  %v7639_v8 = vadd.f32 %v3245_v49, %v2861_v44  ;;  %v3054_v3 = vpop.f32.mrb[73].mxu0  ;;  %v3247_v40 = vpop.f32.mrb[73].mxu1 }
 0x3d9   :  { %v7641_v17 = vadd.f32 %v3054_v3, %v2861_v44  ;;  %v7643_v43 = vadd.f32 %v3247_v40, %v2861_v44  ;;  %v3056_v50 = vpop.f32.mrb[74].mxu0  ;;  %v3249_v30 = vpop.f32.mrb[74].mxu1 }
 0x3da   :  { %v7647_v41 = vadd.f32 %v3056_v50, %v2866_v36  ;;  %v7649_v4 = vadd.f32 %v3249_v30, %v2866_v36  ;;  %v3058_v56 = vpop.f32.mrb[75].mxu0  ;;  %v3251_v63 = vpop.f32.mrb[75].mxu1 }
 0x3db   :  { %v7653_v29 = vadd.f32 %v3058_v56, %v2866_v36  ;;  %v7655_v48 = vadd.f32 %v3251_v63, %v2866_v36  ;;  %v2881_v35 = vpop.permute.xlu0 %2880 }
 0x3df   :  { %v3062_v10 = vpop.f32.mrb[76].mxu0  ;;  %v3255_v32 = vpop.f32.mrb[76].mxu1 }
 0x3e0   :  { %v7661_v38 = vadd.f32 %v3062_v10, %v2871_v5  ;;  %v7663_v44 = vadd.f32 %v3255_v32, %v2871_v5  ;;  %v3064_v22 = vpop.f32.mrb[77].mxu0  ;;  %v3257_v49 = vpop.f32.mrb[77].mxu1 }
 0x3e1   :  { %v7665_v36 = vadd.f32 %v3064_v22, %v2871_v5  ;;  %v7667_v3 = vadd.f32 %v3257_v49, %v2871_v5  ;;  %v3066_v40 = vpop.f32.mrb[78].mxu0  ;;  %v3259_v50 = vpop.f32.mrb[78].mxu1 }
 0x3e2   :  { %v7671_v63 = vadd.f32 %v3066_v40, %v2876_v58  ;;  %v7673_v21 = vadd.f32 %v3259_v50, %v2876_v58  ;;  %v3068_v10 = vpop.f32.mrb[79].mxu0  ;;  %v3261_v46 = vpop.f32.mrb[79].mxu1 }
 0x3e3   :  { %v7677_v22 = vadd.f32 %v3068_v10, %v2876_v58  ;;  %v7679_v5 = vadd.f32 %v3261_v46, %v2876_v58  ;;  %v2886_v50 = vpop.permute.xlu1 %2885  ;;  %v2891_v12 = vpop.permute.xlu0 %2890 }
 0x3e7   :  { %v3072_v59 = vpop.f32.mrb[80].mxu0  ;;  %v3265_v7 = vpop.f32.mrb[80].mxu1 }
 0x3e8   :  { %v7685_v53 = vadd.f32 %v3072_v59, %v2881_v35  ;;  %v7687_v32 = vadd.f32 %v3265_v7, %v2881_v35  ;;  %v3074_v10 = vpop.f32.mrb[81].mxu0  ;;  %v3267_v51 = vpop.f32.mrb[81].mxu1 }
 0x3e9   :  { %v7689_v46 = vadd.f32 %v3074_v10, %v2881_v35  ;;  %v7691_v58 = vadd.f32 %v3267_v51, %v2881_v35  ;;  %v3076_v49 = vpop.f32.mrb[82].mxu0  ;;  %v3269_v30 = vpop.f32.mrb[82].mxu1 }
 0x3ea   :  { %v7695_v45 = vadd.f32 %v3076_v49, %v2886_v50  ;;  %v7697_v33 = vadd.f32 %v3269_v30, %v2886_v50  ;;  %v3078_v59 = vpop.f32.mrb[83].mxu0  ;;  %v3271_v25 = vpop.f32.mrb[83].mxu1 }
 0x3eb   :  { %v7701_v10 = vadd.f32 %v3078_v59, %v2886_v50  ;;  %v7703_v35 = vadd.f32 %v3271_v25, %v2886_v50  ;;  %v2896_v30 = vpop.permute.xlu1 %2895  ;;  %v2901_v1 = vpop.permute.xlu0 %2900 }
 0x3ef   :  { %v3082_v0 = vpop.f32.mrb[84].mxu0  ;;  %v3275_v27 = vpop.f32.mrb[84].mxu1 }
 0x3f0   :  { %v7709_v24 = vadd.f32 %v3082_v0, %v2891_v12  ;;  %v7711_v7 = vadd.f32 %v3275_v27, %v2891_v12  ;;  %v3084_v59 = vpop.f32.mrb[85].mxu0  ;;  %v3277_v9 = vpop.f32.mrb[85].mxu1 }
 0x3f1   :  { %v7713_v25 = vadd.f32 %v3084_v59, %v2891_v12  ;;  %v7715_v50 = vadd.f32 %v3277_v9, %v2891_v12  ;;  %v3086_v51 = vpop.f32.mrb[86].mxu0  ;;  %v3279_v56 = vpop.f32.mrb[86].mxu1 }
 0x3f2   :  { %10024 = vst [vmem:[#allocation15_spill] sm:$0xff] %v7709_v24  ;;  %10025 = vst [vmem:[#allocation14_spill] sm:$0xff] %v7711_v7  ;;  %v7719_v34 = vadd.f32 %v3086_v51, %v2896_v30  ;;  %v7721_v60 = vadd.f32 %v3279_v56, %v2896_v30  ;;  %v3088_v0 = vpop.f32.mrb[87].mxu0  ;;  %v3281_v37 = vpop.f32.mrb[87].mxu1 }
 0x3f3   :  { %v7725_v59 = vadd.f32 %v3088_v0, %v2896_v30  ;;  %v7727_v12 = vadd.f32 %v3281_v37, %v2896_v30  ;;  %v2906_v56 = vpop.permute.xlu1 %2905 }
 0x3f4   :  { %10026 = vst [vmem:[#allocation16_spill] sm:$0xff] %v7719_v34  ;;  %10027 = vst [vmem:[#allocation19_spill] sm:$0xff] %v7721_v60 }
 0x3f5   :  { %10028 = vst [vmem:[#allocation23_spill] sm:$0xff] %v7727_v12 }
 0x3f7   :  { %v3092_v57 = vpop.f32.mrb[88].mxu0  ;;  %v3285_v11 = vpop.f32.mrb[88].mxu1 }
 0x3f8   :  { %v7733_v42 = vadd.f32 %v3092_v57, %v2901_v1  ;;  %v7735_v27 = vadd.f32 %v3285_v11, %v2901_v1  ;;  %v3094_v0 = vpop.f32.mrb[89].mxu0  ;;  %v3287_v26 = vpop.f32.mrb[89].mxu1 }
 0x3f9   :  { %v7737_v37 = vadd.f32 %v3094_v0, %v2901_v1  ;;  %v7739_v30 = vadd.f32 %v3287_v26, %v2901_v1  ;;  %v3096_v9 = vpop.f32.mrb[90].mxu0  ;;  %v3289_v40 = vpop.f32.mrb[90].mxu1 }
 0x3fa   :  { %10029 = vst [vmem:[#allocation20_spill] sm:$0xff] %v7733_v42  ;;  %10030 = vst [vmem:[#allocation24_spill] sm:$0xff] %v7735_v27  ;;  %v7743_v47 = vadd.f32 %v3096_v9, %v2906_v56  ;;  %v7745_v60 = vadd.f32 %v3289_v40, %v2906_v56  ;;  %v3098_v57 = vpop.f32.mrb[91].mxu0  ;;  %v3291_v7 = vpop.f32.mrb[91].mxu1 }
 0x3fb   :  { %10031 = vst [vmem:[#allocation17_spill] sm:$0xff] %v7737_v37  ;;  %10032 = vst [vmem:[#allocation21_spill] sm:$0xff] %v7739_v30  ;;  %v7749_v0 = vadd.f32 %v3098_v57, %v2906_v56  ;;  %v7751_v1 = vadd.f32 %v3291_v7, %v2906_v56  ;;  %v2916_v40 = vpop.permute.xlu1 %2915  ;;  %v2911_v27 = vpop.permute.xlu0 %2910 }
 0x3fc   :  { %10033 = vst [vmem:[#allocation18_spill] sm:$0xff] %v7743_v47  ;;  %10034 = vst [vmem:[#allocation22_spill] sm:$0xff] %v7745_v60 }
 0x3fd   :  { %10035 = vst [vmem:[#allocation27_spill] sm:$0xff] %v7749_v0  ;;  %10036 = vst [vmem:[#allocation31_spill] sm:$0xff] %v7751_v1 }
 0x3ff   :  { %v3102_v42 = vpop.f32.mrb[92].mxu0  ;;  %v3295_v24 = vpop.f32.mrb[92].mxu1 }
 0x400   :  { %v7757_v12 = vadd.f32 %v3102_v42, %v2911_v27  ;;  %v7759_v11 = vadd.f32 %v3295_v24, %v2911_v27  ;;  %v3104_v57 = vpop.f32.mrb[93].mxu0  ;;  %v3297_v34 = vpop.f32.mrb[93].mxu1 }
 0x401   :  { %v7761_v7 = vadd.f32 %v3104_v57, %v2911_v27  ;;  %v7763_v56 = vadd.f32 %v3297_v34, %v2911_v27  ;;  %v3106_v26 = vpop.f32.mrb[94].mxu0  ;;  %v3299_v49 = vpop.f32.mrb[94].mxu1 }
 0x402   :  { %10037 = vst [vmem:[#allocation28_spill] sm:$0xff] %v7757_v12  ;;  %10038 = vst [vmem:[#allocation32_spill] sm:$0xff] %v7759_v11  ;;  %v7767_v60 = vadd.f32 %v3106_v26, %v2916_v40  ;;  %v7769_v47 = vadd.f32 %v3299_v49, %v2916_v40  ;;  %v3108_v42 = vpop.f32.mrb[95].mxu0  ;;  %v3301_v1 = vpop.f32.mrb[95].mxu1 }
 0x403   :  { %10039 = vst [vmem:[#allocation25_spill] sm:$0xff] %v7761_v7  ;;  %10040 = vst [vmem:[#allocation29_spill] sm:$0xff] %v7763_v56  ;;  %v7773_v57 = vadd.f32 %v3108_v42, %v2916_v40  ;;  %v7775_v34 = vadd.f32 %v3301_v1, %v2916_v40  ;;  %v2926_v49 = vpop.permute.xlu1 %2925  ;;  %v2921_v11 = vpop.permute.xlu0 %2920 }
 0x404   :  { %10041 = vst [vmem:[#allocation26_spill] sm:$0xff] %v7767_v60  ;;  %10042 = vst [vmem:[#allocation30_spill] sm:$0xff] %v7769_v47 }
 0x405   :  { %10043 = vst [vmem:[#allocation35_spill] sm:$0xff] %v7773_v57  ;;  %10044 = vst [vmem:[#allocation39_spill] sm:$0xff] %v7775_v34 }
 0x407   :  { %v3112_v12 = vpop.f32.mrb[96].mxu0  ;;  %v3305_v0 = vpop.f32.mrb[96].mxu1 }
 0x408   :  { %v7781_v37 = vadd.f32 %v3112_v12, %v2921_v11  ;;  %v7783_v24 = vadd.f32 %v3305_v0, %v2921_v11  ;;  %v3114_v42 = vpop.f32.mrb[97].mxu0  ;;  %v3307_v30 = vpop.f32.mrb[97].mxu1 }
 0x409   :  { %v7785_v1 = vadd.f32 %v3114_v42, %v2921_v11  ;;  %v7787_v40 = vadd.f32 %v3307_v30, %v2921_v11  ;;  %v3116_v27 = vpop.f32.mrb[98].mxu0  ;;  %v3309_v51 = vpop.f32.mrb[98].mxu1 }
 0x40a   :  { %10045 = vst [vmem:[#allocation36_spill] sm:$0xff] %v7781_v37  ;;  %10046 = vst [vmem:[#allocation40_spill] sm:$0xff] %v7783_v24  ;;  %v7791_v47 = vadd.f32 %v3116_v27, %v2926_v49  ;;  %v7793_v60 = vadd.f32 %v3309_v51, %v2926_v49  ;;  %v3118_v12 = vpop.f32.mrb[99].mxu0  ;;  %v3311_v34 = vpop.f32.mrb[99].mxu1 }
 0x40b   :  { %10047 = vst [vmem:[#allocation33_spill] sm:$0xff] %v7785_v1  ;;  %10048 = vst [vmem:[#allocation37_spill] sm:$0xff] %v7787_v40  ;;  %v7797_v42 = vadd.f32 %v3118_v12, %v2926_v49  ;;  %v7799_v30 = vadd.f32 %v3311_v34, %v2926_v49  ;;  %v2936_v51 = vpop.permute.xlu1 %2935  ;;  %v2931_v24 = vpop.permute.xlu0 %2930 }
 0x40c   :  { %10049 = vst [vmem:[#allocation34_spill] sm:$0xff] %v7791_v47  ;;  %10050 = vst [vmem:[#allocation38_spill] sm:$0xff] %v7793_v60 }
 0x40d   :  { %10051 = vst [vmem:[#allocation43_spill] sm:$0xff] %v7797_v42  ;;  %10052 = vst [vmem:[#allocation47_spill] sm:$0xff] %v7799_v30 }
 0x40f   :  { %v3122_v37 = vpop.f32.mrb[100].mxu0  ;;  %v3315_v57 = vpop.f32.mrb[100].mxu1 }
 0x410   :  { %v7805_v7 = vadd.f32 %v3122_v37, %v2931_v24  ;;  %v7807_v0 = vadd.f32 %v3315_v57, %v2931_v24  ;;  %v3124_v12 = vpop.f32.mrb[101].mxu0  ;;  %v3317_v56 = vpop.f32.mrb[101].mxu1 }
 0x411   :  { %v7809_v34 = vadd.f32 %v3124_v12, %v2931_v24  ;;  %v7811_v49 = vadd.f32 %v3317_v56, %v2931_v24  ;;  %v3126_v11 = vpop.f32.mrb[102].mxu0  ;;  %v3319_v9 = vpop.f32.mrb[102].mxu1 }
 0x412   :  { %10053 = vst [vmem:[#allocation44_spill] sm:$0xff] %v7805_v7  ;;  %10054 = vst [vmem:[#allocation48_spill] sm:$0xff] %v7807_v0  ;;  %v7815_v60 = vadd.f32 %v3126_v11, %v2936_v51  ;;  %v7817_v47 = vadd.f32 %v3319_v9, %v2936_v51  ;;  %v3128_v37 = vpop.f32.mrb[103].mxu0  ;;  %v3321_v30 = vpop.f32.mrb[103].mxu1 }
 0x413   :  { %10055 = vst [vmem:[#allocation41_spill] sm:$0xff] %v7809_v34  ;;  %10056 = vst [vmem:[#allocation45_spill] sm:$0xff] %v7811_v49  ;;  %v7821_v12 = vadd.f32 %v3128_v37, %v2936_v51  ;;  %v7823_v56 = vadd.f32 %v3321_v30, %v2936_v51  ;;  %v2946_v9 = vpop.permute.xlu1 %2945  ;;  %v2941_v0 = vpop.permute.xlu0 %2940 }
 0x414   :  { %10057 = vst [vmem:[#allocation42_spill] sm:$0xff] %v7815_v60  ;;  %10058 = vst [vmem:[#allocation46_spill] sm:$0xff] %v7817_v47 }
 0x415   :  { %10059 = vst [vmem:[#allocation51_spill] sm:$0xff] %v7821_v12  ;;  %10060 = vst [vmem:[#allocation55_spill] sm:$0xff] %v7823_v56 }
 0x417   :  { %v3132_v7 = vpop.f32.mrb[104].mxu0  ;;  %v3325_v42 = vpop.f32.mrb[104].mxu1 }
 0x418   :  { %v7829_v1 = vadd.f32 %v3132_v7, %v2941_v0  ;;  %v7831_v57 = vadd.f32 %v3325_v42, %v2941_v0  ;;  %v3134_v37 = vpop.f32.mrb[105].mxu0  ;;  %v3327_v40 = vpop.f32.mrb[105].mxu1 }
 0x419   :  { %v7833_v30 = vadd.f32 %v3134_v37, %v2941_v0  ;;  %v7835_v51 = vadd.f32 %v3327_v40, %v2941_v0  ;;  %v3136_v24 = vpop.f32.mrb[106].mxu0  ;;  %v3329_v26 = vpop.f32.mrb[106].mxu1 }
 0x41a   :  { %10061 = vst [vmem:[#allocation52_spill] sm:$0xff] %v7829_v1  ;;  %10062 = vst [vmem:[#allocation56_spill] sm:$0xff] %v7831_v57  ;;  %v7839_v47 = vadd.f32 %v3136_v24, %v2946_v9  ;;  %v7841_v60 = vadd.f32 %v3329_v26, %v2946_v9  ;;  %v3138_v7 = vpop.f32.mrb[107].mxu0  ;;  %v3331_v56 = vpop.f32.mrb[107].mxu1 }
 0x41b   :  { %10063 = vst [vmem:[#allocation49_spill] sm:$0xff] %v7833_v30  ;;  %10064 = vst [vmem:[#allocation53_spill] sm:$0xff] %v7835_v51  ;;  %v7845_v37 = vadd.f32 %v3138_v7, %v2946_v9  ;;  %v7847_v40 = vadd.f32 %v3331_v56, %v2946_v9  ;;  %v2956_v26 = vpop.permute.xlu1 %2955  ;;  %v2951_v57 = vpop.permute.xlu0 %2950 }
 0x41c   :  { %10065 = vst [vmem:[#allocation50_spill] sm:$0xff] %v7839_v47  ;;  %10066 = vst [vmem:[#allocation54_spill] sm:$0xff] %v7841_v60 }
 0x41d   :  { %10067 = vst [vmem:[#allocation59_spill] sm:$0xff] %v7845_v37  ;;  %10068 = vst [vmem:[#allocation63_spill] sm:$0xff] %v7847_v40 }
 0x41f   :  { %v3142_v1 = vpop.f32.mrb[108].mxu0  ;;  %v3335_v12 = vpop.f32.mrb[108].mxu1 }
 0x420   :  { %v7853_v34 = vadd.f32 %v3142_v1, %v2951_v57  ;;  %v7855_v42 = vadd.f32 %v3335_v12, %v2951_v57  ;;  %v3144_v7 = vpop.f32.mrb[109].mxu0  ;;  %v3337_v49 = vpop.f32.mrb[109].mxu1 }
 0x421   :  { %v7857_v56 = vadd.f32 %v3144_v7, %v2951_v57  ;;  %v7859_v9 = vadd.f32 %v3337_v49, %v2951_v57  ;;  %v3146_v0 = vpop.f32.mrb[110].mxu0  ;;  %v3339_v27 = vpop.f32.mrb[110].mxu1 }
 0x422   :  { %10069 = vst [vmem:[#allocation60_spill] sm:$0xff] %v7853_v34  ;;  %10070 = vst [vmem:[#allocation64_spill] sm:$0xff] %v7855_v42  ;;  %v7863_v60 = vadd.f32 %v3146_v0, %v2956_v26  ;;  %v7865_v47 = vadd.f32 %v3339_v27, %v2956_v26  ;;  %v3148_v1 = vpop.f32.mrb[111].mxu0  ;;  %v3341_v40 = vpop.f32.mrb[111].mxu1 }
 0x423   :  { %10071 = vst [vmem:[#allocation57_spill] sm:$0xff] %v7857_v56  ;;  %10072 = vst [vmem:[#allocation61_spill] sm:$0xff] %v7859_v9  ;;  %v7869_v7 = vadd.f32 %v3148_v1, %v2956_v26  ;;  %v7871_v49 = vadd.f32 %v3341_v40, %v2956_v26  ;;  %v2966_v27 = vpop.permute.xlu1 %2965  ;;  %v2961_v42 = vpop.permute.xlu0 %2960 }
 0x424   :  { %10073 = vst [vmem:[#allocation58_spill] sm:$0xff] %v7863_v60  ;;  %10074 = vst [vmem:[#allocation62_spill] sm:$0xff] %v7865_v47 }
 0x425   :  { %10075 = vst [vmem:[#allocation67_spill] sm:$0xff] %v7869_v7  ;;  %10076 = vst [vmem:[#allocation71_spill] sm:$0xff] %v7871_v49 }
 0x427   :  { %v3152_v34 = vpop.f32.mrb[112].mxu0  ;;  %v3345_v37 = vpop.f32.mrb[112].mxu1 }
 0x428   :  { %v7877_v30 = vadd.f32 %v3152_v34, %v2961_v42  ;;  %v7879_v12 = vadd.f32 %v3345_v37, %v2961_v42  ;;  %v3154_v1 = vpop.f32.mrb[113].mxu0  ;;  %v3347_v51 = vpop.f32.mrb[113].mxu1 }
 0x429   :  { %v7881_v40 = vadd.f32 %v3154_v1, %v2961_v42  ;;  %v7883_v26 = vadd.f32 %v3347_v51, %v2961_v42  ;;  %v3156_v57 = vpop.f32.mrb[114].mxu0  ;;  %v3349_v11 = vpop.f32.mrb[114].mxu1 }
 0x42a   :  { %10077 = vst [vmem:[#allocation68_spill] sm:$0xff] %v7877_v30  ;;  %10078 = vst [vmem:[#allocation72_spill] sm:$0xff] %v7879_v12  ;;  %v7887_v47 = vadd.f32 %v3156_v57, %v2966_v27  ;;  %v7889_v60 = vadd.f32 %v3349_v11, %v2966_v27  ;;  %v3158_v34 = vpop.f32.mrb[115].mxu0  ;;  %v3351_v49 = vpop.f32.mrb[115].mxu1 }
 0x42b   :  { %10079 = vst [vmem:[#allocation65_spill] sm:$0xff] %v7881_v40  ;;  %10080 = vst [vmem:[#allocation69_spill] sm:$0xff] %v7883_v26  ;;  %v7893_v1 = vadd.f32 %v3158_v34, %v2966_v27  ;;  %v7895_v51 = vadd.f32 %v3351_v49, %v2966_v27  ;;  %v2976_v11 = vpop.permute.xlu1 %2975  ;;  %v2971_v12 = vpop.permute.xlu0 %2970 }
 0x42c   :  { %10081 = vst [vmem:[#allocation66_spill] sm:$0xff] %v7887_v47  ;;  %10082 = vst [vmem:[#allocation70_spill] sm:$0xff] %v7889_v60 }
 0x42d   :  { %10083 = vst [vmem:[#allocation75_spill] sm:$0xff] %v7893_v1  ;;  %10084 = vst [vmem:[#allocation79_spill] sm:$0xff] %v7895_v51 }
 0x42f   :  { %v3162_v30 = vpop.f32.mrb[116].mxu0  ;;  %v3355_v7 = vpop.f32.mrb[116].mxu1 }
 0x430   :  { %v7901_v56 = vadd.f32 %v3162_v30, %v2971_v12  ;;  %v7903_v37 = vadd.f32 %v3355_v7, %v2971_v12  ;;  %v3164_v34 = vpop.f32.mrb[117].mxu0  ;;  %v3357_v9 = vpop.f32.mrb[117].mxu1 }
 0x431   :  { %v7905_v49 = vadd.f32 %v3164_v34, %v2971_v12  ;;  %v7907_v27 = vadd.f32 %v3357_v9, %v2971_v12  ;;  %v3166_v42 = vpop.f32.mrb[118].mxu0  ;;  %v3359_v24 = vpop.f32.mrb[118].mxu1 }
 0x432   :  { %10085 = vst [vmem:[#allocation76_spill] sm:$0xff] %v7901_v56  ;;  %10086 = vst [vmem:[#allocation80_spill] sm:$0xff] %v7903_v37  ;;  %v7911_v60 = vadd.f32 %v3166_v42, %v2976_v11  ;;  %v7913_v47 = vadd.f32 %v3359_v24, %v2976_v11  ;;  %v3168_v30 = vpop.f32.mrb[119].mxu0  ;;  %v3361_v51 = vpop.f32.mrb[119].mxu1  ;;  %v10107_v42 = vmax.f32 %v7591_v61, 0.0 }
 0x433   :  { %10087 = vst [vmem:[#allocation73_spill] sm:$0xff] %v7905_v49  ;;  %10088 = vst [vmem:[#allocation77_spill] sm:$0xff] %v7907_v27  ;;  %v7917_v34 = vadd.f32 %v3168_v30, %v2976_v11  ;;  %v7919_v9 = vadd.f32 %v3361_v51, %v2976_v11  ;;  %v2986_v24 = vpop.permute.xlu1 %2985  ;;  %v2981_v37 = vpop.permute.xlu0 %2980 }
 0x434   :  { %10089 = vst [vmem:[#allocation74_spill] sm:$0xff] %v7911_v60  ;;  %10090 = vst [vmem:[#allocation78_spill] sm:$0xff] %v7913_v47 }
 0x435   :  { %10091 = vst [vmem:[#allocation83_spill] sm:$0xff] %v7917_v34  ;;  %10092 = vst [vmem:[#allocation87_spill] sm:$0xff] %v7919_v9 }
 0x437   :  { %v3172_v56 = vpop.f32.mrb[120].mxu0  ;;  %v3365_v1 = vpop.f32.mrb[120].mxu1 }
 0x438   :  { %v7925_v40 = vadd.f32 %v3172_v56, %v2981_v37  ;;  %v7927_v7 = vadd.f32 %v3365_v1, %v2981_v37  ;;  %v3174_v30 = vpop.f32.mrb[121].mxu0  ;;  %v3367_v26 = vpop.f32.mrb[121].mxu1 }
 0x439   :  { %v7929_v51 = vadd.f32 %v3174_v30, %v2981_v37  ;;  %v7931_v11 = vadd.f32 %v3367_v26, %v2981_v37  ;;  %v3176_v12 = vpop.f32.mrb[122].mxu0  ;;  %v3369_v0 = vpop.f32.mrb[122].mxu1 }
 0x43a   :  { %10093 = vst [vmem:[#allocation84_spill] sm:$0xff] %v7925_v40  ;;  %10094 = vst [vmem:[#allocation88_spill] sm:$0xff] %v7927_v7  ;;  %v7935_v47 = vadd.f32 %v3176_v12, %v2986_v24  ;;  %v7937_v60 = vadd.f32 %v3369_v0, %v2986_v24  ;;  %v3178_v56 = vpop.f32.mrb[123].mxu0  ;;  %v3371_v9 = vpop.f32.mrb[123].mxu1  ;;  %v10108_v12 = vmax.f32 %v7601_v55, 0.0 }
 0x43b   :  { %10095 = vst [vmem:[#allocation81_spill] sm:$0xff] %v7931_v11  ;;  %v7941_v30 = vadd.f32 %v3178_v56, %v2986_v24  ;;  %v7943_v26 = vadd.f32 %v3371_v9, %v2986_v24  ;;  %v2996_v0 = vpop.permute.xlu1 %2995  ;;  %v2991_v7 = vpop.permute.xlu0 %2990 }
 0x43c   :  { %10096 = vst [vmem:[#allocation85_spill] sm:$0xff] %v7935_v47  ;;  %10097 = vst [vmem:[#allocation82_spill] sm:$0xff] %v7937_v60 }
 0x43d   :  { %10098 = vst [vmem:[#allocation86_spill] sm:$0xff] %v7943_v26 }
 0x43f   :  { %v3182_v40 = vpop.f32.mrb[124].mxu0  ;;  %v3375_v34 = vpop.f32.mrb[124].mxu1 }
 0x440   :  { %v7949_v49 = vadd.f32 %v3182_v40, %v2991_v7  ;;  %v7951_v1 = vadd.f32 %v3375_v34, %v2991_v7  ;;  %v3184_v56 = vpop.f32.mrb[125].mxu0  ;;  %v3377_v27 = vpop.f32.mrb[125].mxu1  ;;  %v10103_v34 = vmax.f32 %v7595_v15, 0.0 }
 0x441   :  { %v7953_v9 = vadd.f32 %v3184_v56, %v2991_v7  ;;  %v7955_v24 = vadd.f32 %v3377_v27, %v2991_v7  ;;  %v3186_v37 = vpop.f32.mrb[126].mxu0  ;;  %v3379_v57 = vpop.f32.mrb[126].mxu1 }
 0x442   :  { %10099 = vst [vmem:[#allocation89_spill] sm:$0xff] %v7949_v49  ;;  %10100 = vst [vmem:[#allocation90_spill] sm:$0xff] %v7951_v1  ;;  %v7959_v60 = vadd.f32 %v3186_v37, %v2996_v0  ;;  %v7961_v47 = vadd.f32 %v3379_v57, %v2996_v0  ;;  %v3188_v40 = vpop.f32.mrb[127].mxu0  ;;  %v3381_v26 = vpop.f32.mrb[127].mxu1  ;;  %v10101_v57 = vmax.f32 %v7593_v39, 0.0  ;;  %v10102_v1 = vmax.f32 %v7605_v62, 0.0 }
 0x443   :  { %v7965_v56 = vadd.f32 %v3188_v40, %v2996_v0  ;;  %v7967_v27 = vadd.f32 %v3381_v26, %v2996_v0  ;;  %v10104_v40 = vmax.f32 %v7607_v20, 0.0  ;;  %v10105_v26 = vmax.f32 %v7589_v54, 0.0 }
 0x444   :  { %v3547_v49 = vpack.c.bf16 %v10102_v1, %v10101_v57  ;;  %v10106_v0 = vmax.f32 %v7599_v23, 0.0  ;;  %v3548_v37 = vpack.c.bf16 %v10108_v12, %v10107_v42 }
 0x445   :  { %v3549_v11 = vpack.c.bf16 %v10104_v40, %v10103_v34 }
 0x446   :  { %v3546_v7 = vpack.c.bf16 %v10106_v0, %v10105_v26 }
 0x447   :  { %5797 = dma.done.wait [#allocation5 + $0x1], 4096 }
 0x448   :  { %5798 = vsyncadd [#allocation5 + $0x1], 4294963200  ;;  %5791 = vset.pattern.permute.xlu0 %v9827_v52  ;;  %v10109_v39 = vmax.f32 %v7617_v31, 0.0  ;;  %v10110_v15 = vmax.f32 %v7629_v6, 0.0  ;;  %v10111_v20 = vmax.f32 %v7619_v19, 0.0  ;;  %v10112_v54 = vmax.f32 %v7631_v16, 0.0  ;;  %5792 = vset.pattern.permute.xlu1 %v9827_v52 }
 0x449   :  { %3802 = vmatprep.subr.bf16.mxu0 %v3547_v49  ;;  %3995 = vmatprep.subr.bf16.mxu1 %v3549_v11  ;;  %v10113_v61 = vmax.f32 %v7613_v28, 0.0  ;;  %v10114_v55 = vmax.f32 %v7623_v18, 0.0  ;;  %v10115_v31 = vmax.f32 %v7615_v13, 0.0  ;;  %v10116_v6 = vmax.f32 %v7625_v14, 0.0 }
 0x44a   :  { %v3551_v62 = vpack.c.bf16 %v10110_v15, %v10109_v39  ;;  %v3553_v23 = vpack.c.bf16 %v10112_v54, %v10111_v20  ;;  %3803 = vmatpush1.bf16.msra.mxu0 %v3546_v7  ;;  %3996 = vmatpush1.bf16.msra.mxu1 %v3548_v37  ;;  %v10117_v19 = vmax.f32 %v7641_v17, 0.0  ;;  %v10118_v16 = vmax.f32 %v7653_v29, 0.0  ;;  %v3515_v37 = vld [vmem:[#allocation3 + $0x8] sm:$0xff] }
 0x44b   :  { %v3550_v42 = vpack.c.bf16 %v10114_v55, %v10113_v61  ;;  %v3552_v1 = vpack.c.bf16 %v10116_v6, %v10115_v31  ;;  %v10119_v11 = vmax.f32 %v7643_v43, 0.0  ;;  %v10120_v12 = vmax.f32 %v7655_v48, 0.0  ;;  %3834 = vmatprep.mubr.bf16.mxu0 %v3515_v37  ;;  %4027 = vmatprep.mubr.bf16.mxu1 %v3515_v37  ;;  %v10148_v55 = vld [vmem:[#allocation16_spill] sm:$0xff]  ;;  %v10150_v31 = vld [vmem:[#allocation14_spill] sm:$0xff]  ;;  %v10152_v6 = vld [vmem:[#allocation19_spill] sm:$0xff] }
 0x44c   :  { %3804 = vmatprep.subr.bf16.mxu0 %v3551_v62  ;;  %3997 = vmatprep.subr.bf16.mxu1 %v3553_v23  ;;  %v3555_v49 = vpack.c.bf16 %v10118_v16, %v10117_v19  ;;  %v10121_v18 = vmax.f32 %v7637_v2, 0.0  ;;  %v10122_v13 = vmax.f32 %v7647_v41, 0.0  ;;  %v10123_v34 = vmax.f32 %v7639_v8, 0.0  ;;  %v10144_v23 = vld [vmem:[#allocation23_spill] sm:$0xff]  ;;  %v10154_v16 = vld [vmem:[#allocation17_spill] sm:$0xff]  ;;  %v10162_v37 = vld [vmem:[#allocation20_spill] sm:$0xff] }
 0x44d   :  { %v3557_v28 = vpack.c.bf16 %v10120_v12, %v10119_v11  ;;  %v10124_v7 = vmax.f32 %v7649_v4, 0.0  ;;  %v10125_v43 = vmax.f32 %v7665_v36, 0.0  ;;  %v10126_v29 = vmax.f32 %v7677_v22, 0.0  ;;  %v10156_v11 = vld [vmem:[#allocation27_spill] sm:$0xff] }
 0x44e   :  { %3805 = vmatpush1.bf16.msra.mxu0 %v3550_v42  ;;  %3998 = vmatpush1.bf16.msra.mxu1 %v3552_v1  ;;  %v3554_v14 = vpack.c.bf16 %v10122_v13, %v10121_v18  ;;  %v10127_v57 = vmax.f32 %v7667_v3, 0.0  ;;  %v10128_v2 = vmax.f32 %v7679_v5, 0.0  ;;  %v10129_v8 = vmax.f32 %v7661_v38, 0.0  ;;  %v10158_v18 = vld [vmem:[#allocation21_spill] sm:$0xff] }
 0x44f   :  { %v3556_v17 = vpack.c.bf16 %v10124_v7, %v10123_v34  ;;  %3806 = vmatprep.subr.bf16.mxu0 %v3555_v49  ;;  %3999 = vmatprep.subr.bf16.mxu1 %v3557_v28  ;;  %v3559_v48 = vpack.c.bf16 %v10126_v29, %v10125_v43  ;;  %v10130_v41 = vmax.f32 %v7671_v63, 0.0  ;;  %v10131_v26 = vmax.f32 %v7663_v44, 0.0  ;;  %v10164_v29 = vld [vmem:[#allocation18_spill] sm:$0xff] }
 0x450   :  { %v3561_v40 = vpack.c.bf16 %v10128_v2, %v10127_v57  ;;  %v10132_v36 = vmax.f32 %v7673_v21, 0.0  ;;  %v10133_v3 = vmax.f32 %v7689_v46, 0.0  ;;  %v10134_v5 = vmax.f32 %v7701_v10, 0.0  ;;  %v10166_v2 = vld [vmem:[#allocation24_spill] sm:$0xff] }
 0x451   :  { %v3558_v4 = vpack.c.bf16 %v10130_v41, %v10129_v8  ;;  %v10135_v39 = vmax.f32 %v7691_v58, 0.0  ;;  %v10136_v15 = vmax.f32 %v7703_v35, 0.0  ;;  %v10137_v63 = vmax.f32 %v7685_v53, 0.0  ;;  %v10168_v8 = vld [vmem:[#allocation22_spill] sm:$0xff] }
 0x452   :  { %3807 = vmatpush1.bf16.msra.mxu0 %v3554_v14  ;;  %4000 = vmatpush1.bf16.msra.mxu1 %v3556_v17  ;;  %v3560_v22 = vpack.c.bf16 %v10132_v36, %v10131_v26  ;;  %v3563_v0 = vpack.c.bf16 %v10134_v5, %v10133_v3  ;;  %v10138_v44 = vmax.f32 %v7695_v45, 0.0  ;;  %v10139_v62 = vmax.f32 %v7687_v32, 0.0  ;;  %v3610_v45 = vld [vmem:[%s9499_s8] sm:$0xff]  ;;  %v10146_v32 = vld [vmem:[#allocation15_spill] sm:$0xff]  ;;  %v3611_v17 = vld [vmem:[%s9499_s8 + $0x8] sm:$0xff] }
 0x453   :  { %3808 = vmatprep.subr.bf16.mxu0 %v3559_v48  ;;  %4001 = vmatprep.subr.bf16.mxu1 %v3561_v40  ;;  %v3565_v38 = vpack.c.bf16 %v10136_v15, %v10135_v39  ;;  %v10140_v20 = vmax.f32 %v7697_v33, 0.0  ;;  %v10141_v10 = vmax.f32 %v7713_v25, 0.0  ;;  %v10142_v58 = vmax.f32 %v7725_v59, 0.0  ;;  %v3612_v33 = vld [vmem:[%s9499_s8 + $0x10] sm:$0xff]  ;;  %v10170_v26 = vld [vmem:[#allocation25_spill] sm:$0xff] }
 0x454   :  { %v3562_v21 = vpack.c.bf16 %v10138_v44, %v10137_v63  ;;  %v10143_v54 = vmax.f32 %v7715_v50, 0.0  ;;  %v10145_v61 = vmax.f32 %v10144_v23, 0.0  ;;  %v10147_v25 = vmax.f32 %v10146_v32, 0.0  ;;  %v10160_v14 = vld [vmem:[#allocation31_spill] sm:$0xff]  ;;  %3644 = vperm.xlu0 %5791, %v3610_v45   ;;  %3654 = vperm.xlu1 %5792, %v3612_v33   ;;  %v10184_v23 = vld [vmem:[#allocation30_spill] sm:$0xff]  ;;  %v10186_v45 = vld [vmem:[#allocation33_spill] sm:$0xff] }
 0x455   :  { %v3564_v46 = vpack.c.bf16 %v10140_v20, %v10139_v62  ;;  %v3567_v35 = vpack.c.bf16 %v10142_v58, %v10141_v10  ;;  %v10149_v59 = vmax.f32 %v10148_v55, 0.0  ;;  %v10151_v50 = vmax.f32 %v10150_v31, 0.0  ;;  %v10176_v15 = vld [vmem:[#allocation39_spill] sm:$0xff]  ;;  %v10178_v62 = vld [vmem:[#allocation28_spill] sm:$0xff] }
 0x456   :  { %3809 = vmatpush1.bf16.msra.mxu0 %v3558_v4  ;;  %4002 = vmatpush1.bf16.msra.mxu1 %v3560_v22  ;;  %v3569_v53 = vpack.c.bf16 %v10145_v61, %v10143_v54  ;;  %v10153_v1 = vmax.f32 %v10152_v6, 0.0  ;;  %v10155_v49 = vmax.f32 %v10154_v16, 0.0  ;;  %v10157_v12 = vmax.f32 %v10156_v11, 0.0  ;;  %v10172_v22 = vld [vmem:[#allocation35_spill] sm:$0xff] }
 0x457   :  { %3810 = vmatprep.subr.bf16.mxu0 %v3563_v0  ;;  %4003 = vmatprep.subr.bf16.mxu1 %v3565_v38  ;;  %v3566_v42 = vpack.c.bf16 %v10149_v59, %v10147_v25  ;;  %v10159_v13 = vmax.f32 %v10158_v18, 0.0  ;;  %v10161_v34 = vmax.f32 %v10160_v14, 0.0  ;;  %v10163_v43 = vmax.f32 %v10162_v37, 0.0  ;;  %v10174_v0 = vld [vmem:[#allocation29_spill] sm:$0xff]  ;;  %v3613_v44 = vld [vmem:[%s9499_s8 + $0x18] sm:$0xff] }
 0x458   :  { %v3568_v19 = vpack.c.bf16 %v10153_v1, %v10151_v50  ;;  %v3571_v28 = vpack.c.bf16 %v10157_v12, %v10155_v49  ;;  %v10165_v48 = vmax.f32 %v10164_v29, 0.0  ;;  %v10167_v40 = vmax.f32 %v10166_v2, 0.0  ;;  %3649 = vperm.xlu0 %5791, %v3611_v17   ;;  %v10188_v32 = vld [vmem:[#allocation43_spill] sm:$0xff]  ;;  %v10190_v59 = vld [vmem:[#allocation37_spill] sm:$0xff]  ;;  %3659 = vperm.xlu1 %5792, %v3613_v44   ;;  %v10196_v49 = vld [vmem:[#allocation34_spill] sm:$0xff] }
 0x459   :  { %v3573_v7 = vpack.c.bf16 %v10161_v34, %v10159_v13  ;;  %v10169_v41 = vmax.f32 %v10168_v8, 0.0  ;;  %v10171_v36 = vmax.f32 %v10170_v26, 0.0  ;;  %v10173_v3 = vmax.f32 %v10172_v22, 0.0  ;;  %v10192_v31 = vld [vmem:[#allocation47_spill] sm:$0xff]  ;;  %v3615_v1 = vld [vmem:[%s9499_s8 + $0x28] sm:$0xff]  ;;  %v10210_v26 = vld [vmem:[#allocation44_spill] sm:$0xff] }
 0x45a   :  { %3811 = vmatpush1.bf16.msra.mxu0 %v3562_v21  ;;  %4004 = vmatpush1.bf16.msra.mxu1 %v3564_v46  ;;  %v3570_v57 = vpack.c.bf16 %v10165_v48, %v10163_v43  ;;  %v10175_v39 = vmax.f32 %v10174_v0, 0.0  ;;  %v10177_v38 = vmax.f32 %v10176_v15, 0.0  ;;  %v3614_v21 = vld [vmem:[%s9499_s8 + $0x20] sm:$0xff]  ;;  %v10179_v20 = vmax.f32 %v10178_v62, 0.0  ;;  %v10180_v46 = vld [vmem:[#allocation26_spill] sm:$0xff]  ;;  %v10204_v37 = vld [vmem:[#allocation51_spill] sm:$0xff] }
 0x45b   :  { %3812 = vmatprep.subr.bf16.mxu0 %v3567_v35  ;;  %4005 = vmatprep.subr.bf16.mxu1 %v3569_v53  ;;  %v3572_v4 = vpack.c.bf16 %v10169_v41, %v10167_v40  ;;  %v3575_v5 = vpack.c.bf16 %v10173_v3, %v10171_v36  ;;  %v10181_v10 = vmax.f32 %v10180_v46, 0.0  ;;  %v10182_v35 = vld [vmem:[#allocation32_spill] sm:$0xff]  ;;  %v10185_v61 = vmax.f32 %v10184_v23, 0.0  ;;  %v10200_v13 = vld [vmem:[#allocation38_spill] sm:$0xff]  ;;  %v10206_v48 = vld [vmem:[#allocation45_spill] sm:$0xff] }
 0x45c   :  { %v3577_v63 = vpack.c.bf16 %v10177_v38, %v10175_v39  ;;  %v10183_v54 = vmax.f32 %v10182_v35, 0.0  ;;  %v10187_v33 = vmax.f32 %v10186_v45, 0.0  ;;  %v10189_v25 = vmax.f32 %v10188_v32, 0.0  ;;  %3664 = vperm.xlu0 %5791, %v3614_v21   ;;  %v10208_v2 = vld [vmem:[#allocation55_spill] sm:$0xff]  ;;  %3669 = vperm.xlu1 %5792, %v3615_v1   ;;  %v10212_v22 = vld [vmem:[#allocation42_spill] sm:$0xff]  ;;  %v10214_v0 = vld [vmem:[#allocation48_spill] sm:$0xff] }
 0x45d   :  { %v3574_v58 = vpack.c.bf16 %v10181_v10, %v10179_v20  ;;  %v10193_v50 = vmax.f32 %v10192_v31, 0.0  ;;  %v10197_v11 = vmax.f32 %v10196_v49, 0.0  ;;  %v10201_v14 = vmax.f32 %v10200_v13, 0.0  ;;  %v3617_v41 = vld [vmem:[%s9499_s8 + $0x38] sm:$0xff]  ;;  %v10216_v15 = vld [vmem:[#allocation46_spill] sm:$0xff]  ;;  %v10218_v44 = vld [vmem:[#allocation49_spill] sm:$0xff] }
 0x45e   :  { %3813 = vmatpush1.bf16.msra.mxu0 %v3566_v42  ;;  %4006 = vmatpush1.bf16.msra.mxu1 %v3568_v19  ;;  %v3576_v53 = vpack.c.bf16 %v10185_v61, %v10183_v54  ;;  %v3579_v55 = vpack.c.bf16 %v10189_v25, %v10187_v33  ;;  %v10191_v42 = vmax.f32 %v10190_v59, 0.0  ;;  %v10194_v19 = vld [vmem:[#allocation36_spill] sm:$0xff]  ;;  %v10205_v43 = vmax.f32 %v10204_v37, 0.0  ;;  %v10220_v62 = vld [vmem:[#allocation59_spill] sm:$0xff]  ;;  %v10222_v10 = vld [vmem:[#allocation53_spill] sm:$0xff] }
 0x45f   :  { %3814 = vmatprep.subr.bf16.mxu0 %v3571_v28  ;;  %4007 = vmatprep.subr.bf16.mxu1 %v3573_v7  ;;  %v10195_v16 = vmax.f32 %v10194_v19, 0.0  ;;  %v10198_v28 = vld [vmem:[#allocation40_spill] sm:$0xff]  ;;  %v10202_v7 = vld [vmem:[#allocation41_spill] sm:$0xff]  ;;  %v10209_v40 = vmax.f32 %v10208_v2, 0.0  ;;  %v10211_v36 = vmax.f32 %v10210_v26, 0.0  ;;  %v10213_v3 = vmax.f32 %v10212_v22, 0.0 }
 0x460   :  { %v3581_v6 = vpack.c.bf16 %v10193_v50, %v10191_v42  ;;  %v10199_v18 = vmax.f32 %v10198_v28, 0.0  ;;  %v10203_v17 = vmax.f32 %v10202_v7, 0.0  ;;  %v10215_v39 = vmax.f32 %v10214_v0, 0.0  ;;  %v10224_v35 = vld [vmem:[#allocation63_spill] sm:$0xff]  ;;  %3679 = vperm.xlu1 %5792, %v3617_v41   ;;  %v3619_v61 = vld [vmem:[%s9499_s8 + $0x48] sm:$0xff]  ;;  %v10226_v45 = vld [vmem:[#allocation52_spill] sm:$0xff] }
 0x461   :  { %v3578_v12 = vpack.c.bf16 %v10197_v11, %v10195_v16  ;;  %v10217_v38 = vmax.f32 %v10216_v15, 0.0  ;;  %v10219_v21 = vmax.f32 %v10218_v44, 0.0  ;;  %v10221_v20 = vmax.f32 %v10220_v62, 0.0  ;;  %v10228_v32 = vld [vmem:[#allocation50_spill] sm:$0xff]  ;;  %v10230_v59 = vld [vmem:[#allocation56_spill] sm:$0xff]  ;;  %v10234_v1 = vld [vmem:[#allocation57_spill] sm:$0xff] }
 0x462   :  { %3815 = vmatpush1.bf16.msra.mxu0 %v3570_v57  ;;  %4008 = vmatpush1.bf16.msra.mxu1 %v3572_v4  ;;  %v3580_v34 = vpack.c.bf16 %v10201_v14, %v10199_v18  ;;  %v3583_v29 = vpack.c.bf16 %v10205_v43, %v10203_v17  ;;  %v10207_v57 = vmax.f32 %v10206_v48, 0.0  ;;  %v3616_v4 = vld [vmem:[%s9499_s8 + $0x30] sm:$0xff]  ;;  %v10225_v54 = vmax.f32 %v10224_v35, 0.0  ;;  %v10242_v17 = vld [vmem:[#allocation60_spill] sm:$0xff] }
 0x463   :  { %3816 = vmatprep.subr.bf16.mxu0 %v3575_v5  ;;  %4009 = vmatprep.subr.bf16.mxu1 %v3577_v63  ;;  %v3582_v5 = vpack.c.bf16 %v10213_v3, %v10211_v36  ;;  %v3584_v63 = vpack.c.bf16 %v10217_v38, %v10215_v39  ;;  %v3587_v46 = vpack.c.bf16 %v10221_v20, %v10219_v21  ;;  %v10227_v33 = vmax.f32 %v10226_v45, 0.0  ;;  %v10232_v31 = vld [vmem:[#allocation54_spill] sm:$0xff]  ;;  %v10236_v16 = vld [vmem:[#allocation67_spill] sm:$0xff]  ;;  %v3622_v44 = vld [vmem:[%s9499_s8 + $0x60] sm:$0xff] }
 0x464   :  { %v3585_v8 = vpack.c.bf16 %v10209_v40, %v10207_v57  ;;  %3674 = vperm.xlu0 %5791, %v3616_v4   ;;  %v10229_v25 = vmax.f32 %v10228_v32, 0.0  ;;  %v10231_v42 = vmax.f32 %v10230_v59, 0.0  ;;  %v10233_v50 = vmax.f32 %v10232_v31, 0.0  ;;  %v10240_v18 = vld [vmem:[#allocation71_spill] sm:$0xff]  ;;  %3689 = vperm.xlu1 %5792, %v3619_v61   ;;  %v10244_v43 = vld [vmem:[#allocation58_spill] sm:$0xff]  ;;  %v10246_v57 = vld [vmem:[#allocation64_spill] sm:$0xff] }
 0x465   :  { %v10235_v19 = vmax.f32 %v10234_v1, 0.0  ;;  %v10237_v49 = vmax.f32 %v10236_v16, 0.0  ;;  %v10241_v13 = vmax.f32 %v10240_v18, 0.0  ;;  %v3620_v7 = vld [vmem:[%s9499_s8 + $0x50] sm:$0xff]  ;;  %v10243_v37 = vmax.f32 %v10242_v17, 0.0  ;;  %v10250_v4 = vld [vmem:[#allocation65_spill] sm:$0xff] }
 0x466   :  { %3817 = vmatpush1.bf16.msra.mxu0 %v3574_v58  ;;  %4010 = vmatpush1.bf16.msra.mxu1 %v3576_v53  ;;  %v10223_v58 = vmax.f32 %v10222_v10, 0.0  ;;  %v3618_v53 = vld [vmem:[%s9499_s8 + $0x40] sm:$0xff]  ;;  %v10247_v2 = vmax.f32 %v10246_v57, 0.0  ;;  %v10248_v40 = vld [vmem:[#allocation62_spill] sm:$0xff]  ;;  %v10251_v26 = vmax.f32 %v10250_v4, 0.0  ;;  %v10252_v36 = vld [vmem:[#allocation75_spill] sm:$0xff] }
 0x467   :  { %3818 = vmatprep.subr.bf16.mxu0 %v3579_v55  ;;  %4011 = vmatprep.subr.bf16.mxu1 %v3581_v6  ;;  %v3586_v55 = vpack.c.bf16 %v10229_v25, %v10227_v33  ;;  %v3588_v6 = vpack.c.bf16 %v10233_v50, %v10231_v42  ;;  %v3591_v11 = vpack.c.bf16 %v10237_v49, %v10235_v19  ;;  %v10253_v22 = vmax.f32 %v10252_v36, 0.0  ;;  %v10256_v39 = vld [vmem:[#allocation79_spill] sm:$0xff]  ;;  %v10258_v21 = vld [vmem:[#allocation68_spill] sm:$0xff]  ;;  %v10260_v20 = vld [vmem:[#allocation66_spill] sm:$0xff] }
 0x468   :  { %v3589_v23 = vpack.c.bf16 %v10225_v54, %v10223_v58  ;;  %3684 = vperm.xlu0 %5791, %v3618_v53   ;;  %v10257_v15 = vmax.f32 %v10256_v39, 0.0  ;;  %v10259_v62 = vmax.f32 %v10258_v21, 0.0  ;;  %v10262_v58 = vld [vmem:[#allocation72_spill] sm:$0xff]  ;;  %v10264_v54 = vld [vmem:[#allocation70_spill] sm:$0xff]  ;;  %v10266_v53 = vld [vmem:[#allocation73_spill] sm:$0xff]  ;;  %v10283_v17 = vmax.f32 %v7941_v30, 0.0 }
 0x469   :  { %v3595_v3 = vpack.c.bf16 %v10253_v22, %v10251_v26  ;;  %v10263_v35 = vmax.f32 %v10262_v58, 0.0  ;;  %v10267_v45 = vmax.f32 %v10266_v53, 0.0  ;;  %v10268_v33 = vld [vmem:[#allocation83_spill] sm:$0xff]  ;;  %v10274_v19 = vld [vmem:[#allocation76_spill] sm:$0xff]  ;;  %v10276_v49 = vld [vmem:[#allocation74_spill] sm:$0xff]  ;;  %v10296_v39 = vmax.f32 %v7953_v9, 0.0 }
 0x46a   :  { %3819 = vmatpush1.bf16.msra.mxu0 %v3578_v12  ;;  %4012 = vmatpush1.bf16.msra.mxu1 %v3580_v34  ;;  %v10238_v12 = vld [vmem:[#allocation61_spill] sm:$0xff]  ;;  %v3621_v34 = vld [vmem:[%s9499_s8 + $0x58] sm:$0xff]  ;;  %v10269_v32 = vmax.f32 %v10268_v33, 0.0  ;;  %v3624_v1 = vld [vmem:[%s9499_s8 + $0x70] sm:$0xff]  ;;  %v10275_v16 = vmax.f32 %v10274_v19, 0.0  ;;  %v10305_v58 = vmax.f32 %v7961_v47, 0.0 }
 0x46b   :  { %3820 = vmatprep.subr.bf16.mxu0 %v3583_v29  ;;  %4013 = vmatprep.subr.bf16.mxu1 %v3585_v8  ;;  %v10239_v28 = vmax.f32 %v10238_v12, 0.0  ;;  %v10245_v29 = vmax.f32 %v10244_v43, 0.0  ;;  %v10249_v8 = vmax.f32 %v10248_v40, 0.0  ;;  %v10272_v42 = vld [vmem:[#allocation87_spill] sm:$0xff]  ;;  %v10284_v43 = vld [vmem:[#allocation81_spill] sm:$0xff]  ;;  %v10292_v36 = vld [vmem:[#allocation88_spill] sm:$0xff] }
 0x46c   :  { %3699 = vperm.xlu1 %5792, %v3621_v34   ;;  %3694 = vperm.xlu0 %5791, %v3620_v7   ;;  %v3599_v25 = vpack.c.bf16 %v10269_v32, %v10267_v45  ;;  %v10273_v31 = vmax.f32 %v10272_v42, 0.0  ;;  %v10282_v7 = vmax.f32 %v7929_v51, 0.0  ;;  %v3627_v40 = vld [vmem:[%s9499_s8 + $0x88] sm:$0xff]  ;;  %v10288_v51 = vld [vmem:[#allocation84_spill] sm:$0xff]  ;;  %v10293_v22 = vmax.f32 %v10292_v36, 0.0  ;;  %v3632_v53 = vld [vmem:[%s9499_s8 + $0xb0] sm:$0xff] }
 0x46d   :  { %v3593_v14 = vpack.c.bf16 %v10241_v13, %v10239_v28  ;;  %v3590_v48 = vpack.c.bf16 %v10245_v29, %v10243_v37  ;;  %v3592_v41 = vpack.c.bf16 %v10249_v8, %v10247_v2  ;;  %v10278_v28 = vld [vmem:[#allocation80_spill] sm:$0xff]  ;;  %v10280_v13 = vld [vmem:[#allocation78_spill] sm:$0xff]  ;;  %v10285_v29 = vmax.f32 %v10284_v43, 0.0  ;;  %v10300_v9 = vld [vmem:[#allocation89_spill] sm:$0xff] }
 0x46e   :  { %3821 = vmatpush1.bf16.msra.mxu0 %v3582_v5  ;;  %4014 = vmatpush1.bf16.msra.mxu1 %v3584_v63  ;;  %v10254_v5 = vld [vmem:[#allocation69_spill] sm:$0xff]  ;;  %v10279_v18 = vmax.f32 %v10278_v28, 0.0  ;;  %v3603_v37 = vpack.c.bf16 %v10283_v17, %v10282_v7  ;;  %v10289_v30 = vmax.f32 %v10288_v51, 0.0  ;;  %v3633_v47 = vld [vmem:[%s9499_s8 + $0xb8] sm:$0xff]  ;;  %v3516_v32 = vld [vmem:[#allocation3 + $0x10] sm:$0xff] }
 0x46f   :  { %3822 = vmatprep.subr.bf16.mxu0 %v3587_v46  ;;  %4015 = vmatprep.subr.bf16.mxu1 %v3589_v23  ;;  %v10255_v0 = vmax.f32 %v10254_v5, 0.0  ;;  %v3623_v63 = vld [vmem:[%s9499_s8 + $0x68] sm:$0xff]  ;;  %v10261_v46 = vmax.f32 %v10260_v20, 0.0  ;;  %v10265_v23 = vmax.f32 %v10264_v54, 0.0  ;;  %v3626_v8 = vld [vmem:[%s9499_s8 + $0x80] sm:$0xff]  ;;  %v3628_v20 = vld [vmem:[%s9499_s8 + $0x90] sm:$0xff] }
 0x470   :  { %3709 = vperm.xlu1 %5792, %v3623_v63   ;;  %3704 = vperm.xlu0 %5791, %v3622_v44   ;;  %v10298_v63 = vmax.f32 %v7955_v24, 0.0  ;;  %v10299_v44 = vmax.f32 %v7967_v27, 0.0  ;;  %v3631_v54 = vld [vmem:[%s9499_s8 + $0xa8] sm:$0xff]  ;;  %v3634_v33 = vld [vmem:[%s9499_s8 + $0xc0] sm:$0xff]  ;;  %v3640_v19 = vld [vmem:[%s9499_s8 + $0xf0] sm:$0xff] }
 0x471   :  { %v3597_v38 = vpack.c.bf16 %v10257_v15, %v10255_v0  ;;  %v3594_v10 = vpack.c.bf16 %v10261_v46, %v10259_v62  ;;  %v3596_v61 = vpack.c.bf16 %v10265_v23, %v10263_v35  ;;  %v10297_v15 = vmax.f32 %v7965_v56, 0.0  ;;  %v3629_v62 = vld [vmem:[%s9499_s8 + $0x98] sm:$0xff]  ;;  %v3630_v23 = vld [vmem:[%s9499_s8 + $0xa0] sm:$0xff]  ;;  %v3635_v45 = vld [vmem:[%s9499_s8 + $0xc8] sm:$0xff] }
 0x472   :  { %3823 = vmatpush1.bf16.msra.mxu0 %v3586_v55  ;;  %4016 = vmatpush1.bf16.msra.mxu1 %v3588_v6  ;;  %v10270_v55 = vld [vmem:[#allocation77_spill] sm:$0xff]  ;;  %v3625_v6 = vld [vmem:[%s9499_s8 + $0x78] sm:$0xff]  ;;  %v3609_v21 = vpack.c.bf16 %v10299_v44, %v10298_v63  ;;  %v10301_v56 = vmax.f32 %v10300_v9, 0.0  ;;  %v10302_v46 = vmax.f32 %v7959_v60, 0.0  ;;  %v3524_v28 = vld [vmem:[#allocation3 + $0x50] sm:$0xff] }
 0x473   :  { %3824 = vmatprep.subr.bf16.mxu0 %v3591_v11  ;;  %4017 = vmatprep.subr.bf16.mxu1 %v3593_v14  ;;  %v10271_v59 = vmax.f32 %v10270_v55, 0.0  ;;  %v10277_v11 = vmax.f32 %v10276_v49, 0.0  ;;  %v10281_v14 = vmax.f32 %v10280_v13, 0.0  ;;  %v3514_v60 = vld [vmem:[#allocation3] sm:$0xff]  ;;  %v3637_v55 = vld [vmem:[%s9499_s8 + $0xd8] sm:$0xff]  ;;  %v3639_v42 = vld [vmem:[%s9499_s8 + $0xe8] sm:$0xff] }
 0x474   :  { %3719 = vperm.xlu1 %5792, %v3625_v6   ;;  %3714 = vperm.xlu0 %5791, %v3624_v1   ;;  %v3606_v24 = vpack.c.bf16 %v10302_v46, %v10301_v56  ;;  %v3521_v6 = vld [vmem:[#allocation3 + $0x38] sm:$0xff]  ;;  %v3523_v49 = vld [vmem:[#allocation3 + $0x48] sm:$0xff]  ;;  %v3526_v13 = vld [vmem:[#allocation3 + $0x60] sm:$0xff] }
 0x475   :  { %v3601_v50 = vpack.c.bf16 %v10273_v31, %v10271_v59  ;;  %v3598_v12 = vpack.c.bf16 %v10277_v11, %v10275_v16  ;;  %v3600_v34 = vpack.c.bf16 %v10281_v14, %v10279_v18  ;;  %v3636_v59 = vld [vmem:[%s9499_s8 + $0xd0] sm:$0xff]  ;;  %v3638_v31 = vld [vmem:[%s9499_s8 + $0xe0] sm:$0xff]  ;;  %v3641_v1 = vld [vmem:[%s9499_s8 + $0xf8] sm:$0xff] }
 0x476   :  { %3825 = vmatpush1.bf16.msra.mxu0 %v3590_v48  ;;  %4018 = vmatpush1.bf16.msra.mxu1 %v3592_v41  ;;  %v10286_v48 = vld [vmem:[#allocation86_spill] sm:$0xff]  ;;  %v10290_v41 = vld [vmem:[#allocation85_spill] sm:$0xff]  ;;  %v3529_v14 = vld [vmem:[#allocation3 + $0x78] sm:$0xff] }
 0x477   :  { %3826 = vmatprep.subr.bf16.mxu0 %v3595_v3  ;;  %4019 = vmatprep.subr.bf16.mxu1 %v3597_v38  ;;  %v10287_v57 = vmax.f32 %v10286_v48, 0.0  ;;  %v10291_v4 = vmax.f32 %v10290_v41, 0.0  ;;  %v10294_v3 = vld [vmem:[#allocation82_spill] sm:$0xff]  ;;  %v3607_v38 = vpack.c.bf16 %v10297_v15, %v10296_v39  ;;  %v3522_v11 = vld [vmem:[#allocation3 + $0x40] sm:$0xff]  ;;  %v3541_v51 = vld [vmem:[#allocation3 + $0xd8] sm:$0xff] }
 0x478   :  { %v10295_v5 = vmax.f32 %v10294_v3, 0.0  ;;  %3729 = vperm.xlu1 %5792, %v3627_v40   ;;  %3724 = vperm.xlu0 %5791, %v3626_v8   ;;  %v3520_v16 = vld [vmem:[#allocation3 + $0x30] sm:$0xff]  ;;  %v3527_v18 = vld [vmem:[#allocation3 + $0x68] sm:$0xff]  ;;  %v3530_v17 = vld [vmem:[#allocation3 + $0x80] sm:$0xff] }
 0x479   :  { %v3605_v2 = vpack.c.bf16 %v10287_v57, %v10285_v29  ;;  %v3602_v26 = vpack.c.bf16 %v10291_v4, %v10289_v30  ;;  %v3531_v7 = vld [vmem:[#allocation3 + $0x88] sm:$0xff]  ;;  %v3532_v43 = vld [vmem:[#allocation3 + $0x90] sm:$0xff]  ;;  %v3534_v48 = vld [vmem:[#allocation3 + $0xa0] sm:$0xff] }
 0x47a   :  { %3827 = vmatpush1.bf16.msra.mxu0 %v3594_v10  ;;  %4020 = vmatpush1.bf16.msra.mxu1 %v3596_v61  ;;  %v3604_v0 = vpack.c.bf16 %v10295_v5, %v10293_v22  ;;  %v10303_v10 = vld [vmem:[#allocation90_spill] sm:$0xff]  ;;  %v3517_v61 = vld [vmem:[#allocation3 + $0x18] sm:$0xff]  ;;  %v3538_v8 = vld [vmem:[#allocation3 + $0xc0] sm:$0xff] }
 0x47b   :  { %3828 = vmatprep.subr.bf16.mxu0 %v3599_v25  ;;  %4021 = vmatprep.subr.bf16.mxu1 %v3601_v50  ;;  %v10304_v27 = vmax.f32 %v10303_v10, 0.0  ;;  %v3519_v25 = vld [vmem:[#allocation3 + $0x28] sm:$0xff]  ;;  %v3518_v50 = vld [vmem:[#allocation3 + $0x20] sm:$0xff]  ;;  %v3537_v57 = vld [vmem:[#allocation3 + $0xb8] sm:$0xff] }
 0x47c   :  { %3739 = vperm.xlu1 %5792, %v3629_v62   ;;  %3734 = vperm.xlu0 %5791, %v3628_v20   ;;  %v3535_v29 = vld [vmem:[#allocation3 + $0xa8] sm:$0xff]  ;;  %v3540_v30 = vld [vmem:[#allocation3 + $0xd0] sm:$0xff]  ;;  %v3542_v4 = vld [vmem:[#allocation3 + $0xe0] sm:$0xff] }
 0x47d   :  { %v3608_v35 = vpack.c.bf16 %v10305_v58, %v10304_v27  ;;  %v3539_v40 = vld [vmem:[#allocation3 + $0xc8] sm:$0xff]  ;;  %v3544_v36 = vld [vmem:[#allocation3 + $0xf0] sm:$0xff] }
 0x47e   :  { %3829 = vmatpush1.bf16.msra.mxu0 %v3598_v12  ;;  %4022 = vmatpush1.bf16.msra.mxu1 %v3600_v34  ;;  %v3525_v12 = vld [vmem:[#allocation3 + $0x58] sm:$0xff]  ;;  %v3528_v34 = vld [vmem:[#allocation3 + $0x70] sm:$0xff]  ;;  %v3543_v41 = vld [vmem:[#allocation3 + $0xe8] sm:$0xff] }
 0x47f   :  { %3830 = vmatprep.subr.bf16.mxu0 %v3603_v37  ;;  %4023 = vmatprep.subr.bf16.mxu1 %v3605_v2  ;;  %v3533_v37 = vld [vmem:[#allocation3 + $0x98] sm:$0xff]  ;;  %v3536_v2 = vld [vmem:[#allocation3 + $0xb0] sm:$0xff] }
 0x480   :  { %3749 = vperm.xlu1 %5792, %v3631_v54   ;;  %3744 = vperm.xlu0 %5791, %v3630_v23  }
 0x482   :  { %3831 = vmatpush1.bf16.msra.mxu0 %v3602_v26  ;;  %4024 = vmatpush1.bf16.msra.mxu1 %v3604_v0  ;;  %v3545_v26 = vld [vmem:[#allocation3 + $0xf8] sm:$0xff] }
 0x483   :  { %3832 = vmatprep.subr.bf16.mxu0 %v3607_v38  ;;  %4025 = vmatprep.subr.bf16.mxu1 %v3609_v21 }
 0x484   :  { %3759 = vperm.xlu1 %5792, %v3633_v47   ;;  %3754 = vperm.xlu0 %5791, %v3632_v53  }
 0x486   :  { %3833 = vmatpush1.bf16.msra.mxu0 %v3606_v24  ;;  %4026 = vmatpush1.bf16.msra.mxu1 %v3608_v35 }
 0x488   :  { %3769 = vperm.xlu1 %5792, %v3635_v45   ;;  %3764 = vperm.xlu0 %5791, %v3634_v33  }
 0x489   :  { %3835 = vmatmul.mubr.bf16.vlgmr.msra.gmra.mrb[128].mxu0 %v3514_v60  ;;  %4028 = vmatmul.mubr.bf16.vlgmr.msra.gmra.mrb[128].mxu1 %v3514_v60 }
 0x48a   :  { %3844 = vmatprep.mubr.bf16.mxu0 %v3517_v61  ;;  %4037 = vmatprep.mubr.bf16.mxu1 %v3517_v61 }
 0x48c   :  { %3779 = vperm.xlu1 %5792, %v3637_v55   ;;  %3774 = vperm.xlu0 %5791, %v3636_v59  }
 0x490   :  { %3789 = vperm.xlu1 %5792, %v3639_v42   ;;  %3784 = vperm.xlu0 %5791, %v3638_v31  }
 0x491   :  { %3845 = vmatmul.mubr.bf16.gmra.mrb[132].mxu0 %v3516_v32  ;;  %4038 = vmatmul.mubr.bf16.gmra.mrb[132].mxu1 %v3516_v32 }
 0x492   :  { %3854 = vmatprep.mubr.bf16.mxu0 %v3519_v25  ;;  %4047 = vmatprep.mubr.bf16.mxu1 %v3519_v25 }
 0x494   :  { %3799 = vperm.xlu1 %5792, %v3641_v1   ;;  %3794 = vperm.xlu0 %5791, %v3640_v19  }
 0x499   :  { %3855 = vmatmul.mubr.bf16.gmra.mrb[136].mxu0 %v3518_v50  ;;  %4048 = vmatmul.mubr.bf16.gmra.mrb[136].mxu1 %v3518_v50 }
 0x49a   :  { %3864 = vmatprep.mubr.bf16.mxu0 %v3521_v6  ;;  %4057 = vmatprep.mubr.bf16.mxu1 %v3521_v6 }
 0x4a1   :  { %3865 = vmatmul.mubr.bf16.gmra.mrb[140].mxu0 %v3520_v16  ;;  %4058 = vmatmul.mubr.bf16.gmra.mrb[140].mxu1 %v3520_v16 }
 0x4a2   :  { %3874 = vmatprep.mubr.bf16.mxu0 %v3523_v49  ;;  %4067 = vmatprep.mubr.bf16.mxu1 %v3523_v49 }
 0x4a9   :  { %3875 = vmatmul.mubr.bf16.gmra.mrb[144].mxu0 %v3522_v11  ;;  %4068 = vmatmul.mubr.bf16.gmra.mrb[144].mxu1 %v3522_v11 }
 0x4aa   :  { %3884 = vmatprep.mubr.bf16.mxu0 %v3525_v12  ;;  %4077 = vmatprep.mubr.bf16.mxu1 %v3525_v12 }
 0x4b1   :  { %3885 = vmatmul.mubr.bf16.gmra.mrb[148].mxu0 %v3524_v28  ;;  %4078 = vmatmul.mubr.bf16.gmra.mrb[148].mxu1 %v3524_v28 }
 0x4b2   :  { %3894 = vmatprep.mubr.bf16.mxu0 %v3527_v18  ;;  %4087 = vmatprep.mubr.bf16.mxu1 %v3527_v18 }
 0x4b9   :  { %3895 = vmatmul.mubr.bf16.gmra.mrb[152].mxu0 %v3526_v13  ;;  %4088 = vmatmul.mubr.bf16.gmra.mrb[152].mxu1 %v3526_v13 }
 0x4ba   :  { %3904 = vmatprep.mubr.bf16.mxu0 %v3529_v14  ;;  %4097 = vmatprep.mubr.bf16.mxu1 %v3529_v14 }
 0x4c1   :  { %3905 = vmatmul.mubr.bf16.gmra.mrb[156].mxu0 %v3528_v34  ;;  %4098 = vmatmul.mubr.bf16.gmra.mrb[156].mxu1 %v3528_v34 }
 0x4c2   :  { %3914 = vmatprep.mubr.bf16.mxu0 %v3531_v7  ;;  %4107 = vmatprep.mubr.bf16.mxu1 %v3531_v7 }
 0x4c9   :  { %3915 = vmatmul.mubr.bf16.gmra.mrb[160].mxu0 %v3530_v17  ;;  %4108 = vmatmul.mubr.bf16.gmra.mrb[160].mxu1 %v3530_v17 }
 0x4ca   :  { %3924 = vmatprep.mubr.bf16.mxu0 %v3533_v37  ;;  %4117 = vmatprep.mubr.bf16.mxu1 %v3533_v37 }
 0x4d1   :  { %3925 = vmatmul.mubr.bf16.gmra.mrb[164].mxu0 %v3532_v43  ;;  %4118 = vmatmul.mubr.bf16.gmra.mrb[164].mxu1 %v3532_v43 }
 0x4d2   :  { %3934 = vmatprep.mubr.bf16.mxu0 %v3535_v29  ;;  %4127 = vmatprep.mubr.bf16.mxu1 %v3535_v29 }
 0x4d3   :  { %v3645_v22 = vpop.permute.xlu0 %3644  ;;  %v3655_v5 = vpop.permute.xlu1 %3654 }
 0x4d7   :  { %v3650_v3 = vpop.permute.xlu0 %3649  ;;  %v3660_v33 = vpop.permute.xlu1 %3659 }
 0x4d9   :  { %3935 = vmatmul.mubr.bf16.gmra.mrb[168].mxu0 %v3534_v48  ;;  %4128 = vmatmul.mubr.bf16.gmra.mrb[168].mxu1 %v3534_v48 }
 0x4da   :  { %3944 = vmatprep.mubr.bf16.mxu0 %v3537_v57  ;;  %4137 = vmatprep.mubr.bf16.mxu1 %v3537_v57 }
 0x4db   :  { %v3670_v48 = vpop.permute.xlu1 %3669  ;;  %v3665_v57 = vpop.permute.xlu0 %3664 }
 0x4e1   :  { %3945 = vmatmul.mubr.bf16.gmra.mrb[172].mxu0 %v3536_v2  ;;  %4138 = vmatmul.mubr.bf16.gmra.mrb[172].mxu1 %v3536_v2 }
 0x4e2   :  { %3954 = vmatprep.mubr.bf16.mxu0 %v3539_v40  ;;  %4147 = vmatprep.mubr.bf16.mxu1 %v3539_v40 }
 0x4e9   :  { %3955 = vmatmul.mubr.bf16.gmra.mrb[176].mxu0 %v3538_v8  ;;  %4148 = vmatmul.mubr.bf16.gmra.mrb[176].mxu1 %v3538_v8 }
 0x4ea   :  { %3964 = vmatprep.mubr.bf16.mxu0 %v3541_v51  ;;  %4157 = vmatprep.mubr.bf16.mxu1 %v3541_v51 }
 0x4f1   :  { %3965 = vmatmul.mubr.bf16.gmra.mrb[180].mxu0 %v3540_v30  ;;  %4158 = vmatmul.mubr.bf16.gmra.mrb[180].mxu1 %v3540_v30 }
 0x4f2   :  { %3974 = vmatprep.mubr.bf16.mxu0 %v3543_v41  ;;  %4167 = vmatprep.mubr.bf16.mxu1 %v3543_v41 }
 0x4f9   :  { %3975 = vmatmul.mubr.bf16.gmra.mrb[184].mxu0 %v3542_v4  ;;  %4168 = vmatmul.mubr.bf16.gmra.mrb[184].mxu1 %v3542_v4 }
 0x4fa   :  { %3984 = vmatprep.mubr.bf16.mxu0 %v3545_v26  ;;  %4177 = vmatprep.mubr.bf16.mxu1 %v3545_v26 }
 0x501   :  { %3985 = vmatmul.mubr.bf16.gmra.mrb[188].mxu0 %v3544_v36  ;;  %4178 = vmatmul.mubr.bf16.gmra.mrb[188].mxu1 %v3544_v36 }
 0x55c   :  { %v3836_v0 = vpop.f32.mrb[128].mxu0  ;;  %v4029_v39 = vpop.f32.mrb[128].mxu1 }
 0x55d   :  { %v8327_v15 = vadd.f32 %v3836_v0, %v3645_v22  ;;  %v8329_v38 = vadd.f32 %v4029_v39, %v3645_v22  ;;  %v3838_v63 = vpop.f32.mrb[129].mxu0  ;;  %v4031_v44 = vpop.f32.mrb[129].mxu1 }
 0x55e   :  { %v8331_v21 = vadd.f32 %v3838_v63, %v3645_v22  ;;  %v8333_v62 = vadd.f32 %v4031_v44, %v3645_v22  ;;  %v3840_v20 = vpop.f32.mrb[130].mxu0  ;;  %v4033_v9 = vpop.f32.mrb[130].mxu1 }
 0x55f   :  { %v8337_v24 = vadd.f32 %v3840_v20, %v3650_v3  ;;  %v8339_v10 = vadd.f32 %v4033_v9, %v3650_v3  ;;  %v3842_v27 = vpop.f32.mrb[131].mxu0  ;;  %v4035_v58 = vpop.f32.mrb[131].mxu1 }
 0x560   :  { %v8343_v23 = vadd.f32 %v3842_v27, %v3650_v3  ;;  %v8345_v60 = vadd.f32 %v4035_v58, %v3650_v3 }
 0x564   :  { %v3846_v32 = vpop.f32.mrb[132].mxu0  ;;  %v4039_v25 = vpop.f32.mrb[132].mxu1 }
 0x565   :  { %v8351_v55 = vadd.f32 %v3846_v32, %v3655_v5  ;;  %v8353_v59 = vadd.f32 %v4039_v25, %v3655_v5  ;;  %v3848_v42 = vpop.f32.mrb[133].mxu0  ;;  %v4041_v31 = vpop.f32.mrb[133].mxu1 }
 0x566   :  { %v8355_v50 = vadd.f32 %v3848_v42, %v3655_v5  ;;  %v8357_v6 = vadd.f32 %v4041_v31, %v3655_v5  ;;  %v3850_v1 = vpop.f32.mrb[134].mxu0  ;;  %v4043_v19 = vpop.f32.mrb[134].mxu1 }
 0x567   :  { %v8361_v11 = vadd.f32 %v3850_v1, %v3660_v33  ;;  %v8363_v12 = vadd.f32 %v4043_v19, %v3660_v33  ;;  %v3852_v28 = vpop.f32.mrb[135].mxu0  ;;  %v4045_v18 = vpop.f32.mrb[135].mxu1 }
 0x568   :  { %v8367_v34 = vadd.f32 %v3852_v28, %v3660_v33  ;;  %v8369_v7 = vadd.f32 %v4045_v18, %v3660_v33  ;;  %v3680_v31 = vpop.permute.xlu1 %3679  ;;  %v3675_v1 = vpop.permute.xlu0 %3674 }
 0x56c   :  { %v3856_v2 = vpop.f32.mrb[136].mxu0  ;;  %v4049_v40 = vpop.f32.mrb[136].mxu1 }
 0x56d   :  { %v8375_v8 = vadd.f32 %v3856_v2, %v3665_v57  ;;  %v8377_v51 = vadd.f32 %v4049_v40, %v3665_v57  ;;  %v3858_v30 = vpop.f32.mrb[137].mxu0  ;;  %v4051_v41 = vpop.f32.mrb[137].mxu1 }
 0x56e   :  { %v8379_v4 = vadd.f32 %v3858_v30, %v3665_v57  ;;  %v8381_v26 = vadd.f32 %v4051_v41, %v3665_v57  ;;  %v3860_v36 = vpop.f32.mrb[138].mxu0  ;;  %v4053_v22 = vpop.f32.mrb[138].mxu1 }
 0x56f   :  { %v8385_v0 = vadd.f32 %v3860_v36, %v3670_v48  ;;  %v8387_v39 = vadd.f32 %v4053_v22, %v3670_v48  ;;  %v3862_v63 = vpop.f32.mrb[139].mxu0  ;;  %v4055_v44 = vpop.f32.mrb[139].mxu1 }
 0x570   :  { %v8391_v27 = vadd.f32 %v3862_v63, %v3670_v48  ;;  %v8393_v58 = vadd.f32 %v4055_v44, %v3670_v48  ;;  %v3685_v3 = vpop.permute.xlu0 %3684 }
 0x574   :  { %v3866_v19 = vpop.f32.mrb[140].mxu0  ;;  %v4059_v28 = vpop.f32.mrb[140].mxu1 }
 0x575   :  { %v8399_v18 = vadd.f32 %v3866_v19, %v3675_v1  ;;  %v8401_v57 = vadd.f32 %v4059_v28, %v3675_v1  ;;  %v3868_v2 = vpop.f32.mrb[141].mxu0  ;;  %v4061_v40 = vpop.f32.mrb[141].mxu1 }
 0x576   :  { %v8403_v48 = vadd.f32 %v3868_v2, %v3675_v1  ;;  %v8405_v30 = vadd.f32 %v4061_v40, %v3675_v1  ;;  %v3870_v41 = vpop.f32.mrb[142].mxu0  ;;  %v4063_v36 = vpop.f32.mrb[142].mxu1 }
 0x577   :  { %v8409_v44 = vadd.f32 %v3870_v41, %v3680_v31  ;;  %v8411_v32 = vadd.f32 %v4063_v36, %v3680_v31  ;;  %v3872_v19 = vpop.f32.mrb[143].mxu0  ;;  %v4065_v5 = vpop.f32.mrb[143].mxu1 }
 0x578   :  { %v8415_v2 = vadd.f32 %v3872_v19, %v3680_v31  ;;  %v8417_v1 = vadd.f32 %v4065_v5, %v3680_v31  ;;  %v3690_v36 = vpop.permute.xlu1 %3689  ;;  %v3695_v16 = vpop.permute.xlu0 %3694 }
 0x57c   :  { %v3876_v42 = vpop.f32.mrb[144].mxu0  ;;  %v4069_v9 = vpop.f32.mrb[144].mxu1 }
 0x57d   :  { %v8423_v25 = vadd.f32 %v3876_v42, %v3685_v3  ;;  %v8425_v28 = vadd.f32 %v4069_v9, %v3685_v3  ;;  %v3878_v19 = vpop.f32.mrb[145].mxu0  ;;  %v4071_v33 = vpop.f32.mrb[145].mxu1 }
 0x57e   :  { %v8427_v5 = vadd.f32 %v3878_v19, %v3685_v3  ;;  %v8429_v31 = vadd.f32 %v4071_v33, %v3685_v3  ;;  %v3880_v40 = vpop.f32.mrb[146].mxu0  ;;  %v4073_v22 = vpop.f32.mrb[146].mxu1 }
 0x57f   :  { %v8433_v20 = vadd.f32 %v3880_v40, %v3690_v36  ;;  %v8435_v37 = vadd.f32 %v4073_v22, %v3690_v36  ;;  %v3882_v42 = vpop.f32.mrb[147].mxu0  ;;  %v4075_v49 = vpop.f32.mrb[147].mxu1 }
 0x580   :  { %v8439_v19 = vadd.f32 %v3882_v42, %v3690_v36  ;;  %v8441_v3 = vadd.f32 %v4075_v49, %v3690_v36  ;;  %v3700_v22 = vpop.permute.xlu1 %3699  ;;  %v3705_v56 = vpop.permute.xlu0 %3704 }
 0x584   :  { %v3886_v29 = vpop.f32.mrb[148].mxu0  ;;  %v4079_v14 = vpop.f32.mrb[148].mxu1 }
 0x585   :  { %v8447_v43 = vadd.f32 %v3886_v29, %v3695_v16  ;;  %v8449_v9 = vadd.f32 %v4079_v14, %v3695_v16  ;;  %v3888_v42 = vpop.f32.mrb[149].mxu0  ;;  %v4081_v17 = vpop.f32.mrb[149].mxu1 }
 0x586   :  { %v8451_v49 = vadd.f32 %v3888_v42, %v3695_v16  ;;  %v8453_v36 = vadd.f32 %v4081_v17, %v3695_v16  ;;  %v3890_v33 = vpop.f32.mrb[150].mxu0  ;;  %v4083_v63 = vpop.f32.mrb[150].mxu1 }
 0x587   :  { %10306 = vst [vmem:[#allocation23_spill] sm:$0xff] %v8447_v43  ;;  %10307 = vst [vmem:[#allocation15_spill] sm:$0xff] %v8449_v9  ;;  %v8457_v13 = vadd.f32 %v3890_v33, %v3700_v22  ;;  %v8459_v47 = vadd.f32 %v4083_v63, %v3700_v22  ;;  %v3892_v29 = vpop.f32.mrb[151].mxu0  ;;  %v4085_v46 = vpop.f32.mrb[151].mxu1 }
 0x588   :  { %v8463_v42 = vadd.f32 %v3892_v29, %v3700_v22  ;;  %v8465_v16 = vadd.f32 %v4085_v46, %v3700_v22  ;;  %v3710_v63 = vpop.permute.xlu1 %3709 }
 0x589   :  { %10308 = vst [vmem:[#allocation16_spill] sm:$0xff] %v8457_v13  ;;  %10309 = vst [vmem:[#allocation14_spill] sm:$0xff] %v8459_v47 }
 0x58a   :  { %10310 = vst [vmem:[#allocation19_spill] sm:$0xff] %v8465_v16 }
 0x58c   :  { %v3896_v45 = vpop.f32.mrb[152].mxu0  ;;  %v4089_v54 = vpop.f32.mrb[152].mxu1 }
 0x58d   :  { %v8471_v53 = vadd.f32 %v3896_v45, %v3705_v56  ;;  %v8473_v14 = vadd.f32 %v4089_v54, %v3705_v56  ;;  %v3898_v29 = vpop.f32.mrb[153].mxu0  ;;  %v4091_v61 = vpop.f32.mrb[153].mxu1 }
 0x58e   :  { %v8475_v46 = vadd.f32 %v3898_v29, %v3705_v56  ;;  %v8477_v22 = vadd.f32 %v4091_v61, %v3705_v56  ;;  %v3900_v17 = vpop.f32.mrb[154].mxu0  ;;  %v4093_v41 = vpop.f32.mrb[154].mxu1 }
 0x58f   :  { %10311 = vst [vmem:[#allocation17_spill] sm:$0xff] %v8471_v53  ;;  %10312 = vst [vmem:[#allocation27_spill] sm:$0xff] %v8473_v14  ;;  %v8481_v35 = vadd.f32 %v3900_v17, %v3710_v63  ;;  %v8483_v47 = vadd.f32 %v4093_v41, %v3710_v63  ;;  %v3902_v45 = vpop.f32.mrb[155].mxu0  ;;  %v4095_v9 = vpop.f32.mrb[155].mxu1 }
 0x590   :  { %10313 = vst [vmem:[#allocation21_spill] sm:$0xff] %v8475_v46  ;;  %10314 = vst [vmem:[#allocation31_spill] sm:$0xff] %v8477_v22  ;;  %v8487_v29 = vadd.f32 %v3902_v45, %v3710_v63  ;;  %v8489_v56 = vadd.f32 %v4095_v9, %v3710_v63  ;;  %v3720_v41 = vpop.permute.xlu1 %3719  ;;  %v3715_v14 = vpop.permute.xlu0 %3714 }
 0x591   :  { %10315 = vst [vmem:[#allocation20_spill] sm:$0xff] %v8481_v35  ;;  %10316 = vst [vmem:[#allocation18_spill] sm:$0xff] %v8483_v47 }
 0x592   :  { %10317 = vst [vmem:[#allocation24_spill] sm:$0xff] %v8487_v29  ;;  %10318 = vst [vmem:[#allocation22_spill] sm:$0xff] %v8489_v56 }
 0x594   :  { %v3906_v53 = vpop.f32.mrb[156].mxu0  ;;  %v4099_v43 = vpop.f32.mrb[156].mxu1 }
 0x595   :  { %v8495_v16 = vadd.f32 %v3906_v53, %v3715_v14  ;;  %v8497_v54 = vadd.f32 %v4099_v43, %v3715_v14  ;;  %v3908_v45 = vpop.f32.mrb[157].mxu0  ;;  %v4101_v13 = vpop.f32.mrb[157].mxu1 }
 0x596   :  { %v8499_v9 = vadd.f32 %v3908_v45, %v3715_v14  ;;  %v8501_v63 = vadd.f32 %v4101_v13, %v3715_v14  ;;  %v3910_v61 = vpop.f32.mrb[158].mxu0  ;;  %v4103_v40 = vpop.f32.mrb[158].mxu1 }
 0x597   :  { %10319 = vst [vmem:[#allocation25_spill] sm:$0xff] %v8495_v16  ;;  %10320 = vst [vmem:[#allocation35_spill] sm:$0xff] %v8497_v54  ;;  %v8505_v47 = vadd.f32 %v3910_v61, %v3720_v41  ;;  %v8507_v35 = vadd.f32 %v4103_v40, %v3720_v41  ;;  %v3912_v53 = vpop.f32.mrb[159].mxu0  ;;  %v4105_v56 = vpop.f32.mrb[159].mxu1 }
 0x598   :  { %10321 = vst [vmem:[#allocation29_spill] sm:$0xff] %v8499_v9  ;;  %10322 = vst [vmem:[#allocation39_spill] sm:$0xff] %v8501_v63  ;;  %v8511_v45 = vadd.f32 %v3912_v53, %v3720_v41  ;;  %v8513_v13 = vadd.f32 %v4105_v56, %v3720_v41  ;;  %v3730_v40 = vpop.permute.xlu1 %3729  ;;  %v3725_v54 = vpop.permute.xlu0 %3724 }
 0x599   :  { %10323 = vst [vmem:[#allocation28_spill] sm:$0xff] %v8505_v47  ;;  %10324 = vst [vmem:[#allocation26_spill] sm:$0xff] %v8507_v35 }
 0x59a   :  { %10325 = vst [vmem:[#allocation32_spill] sm:$0xff] %v8511_v45  ;;  %10326 = vst [vmem:[#allocation30_spill] sm:$0xff] %v8513_v13 }
 0x59c   :  { %v3916_v16 = vpop.f32.mrb[160].mxu0  ;;  %v4109_v29 = vpop.f32.mrb[160].mxu1 }
 0x59d   :  { %v8519_v46 = vadd.f32 %v3916_v16, %v3725_v54  ;;  %v8521_v43 = vadd.f32 %v4109_v29, %v3725_v54  ;;  %v3918_v53 = vpop.f32.mrb[161].mxu0  ;;  %v4111_v22 = vpop.f32.mrb[161].mxu1 }
 0x59e   :  { %v8523_v56 = vadd.f32 %v3918_v53, %v3725_v54  ;;  %v8525_v41 = vadd.f32 %v4111_v22, %v3725_v54  ;;  %v3920_v14 = vpop.f32.mrb[162].mxu0  ;;  %v4113_v33 = vpop.f32.mrb[162].mxu1 }
 0x59f   :  { %10327 = vst [vmem:[#allocation33_spill] sm:$0xff] %v8519_v46  ;;  %10328 = vst [vmem:[#allocation43_spill] sm:$0xff] %v8521_v43  ;;  %v8529_v35 = vadd.f32 %v3920_v14, %v3730_v40  ;;  %v8531_v47 = vadd.f32 %v4113_v33, %v3730_v40  ;;  %v3922_v16 = vpop.f32.mrb[163].mxu0  ;;  %v4115_v13 = vpop.f32.mrb[163].mxu1 }
 0x5a0   :  { %10329 = vst [vmem:[#allocation37_spill] sm:$0xff] %v8523_v56  ;;  %10330 = vst [vmem:[#allocation47_spill] sm:$0xff] %v8525_v41  ;;  %v8535_v53 = vadd.f32 %v3922_v16, %v3730_v40  ;;  %v8537_v22 = vadd.f32 %v4115_v13, %v3730_v40  ;;  %v3740_v33 = vpop.permute.xlu1 %3739  ;;  %v3735_v43 = vpop.permute.xlu0 %3734 }
 0x5a1   :  { %10331 = vst [vmem:[#allocation36_spill] sm:$0xff] %v8529_v35  ;;  %10332 = vst [vmem:[#allocation34_spill] sm:$0xff] %v8531_v47 }
 0x5a2   :  { %10333 = vst [vmem:[#allocation40_spill] sm:$0xff] %v8535_v53  ;;  %10334 = vst [vmem:[#allocation38_spill] sm:$0xff] %v8537_v22 }
 0x5a4   :  { %v3926_v46 = vpop.f32.mrb[164].mxu0  ;;  %v4119_v45 = vpop.f32.mrb[164].mxu1 }
 0x5a5   :  { %v8543_v9 = vadd.f32 %v3926_v46, %v3735_v43  ;;  %v8545_v29 = vadd.f32 %v4119_v45, %v3735_v43  ;;  %v3928_v16 = vpop.f32.mrb[165].mxu0  ;;  %v4121_v63 = vpop.f32.mrb[165].mxu1 }
 0x5a6   :  { %v8547_v13 = vadd.f32 %v3928_v16, %v3735_v43  ;;  %v8549_v40 = vadd.f32 %v4121_v63, %v3735_v43  ;;  %v3930_v54 = vpop.f32.mrb[166].mxu0  ;;  %v4123_v17 = vpop.f32.mrb[166].mxu1 }
 0x5a7   :  { %10335 = vst [vmem:[#allocation41_spill] sm:$0xff] %v8543_v9  ;;  %10336 = vst [vmem:[#allocation51_spill] sm:$0xff] %v8545_v29  ;;  %v8553_v47 = vadd.f32 %v3930_v54, %v3740_v33  ;;  %v8555_v35 = vadd.f32 %v4123_v17, %v3740_v33  ;;  %v3932_v46 = vpop.f32.mrb[167].mxu0  ;;  %v4125_v22 = vpop.f32.mrb[167].mxu1 }
 0x5a8   :  { %10337 = vst [vmem:[#allocation45_spill] sm:$0xff] %v8547_v13  ;;  %10338 = vst [vmem:[#allocation55_spill] sm:$0xff] %v8549_v40  ;;  %v8559_v16 = vadd.f32 %v3932_v46, %v3740_v33  ;;  %v8561_v63 = vadd.f32 %v4125_v22, %v3740_v33  ;;  %v3750_v17 = vpop.permute.xlu1 %3749  ;;  %v3745_v29 = vpop.permute.xlu0 %3744 }
 0x5a9   :  { %10339 = vst [vmem:[#allocation44_spill] sm:$0xff] %v8553_v47  ;;  %10340 = vst [vmem:[#allocation42_spill] sm:$0xff] %v8555_v35 }
 0x5aa   :  { %10341 = vst [vmem:[#allocation48_spill] sm:$0xff] %v8559_v16  ;;  %10342 = vst [vmem:[#allocation46_spill] sm:$0xff] %v8561_v63 }
 0x5ac   :  { %v3936_v9 = vpop.f32.mrb[168].mxu0  ;;  %v4129_v53 = vpop.f32.mrb[168].mxu1 }
 0x5ad   :  { %v8567_v56 = vadd.f32 %v3936_v9, %v3745_v29  ;;  %v8569_v45 = vadd.f32 %v4129_v53, %v3745_v29  ;;  %v3938_v46 = vpop.f32.mrb[169].mxu0  ;;  %v4131_v41 = vpop.f32.mrb[169].mxu1 }
 0x5ae   :  { %v8571_v22 = vadd.f32 %v3938_v46, %v3745_v29  ;;  %v8573_v33 = vadd.f32 %v4131_v41, %v3745_v29  ;;  %v3940_v43 = vpop.f32.mrb[170].mxu0  ;;  %v4133_v61 = vpop.f32.mrb[170].mxu1 }
 0x5af   :  { %10343 = vst [vmem:[#allocation49_spill] sm:$0xff] %v8567_v56  ;;  %10344 = vst [vmem:[#allocation59_spill] sm:$0xff] %v8569_v45  ;;  %v8577_v35 = vadd.f32 %v3940_v43, %v3750_v17  ;;  %v8579_v47 = vadd.f32 %v4133_v61, %v3750_v17  ;;  %v3942_v9 = vpop.f32.mrb[171].mxu0  ;;  %v4135_v63 = vpop.f32.mrb[171].mxu1 }
 0x5b0   :  { %10345 = vst [vmem:[#allocation53_spill] sm:$0xff] %v8571_v22  ;;  %10346 = vst [vmem:[#allocation63_spill] sm:$0xff] %v8573_v33  ;;  %v8583_v46 = vadd.f32 %v3942_v9, %v3750_v17  ;;  %v8585_v41 = vadd.f32 %v4135_v63, %v3750_v17  ;;  %v3760_v61 = vpop.permute.xlu1 %3759  ;;  %v3755_v45 = vpop.permute.xlu0 %3754 }
 0x5b1   :  { %10347 = vst [vmem:[#allocation52_spill] sm:$0xff] %v8577_v35  ;;  %10348 = vst [vmem:[#allocation50_spill] sm:$0xff] %v8579_v47 }
 0x5b2   :  { %10349 = vst [vmem:[#allocation56_spill] sm:$0xff] %v8583_v46  ;;  %10350 = vst [vmem:[#allocation54_spill] sm:$0xff] %v8585_v41 }
 0x5b4   :  { %v3946_v56 = vpop.f32.mrb[172].mxu0  ;;  %v4139_v16 = vpop.f32.mrb[172].mxu1 }
 0x5b5   :  { %v8591_v13 = vadd.f32 %v3946_v56, %v3755_v45  ;;  %v8593_v53 = vadd.f32 %v4139_v16, %v3755_v45  ;;  %v3948_v9 = vpop.f32.mrb[173].mxu0  ;;  %v4141_v40 = vpop.f32.mrb[173].mxu1 }
 0x5b6   :  { %v8595_v63 = vadd.f32 %v3948_v9, %v3755_v45  ;;  %v8597_v17 = vadd.f32 %v4141_v40, %v3755_v45  ;;  %v3950_v29 = vpop.f32.mrb[174].mxu0  ;;  %v4143_v14 = vpop.f32.mrb[174].mxu1 }
 0x5b7   :  { %10351 = vst [vmem:[#allocation57_spill] sm:$0xff] %v8591_v13  ;;  %10352 = vst [vmem:[#allocation67_spill] sm:$0xff] %v8593_v53  ;;  %v8601_v47 = vadd.f32 %v3950_v29, %v3760_v61  ;;  %v8603_v35 = vadd.f32 %v4143_v14, %v3760_v61  ;;  %v3952_v56 = vpop.f32.mrb[175].mxu0  ;;  %v4145_v41 = vpop.f32.mrb[175].mxu1 }
 0x5b8   :  { %10353 = vst [vmem:[#allocation61_spill] sm:$0xff] %v8595_v63  ;;  %10354 = vst [vmem:[#allocation71_spill] sm:$0xff] %v8597_v17  ;;  %v8607_v9 = vadd.f32 %v3952_v56, %v3760_v61  ;;  %v8609_v40 = vadd.f32 %v4145_v41, %v3760_v61  ;;  %v3770_v14 = vpop.permute.xlu1 %3769  ;;  %v3765_v53 = vpop.permute.xlu0 %3764 }
 0x5b9   :  { %10355 = vst [vmem:[#allocation60_spill] sm:$0xff] %v8601_v47  ;;  %10356 = vst [vmem:[#allocation58_spill] sm:$0xff] %v8603_v35 }
 0x5ba   :  { %10357 = vst [vmem:[#allocation64_spill] sm:$0xff] %v8607_v9  ;;  %10358 = vst [vmem:[#allocation62_spill] sm:$0xff] %v8609_v40 }
 0x5bc   :  { %v3956_v13 = vpop.f32.mrb[176].mxu0  ;;  %v4149_v46 = vpop.f32.mrb[176].mxu1 }
 0x5bd   :  { %v8615_v22 = vadd.f32 %v3956_v13, %v3765_v53  ;;  %v8617_v16 = vadd.f32 %v4149_v46, %v3765_v53  ;;  %v3958_v56 = vpop.f32.mrb[177].mxu0  ;;  %v4151_v33 = vpop.f32.mrb[177].mxu1 }
 0x5be   :  { %v8619_v41 = vadd.f32 %v3958_v56, %v3765_v53  ;;  %v8621_v61 = vadd.f32 %v4151_v33, %v3765_v53  ;;  %v3960_v45 = vpop.f32.mrb[178].mxu0  ;;  %v4153_v54 = vpop.f32.mrb[178].mxu1 }
 0x5bf   :  { %10359 = vst [vmem:[#allocation65_spill] sm:$0xff] %v8615_v22  ;;  %10360 = vst [vmem:[#allocation75_spill] sm:$0xff] %v8617_v16  ;;  %v8625_v35 = vadd.f32 %v3960_v45, %v3770_v14  ;;  %v8627_v47 = vadd.f32 %v4153_v54, %v3770_v14  ;;  %v3962_v13 = vpop.f32.mrb[179].mxu0  ;;  %v4155_v40 = vpop.f32.mrb[179].mxu1 }
 0x5c0   :  { %10361 = vst [vmem:[#allocation69_spill] sm:$0xff] %v8619_v41  ;;  %10362 = vst [vmem:[#allocation79_spill] sm:$0xff] %v8621_v61  ;;  %v8631_v56 = vadd.f32 %v3962_v13, %v3770_v14  ;;  %v8633_v33 = vadd.f32 %v4155_v40, %v3770_v14  ;;  %v3780_v54 = vpop.permute.xlu1 %3779  ;;  %v3775_v16 = vpop.permute.xlu0 %3774 }
 0x5c1   :  { %10363 = vst [vmem:[#allocation68_spill] sm:$0xff] %v8625_v35  ;;  %10364 = vst [vmem:[#allocation66_spill] sm:$0xff] %v8627_v47 }
 0x5c2   :  { %10365 = vst [vmem:[#allocation72_spill] sm:$0xff] %v8631_v56  ;;  %10366 = vst [vmem:[#allocation70_spill] sm:$0xff] %v8633_v33 }
 0x5c4   :  { %v3966_v22 = vpop.f32.mrb[180].mxu0  ;;  %v4159_v9 = vpop.f32.mrb[180].mxu1 }
 0x5c5   :  { %v8639_v63 = vadd.f32 %v3966_v22, %v3775_v16  ;;  %v8641_v46 = vadd.f32 %v4159_v9, %v3775_v16  ;;  %v3968_v13 = vpop.f32.mrb[181].mxu0  ;;  %v4161_v17 = vpop.f32.mrb[181].mxu1 }
 0x5c6   :  { %v8643_v40 = vadd.f32 %v3968_v13, %v3775_v16  ;;  %v8645_v14 = vadd.f32 %v4161_v17, %v3775_v16  ;;  %v3970_v53 = vpop.f32.mrb[182].mxu0  ;;  %v4163_v43 = vpop.f32.mrb[182].mxu1 }
 0x5c7   :  { %10367 = vst [vmem:[#allocation73_spill] sm:$0xff] %v8639_v63  ;;  %10368 = vst [vmem:[#allocation83_spill] sm:$0xff] %v8641_v46  ;;  %v8649_v47 = vadd.f32 %v3970_v53, %v3780_v54  ;;  %v8651_v35 = vadd.f32 %v4163_v43, %v3780_v54  ;;  %v3972_v22 = vpop.f32.mrb[183].mxu0  ;;  %v4165_v33 = vpop.f32.mrb[183].mxu1  ;;  %v10389_v53 = vmax.f32 %v8329_v38, 0.0 }
 0x5c8   :  { %10369 = vst [vmem:[#allocation77_spill] sm:$0xff] %v8643_v40  ;;  %10370 = vst [vmem:[#allocation87_spill] sm:$0xff] %v8645_v14  ;;  %v8655_v13 = vadd.f32 %v3972_v22, %v3780_v54  ;;  %v8657_v17 = vadd.f32 %v4165_v33, %v3780_v54  ;;  %v3790_v43 = vpop.permute.xlu1 %3789  ;;  %v3785_v46 = vpop.permute.xlu0 %3784 }
 0x5c9   :  { %10371 = vst [vmem:[#allocation76_spill] sm:$0xff] %v8649_v47  ;;  %10372 = vst [vmem:[#allocation74_spill] sm:$0xff] %v8651_v35 }
 0x5ca   :  { %10373 = vst [vmem:[#allocation80_spill] sm:$0xff] %v8655_v13  ;;  %10374 = vst [vmem:[#allocation78_spill] sm:$0xff] %v8657_v17 }
 0x5cc   :  { %v3976_v63 = vpop.f32.mrb[184].mxu0  ;;  %v4169_v56 = vpop.f32.mrb[184].mxu1 }
 0x5cd   :  { %v8663_v41 = vadd.f32 %v3976_v63, %v3785_v46  ;;  %v8665_v9 = vadd.f32 %v4169_v56, %v3785_v46  ;;  %v3978_v22 = vpop.f32.mrb[185].mxu0  ;;  %v4171_v61 = vpop.f32.mrb[185].mxu1 }
 0x5ce   :  { %v8667_v33 = vadd.f32 %v3978_v22, %v3785_v46  ;;  %v8669_v54 = vadd.f32 %v4171_v61, %v3785_v46  ;;  %v3980_v16 = vpop.f32.mrb[186].mxu0  ;;  %v4173_v29 = vpop.f32.mrb[186].mxu1 }
 0x5cf   :  { %10375 = vst [vmem:[#allocation81_spill] sm:$0xff] %v8663_v41  ;;  %10376 = vst [vmem:[#allocation86_spill] sm:$0xff] %v8665_v9  ;;  %v8673_v35 = vadd.f32 %v3980_v16, %v3790_v43  ;;  %v8675_v47 = vadd.f32 %v4173_v29, %v3790_v43  ;;  %v3982_v63 = vpop.f32.mrb[187].mxu0  ;;  %v4175_v17 = vpop.f32.mrb[187].mxu1  ;;  %v10390_v16 = vmax.f32 %v8339_v10, 0.0 }
 0x5d0   :  { %10377 = vst [vmem:[#allocation84_spill] sm:$0xff] %v8669_v54  ;;  %v8679_v22 = vadd.f32 %v3982_v63, %v3790_v43  ;;  %v8681_v61 = vadd.f32 %v4175_v17, %v3790_v43  ;;  %v3800_v29 = vpop.permute.xlu1 %3799  ;;  %v3795_v9 = vpop.permute.xlu0 %3794 }
 0x5d1   :  { %10378 = vst [vmem:[#allocation85_spill] sm:$0xff] %v8673_v35  ;;  %10379 = vst [vmem:[#allocation88_spill] sm:$0xff] %v8675_v47 }
 0x5d2   :  { %10380 = vst [vmem:[#allocation82_spill] sm:$0xff] %v8681_v61 }
 0x5d4   :  { %v3986_v41 = vpop.f32.mrb[188].mxu0  ;;  %v4179_v13 = vpop.f32.mrb[188].mxu1 }
 0x5d5   :  { %v8687_v40 = vadd.f32 %v3986_v41, %v3795_v9  ;;  %v8689_v56 = vadd.f32 %v4179_v13, %v3795_v9  ;;  %v3988_v63 = vpop.f32.mrb[189].mxu0  ;;  %v4181_v14 = vpop.f32.mrb[189].mxu1  ;;  %v10385_v13 = vmax.f32 %v8333_v62, 0.0 }
 0x5d6   :  { %v8691_v17 = vadd.f32 %v3988_v63, %v3795_v9  ;;  %v8693_v43 = vadd.f32 %v4181_v14, %v3795_v9  ;;  %v3990_v46 = vpop.f32.mrb[190].mxu0  ;;  %v4183_v45 = vpop.f32.mrb[190].mxu1 }
 0x5d7   :  { %10381 = vst [vmem:[#allocation89_spill] sm:$0xff] %v8687_v40  ;;  %10382 = vst [vmem:[#allocation90_spill] sm:$0xff] %v8689_v56  ;;  %v8697_v47 = vadd.f32 %v3990_v46, %v3800_v29  ;;  %v8699_v35 = vadd.f32 %v4183_v45, %v3800_v29  ;;  %v3992_v41 = vpop.f32.mrb[191].mxu0  ;;  %v4185_v61 = vpop.f32.mrb[191].mxu1  ;;  %v10383_v45 = vmax.f32 %v8331_v21, 0.0  ;;  %v10384_v56 = vmax.f32 %v8343_v23, 0.0 }
 0x5d8   :  { %v8703_v63 = vadd.f32 %v3992_v41, %v3800_v29  ;;  %v8705_v14 = vadd.f32 %v4185_v61, %v3800_v29  ;;  %v10386_v41 = vmax.f32 %v8345_v60, 0.0  ;;  %v10387_v61 = vmax.f32 %v8327_v15, 0.0 }
 0x5d9   :  { %v4351_v40 = vpack.c.bf16 %v10384_v56, %v10383_v45  ;;  %v10388_v29 = vmax.f32 %v8337_v24, 0.0  ;;  %v4352_v46 = vpack.c.bf16 %v10390_v16, %v10389_v53 }
 0x5da   :  { %v4353_v54 = vpack.c.bf16 %v10386_v41, %v10385_v13 }
 0x5db   :  { %v4350_v9 = vpack.c.bf16 %v10388_v29, %v10387_v61 }
 0x5dc   :  { %5799 = dma.done.wait [#allocation5 + $0x2], 4096 }
 0x5dd   :  { %5800 = vsyncadd [#allocation5 + $0x2], 4294963200  ;;  %5793 = vset.pattern.permute.xlu0 %v9827_v52  ;;  %v10391_v21 = vmax.f32 %v8355_v50, 0.0  ;;  %v10392_v62 = vmax.f32 %v8367_v34, 0.0  ;;  %v10393_v60 = vmax.f32 %v8357_v6, 0.0  ;;  %v10394_v15 = vmax.f32 %v8369_v7, 0.0  ;;  %5794 = vset.pattern.permute.xlu1 %v9827_v52 }
 0x5de   :  { %4606 = vmatprep.subr.bf16.mxu0 %v4351_v40  ;;  %4799 = vmatprep.subr.bf16.mxu1 %v4353_v54  ;;  %v10395_v38 = vmax.f32 %v8351_v55, 0.0  ;;  %v10396_v10 = vmax.f32 %v8361_v11, 0.0  ;;  %v10397_v50 = vmax.f32 %v8353_v59, 0.0  ;;  %v10398_v34 = vmax.f32 %v8363_v12, 0.0  ;;  %v4417_v45 = vld [vmem:[%s9501_s10 + $0x18] sm:$0xff] }
 0x5df   :  { %v4355_v23 = vpack.c.bf16 %v10392_v62, %v10391_v21  ;;  %v4357_v24 = vpack.c.bf16 %v10394_v15, %v10393_v60  ;;  %4607 = vmatpush1.bf16.msra.mxu0 %v4350_v9  ;;  %4800 = vmatpush1.bf16.msra.mxu1 %v4352_v46  ;;  %v10399_v6 = vmax.f32 %v8379_v4, 0.0  ;;  %v10400_v52 = vmax.f32 %v8391_v27, 0.0  ;;  %v4414_v27 = vld [vmem:[%s9501_s10] sm:$0xff]  ;;  %v4415_v46 = vld [vmem:[%s9501_s10 + $0x8] sm:$0xff] }
 0x5e0   :  { %v4354_v53 = vpack.c.bf16 %v10396_v10, %v10395_v38  ;;  %v4356_v56 = vpack.c.bf16 %v10398_v34, %v10397_v50  ;;  %v10401_v40 = vmax.f32 %v8381_v26, 0.0  ;;  %v10402_v54 = vmax.f32 %v8393_v58, 0.0  ;;  %v4416_v26 = vld [vmem:[%s9501_s10 + $0x10] sm:$0xff]  ;;  %4448 = vperm.xlu0 %5793, %v4414_v27  }
 0x5e1   :  { %4608 = vmatprep.subr.bf16.mxu0 %v4355_v23  ;;  %4801 = vmatprep.subr.bf16.mxu1 %v4357_v24  ;;  %v4359_v7 = vpack.c.bf16 %v10400_v52, %v10399_v6  ;;  %v10403_v11 = vmax.f32 %v8375_v8, 0.0  ;;  %v10404_v59 = vmax.f32 %v8385_v0, 0.0  ;;  %v10405_v16 = vmax.f32 %v8377_v51, 0.0  ;;  %v4319_v24 = vld [vmem:[#allocation4 + $0x8] sm:$0xff]  ;;  %v10426_v34 = vld [vmem:[#allocation19_spill] sm:$0xff] }
 0x5e2   :  { %v4361_v55 = vpack.c.bf16 %v10402_v54, %v10401_v40  ;;  %v10406_v13 = vmax.f32 %v8387_v39, 0.0  ;;  %v10407_v8 = vmax.f32 %v8403_v48, 0.0  ;;  %v10408_v0 = vmax.f32 %v8415_v2, 0.0  ;;  %4458 = vperm.xlu1 %5794, %v4416_v26   ;;  %4638 = vmatprep.mubr.bf16.mxu0 %v4319_v24  ;;  %v10432_v52 = vld [vmem:[#allocation15_spill] sm:$0xff]  ;;  %v10434_v40 = vld [vmem:[#allocation14_spill] sm:$0xff] }
 0x5e3   :  { %4609 = vmatpush1.bf16.msra.mxu0 %v4354_v53  ;;  %4802 = vmatpush1.bf16.msra.mxu1 %v4356_v56  ;;  %v4358_v12 = vpack.c.bf16 %v10404_v59, %v10403_v11  ;;  %v10409_v51 = vmax.f32 %v8405_v30, 0.0  ;;  %v10410_v39 = vmax.f32 %v8417_v1, 0.0  ;;  %v10411_v48 = vmax.f32 %v8399_v18, 0.0  ;;  %v10436_v11 = vld [vmem:[#allocation21_spill] sm:$0xff]  ;;  %v10442_v26 = vld [vmem:[#allocation22_spill] sm:$0xff] }
 0x5e4   :  { %v4360_v4 = vpack.c.bf16 %v10406_v13, %v10405_v16  ;;  %4610 = vmatprep.subr.bf16.mxu0 %v4359_v7  ;;  %4803 = vmatprep.subr.bf16.mxu1 %v4361_v55  ;;  %v4363_v58 = vpack.c.bf16 %v10408_v0, %v10407_v8  ;;  %v10412_v2 = vmax.f32 %v8409_v44, 0.0  ;;  %v10413_v1 = vmax.f32 %v8401_v57, 0.0  ;;  %v4418_v57 = vld [vmem:[%s9501_s10 + $0x20] sm:$0xff] }
 0x5e5   :  { %v4365_v9 = vpack.c.bf16 %v10410_v39, %v10409_v51  ;;  %v10414_v41 = vmax.f32 %v8411_v32, 0.0  ;;  %v10415_v29 = vmax.f32 %v8427_v5, 0.0  ;;  %v10416_v21 = vmax.f32 %v8439_v19, 0.0  ;;  %4453 = vperm.xlu0 %5793, %v4415_v46   ;;  %v4419_v32 = vld [vmem:[%s9501_s10 + $0x28] sm:$0xff]  ;;  %4831 = vmatprep.mubr.bf16.mxu1 %v4319_v24  ;;  %v10446_v46 = vld [vmem:[#allocation20_spill] sm:$0xff] }
 0x5e6   :  { %v4362_v30 = vpack.c.bf16 %v10412_v2, %v10411_v48  ;;  %v10417_v23 = vmax.f32 %v8429_v31, 0.0  ;;  %v10418_v60 = vmax.f32 %v8441_v3, 0.0  ;;  %4463 = vperm.xlu1 %5794, %v4417_v45   ;;  %v10419_v44 = vmax.f32 %v8423_v25, 0.0  ;;  %v4423_v51 = vld [vmem:[%s9501_s10 + $0x48] sm:$0xff]  ;;  %v10448_v2 = vld [vmem:[#allocation27_spill] sm:$0xff]  ;;  %v10462_v24 = vld [vmem:[#allocation28_spill] sm:$0xff] }
 0x5e7   :  { %4611 = vmatpush1.bf16.msra.mxu0 %v4358_v12  ;;  %4804 = vmatpush1.bf16.msra.mxu1 %v4360_v4  ;;  %v4364_v61 = vpack.c.bf16 %v10414_v41, %v10413_v1  ;;  %v4367_v62 = vpack.c.bf16 %v10416_v21, %v10415_v29  ;;  %v10420_v5 = vmax.f32 %v8433_v20, 0.0  ;;  %v10421_v19 = vmax.f32 %v8425_v28, 0.0  ;;  %v4421_v20 = vld [vmem:[%s9501_s10 + $0x38] sm:$0xff]  ;;  %v10444_v39 = vld [vmem:[#allocation17_spill] sm:$0xff]  ;;  %v10450_v1 = vld [vmem:[#allocation18_spill] sm:$0xff] }
 0x5e8   :  { %4612 = vmatprep.subr.bf16.mxu0 %v4363_v58  ;;  %4805 = vmatprep.subr.bf16.mxu1 %v4365_v9  ;;  %v4369_v18 = vpack.c.bf16 %v10418_v60, %v10417_v23  ;;  %v10422_v3 = vmax.f32 %v8435_v37, 0.0  ;;  %v10423_v38 = vmax.f32 %v8451_v49, 0.0  ;;  %v10424_v10 = vmax.f32 %v8463_v42, 0.0  ;;  %v4420_v37 = vld [vmem:[%s9501_s10 + $0x30] sm:$0xff]  ;;  %v10430_v42 = vld [vmem:[#allocation16_spill] sm:$0xff]  ;;  %v10452_v29 = vld [vmem:[#allocation29_spill] sm:$0xff] }
 0x5e9   :  { %v4366_v31 = vpack.c.bf16 %v10420_v5, %v10419_v44  ;;  %v10425_v50 = vmax.f32 %v8453_v36, 0.0  ;;  %v10427_v25 = vmax.f32 %v10426_v34, 0.0  ;;  %4468 = vperm.xlu0 %5793, %v4418_v57   ;;  %v10428_v28 = vld [vmem:[#allocation23_spill] sm:$0xff]  ;;  %v10431_v36 = vmax.f32 %v10430_v42, 0.0  ;;  %v10438_v12 = vld [vmem:[#allocation24_spill] sm:$0xff]  ;;  %v10466_v34 = vld [vmem:[#allocation26_spill] sm:$0xff] }
 0x5ea   :  { %v4368_v15 = vpack.c.bf16 %v10422_v3, %v10421_v19  ;;  %v4371_v53 = vpack.c.bf16 %v10424_v10, %v10423_v38  ;;  %4473 = vperm.xlu1 %5794, %v4419_v32   ;;  %v10429_v49 = vmax.f32 %v10428_v28, 0.0  ;;  %v10433_v7 = vmax.f32 %v10432_v52, 0.0  ;;  %v10440_v4 = vld [vmem:[#allocation31_spill] sm:$0xff]  ;;  %v4422_v58 = vld [vmem:[%s9501_s10 + $0x40] sm:$0xff]  ;;  %v10458_v32 = vld [vmem:[#allocation30_spill] sm:$0xff] }
 0x5eb   :  { %4613 = vmatpush1.bf16.msra.mxu0 %v4362_v30  ;;  %4806 = vmatpush1.bf16.msra.mxu1 %v4364_v61  ;;  %v4373_v56 = vpack.c.bf16 %v10427_v25, %v10425_v50  ;;  %v10435_v54 = vmax.f32 %v10434_v40, 0.0  ;;  %v10437_v59 = vmax.f32 %v10436_v11, 0.0  ;;  %v10439_v16 = vmax.f32 %v10438_v12, 0.0  ;;  %v4425_v19 = vld [vmem:[%s9501_s10 + $0x58] sm:$0xff]  ;;  %v10460_v3 = vld [vmem:[#allocation25_spill] sm:$0xff]  ;;  %v10474_v52 = vld [vmem:[#allocation38_spill] sm:$0xff] }
 0x5ec   :  { %4614 = vmatprep.subr.bf16.mxu0 %v4367_v62  ;;  %4807 = vmatprep.subr.bf16.mxu1 %v4369_v18  ;;  %v4370_v6 = vpack.c.bf16 %v10431_v36, %v10429_v49  ;;  %v10441_v27 = vmax.f32 %v10440_v4, 0.0  ;;  %v10443_v8 = vmax.f32 %v10442_v26, 0.0  ;;  %v10445_v9 = vmax.f32 %v10444_v39, 0.0  ;;  %v10454_v62 = vld [vmem:[#allocation32_spill] sm:$0xff]  ;;  %v10456_v18 = vld [vmem:[#allocation39_spill] sm:$0xff]  ;;  %v10476_v11 = vld [vmem:[#allocation33_spill] sm:$0xff] }
 0x5ed   :  { %v4372_v55 = vpack.c.bf16 %v10435_v54, %v10433_v7  ;;  %v4375_v13 = vpack.c.bf16 %v10439_v16, %v10437_v59  ;;  %4478 = vperm.xlu0 %5793, %v4420_v37   ;;  %v10447_v45 = vmax.f32 %v10446_v46, 0.0  ;;  %v10449_v30 = vmax.f32 %v10448_v2, 0.0  ;;  %v10468_v37 = vld [vmem:[#allocation37_spill] sm:$0xff]  ;;  %v10470_v28 = vld [vmem:[#allocation40_spill] sm:$0xff]  ;;  %v10472_v36 = vld [vmem:[#allocation47_spill] sm:$0xff] }
 0x5ee   :  { %v4377_v0 = vpack.c.bf16 %v10443_v8, %v10441_v27  ;;  %4483 = vperm.xlu1 %5794, %v4421_v20   ;;  %v10451_v41 = vmax.f32 %v10450_v1, 0.0  ;;  %v10453_v21 = vmax.f32 %v10452_v29, 0.0  ;;  %v10455_v23 = vmax.f32 %v10454_v62, 0.0  ;;  %v4426_v54 = vld [vmem:[%s9501_s10 + $0x60] sm:$0xff]  ;;  %v10480_v4 = vld [vmem:[#allocation43_spill] sm:$0xff]  ;;  %v10482_v26 = vld [vmem:[#allocation34_spill] sm:$0xff] }
 0x5ef   :  { %4615 = vmatpush1.bf16.msra.mxu0 %v4366_v31  ;;  %4808 = vmatpush1.bf16.msra.mxu1 %v4368_v15  ;;  %v4374_v48 = vpack.c.bf16 %v10447_v45, %v10445_v9  ;;  %v10457_v57 = vmax.f32 %v10456_v18, 0.0  ;;  %v10459_v44 = vmax.f32 %v10458_v32, 0.0  ;;  %v4424_v31 = vld [vmem:[%s9501_s10 + $0x50] sm:$0xff]  ;;  %v10461_v15 = vmax.f32 %v10460_v3, 0.0  ;;  %v10478_v12 = vld [vmem:[#allocation36_spill] sm:$0xff]  ;;  %v10492_v29 = vld [vmem:[#allocation41_spill] sm:$0xff] }
 0x5f0   :  { %4616 = vmatprep.subr.bf16.mxu0 %v4371_v53  ;;  %4809 = vmatprep.subr.bf16.mxu1 %v4373_v56  ;;  %v4376_v61 = vpack.c.bf16 %v10451_v41, %v10449_v30  ;;  %v4379_v60 = vpack.c.bf16 %v10455_v23, %v10453_v21  ;;  %v10463_v38 = vmax.f32 %v10462_v24, 0.0  ;;  %v10464_v53 = vld [vmem:[#allocation35_spill] sm:$0xff]  ;;  %v10467_v25 = vmax.f32 %v10466_v34, 0.0  ;;  %v10486_v39 = vld [vmem:[#allocation48_spill] sm:$0xff]  ;;  %v10490_v2 = vld [vmem:[#allocation46_spill] sm:$0xff] }
 0x5f1   :  { %v4381_v5 = vpack.c.bf16 %v10459_v44, %v10457_v57  ;;  %4488 = vperm.xlu0 %5793, %v4422_v58   ;;  %v10465_v50 = vmax.f32 %v10464_v53, 0.0  ;;  %v10469_v20 = vmax.f32 %v10468_v37, 0.0  ;;  %v10471_v49 = vmax.f32 %v10470_v28, 0.0  ;;  %v10484_v58 = vld [vmem:[#allocation45_spill] sm:$0xff]  ;;  %v10488_v45 = vld [vmem:[#allocation55_spill] sm:$0xff]  ;;  %v10494_v62 = vld [vmem:[#allocation44_spill] sm:$0xff] }
 0x5f2   :  { %4493 = vperm.xlu1 %5794, %v4423_v51   ;;  %v4378_v10 = vpack.c.bf16 %v10463_v38, %v10461_v15  ;;  %v10475_v7 = vmax.f32 %v10474_v52, 0.0  ;;  %v10477_v59 = vmax.f32 %v10476_v11, 0.0  ;;  %v10479_v16 = vmax.f32 %v10478_v12, 0.0  ;;  %v4428_v41 = vld [vmem:[%s9501_s10 + $0x70] sm:$0xff]  ;;  %v10502_v3 = vld [vmem:[#allocation56_spill] sm:$0xff]  ;;  %v10508_v37 = vld [vmem:[#allocation49_spill] sm:$0xff] }
 0x5f3   :  { %4617 = vmatpush1.bf16.msra.mxu0 %v4370_v6  ;;  %4810 = vmatpush1.bf16.msra.mxu1 %v4372_v55  ;;  %v4380_v56 = vpack.c.bf16 %v10467_v25, %v10465_v50  ;;  %v4383_v42 = vpack.c.bf16 %v10471_v49, %v10469_v20  ;;  %v10473_v6 = vmax.f32 %v10472_v36, 0.0  ;;  %v4427_v55 = vld [vmem:[%s9501_s10 + $0x68] sm:$0xff]  ;;  %v10481_v27 = vmax.f32 %v10480_v4, 0.0  ;;  %v10496_v18 = vld [vmem:[#allocation51_spill] sm:$0xff]  ;;  %v4430_v25 = vld [vmem:[%s9501_s10 + $0x80] sm:$0xff] }
 0x5f4   :  { %4618 = vmatprep.subr.bf16.mxu0 %v4375_v13  ;;  %4811 = vmatprep.subr.bf16.mxu1 %v4377_v0  ;;  %v4382_v13 = vpack.c.bf16 %v10479_v16, %v10477_v59  ;;  %v10483_v8 = vmax.f32 %v10482_v26, 0.0  ;;  %v10485_v51 = vmax.f32 %v10484_v58, 0.0  ;;  %v10487_v9 = vmax.f32 %v10486_v39, 0.0  ;;  %v10498_v32 = vld [vmem:[#allocation42_spill] sm:$0xff]  ;;  %v10504_v38 = vld [vmem:[#allocation63_spill] sm:$0xff]  ;;  %v10510_v28 = vld [vmem:[#allocation52_spill] sm:$0xff] }
 0x5f5   :  { %v4385_v40 = vpack.c.bf16 %v10475_v7, %v10473_v6  ;;  %4498 = vperm.xlu0 %5793, %v4424_v31   ;;  %v10491_v30 = vmax.f32 %v10490_v2, 0.0  ;;  %v10493_v21 = vmax.f32 %v10492_v29, 0.0  ;;  %v10495_v23 = vmax.f32 %v10494_v62, 0.0  ;;  %v10500_v31 = vld [vmem:[#allocation53_spill] sm:$0xff]  ;;  %v10506_v53 = vld [vmem:[#allocation54_spill] sm:$0xff]  ;;  %v10512_v36 = vld [vmem:[#allocation59_spill] sm:$0xff] }
 0x5f6   :  { %4503 = vperm.xlu1 %5794, %v4425_v19   ;;  %v4384_v0 = vpack.c.bf16 %v10483_v8, %v10481_v27  ;;  %v4387_v46 = vpack.c.bf16 %v10487_v9, %v10485_v51  ;;  %v10497_v57 = vmax.f32 %v10496_v18, 0.0  ;;  %v10499_v44 = vmax.f32 %v10498_v32, 0.0  ;;  %v10514_v52 = vld [vmem:[#allocation50_spill] sm:$0xff]  ;;  %v10518_v11 = vld [vmem:[#allocation64_spill] sm:$0xff]  ;;  %v10520_v16 = vld [vmem:[#allocation71_spill] sm:$0xff] }
 0x5f7   :  { %4619 = vmatpush1.bf16.msra.mxu0 %v4374_v48  ;;  %4812 = vmatpush1.bf16.msra.mxu1 %v4376_v61  ;;  %v10489_v48 = vmax.f32 %v10488_v45, 0.0  ;;  %v4429_v61 = vld [vmem:[%s9501_s10 + $0x78] sm:$0xff]  ;;  %v10501_v19 = vmax.f32 %v10500_v31, 0.0  ;;  %v10503_v15 = vmax.f32 %v10502_v3, 0.0  ;;  %v10507_v50 = vmax.f32 %v10506_v53, 0.0  ;;  %v10522_v4 = vld [vmem:[#allocation62_spill] sm:$0xff] }
 0x5f8   :  { %4620 = vmatprep.subr.bf16.mxu0 %v4379_v60  ;;  %4813 = vmatprep.subr.bf16.mxu1 %v4381_v5  ;;  %v4386_v60 = vpack.c.bf16 %v10495_v23, %v10493_v21  ;;  %v4388_v5 = vpack.c.bf16 %v10499_v44, %v10497_v57  ;;  %v10509_v20 = vmax.f32 %v10508_v37, 0.0  ;;  %v10511_v49 = vmax.f32 %v10510_v28, 0.0  ;;  %v4432_v8 = vld [vmem:[%s9501_s10 + $0x90] sm:$0xff]  ;;  %v10524_v58 = vld [vmem:[#allocation57_spill] sm:$0xff]  ;;  %v10526_v39 = vld [vmem:[#allocation60_spill] sm:$0xff] }
 0x5f9   :  { %v4389_v1 = vpack.c.bf16 %v10491_v30, %v10489_v48  ;;  %4508 = vperm.xlu0 %5793, %v4426_v54   ;;  %v4391_v24 = vpack.c.bf16 %v10503_v15, %v10501_v19  ;;  %v10513_v6 = vmax.f32 %v10512_v36, 0.0  ;;  %v10515_v7 = vmax.f32 %v10514_v52, 0.0  ;;  %v10516_v54 = vld [vmem:[#allocation61_spill] sm:$0xff]  ;;  %v10528_v45 = vld [vmem:[#allocation67_spill] sm:$0xff]  ;;  %v10530_v2 = vld [vmem:[#allocation58_spill] sm:$0xff] }
 0x5fa   :  { %4513 = vperm.xlu1 %5794, %v4427_v55   ;;  %v10517_v55 = vmax.f32 %v10516_v54, 0.0  ;;  %v10519_v59 = vmax.f32 %v10518_v11, 0.0  ;;  %v10523_v27 = vmax.f32 %v10522_v4, 0.0  ;;  %v10525_v51 = vmax.f32 %v10524_v58, 0.0  ;;  %v10534_v29 = vld [vmem:[#allocation72_spill] sm:$0xff]  ;;  %v10536_v23 = vld [vmem:[#allocation79_spill] sm:$0xff] }
 0x5fb   :  { %4621 = vmatpush1.bf16.msra.mxu0 %v4378_v10  ;;  %4814 = vmatpush1.bf16.msra.mxu1 %v4380_v56  ;;  %v10505_v10 = vmax.f32 %v10504_v38, 0.0  ;;  %v4431_v56 = vld [vmem:[%s9501_s10 + $0x88] sm:$0xff]  ;;  %v10527_v9 = vmax.f32 %v10526_v39, 0.0  ;;  %v10529_v48 = vmax.f32 %v10528_v45, 0.0  ;;  %v10531_v30 = vmax.f32 %v10530_v2, 0.0  ;;  %v4434_v44 = vld [vmem:[%s9501_s10 + $0xa0] sm:$0xff] }
 0x5fc   :  { %4622 = vmatprep.subr.bf16.mxu0 %v4383_v42  ;;  %4815 = vmatprep.subr.bf16.mxu1 %v4385_v40  ;;  %v4390_v42 = vpack.c.bf16 %v10511_v49, %v10509_v20  ;;  %v4392_v40 = vpack.c.bf16 %v10515_v7, %v10513_v6  ;;  %v4395_v12 = vpack.c.bf16 %v10519_v59, %v10517_v55  ;;  %v10535_v21 = vmax.f32 %v10534_v29, 0.0  ;;  %v10538_v18 = vld [vmem:[#allocation70_spill] sm:$0xff]  ;;  %v10540_v31 = vld [vmem:[#allocation65_spill] sm:$0xff]  ;;  %v10542_v3 = vld [vmem:[#allocation68_spill] sm:$0xff] }
 0x5fd   :  { %v4393_v34 = vpack.c.bf16 %v10507_v50, %v10505_v10  ;;  %4518 = vperm.xlu0 %5793, %v4428_v41   ;;  %v10532_v41 = vld [vmem:[#allocation69_spill] sm:$0xff]  ;;  %v10539_v57 = vmax.f32 %v10538_v18, 0.0  ;;  %v10541_v19 = vmax.f32 %v10540_v31, 0.0  ;;  %v10543_v15 = vmax.f32 %v10542_v3, 0.0  ;;  %v10544_v38 = vld [vmem:[#allocation75_spill] sm:$0xff]  ;;  %v10546_v53 = vld [vmem:[#allocation66_spill] sm:$0xff] }
 0x5fe   :  { %4523 = vperm.xlu1 %5794, %v4429_v61   ;;  %v10533_v61 = vmax.f32 %v10532_v41, 0.0  ;;  %v10545_v10 = vmax.f32 %v10544_v38, 0.0  ;;  %v10547_v50 = vmax.f32 %v10546_v53, 0.0  ;;  %v10550_v37 = vld [vmem:[#allocation80_spill] sm:$0xff]  ;;  %v10552_v49 = vld [vmem:[#allocation87_spill] sm:$0xff]  ;;  %v10554_v36 = vld [vmem:[#allocation78_spill] sm:$0xff] }
 0x5ff   :  { %4623 = vmatpush1.bf16.msra.mxu0 %v4382_v13  ;;  %4816 = vmatpush1.bf16.msra.mxu1 %v4384_v0  ;;  %v10521_v13 = vmax.f32 %v10520_v16, 0.0  ;;  %v4433_v0 = vld [vmem:[%s9501_s10 + $0x98] sm:$0xff]  ;;  %v10551_v20 = vmax.f32 %v10550_v37, 0.0  ;;  %v10555_v6 = vmax.f32 %v10554_v36, 0.0  ;;  %v4436_v7 = vld [vmem:[%s9501_s10 + $0xb0] sm:$0xff]  ;;  %v10556_v54 = vld [vmem:[#allocation73_spill] sm:$0xff] }
 0x600   :  { %4624 = vmatprep.subr.bf16.mxu0 %v4387_v46  ;;  %4817 = vmatprep.subr.bf16.mxu1 %v4389_v1  ;;  %v4394_v46 = vpack.c.bf16 %v10527_v9, %v10525_v51  ;;  %v4396_v1 = vpack.c.bf16 %v10531_v30, %v10529_v48  ;;  %v4399_v62 = vpack.c.bf16 %v10535_v21, %v10533_v61  ;;  %v10557_v55 = vmax.f32 %v10556_v54, 0.0  ;;  %v10558_v11 = vld [vmem:[#allocation76_spill] sm:$0xff]  ;;  %v10560_v16 = vld [vmem:[#allocation83_spill] sm:$0xff]  ;;  %v10562_v4 = vld [vmem:[#allocation74_spill] sm:$0xff] }
 0x601   :  { %v4397_v26 = vpack.c.bf16 %v10523_v27, %v10521_v13  ;;  %4528 = vperm.xlu0 %5793, %v4430_v25   ;;  %v10548_v25 = vld [vmem:[#allocation77_spill] sm:$0xff]  ;;  %v10559_v59 = vmax.f32 %v10558_v11, 0.0  ;;  %v10561_v13 = vmax.f32 %v10560_v16, 0.0  ;;  %v10563_v27 = vmax.f32 %v10562_v4, 0.0  ;;  %v10566_v51 = vld [vmem:[#allocation84_spill] sm:$0xff]  ;;  %v10568_v9 = vld [vmem:[#allocation82_spill] sm:$0xff] }
 0x602   :  { %4533 = vperm.xlu1 %5794, %v4431_v56   ;;  %v10549_v56 = vmax.f32 %v10548_v25, 0.0  ;;  %v10567_v39 = vmax.f32 %v10566_v51, 0.0  ;;  %v4438_v48 = vld [vmem:[%s9501_s10 + $0xc0] sm:$0xff]  ;;  %v4439_v2 = vld [vmem:[%s9501_s10 + $0xc8] sm:$0xff]  ;;  %v10579_v18 = vmax.f32 %v8703_v63, 0.0  ;;  %v4440_v31 = vld [vmem:[%s9501_s10 + $0xd0] sm:$0xff] }
 0x603   :  { %4625 = vmatpush1.bf16.msra.mxu0 %v4386_v60  ;;  %4818 = vmatpush1.bf16.msra.mxu1 %v4388_v5  ;;  %v10537_v60 = vmax.f32 %v10536_v23, 0.0  ;;  %v4435_v5 = vld [vmem:[%s9501_s10 + $0xa8] sm:$0xff]  ;;  %v10576_v21 = vld [vmem:[#allocation88_spill] sm:$0xff]  ;;  %v10584_v3 = vmax.f32 %v8697_v47, 0.0  ;;  %v4320_v37 = vld [vmem:[#allocation4 + $0x10] sm:$0xff] }
 0x604   :  { %4626 = vmatprep.subr.bf16.mxu0 %v4391_v24  ;;  %4819 = vmatprep.subr.bf16.mxu1 %v4393_v34  ;;  %v4398_v24 = vpack.c.bf16 %v10543_v15, %v10541_v19  ;;  %v4400_v34 = vpack.c.bf16 %v10547_v50, %v10545_v10  ;;  %v4403_v28 = vpack.c.bf16 %v10551_v20, %v10549_v56  ;;  %v10572_v30 = vld [vmem:[#allocation85_spill] sm:$0xff]  ;;  %v10574_v61 = vld [vmem:[#allocation86_spill] sm:$0xff]  ;;  %v4441_v19 = vld [vmem:[%s9501_s10 + $0xd8] sm:$0xff] }
 0x605   :  { %v4401_v32 = vpack.c.bf16 %v10539_v57, %v10537_v60  ;;  %4538 = vperm.xlu0 %5793, %v4432_v8   ;;  %v10564_v8 = vmax.f32 %v8667_v33, 0.0  ;;  %v10570_v33 = vld [vmem:[#allocation81_spill] sm:$0xff]  ;;  %v10575_v29 = vmax.f32 %v10574_v61, 0.0  ;;  %v10578_v60 = vmax.f32 %v8691_v17, 0.0  ;;  %v10585_v15 = vld [vmem:[#allocation90_spill] sm:$0xff]  ;;  %v4321_v50 = vld [vmem:[#allocation4 + $0x18] sm:$0xff] }
 0x606   :  { %4543 = vperm.xlu1 %5794, %v4433_v0   ;;  %v10565_v0 = vmax.f32 %v8679_v22, 0.0  ;;  %v10571_v22 = vmax.f32 %v10570_v33, 0.0  ;;  %v10582_v17 = vld [vmem:[#allocation89_spill] sm:$0xff]  ;;  %v4324_v11 = vld [vmem:[#allocation4 + $0x30] sm:$0xff]  ;;  %v5135_v16 = vld [vmem:[%s9502_s11 + $0x78] sm:$0xff] }
 0x607   :  { %4627 = vmatpush1.bf16.msra.mxu0 %v4390_v42  ;;  %4820 = vmatpush1.bf16.msra.mxu1 %v4392_v40  ;;  %v10553_v42 = vmax.f32 %v10552_v49, 0.0  ;;  %v4437_v40 = vld [vmem:[%s9501_s10 + $0xb8] sm:$0xff]  ;;  %v4411_v57 = vpack.c.bf16 %v10579_v18, %v10578_v60  ;;  %v10583_v63 = vmax.f32 %v10582_v17, 0.0  ;;  %v5120_v10 = vld [vmem:[%s9502_s11] sm:$0xff]  ;;  %v5121_v53 = vld [vmem:[%s9502_s11 + $0x8] sm:$0xff] }
 0x608   :  { %4628 = vmatprep.subr.bf16.mxu0 %v4395_v12  ;;  %4821 = vmatprep.subr.bf16.mxu1 %v4397_v26  ;;  %v4402_v12 = vpack.c.bf16 %v10559_v59, %v10557_v55  ;;  %v4404_v26 = vpack.c.bf16 %v10563_v27, %v10561_v13  ;;  %v4407_v58 = vpack.c.bf16 %v10565_v0, %v10564_v8  ;;  %v4318_v47 = vld [vmem:[#allocation4] sm:$0xff]  ;;  %v5125_v56 = vld [vmem:[%s9502_s11 + $0x28] sm:$0xff]  ;;  %v5127_v49 = vld [vmem:[%s9502_s11 + $0x38] sm:$0xff] }
 0x609   :  { %v4405_v52 = vpack.c.bf16 %v10555_v6, %v10553_v42  ;;  %4548 = vperm.xlu0 %5793, %v4434_v44   ;;  %v10581_v44 = vmax.f32 %v8705_v14, 0.0  ;;  %v10586_v14 = vmax.f32 %v10585_v15, 0.0  ;;  %v5124_v25 = vld [vmem:[%s9502_s11 + $0x20] sm:$0xff]  ;;  %v4323_v20 = vld [vmem:[#allocation4 + $0x28] sm:$0xff]  ;;  %v5138_v8 = vld [vmem:[%s9502_s11 + $0x90] sm:$0xff] }
 0x60a   :  { %4553 = vperm.xlu1 %5794, %v4435_v5   ;;  %v5128_v42 = vld [vmem:[%s9502_s11 + $0x40] sm:$0xff]  ;;  %v5129_v36 = vld [vmem:[%s9502_s11 + $0x48] sm:$0xff]  ;;  %v5139_v0 = vld [vmem:[%s9502_s11 + $0x98] sm:$0xff] }
 0x60b   :  { %4629 = vmatpush1.bf16.msra.mxu0 %v4394_v46  ;;  %4822 = vmatpush1.bf16.msra.mxu1 %v4396_v1  ;;  %v10569_v46 = vmax.f32 %v10568_v9, 0.0  ;;  %v10573_v1 = vmax.f32 %v10572_v30, 0.0  ;;  %v4322_v6 = vld [vmem:[#allocation4 + $0x20] sm:$0xff]  ;;  %v5133_v55 = vld [vmem:[%s9502_s11 + $0x68] sm:$0xff]  ;;  %v5147_v61 = vld [vmem:[%s9502_s11 + $0xd8] sm:$0xff] }
 0x60c   :  { %4630 = vmatprep.subr.bf16.mxu0 %v4399_v62  ;;  %4823 = vmatprep.subr.bf16.mxu1 %v4401_v32  ;;  %v10577_v62 = vmax.f32 %v10576_v21, 0.0  ;;  %v10580_v32 = vmax.f32 %v8693_v43, 0.0  ;;  %v4410_v43 = vpack.c.bf16 %v10584_v3, %v10583_v63  ;;  %v5132_v54 = vld [vmem:[%s9502_s11 + $0x60] sm:$0xff]  ;;  %v4327_v59 = vld [vmem:[#allocation4 + $0x48] sm:$0xff]  ;;  %v4445_v60 = vld [vmem:[%s9501_s10 + $0xf8] sm:$0xff] }
 0x60d   :  { %v4409_v45 = vpack.c.bf16 %v10569_v46, %v10567_v39  ;;  %4558 = vperm.xlu0 %5793, %v4436_v7   ;;  %v4406_v41 = vpack.c.bf16 %v10573_v1, %v10571_v22  ;;  %v5130_v7 = vld [vmem:[%s9502_s11 + $0x50] sm:$0xff]  ;;  %v5136_v13 = vld [vmem:[%s9502_s11 + $0x80] sm:$0xff]  ;;  %v5137_v4 = vld [vmem:[%s9502_s11 + $0x88] sm:$0xff] }
 0x60e   :  { %4563 = vperm.xlu1 %5794, %v4437_v40   ;;  %v4408_v23 = vpack.c.bf16 %v10577_v62, %v10575_v29  ;;  %v4413_v5 = vpack.c.bf16 %v10581_v44, %v10580_v32  ;;  %v5131_v40 = vld [vmem:[%s9502_s11 + $0x58] sm:$0xff]  ;;  %v4326_v27 = vld [vmem:[#allocation4 + $0x40] sm:$0xff]  ;;  %v5141_v51 = vld [vmem:[%s9502_s11 + $0xa8] sm:$0xff] }
 0x60f   :  { %4631 = vmatpush1.bf16.msra.mxu0 %v4398_v24  ;;  %4824 = vmatpush1.bf16.msra.mxu1 %v4400_v34  ;;  %v10587_v24 = vmax.f32 %v8699_v35, 0.0  ;;  %v5122_v35 = vld [vmem:[%s9502_s11 + $0x10] sm:$0xff]  ;;  %v5123_v34 = vld [vmem:[%s9502_s11 + $0x18] sm:$0xff]  ;;  %v4331_v9 = vld [vmem:[#allocation4 + $0x68] sm:$0xff] }
 0x610   :  { %4632 = vmatprep.subr.bf16.mxu0 %v4403_v28  ;;  %4825 = vmatprep.subr.bf16.mxu1 %v4405_v52  ;;  %v5126_v28 = vld [vmem:[%s9502_s11 + $0x30] sm:$0xff]  ;;  %v4325_v52 = vld [vmem:[#allocation4 + $0x38] sm:$0xff]  ;;  %v4330_v33 = vld [vmem:[#allocation4 + $0x60] sm:$0xff] }
 0x611   :  { %4568 = vperm.xlu0 %5793, %v4438_v48   ;;  %v4412_v38 = vpack.c.bf16 %v10587_v24, %v10586_v14  ;;  %v4328_v39 = vld [vmem:[#allocation4 + $0x50] sm:$0xff]  ;;  %v5144_v48 = vld [vmem:[%s9502_s11 + $0xc0] sm:$0xff]  ;;  %v4333_v22 = vld [vmem:[#allocation4 + $0x78] sm:$0xff] }
 0x612   :  { %4573 = vperm.xlu1 %5794, %v4439_v2   ;;  %v5142_v46 = vld [vmem:[%s9502_s11 + $0xb0] sm:$0xff]  ;;  %v5145_v2 = vld [vmem:[%s9502_s11 + $0xc8] sm:$0xff]  ;;  %v4442_v30 = vld [vmem:[%s9501_s10 + $0xe0] sm:$0xff] }
 0x613   :  { %4633 = vmatpush1.bf16.msra.mxu0 %v4402_v12  ;;  %4826 = vmatpush1.bf16.msra.mxu1 %v4404_v26  ;;  %v5134_v12 = vld [vmem:[%s9502_s11 + $0x70] sm:$0xff]  ;;  %v4329_v26 = vld [vmem:[#allocation4 + $0x58] sm:$0xff]  ;;  %v4335_v21 = vld [vmem:[#allocation4 + $0x88] sm:$0xff] }
 0x614   :  { %4634 = vmatprep.subr.bf16.mxu0 %v4407_v58  ;;  %4827 = vmatprep.subr.bf16.mxu1 %v4409_v45  ;;  %v5140_v58 = vld [vmem:[%s9502_s11 + $0xa0] sm:$0xff]  ;;  %v5143_v45 = vld [vmem:[%s9502_s11 + $0xb8] sm:$0xff]  ;;  %v5146_v1 = vld [vmem:[%s9502_s11 + $0xd0] sm:$0xff] }
 0x615   :  { %4578 = vperm.xlu0 %5793, %v4440_v31   ;;  %v4332_v29 = vld [vmem:[#allocation4 + $0x70] sm:$0xff]  ;;  %v5149_v18 = vld [vmem:[%s9502_s11 + $0xe8] sm:$0xff]  ;;  %v4337_v32 = vld [vmem:[#allocation4 + $0x98] sm:$0xff] }
 0x616   :  { %4583 = vperm.xlu1 %5794, %v4441_v19   ;;  %v4444_v62 = vld [vmem:[%s9501_s10 + $0xf0] sm:$0xff]  ;;  %v5588_v31 = vld [vmem:[#allocation6] sm:$0x1]  ;;  %v4339_v17 = vld [vmem:[#allocation4 + $0xa8] sm:$0xff] }
 0x617   :  { %4635 = vmatpush1.bf16.msra.mxu0 %v4406_v41  ;;  %4828 = vmatpush1.bf16.msra.mxu1 %v4408_v23  ;;  %v4443_v41 = vld [vmem:[%s9501_s10 + $0xe8] sm:$0xff]  ;;  %v5148_v23 = vld [vmem:[%s9502_s11 + $0xe0] sm:$0xff]  ;;  %v5150_v44 = vld [vmem:[%s9502_s11 + $0xf0] sm:$0xff] }
 0x618   :  { %4636 = vmatprep.subr.bf16.mxu0 %v4411_v57  ;;  %4829 = vmatprep.subr.bf16.mxu1 %v4413_v5  ;;  %v4334_v57 = vld [vmem:[#allocation4 + $0x80] sm:$0xff]  ;;  %v5151_v5 = vld [vmem:[%s9502_s11 + $0xf8] sm:$0xff]  ;;  %v4336_v19 = vld [vmem:[#allocation4 + $0x90] sm:$0xff] }
 0x619   :  { %5154 = vperm.xlu0 %5793, %v5120_v10   ;;  %v4338_v63 = vld [vmem:[#allocation4 + $0xa0] sm:$0xff]  ;;  %v4341_v3 = vld [vmem:[#allocation4 + $0xb8] sm:$0xff]  ;;  %v4343_v15 = vld [vmem:[#allocation4 + $0xc8] sm:$0xff] }
 0x61a   :  { %5159 = vperm.xlu1 %5794, %v5121_v53   ;;  %v4342_v14 = vld [vmem:[#allocation4 + $0xc0] sm:$0xff]  ;;  %v4345_v24 = vld [vmem:[#allocation4 + $0xd8] sm:$0xff]  ;;  %v4347_v10 = vld [vmem:[#allocation4 + $0xe8] sm:$0xff] }
 0x61b   :  { %4637 = vmatpush1.bf16.msra.mxu0 %v4410_v43  ;;  %4830 = vmatpush1.bf16.msra.mxu1 %v4412_v38  ;;  %v4340_v43 = vld [vmem:[#allocation4 + $0xb0] sm:$0xff]  ;;  %v4346_v53 = vld [vmem:[#allocation4 + $0xe0] sm:$0xff] }
 0x61c   :  { %v4344_v38 = vld [vmem:[#allocation4 + $0xd0] sm:$0xff] }
 0x61d   :  { %5164 = vperm.xlu0 %5793, %v5122_v35  }
 0x61e   :  { %4639 = vmatmul.mubr.bf16.vlgmr.msra.gmra.mrb[192].mxu0 %v4318_v47  ;;  %4832 = vmatmul.mubr.bf16.vlgmr.msra.gmra.mrb[192].mxu1 %v4318_v47  ;;  %v4349_v47 = vld [vmem:[#allocation4 + $0xf8] sm:$0xff] }
 0x61f   :  { %4648 = vmatprep.mubr.bf16.mxu0 %v4321_v50  ;;  %4841 = vmatprep.mubr.bf16.mxu1 %v4321_v50  ;;  %v4348_v50 = vld [vmem:[#allocation4 + $0xf0] sm:$0xff] }
 0x620   :  { %5169 = vperm.xlu1 %5794, %v5123_v34  }
 0x621   :  { %5174 = vperm.xlu0 %5793, %v5124_v25  }
 0x624   :  { %5179 = vperm.xlu1 %5794, %v5125_v56  }
 0x625   :  { %5184 = vperm.xlu0 %5793, %v5126_v28  }
 0x626   :  { %4649 = vmatmul.mubr.bf16.gmra.mrb[196].mxu0 %v4320_v37  ;;  %4842 = vmatmul.mubr.bf16.gmra.mrb[196].mxu1 %v4320_v37 }
 0x627   :  { %4658 = vmatprep.mubr.bf16.mxu0 %v4323_v20  ;;  %4851 = vmatprep.mubr.bf16.mxu1 %v4323_v20 }
 0x628   :  { %5189 = vperm.xlu1 %5794, %v5127_v49  }
 0x629   :  { %5194 = vperm.xlu0 %5793, %v5128_v42  }
 0x62c   :  { %5199 = vperm.xlu1 %5794, %v5129_v36  }
 0x62d   :  { %5204 = vperm.xlu0 %5793, %v5130_v7  }
 0x62e   :  { %4659 = vmatmul.mubr.bf16.gmra.mrb[200].mxu0 %v4322_v6  ;;  %4852 = vmatmul.mubr.bf16.gmra.mrb[200].mxu1 %v4322_v6 }
 0x62f   :  { %4668 = vmatprep.mubr.bf16.mxu0 %v4325_v52  ;;  %4861 = vmatprep.mubr.bf16.mxu1 %v4325_v52 }
 0x630   :  { %5209 = vperm.xlu1 %5794, %v5131_v40  }
 0x631   :  { %5214 = vperm.xlu0 %5793, %v5132_v54  }
 0x634   :  { %5219 = vperm.xlu1 %5794, %v5133_v55  }
 0x635   :  { %5224 = vperm.xlu0 %5793, %v5134_v12  }
 0x636   :  { %4669 = vmatmul.mubr.bf16.gmra.mrb[204].mxu0 %v4324_v11  ;;  %4862 = vmatmul.mubr.bf16.gmra.mrb[204].mxu1 %v4324_v11 }
 0x637   :  { %4678 = vmatprep.mubr.bf16.mxu0 %v4327_v59  ;;  %4871 = vmatprep.mubr.bf16.mxu1 %v4327_v59 }
 0x638   :  { %5229 = vperm.xlu1 %5794, %v5135_v16  }
 0x639   :  { %5234 = vperm.xlu0 %5793, %v5136_v13  }
 0x63c   :  { %5239 = vperm.xlu1 %5794, %v5137_v4  }
 0x63d   :  { %5244 = vperm.xlu0 %5793, %v5138_v8  }
 0x63e   :  { %4679 = vmatmul.mubr.bf16.gmra.mrb[208].mxu0 %v4326_v27  ;;  %4872 = vmatmul.mubr.bf16.gmra.mrb[208].mxu1 %v4326_v27 }
 0x63f   :  { %4688 = vmatprep.mubr.bf16.mxu0 %v4329_v26  ;;  %4881 = vmatprep.mubr.bf16.mxu1 %v4329_v26 }
 0x640   :  { %5249 = vperm.xlu1 %5794, %v5139_v0  }
 0x641   :  { %5254 = vperm.xlu0 %5793, %v5140_v58  }
 0x644   :  { %5259 = vperm.xlu1 %5794, %v5141_v51  }
 0x645   :  { %5264 = vperm.xlu0 %5793, %v5142_v46  }
 0x646   :  { %4689 = vmatmul.mubr.bf16.gmra.mrb[212].mxu0 %v4328_v39  ;;  %4882 = vmatmul.mubr.bf16.gmra.mrb[212].mxu1 %v4328_v39 }
 0x647   :  { %4698 = vmatprep.mubr.bf16.mxu0 %v4331_v9  ;;  %4891 = vmatprep.mubr.bf16.mxu1 %v4331_v9 }
 0x648   :  { %5269 = vperm.xlu1 %5794, %v5143_v45  }
 0x649   :  { %5274 = vperm.xlu0 %5793, %v5144_v48  }
 0x64c   :  { %5279 = vperm.xlu1 %5794, %v5145_v2  }
 0x64d   :  { %4588 = vperm.xlu0 %5793, %v4442_v30  }
 0x64e   :  { %4699 = vmatmul.mubr.bf16.gmra.mrb[216].mxu0 %v4330_v33  ;;  %4892 = vmatmul.mubr.bf16.gmra.mrb[216].mxu1 %v4330_v33 }
 0x64f   :  { %4708 = vmatprep.mubr.bf16.mxu0 %v4333_v22  ;;  %4901 = vmatprep.mubr.bf16.mxu1 %v4333_v22 }
 0x650   :  { %5284 = vperm.xlu1 %5794, %v5146_v1  }
 0x651   :  { %4593 = vperm.xlu0 %5793, %v4443_v41  }
 0x654   :  { %5289 = vperm.xlu1 %5794, %v5147_v61  }
 0x655   :  { %4598 = vperm.xlu0 %5793, %v4444_v62  }
 0x656   :  { %4709 = vmatmul.mubr.bf16.gmra.mrb[220].mxu0 %v4332_v29  ;;  %4902 = vmatmul.mubr.bf16.gmra.mrb[220].mxu1 %v4332_v29 }
 0x657   :  { %4718 = vmatprep.mubr.bf16.mxu0 %v4335_v21  ;;  %4911 = vmatprep.mubr.bf16.mxu1 %v4335_v21 }
 0x658   :  { %5294 = vperm.xlu1 %5794, %v5148_v23  }
 0x659   :  { %4603 = vperm.xlu0 %5793, %v4445_v60  }
 0x65c   :  { %5299 = vperm.xlu1 %5794, %v5149_v18  }
 0x65d   :  { %5304 = vperm.xlu0 %5793, %v5150_v44  }
 0x65e   :  { %4719 = vmatmul.mubr.bf16.gmra.mrb[224].mxu0 %v4334_v57  ;;  %4912 = vmatmul.mubr.bf16.gmra.mrb[224].mxu1 %v4334_v57 }
 0x65f   :  { %4728 = vmatprep.mubr.bf16.mxu0 %v4337_v32  ;;  %4921 = vmatprep.mubr.bf16.mxu1 %v4337_v32  ;;  %v4449_v35 = vpop.permute.xlu0 %4448 }
 0x660   :  { %5309 = vperm.xlu1 %5794, %v5151_v5  }
 0x661   :  { %5591 = vperm.xlu0 %5793, %v5588_v31   ;;  %v9161_v34 = vpop.permute.xlu1 %4458 }
 0x664   :  { %v4454_v25 = vpop.permute.xlu0 %4453 }
 0x665   :  { %v9163_v56 = vpop.permute.xlu1 %4463 }
 0x666   :  { %4729 = vmatmul.mubr.bf16.gmra.mrb[228].mxu0 %v4336_v19  ;;  %4922 = vmatmul.mubr.bf16.gmra.mrb[228].mxu1 %v4336_v19 }
 0x667   :  { %4738 = vmatprep.mubr.bf16.mxu0 %v4339_v17  ;;  %4931 = vmatprep.mubr.bf16.mxu1 %v4339_v17 }
 0x668   :  { %v9165_v37 = vpop.permute.xlu0 %4468 }
 0x669   :  { %v9167_v20 = vpop.permute.xlu1 %4473 }
 0x66c   :  { %v9169_v28 = vpop.permute.xlu0 %4478 }
 0x66d   :  { %v9171_v49 = vpop.permute.xlu1 %4483 }
 0x66e   :  { %4739 = vmatmul.mubr.bf16.gmra.mrb[232].mxu0 %v4338_v63  ;;  %4932 = vmatmul.mubr.bf16.gmra.mrb[232].mxu1 %v4338_v63 }
 0x66f   :  { %4748 = vmatprep.mubr.bf16.mxu0 %v4341_v3  ;;  %4941 = vmatprep.mubr.bf16.mxu1 %v4341_v3 }
 0x670   :  { %v9173_v42 = vpop.permute.xlu0 %4488 }
 0x671   :  { %v9175_v36 = vpop.permute.xlu1 %4493 }
 0x674   :  { %v9177_v6 = vpop.permute.xlu0 %4498 }
 0x675   :  { %v9179_v52 = vpop.permute.xlu1 %4503 }
 0x676   :  { %4749 = vmatmul.mubr.bf16.gmra.mrb[236].mxu0 %v4340_v43  ;;  %4942 = vmatmul.mubr.bf16.gmra.mrb[236].mxu1 %v4340_v43 }
 0x677   :  { %4758 = vmatprep.mubr.bf16.mxu0 %v4343_v15  ;;  %4951 = vmatprep.mubr.bf16.mxu1 %v4343_v15 }
 0x678   :  { %v9181_v7 = vpop.permute.xlu0 %4508 }
 0x679   :  { %v9183_v40 = vpop.permute.xlu1 %4513 }
 0x67c   :  { %v9185_v54 = vpop.permute.xlu0 %4518 }
 0x67d   :  { %v9187_v55 = vpop.permute.xlu1 %4523 }
 0x67e   :  { %4759 = vmatmul.mubr.bf16.gmra.mrb[240].mxu0 %v4342_v14  ;;  %4952 = vmatmul.mubr.bf16.gmra.mrb[240].mxu1 %v4342_v14 }
 0x67f   :  { %4768 = vmatprep.mubr.bf16.mxu0 %v4345_v24  ;;  %4961 = vmatprep.mubr.bf16.mxu1 %v4345_v24 }
 0x680   :  { %v9189_v11 = vpop.permute.xlu0 %4528 }
 0x681   :  { %v9191_v59 = vpop.permute.xlu1 %4533 }
 0x684   :  { %v9193_v12 = vpop.permute.xlu0 %4538 }
 0x685   :  { %v9195_v16 = vpop.permute.xlu1 %4543 }
 0x686   :  { %4769 = vmatmul.mubr.bf16.gmra.mrb[244].mxu0 %v4344_v38  ;;  %4962 = vmatmul.mubr.bf16.gmra.mrb[244].mxu1 %v4344_v38 }
 0x687   :  { %4778 = vmatprep.mubr.bf16.mxu0 %v4347_v10  ;;  %4971 = vmatprep.mubr.bf16.mxu1 %v4347_v10 }
 0x688   :  { %v9197_v13 = vpop.permute.xlu0 %4548 }
 0x689   :  { %v9199_v4 = vpop.permute.xlu1 %4553 }
 0x68c   :  { %v9201_v27 = vpop.permute.xlu0 %4558 }
 0x68d   :  { %v9203_v26 = vpop.permute.xlu1 %4563 }
 0x68e   :  { %4779 = vmatmul.mubr.bf16.gmra.mrb[248].mxu0 %v4346_v53  ;;  %4972 = vmatmul.mubr.bf16.gmra.mrb[248].mxu1 %v4346_v53 }
 0x68f   :  { %4788 = vmatprep.mubr.bf16.mxu0 %v4349_v47  ;;  %4981 = vmatprep.mubr.bf16.mxu1 %v4349_v47 }
 0x690   :  { %v9205_v8 = vpop.permute.xlu0 %4568 }
 0x691   :  { %v9207_v0 = vpop.permute.xlu1 %4573 }
 0x694   :  { %v9209_v58 = vpop.permute.xlu0 %4578 }
 0x695   :  { %v9211_v51 = vpop.permute.xlu1 %4583 }
 0x696   :  { %4789 = vmatmul.mubr.bf16.gmra.mrb[252].mxu0 %v4348_v50  ;;  %4982 = vmatmul.mubr.bf16.gmra.mrb[252].mxu1 %v4348_v50 }
 0x698   :  { %v5155_v39 = vpop.permute.xlu0 %5154 }
 0x699   :  { %v5160_v9 = vpop.permute.xlu1 %5159 }
 0x69c   :  { %v9213_v46 = vpop.permute.xlu0 %5164 }
 0x69f   :  { %v9215_v45 = vpop.permute.xlu1 %5169 }
 0x6a0   :  { %v9217_v15 = vpop.permute.xlu0 %5174 }
 0x6a3   :  { %v9219_v14 = vpop.permute.xlu1 %5179 }
 0x6f1   :  { %v4640_v48 = vpop.f32.mrb[192].mxu0  ;;  %v4833_v2 = vpop.f32.mrb[192].mxu1 }
 0x6f2   :  { %v4641_v33 = vadd.f32 %v4640_v48, %v4449_v35  ;;  %v4834_v22 = vadd.f32 %v4833_v2, %v4449_v35  ;;  %v4642_v30 = vpop.f32.mrb[193].mxu0  ;;  %v4835_v1 = vpop.f32.mrb[193].mxu1 }
 0x6f3   :  { %v4643_v41 = vadd.f32 %v4642_v30, %v4449_v35  ;;  %v4836_v61 = vadd.f32 %v4835_v1, %v4449_v35  ;;  %v4644_v29 = vpop.f32.mrb[194].mxu0  ;;  %v4837_v21 = vpop.f32.mrb[194].mxu1 }
 0x6f4   :  { %v4992_v62 = vmax.f32 %v4641_v33, 0.0  ;;  %v4994_v23 = vmax.f32 %v4834_v22, 0.0  ;;  %v4645_v60 = vadd.f32 %v4644_v29, %v4454_v25  ;;  %v4838_v18 = vadd.f32 %v4837_v21, %v4454_v25  ;;  %v4646_v57 = vpop.f32.mrb[195].mxu0  ;;  %v4839_v32 = vpop.f32.mrb[195].mxu1 }
 0x6f5   :  { %v4993_v44 = vmax.f32 %v4643_v41, 0.0  ;;  %v4995_v5 = vmax.f32 %v4836_v61, 0.0  ;;  %v4647_v31 = vadd.f32 %v4646_v57, %v4454_v25  ;;  %v4840_v19 = vadd.f32 %v4839_v32, %v4454_v25 }
 0x6f6   :  { %v4996_v17 = vmax.f32 %v4645_v60, 0.0  ;;  %v4998_v63 = vmax.f32 %v4838_v18, 0.0  ;;  %v5312_v24 = vmul.f32 %v5155_v39, %v4992_v62  ;;  %v5314_v38 = vmul.f32 %v5155_v39, %v4994_v23 }
 0x6f7   :  { %v4997_v3 = vmax.f32 %v4647_v31, 0.0  ;;  %v4999_v43 = vmax.f32 %v4840_v19, 0.0  ;;  %v5313_v47 = vmul.f32 %v5155_v39, %v4993_v44  ;;  %v5315_v50 = vmul.f32 %v5155_v39, %v4995_v5 }
 0x6f8   :  { %v5316_v10 = vmul.f32 %v5160_v9, %v4996_v17  ;;  %v5318_v53 = vmul.f32 %v5160_v9, %v4998_v63 }
 0x6f9   :  { %v5317_v35 = vmul.f32 %v5160_v9, %v4997_v3  ;;  %v5319_v48 = vmul.f32 %v5160_v9, %v4999_v43  ;;  %v4650_v2 = vpop.f32.mrb[196].mxu0  ;;  %v4843_v33 = vpop.f32.mrb[196].mxu1 }
 0x6fa   :  { %v5440_v22 = vadd.f32 %v5316_v10, %v5312_v24  ;;  %v5514_v25 = vadd.f32 %v5318_v53, %v5314_v38  ;;  %v4651_v30 = vadd.f32 %v4650_v2, %v9161_v34  ;;  %v4844_v1 = vadd.f32 %v4843_v33, %v9161_v34  ;;  %v4652_v41 = vpop.f32.mrb[197].mxu0  ;;  %v4845_v61 = vpop.f32.mrb[197].mxu1 }
 0x6fb   :  { %v5477_v29 = vadd.f32 %v5317_v35, %v5313_v47  ;;  %v5551_v21 = vadd.f32 %v5319_v48, %v5315_v50  ;;  %v4653_v62 = vadd.f32 %v4652_v41, %v9161_v34  ;;  %v4846_v23 = vadd.f32 %v4845_v61, %v9161_v34  ;;  %v4654_v60 = vpop.f32.mrb[198].mxu0  ;;  %v4847_v39 = vpop.f32.mrb[198].mxu1 }
 0x6fc   :  { %v5000_v18 = vmax.f32 %v4651_v30, 0.0  ;;  %v5002_v9 = vmax.f32 %v4844_v1, 0.0  ;;  %v4655_v57 = vadd.f32 %v4654_v60, %v9163_v56  ;;  %v4848_v32 = vadd.f32 %v4847_v39, %v9163_v56  ;;  %v4656_v44 = vpop.f32.mrb[199].mxu0  ;;  %v4849_v5 = vpop.f32.mrb[199].mxu1 }
 0x6fd   :  { %v5001_v31 = vmax.f32 %v4653_v62, 0.0  ;;  %v5003_v19 = vmax.f32 %v4846_v23, 0.0  ;;  %v4657_v17 = vadd.f32 %v4656_v44, %v9163_v56  ;;  %v4850_v63 = vadd.f32 %v4849_v5, %v9163_v56  ;;  %v9233_v50 = vpop.permute.xlu0 %5184  ;;  %v9235_v35 = vpop.permute.xlu1 %5189 }
 0x6fe   :  { %v5320_v3 = vmul.f32 %v9213_v46, %v5000_v18  ;;  %v5322_v34 = vmul.f32 %v9213_v46, %v5002_v9  ;;  %v5004_v43 = vmax.f32 %v4655_v57, 0.0  ;;  %v5006_v24 = vmax.f32 %v4848_v32, 0.0 }
 0x6ff   :  { %v5321_v38 = vmul.f32 %v9213_v46, %v5001_v31  ;;  %v5323_v10 = vmul.f32 %v9213_v46, %v5003_v19  ;;  %v5005_v53 = vmax.f32 %v4657_v17, 0.0  ;;  %v5007_v47 = vmax.f32 %v4850_v63, 0.0 }
 0x700   :  { %v5441_v48 = vadd.f32 %v5440_v22, %v5320_v3  ;;  %v5515_v2 = vadd.f32 %v5514_v25, %v5322_v34  ;;  %v5324_v56 = vmul.f32 %v9215_v45, %v5004_v43  ;;  %v5326_v33 = vmul.f32 %v9215_v45, %v5006_v24 }
 0x701   :  { %v5478_v30 = vadd.f32 %v5477_v29, %v5321_v38  ;;  %v5552_v1 = vadd.f32 %v5551_v21, %v5323_v10  ;;  %v5325_v41 = vmul.f32 %v9215_v45, %v5005_v53  ;;  %v5327_v61 = vmul.f32 %v9215_v45, %v5007_v47  ;;  %v4660_v62 = vpop.f32.mrb[200].mxu0  ;;  %v4853_v46 = vpop.f32.mrb[200].mxu1 }
 0x702   :  { %v5442_v23 = vadd.f32 %v5441_v48, %v5324_v56  ;;  %v5516_v60 = vadd.f32 %v5515_v2, %v5326_v33  ;;  %v4661_v39 = vadd.f32 %v4660_v62, %v9165_v37  ;;  %v4854_v18 = vadd.f32 %v4853_v46, %v9165_v37  ;;  %v4662_v22 = vpop.f32.mrb[201].mxu0  ;;  %v4855_v25 = vpop.f32.mrb[201].mxu1 }
 0x703   :  { %v5479_v9 = vadd.f32 %v5478_v30, %v5325_v41  ;;  %v5553_v57 = vadd.f32 %v5552_v1, %v5327_v61  ;;  %v4663_v32 = vadd.f32 %v4662_v22, %v9165_v37  ;;  %v4856_v29 = vadd.f32 %v4855_v25, %v9165_v37  ;;  %v4664_v21 = vpop.f32.mrb[202].mxu0  ;;  %v4857_v44 = vpop.f32.mrb[202].mxu1 }
 0x704   :  { %v5008_v5 = vmax.f32 %v4661_v39, 0.0  ;;  %v5010_v45 = vmax.f32 %v4854_v18, 0.0  ;;  %v4665_v31 = vadd.f32 %v4664_v21, %v9167_v20  ;;  %v4858_v19 = vadd.f32 %v4857_v44, %v9167_v20  ;;  %v4666_v17 = vpop.f32.mrb[203].mxu0  ;;  %v4859_v63 = vpop.f32.mrb[203].mxu1 }
 0x705   :  { %v5009_v3 = vmax.f32 %v4663_v32, 0.0  ;;  %v5011_v34 = vmax.f32 %v4856_v29, 0.0  ;;  %v4667_v43 = vadd.f32 %v4666_v17, %v9167_v20  ;;  %v4860_v24 = vadd.f32 %v4859_v63, %v9167_v20  ;;  %v9253_v33 = vpop.permute.xlu0 %5194  ;;  %v9255_v30 = vpop.permute.xlu1 %5199 }
 0x706   :  { %v5328_v38 = vmul.f32 %v9217_v15, %v5008_v5  ;;  %v5330_v37 = vmul.f32 %v9217_v15, %v5010_v45  ;;  %v5012_v10 = vmax.f32 %v4665_v31, 0.0  ;;  %v5014_v53 = vmax.f32 %v4858_v19, 0.0 }
 0x707   :  { %v5329_v47 = vmul.f32 %v9217_v15, %v5009_v3  ;;  %v5331_v48 = vmul.f32 %v9217_v15, %v5011_v34  ;;  %v5013_v2 = vmax.f32 %v4667_v43, 0.0  ;;  %v5015_v56 = vmax.f32 %v4860_v24, 0.0 }
 0x708   :  { %v5443_v1 = vadd.f32 %v5442_v23, %v5328_v38  ;;  %v5517_v41 = vadd.f32 %v5516_v60, %v5330_v37  ;;  %v5332_v20 = vmul.f32 %v9219_v14, %v5012_v10  ;;  %v5334_v61 = vmul.f32 %v9219_v14, %v5014_v53 }
 0x709   :  { %v5480_v62 = vadd.f32 %v5479_v9, %v5329_v47  ;;  %v5554_v46 = vadd.f32 %v5553_v57, %v5331_v48  ;;  %v5333_v39 = vmul.f32 %v9219_v14, %v5013_v2  ;;  %v5335_v18 = vmul.f32 %v9219_v14, %v5015_v56  ;;  %v4670_v22 = vpop.f32.mrb[204].mxu0  ;;  %v4863_v15 = vpop.f32.mrb[204].mxu1 }
 0x70a   :  { %v5444_v25 = vadd.f32 %v5443_v1, %v5332_v20  ;;  %v5518_v32 = vadd.f32 %v5517_v41, %v5334_v61  ;;  %v4671_v29 = vadd.f32 %v4670_v22, %v9169_v28  ;;  %v4864_v21 = vadd.f32 %v4863_v15, %v9169_v28  ;;  %v4672_v23 = vpop.f32.mrb[205].mxu0  ;;  %v4865_v60 = vpop.f32.mrb[205].mxu1 }
 0x70b   :  { %v5481_v44 = vadd.f32 %v5480_v62, %v5333_v39  ;;  %v5555_v5 = vadd.f32 %v5554_v46, %v5335_v18  ;;  %v4673_v45 = vadd.f32 %v4672_v23, %v9169_v28  ;;  %v4866_v9 = vadd.f32 %v4865_v60, %v9169_v28  ;;  %v4674_v57 = vpop.f32.mrb[206].mxu0  ;;  %v4867_v31 = vpop.f32.mrb[206].mxu1 }
 0x70c   :  { %v5016_v19 = vmax.f32 %v4671_v29, 0.0  ;;  %v5018_v14 = vmax.f32 %v4864_v21, 0.0  ;;  %v4675_v17 = vadd.f32 %v4674_v57, %v9171_v49  ;;  %v4868_v63 = vadd.f32 %v4867_v31, %v9171_v49  ;;  %v4676_v3 = vpop.f32.mrb[207].mxu0  ;;  %v4869_v34 = vpop.f32.mrb[207].mxu1 }
 0x70d   :  { %v5017_v43 = vmax.f32 %v4673_v45, 0.0  ;;  %v5019_v24 = vmax.f32 %v4866_v9, 0.0  ;;  %v4677_v38 = vadd.f32 %v4676_v3, %v9171_v49  ;;  %v4870_v37 = vadd.f32 %v4869_v34, %v9171_v49  ;;  %v9273_v41 = vpop.permute.xlu0 %5204  ;;  %v9275_v20 = vpop.permute.xlu1 %5209 }
 0x70e   :  { %v5336_v10 = vmul.f32 %v9233_v50, %v5016_v19  ;;  %v5338_v28 = vmul.f32 %v9233_v50, %v5018_v14  ;;  %v5020_v53 = vmax.f32 %v4675_v17, 0.0  ;;  %v5022_v47 = vmax.f32 %v4868_v63, 0.0 }
 0x70f   :  { %v5337_v48 = vmul.f32 %v9233_v50, %v5017_v43  ;;  %v5339_v2 = vmul.f32 %v9233_v50, %v5019_v24  ;;  %v5021_v56 = vmax.f32 %v4677_v38, 0.0  ;;  %v5023_v1 = vmax.f32 %v4870_v37, 0.0 }
 0x710   :  { %v5445_v61 = vadd.f32 %v5444_v25, %v5336_v10  ;;  %v5519_v62 = vadd.f32 %v5518_v32, %v5338_v28  ;;  %v5340_v49 = vmul.f32 %v9235_v35, %v5020_v53  ;;  %v5342_v46 = vmul.f32 %v9235_v35, %v5022_v47 }
 0x711   :  { %v5482_v39 = vadd.f32 %v5481_v44, %v5337_v48  ;;  %v5556_v18 = vadd.f32 %v5555_v5, %v5339_v2  ;;  %v5341_v22 = vmul.f32 %v9235_v35, %v5021_v56  ;;  %v5343_v15 = vmul.f32 %v9235_v35, %v5023_v1  ;;  %v4680_v29 = vpop.f32.mrb[208].mxu0  ;;  %v4873_v50 = vpop.f32.mrb[208].mxu1 }
 0x712   :  { %v5446_v21 = vadd.f32 %v5445_v61, %v5340_v49  ;;  %v5520_v23 = vadd.f32 %v5519_v62, %v5342_v46  ;;  %v4681_v60 = vadd.f32 %v4680_v29, %v9173_v42  ;;  %v4874_v45 = vadd.f32 %v4873_v50, %v9173_v42  ;;  %v4682_v25 = vpop.f32.mrb[209].mxu0  ;;  %v4875_v32 = vpop.f32.mrb[209].mxu1 }
 0x713   :  { %v5483_v9 = vadd.f32 %v5482_v39, %v5341_v22  ;;  %v5557_v57 = vadd.f32 %v5556_v18, %v5343_v15  ;;  %v4683_v31 = vadd.f32 %v4682_v25, %v9173_v42  ;;  %v4876_v44 = vadd.f32 %v4875_v32, %v9173_v42  ;;  %v4684_v5 = vpop.f32.mrb[210].mxu0  ;;  %v4877_v19 = vpop.f32.mrb[210].mxu1 }
 0x714   :  { %v5024_v14 = vmax.f32 %v4681_v60, 0.0  ;;  %v5026_v35 = vmax.f32 %v4874_v45, 0.0  ;;  %v4685_v17 = vadd.f32 %v4684_v5, %v9175_v36  ;;  %v4878_v63 = vadd.f32 %v4877_v19, %v9175_v36  ;;  %v4686_v3 = vpop.f32.mrb[211].mxu0  ;;  %v4879_v34 = vpop.f32.mrb[211].mxu1 }
 0x715   :  { %v5025_v43 = vmax.f32 %v4683_v31, 0.0  ;;  %v5027_v24 = vmax.f32 %v4876_v44, 0.0  ;;  %v4687_v38 = vadd.f32 %v4686_v3, %v9175_v36  ;;  %v4880_v37 = vadd.f32 %v4879_v34, %v9175_v36  ;;  %v9293_v1 = vpop.permute.xlu0 %5214  ;;  %v9295_v61 = vpop.permute.xlu1 %5219 }
 0x716   :  { %v5344_v10 = vmul.f32 %v9253_v33, %v5024_v14  ;;  %v5346_v42 = vmul.f32 %v9253_v33, %v5026_v35  ;;  %v5028_v28 = vmax.f32 %v4685_v17, 0.0  ;;  %v5030_v53 = vmax.f32 %v4878_v63, 0.0 }
 0x717   :  { %v5345_v47 = vmul.f32 %v9253_v33, %v5025_v43  ;;  %v5347_v48 = vmul.f32 %v9253_v33, %v5027_v24  ;;  %v5029_v2 = vmax.f32 %v4687_v38, 0.0  ;;  %v5031_v56 = vmax.f32 %v4880_v37, 0.0 }
 0x718   :  { %v5447_v62 = vadd.f32 %v5446_v21, %v5344_v10  ;;  %v5521_v49 = vadd.f32 %v5520_v23, %v5346_v42  ;;  %v5348_v36 = vmul.f32 %v9255_v30, %v5028_v28  ;;  %v5350_v46 = vmul.f32 %v9255_v30, %v5030_v53 }
 0x719   :  { %v5484_v39 = vadd.f32 %v5483_v9, %v5345_v47  ;;  %v5558_v18 = vadd.f32 %v5557_v57, %v5347_v48  ;;  %v5349_v22 = vmul.f32 %v9255_v30, %v5029_v2  ;;  %v5351_v15 = vmul.f32 %v9255_v30, %v5031_v56  ;;  %v4690_v29 = vpop.f32.mrb[212].mxu0  ;;  %v4883_v33 = vpop.f32.mrb[212].mxu1 }
 0x71a   :  { %v5448_v50 = vadd.f32 %v5447_v62, %v5348_v36  ;;  %v5522_v60 = vadd.f32 %v5521_v49, %v5350_v46  ;;  %v4691_v45 = vadd.f32 %v4690_v29, %v9177_v6  ;;  %v4884_v25 = vadd.f32 %v4883_v33, %v9177_v6  ;;  %v4692_v21 = vpop.f32.mrb[213].mxu0  ;;  %v4885_v23 = vpop.f32.mrb[213].mxu1 }
 0x71b   :  { %v5485_v32 = vadd.f32 %v5484_v39, %v5349_v22  ;;  %v5559_v31 = vadd.f32 %v5558_v18, %v5351_v15  ;;  %v4693_v44 = vadd.f32 %v4692_v21, %v9177_v6  ;;  %v4886_v9 = vadd.f32 %v4885_v23, %v9177_v6  ;;  %v4694_v57 = vpop.f32.mrb[214].mxu0  ;;  %v4887_v5 = vpop.f32.mrb[214].mxu1 }
 0x71c   :  { %v5032_v19 = vmax.f32 %v4691_v45, 0.0  ;;  %v5034_v30 = vmax.f32 %v4884_v25, 0.0  ;;  %v4695_v14 = vadd.f32 %v4694_v57, %v9179_v52  ;;  %v4888_v35 = vadd.f32 %v4887_v5, %v9179_v52  ;;  %v4696_v17 = vpop.f32.mrb[215].mxu0  ;;  %v4889_v63 = vpop.f32.mrb[215].mxu1 }
 0x71d   :  { %v5033_v3 = vmax.f32 %v4693_v44, 0.0  ;;  %v5035_v34 = vmax.f32 %v4886_v9, 0.0  ;;  %v4697_v43 = vadd.f32 %v4696_v17, %v9179_v52  ;;  %v4890_v24 = vadd.f32 %v4889_v63, %v9179_v52  ;;  %v9313_v48 = vpop.permute.xlu0 %5224  ;;  %v9315_v2 = vpop.permute.xlu1 %5229 }
 0x71e   :  { %v5352_v38 = vmul.f32 %v9273_v41, %v5032_v19  ;;  %v5354_v6 = vmul.f32 %v9273_v41, %v5034_v30  ;;  %v5036_v37 = vmax.f32 %v4695_v14, 0.0  ;;  %v5038_v10 = vmax.f32 %v4888_v35, 0.0 }
 0x71f   :  { %v5353_v42 = vmul.f32 %v9273_v41, %v5033_v3  ;;  %v5355_v28 = vmul.f32 %v9273_v41, %v5035_v34  ;;  %v5037_v53 = vmax.f32 %v4697_v43, 0.0  ;;  %v5039_v47 = vmax.f32 %v4890_v24, 0.0 }
 0x720   :  { %v5449_v56 = vadd.f32 %v5448_v50, %v5352_v38  ;;  %v5523_v62 = vadd.f32 %v5522_v60, %v5354_v6  ;;  %v5356_v52 = vmul.f32 %v9275_v20, %v5036_v37  ;;  %v5358_v49 = vmul.f32 %v9275_v20, %v5038_v10 }
 0x721   :  { %v5486_v36 = vadd.f32 %v5485_v32, %v5353_v42  ;;  %v5560_v46 = vadd.f32 %v5559_v31, %v5355_v28  ;;  %v5357_v39 = vmul.f32 %v9275_v20, %v5037_v53  ;;  %v5359_v18 = vmul.f32 %v9275_v20, %v5039_v47  ;;  %v4700_v22 = vpop.f32.mrb[216].mxu0  ;;  %v4893_v41 = vpop.f32.mrb[216].mxu1 }
 0x722   :  { %v5450_v15 = vadd.f32 %v5449_v56, %v5356_v52  ;;  %v5524_v29 = vadd.f32 %v5523_v62, %v5358_v49  ;;  %v4701_v33 = vadd.f32 %v4700_v22, %v9181_v7  ;;  %v4894_v45 = vadd.f32 %v4893_v41, %v9181_v7  ;;  %v4702_v50 = vpop.f32.mrb[217].mxu0  ;;  %v4895_v60 = vpop.f32.mrb[217].mxu1 }
 0x723   :  { %v5487_v25 = vadd.f32 %v5486_v36, %v5357_v39  ;;  %v5561_v21 = vadd.f32 %v5560_v46, %v5359_v18  ;;  %v4703_v23 = vadd.f32 %v4702_v50, %v9181_v7  ;;  %v4896_v32 = vadd.f32 %v4895_v60, %v9181_v7  ;;  %v4704_v31 = vpop.f32.mrb[218].mxu0  ;;  %v4897_v44 = vpop.f32.mrb[218].mxu1 }
 0x724   :  { %v5040_v9 = vmax.f32 %v4701_v33, 0.0  ;;  %v5042_v20 = vmax.f32 %v4894_v45, 0.0  ;;  %v4705_v57 = vadd.f32 %v4704_v31, %v9183_v40  ;;  %v4898_v5 = vadd.f32 %v4897_v44, %v9183_v40  ;;  %v4706_v19 = vpop.f32.mrb[219].mxu0  ;;  %v4899_v30 = vpop.f32.mrb[219].mxu1 }
 0x725   :  { %v5041_v14 = vmax.f32 %v4703_v23, 0.0  ;;  %v5043_v35 = vmax.f32 %v4896_v32, 0.0  ;;  %v4707_v17 = vadd.f32 %v4706_v19, %v9183_v40  ;;  %v4900_v63 = vadd.f32 %v4899_v30, %v9183_v40  ;;  %v9333_v10 = vpop.permute.xlu0 %5234  ;;  %v9335_v42 = vpop.permute.xlu1 %5239 }
 0x726   :  { %v5360_v3 = vmul.f32 %v9293_v1, %v5040_v9  ;;  %v5362_v7 = vmul.f32 %v9293_v1, %v5042_v20  ;;  %v5044_v34 = vmax.f32 %v4705_v57, 0.0  ;;  %v5046_v43 = vmax.f32 %v4898_v5, 0.0 }
 0x727   :  { %v5361_v24 = vmul.f32 %v9293_v1, %v5041_v14  ;;  %v5363_v38 = vmul.f32 %v9293_v1, %v5043_v35  ;;  %v5045_v6 = vmax.f32 %v4707_v17, 0.0  ;;  %v5047_v37 = vmax.f32 %v4900_v63, 0.0 }
 0x728   :  { %v5451_v28 = vadd.f32 %v5450_v15, %v5360_v3  ;;  %v5525_v53 = vadd.f32 %v5524_v29, %v5362_v7  ;;  %v5364_v40 = vmul.f32 %v9295_v61, %v5044_v34  ;;  %v5366_v47 = vmul.f32 %v9295_v61, %v5046_v43 }
 0x729   :  { %v5488_v56 = vadd.f32 %v5487_v25, %v5361_v24  ;;  %v5562_v62 = vadd.f32 %v5561_v21, %v5363_v38  ;;  %v5365_v52 = vmul.f32 %v9295_v61, %v5045_v6  ;;  %v5367_v49 = vmul.f32 %v9295_v61, %v5047_v37  ;;  %v4710_v36 = vpop.f32.mrb[220].mxu0  ;;  %v4903_v1 = vpop.f32.mrb[220].mxu1 }
 0x72a   :  { %v5452_v46 = vadd.f32 %v5451_v28, %v5364_v40  ;;  %v5526_v39 = vadd.f32 %v5525_v53, %v5366_v47  ;;  %v4711_v18 = vadd.f32 %v4710_v36, %v9185_v54  ;;  %v4904_v22 = vadd.f32 %v4903_v1, %v9185_v54  ;;  %v4712_v41 = vpop.f32.mrb[221].mxu0  ;;  %v4905_v15 = vpop.f32.mrb[221].mxu1 }
 0x72b   :  { %v5489_v29 = vadd.f32 %v5488_v56, %v5365_v52  ;;  %v5563_v33 = vadd.f32 %v5562_v62, %v5367_v49  ;;  %v4713_v45 = vadd.f32 %v4712_v41, %v9185_v54  ;;  %v4906_v50 = vadd.f32 %v4905_v15, %v9185_v54  ;;  %v4714_v60 = vpop.f32.mrb[222].mxu0  ;;  %v4907_v25 = vpop.f32.mrb[222].mxu1 }
 0x72c   :  { %v5048_v21 = vmax.f32 %v4711_v18, 0.0  ;;  %v5050_v61 = vmax.f32 %v4904_v22, 0.0  ;;  %v4715_v23 = vadd.f32 %v4714_v60, %v9187_v55  ;;  %v4908_v32 = vadd.f32 %v4907_v25, %v9187_v55  ;;  %v4716_v31 = vpop.f32.mrb[223].mxu0  ;;  %v4909_v44 = vpop.f32.mrb[223].mxu1 }
 0x72d   :  { %v5049_v9 = vmax.f32 %v4713_v45, 0.0  ;;  %v5051_v20 = vmax.f32 %v4906_v50, 0.0  ;;  %v4717_v57 = vadd.f32 %v4716_v31, %v9187_v55  ;;  %v4910_v5 = vadd.f32 %v4909_v44, %v9187_v55  ;;  %v9353_v7 = vpop.permute.xlu0 %5244  ;;  %v9355_v34 = vpop.permute.xlu1 %5249 }
 0x72e   :  { %v5368_v19 = vmul.f32 %v9313_v48, %v5048_v21  ;;  %v5370_v54 = vmul.f32 %v9313_v48, %v5050_v61  ;;  %v5052_v30 = vmax.f32 %v4715_v23, 0.0  ;;  %v5054_v14 = vmax.f32 %v4908_v32, 0.0 }
 0x72f   :  { %v5369_v35 = vmul.f32 %v9313_v48, %v5049_v9  ;;  %v5371_v17 = vmul.f32 %v9313_v48, %v5051_v20  ;;  %v5053_v63 = vmax.f32 %v4717_v57, 0.0  ;;  %v5055_v3 = vmax.f32 %v4910_v5, 0.0 }
 0x730   :  { %v5453_v43 = vadd.f32 %v5452_v46, %v5368_v19  ;;  %v5527_v24 = vadd.f32 %v5526_v39, %v5370_v54  ;;  %v5372_v55 = vmul.f32 %v9315_v2, %v5052_v30  ;;  %v5374_v38 = vmul.f32 %v9315_v2, %v5054_v14 }
 0x731   :  { %v5490_v6 = vadd.f32 %v5489_v29, %v5369_v35  ;;  %v5564_v37 = vadd.f32 %v5563_v33, %v5371_v17  ;;  %v5373_v28 = vmul.f32 %v9315_v2, %v5053_v63  ;;  %v5375_v53 = vmul.f32 %v9315_v2, %v5055_v3  ;;  %v4720_v40 = vpop.f32.mrb[224].mxu0  ;;  %v4913_v48 = vpop.f32.mrb[224].mxu1 }
 0x732   :  { %v5454_v47 = vadd.f32 %v5453_v43, %v5372_v55  ;;  %v5528_v56 = vadd.f32 %v5527_v24, %v5374_v38  ;;  %v4721_v62 = vadd.f32 %v4720_v40, %v9189_v11  ;;  %v4914_v52 = vadd.f32 %v4913_v48, %v9189_v11  ;;  %v4722_v49 = vpop.f32.mrb[225].mxu0  ;;  %v4915_v36 = vpop.f32.mrb[225].mxu1 }
 0x733   :  { %v5491_v1 = vadd.f32 %v5490_v6, %v5373_v28  ;;  %v5565_v46 = vadd.f32 %v5564_v37, %v5375_v53  ;;  %v4723_v39 = vadd.f32 %v4722_v49, %v9189_v11  ;;  %v4916_v18 = vadd.f32 %v4915_v36, %v9189_v11  ;;  %v4724_v22 = vpop.f32.mrb[226].mxu0  ;;  %v4917_v41 = vpop.f32.mrb[226].mxu1 }
 0x734   :  { %v5056_v15 = vmax.f32 %v4721_v62, 0.0  ;;  %v5058_v2 = vmax.f32 %v4914_v52, 0.0  ;;  %v4725_v29 = vadd.f32 %v4724_v22, %v9191_v59  ;;  %v4918_v33 = vadd.f32 %v4917_v41, %v9191_v59  ;;  %v4726_v45 = vpop.f32.mrb[227].mxu0  ;;  %v4919_v50 = vpop.f32.mrb[227].mxu1 }
 0x735   :  { %v5057_v60 = vmax.f32 %v4723_v39, 0.0  ;;  %v5059_v25 = vmax.f32 %v4916_v18, 0.0  ;;  %v4727_v21 = vadd.f32 %v4726_v45, %v9191_v59  ;;  %v4920_v61 = vadd.f32 %v4919_v50, %v9191_v59  ;;  %v9373_v5 = vpop.permute.xlu0 %5254  ;;  %v9375_v19 = vpop.permute.xlu1 %5259 }
 0x736   :  { %v5376_v23 = vmul.f32 %v9333_v10, %v5056_v15  ;;  %v5378_v11 = vmul.f32 %v9333_v10, %v5058_v2  ;;  %v5060_v32 = vmax.f32 %v4725_v29, 0.0  ;;  %v5062_v31 = vmax.f32 %v4918_v33, 0.0 }
 0x737   :  { %v5377_v44 = vmul.f32 %v9333_v10, %v5057_v60  ;;  %v5379_v9 = vmul.f32 %v9333_v10, %v5059_v25  ;;  %v5061_v20 = vmax.f32 %v4727_v21, 0.0  ;;  %v5063_v57 = vmax.f32 %v4920_v61, 0.0 }
 0x738   :  { %v5455_v54 = vadd.f32 %v5454_v47, %v5376_v23  ;;  %v5529_v30 = vadd.f32 %v5528_v56, %v5378_v11  ;;  %v5380_v59 = vmul.f32 %v9335_v42, %v5060_v32  ;;  %v5382_v14 = vmul.f32 %v9335_v42, %v5062_v31 }
 0x739   :  { %v5492_v35 = vadd.f32 %v5491_v1, %v5377_v44  ;;  %v5566_v17 = vadd.f32 %v5565_v46, %v5379_v9  ;;  %v5381_v63 = vmul.f32 %v9335_v42, %v5061_v20  ;;  %v5383_v3 = vmul.f32 %v9335_v42, %v5063_v57  ;;  %v4730_v43 = vpop.f32.mrb[228].mxu0  ;;  %v4923_v10 = vpop.f32.mrb[228].mxu1 }
 0x73a   :  { %v5456_v24 = vadd.f32 %v5455_v54, %v5380_v59  ;;  %v5530_v55 = vadd.f32 %v5529_v30, %v5382_v14  ;;  %v4731_v38 = vadd.f32 %v4730_v43, %v9193_v12  ;;  %v4924_v6 = vadd.f32 %v4923_v10, %v9193_v12  ;;  %v4732_v37 = vpop.f32.mrb[229].mxu0  ;;  %v4925_v28 = vpop.f32.mrb[229].mxu1 }
 0x73b   :  { %v5493_v53 = vadd.f32 %v5492_v35, %v5381_v63  ;;  %v5567_v40 = vadd.f32 %v5566_v17, %v5383_v3  ;;  %v4733_v48 = vadd.f32 %v4732_v37, %v9193_v12  ;;  %v4926_v47 = vadd.f32 %v4925_v28, %v9193_v12  ;;  %v4734_v56 = vpop.f32.mrb[230].mxu0  ;;  %v4927_v62 = vpop.f32.mrb[230].mxu1 }
 0x73c   :  { %v5064_v52 = vmax.f32 %v4731_v38, 0.0  ;;  %v5066_v42 = vmax.f32 %v4924_v6, 0.0  ;;  %v4735_v49 = vadd.f32 %v4734_v56, %v9195_v16  ;;  %v4928_v36 = vadd.f32 %v4927_v62, %v9195_v16  ;;  %v4736_v1 = vpop.f32.mrb[231].mxu0  ;;  %v4929_v46 = vpop.f32.mrb[231].mxu1 }
 0x73d   :  { %v5065_v39 = vmax.f32 %v4733_v48, 0.0  ;;  %v5067_v18 = vmax.f32 %v4926_v47, 0.0  ;;  %v4737_v22 = vadd.f32 %v4736_v1, %v9195_v16  ;;  %v4930_v41 = vadd.f32 %v4929_v46, %v9195_v16  ;;  %v9393_v25 = vpop.permute.xlu0 %5264  ;;  %v9395_v21 = vpop.permute.xlu1 %5269 }
 0x73e   :  { %v5384_v15 = vmul.f32 %v9353_v7, %v5064_v52  ;;  %v5386_v12 = vmul.f32 %v9353_v7, %v5066_v42  ;;  %v5068_v2 = vmax.f32 %v4735_v49, 0.0  ;;  %v5070_v29 = vmax.f32 %v4928_v36, 0.0 }
 0x73f   :  { %v5385_v33 = vmul.f32 %v9353_v7, %v5065_v39  ;;  %v5387_v45 = vmul.f32 %v9353_v7, %v5067_v18  ;;  %v5069_v50 = vmax.f32 %v4737_v22, 0.0  ;;  %v5071_v60 = vmax.f32 %v4930_v41, 0.0 }
 0x740   :  { %v5457_v61 = vadd.f32 %v5456_v24, %v5384_v15  ;;  %v5531_v23 = vadd.f32 %v5530_v55, %v5386_v12  ;;  %v5388_v16 = vmul.f32 %v9355_v34, %v5068_v2  ;;  %v5390_v11 = vmul.f32 %v9355_v34, %v5070_v29 }
 0x741   :  { %v5494_v32 = vadd.f32 %v5493_v53, %v5385_v33  ;;  %v5568_v31 = vadd.f32 %v5567_v40, %v5387_v45  ;;  %v5389_v44 = vmul.f32 %v9355_v34, %v5069_v50  ;;  %v5391_v9 = vmul.f32 %v9355_v34, %v5071_v60  ;;  %v4740_v20 = vpop.f32.mrb[232].mxu0  ;;  %v4933_v7 = vpop.f32.mrb[232].mxu1 }
 0x742   :  { %v5458_v57 = vadd.f32 %v5457_v61, %v5388_v16  ;;  %v5532_v54 = vadd.f32 %v5531_v23, %v5390_v11  ;;  %v4741_v30 = vadd.f32 %v4740_v20, %v9197_v13  ;;  %v4934_v59 = vadd.f32 %v4933_v7, %v9197_v13  ;;  %v4742_v14 = vpop.f32.mrb[233].mxu0  ;;  %v4935_v35 = vpop.f32.mrb[233].mxu1 }
 0x743   :  { %v5495_v17 = vadd.f32 %v5494_v32, %v5389_v44  ;;  %v5569_v63 = vadd.f32 %v5568_v31, %v5391_v9  ;;  %v4743_v3 = vadd.f32 %v4742_v14, %v9197_v13  ;;  %v4936_v43 = vadd.f32 %v4935_v35, %v9197_v13  ;;  %v4744_v10 = vpop.f32.mrb[234].mxu0  ;;  %v4937_v24 = vpop.f32.mrb[234].mxu1 }
 0x744   :  { %v5072_v55 = vmax.f32 %v4741_v30, 0.0  ;;  %v5074_v34 = vmax.f32 %v4934_v59, 0.0  ;;  %v4745_v38 = vadd.f32 %v4744_v10, %v9199_v4  ;;  %v4938_v6 = vadd.f32 %v4937_v24, %v9199_v4  ;;  %v4746_v37 = vpop.f32.mrb[235].mxu0  ;;  %v4939_v28 = vpop.f32.mrb[235].mxu1 }
 0x745   :  { %v5073_v53 = vmax.f32 %v4743_v3, 0.0  ;;  %v5075_v40 = vmax.f32 %v4936_v43, 0.0  ;;  %v4747_v48 = vadd.f32 %v4746_v37, %v9199_v4  ;;  %v4940_v47 = vadd.f32 %v4939_v28, %v9199_v4  ;;  %v9413_v46 = vpop.permute.xlu0 %5274  ;;  %v9415_v39 = vpop.permute.xlu1 %5279 }
 0x746   :  { %v5392_v56 = vmul.f32 %v9373_v5, %v5072_v55  ;;  %v5394_v13 = vmul.f32 %v9373_v5, %v5074_v34  ;;  %v5076_v62 = vmax.f32 %v4745_v38, 0.0  ;;  %v5078_v52 = vmax.f32 %v4938_v6, 0.0 }
 0x747   :  { %v5393_v42 = vmul.f32 %v9373_v5, %v5073_v53  ;;  %v5395_v49 = vmul.f32 %v9373_v5, %v5075_v40  ;;  %v5077_v36 = vmax.f32 %v4747_v48, 0.0  ;;  %v5079_v1 = vmax.f32 %v4940_v47, 0.0 }
 0x748   :  { %v5459_v18 = vadd.f32 %v5458_v57, %v5392_v56  ;;  %v5533_v22 = vadd.f32 %v5532_v54, %v5394_v13  ;;  %v5396_v4 = vmul.f32 %v9375_v19, %v5076_v62  ;;  %v5398_v41 = vmul.f32 %v9375_v19, %v5078_v52 }
 0x749   :  { %v5496_v15 = vadd.f32 %v5495_v17, %v5393_v42  ;;  %v5570_v12 = vadd.f32 %v5569_v63, %v5395_v49  ;;  %v5397_v2 = vmul.f32 %v9375_v19, %v5077_v36  ;;  %v5399_v29 = vmul.f32 %v9375_v19, %v5079_v1  ;;  %v4750_v33 = vpop.f32.mrb[236].mxu0  ;;  %v4943_v5 = vpop.f32.mrb[236].mxu1 }
 0x74a   :  { %v5460_v45 = vadd.f32 %v5459_v18, %v5396_v4  ;;  %v5534_v50 = vadd.f32 %v5533_v22, %v5398_v41  ;;  %v4751_v60 = vadd.f32 %v4750_v33, %v9201_v27  ;;  %v4944_v61 = vadd.f32 %v4943_v5, %v9201_v27  ;;  %v4752_v23 = vpop.f32.mrb[237].mxu0  ;;  %v4945_v16 = vpop.f32.mrb[237].mxu1 }
 0x74b   :  { %v5497_v11 = vadd.f32 %v5496_v15, %v5397_v2  ;;  %v5571_v32 = vadd.f32 %v5570_v12, %v5399_v29  ;;  %v4753_v31 = vadd.f32 %v4752_v23, %v9201_v27  ;;  %v4946_v44 = vadd.f32 %v4945_v16, %v9201_v27  ;;  %v4754_v9 = vpop.f32.mrb[238].mxu0  ;;  %v4947_v20 = vpop.f32.mrb[238].mxu1 }
 0x74c   :  { %v5080_v7 = vmax.f32 %v4751_v60, 0.0  ;;  %v5082_v19 = vmax.f32 %v4944_v61, 0.0  ;;  %v4755_v57 = vadd.f32 %v4754_v9, %v9203_v26  ;;  %v4948_v54 = vadd.f32 %v4947_v20, %v9203_v26  ;;  %v4756_v30 = vpop.f32.mrb[239].mxu0  ;;  %v4949_v59 = vpop.f32.mrb[239].mxu1 }
 0x74d   :  { %v5081_v14 = vmax.f32 %v4753_v31, 0.0  ;;  %v5083_v35 = vmax.f32 %v4946_v44, 0.0  ;;  %v4757_v17 = vadd.f32 %v4756_v30, %v9203_v26  ;;  %v4950_v63 = vadd.f32 %v4949_v59, %v9203_v26  ;;  %v9433_v6 = vpop.permute.xlu0 %4588  ;;  %v9435_v37 = vpop.permute.xlu1 %5284 }
 0x74e   :  { %v5400_v3 = vmul.f32 %v9393_v25, %v5080_v7  ;;  %v5402_v27 = vmul.f32 %v9393_v25, %v5082_v19  ;;  %v5084_v43 = vmax.f32 %v4755_v57, 0.0  ;;  %v5086_v10 = vmax.f32 %v4948_v54, 0.0 }
 0x74f   :  { %v5401_v24 = vmul.f32 %v9393_v25, %v5081_v14  ;;  %v5403_v55 = vmul.f32 %v9393_v25, %v5083_v35  ;;  %v5085_v34 = vmax.f32 %v4757_v17, 0.0  ;;  %v5087_v38 = vmax.f32 %v4950_v63, 0.0 }
 0x750   :  { %v5461_v28 = vadd.f32 %v5460_v45, %v5400_v3  ;;  %v5535_v53 = vadd.f32 %v5534_v50, %v5402_v27  ;;  %v5404_v26 = vmul.f32 %v9395_v21, %v5084_v43  ;;  %v5406_v40 = vmul.f32 %v9395_v21, %v5086_v10 }
 0x751   :  { %v5498_v48 = vadd.f32 %v5497_v11, %v5401_v24  ;;  %v5572_v47 = vadd.f32 %v5571_v32, %v5403_v55  ;;  %v5405_v56 = vmul.f32 %v9395_v21, %v5085_v34  ;;  %v5407_v13 = vmul.f32 %v9395_v21, %v5087_v38  ;;  %v4760_v62 = vpop.f32.mrb[240].mxu0  ;;  %v4953_v25 = vpop.f32.mrb[240].mxu1 }
 0x752   :  { %v5462_v52 = vadd.f32 %v5461_v28, %v5404_v26  ;;  %v5536_v42 = vadd.f32 %v5535_v53, %v5406_v40  ;;  %v4761_v49 = vadd.f32 %v4760_v62, %v9205_v8  ;;  %v4954_v36 = vadd.f32 %v4953_v25, %v9205_v8  ;;  %v4762_v1 = vpop.f32.mrb[241].mxu0  ;;  %v4955_v18 = vpop.f32.mrb[241].mxu1 }
 0x753   :  { %v5499_v22 = vadd.f32 %v5498_v48, %v5405_v56  ;;  %v5573_v4 = vadd.f32 %v5572_v47, %v5407_v13  ;;  %v4763_v41 = vadd.f32 %v4762_v1, %v9205_v8  ;;  %v4956_v15 = vadd.f32 %v4955_v18, %v9205_v8  ;;  %v4764_v12 = vpop.f32.mrb[242].mxu0  ;;  %v4957_v2 = vpop.f32.mrb[242].mxu1 }
 0x754   :  { %v5088_v29 = vmax.f32 %v4761_v49, 0.0  ;;  %v5090_v21 = vmax.f32 %v4954_v36, 0.0  ;;  %v4765_v33 = vadd.f32 %v4764_v12, %v9207_v0  ;;  %v4958_v5 = vadd.f32 %v4957_v2, %v9207_v0  ;;  %v4766_v45 = vpop.f32.mrb[243].mxu0  ;;  %v4959_v50 = vpop.f32.mrb[243].mxu1 }
 0x755   :  { %v5089_v60 = vmax.f32 %v4763_v41, 0.0  ;;  %v5091_v61 = vmax.f32 %v4956_v15, 0.0  ;;  %v4767_v23 = vadd.f32 %v4766_v45, %v9207_v0  ;;  %v4960_v16 = vadd.f32 %v4959_v50, %v9207_v0  ;;  %v9453_v19 = vpop.permute.xlu0 %4593  ;;  %v5290_v57 = vpop.permute.xlu1 %5289 }
 0x756   :  { %v5408_v11 = vmul.f32 %v9413_v46, %v5088_v29  ;;  %v5410_v8 = vmul.f32 %v9413_v46, %v5090_v21  ;;  %v5092_v32 = vmax.f32 %v4765_v33, 0.0  ;;  %v5094_v31 = vmax.f32 %v4958_v5, 0.0 }
 0x757   :  { %v5409_v44 = vmul.f32 %v9413_v46, %v5089_v60  ;;  %v5411_v9 = vmul.f32 %v9413_v46, %v5091_v61  ;;  %v5093_v20 = vmax.f32 %v4767_v23, 0.0  ;;  %v5095_v7 = vmax.f32 %v4960_v16, 0.0 }
 0x758   :  { %v5463_v54 = vadd.f32 %v5462_v52, %v5408_v11  ;;  %v5537_v30 = vadd.f32 %v5536_v42, %v5410_v8  ;;  %v5412_v59 = vmul.f32 %v9415_v39, %v5092_v32  ;;  %v5414_v0 = vmul.f32 %v9415_v39, %v5094_v31 }
 0x759   :  { %v5500_v14 = vadd.f32 %v5499_v22, %v5409_v44  ;;  %v5574_v35 = vadd.f32 %v5573_v4, %v5411_v9  ;;  %v5413_v17 = vmul.f32 %v9415_v39, %v5093_v20  ;;  %v5415_v63 = vmul.f32 %v9415_v39, %v5095_v7  ;;  %v4770_v3 = vpop.f32.mrb[244].mxu0  ;;  %v4963_v27 = vpop.f32.mrb[244].mxu1 }
 0x75a   :  { %v5464_v46 = vadd.f32 %v5463_v54, %v5412_v59  ;;  %v5538_v43 = vadd.f32 %v5537_v30, %v5414_v0  ;;  %v4771_v10 = vadd.f32 %v4770_v3, %v9209_v58  ;;  %v4964_v24 = vadd.f32 %v4963_v27, %v9209_v58  ;;  %v4772_v55 = vpop.f32.mrb[245].mxu0  ;;  %v4965_v34 = vpop.f32.mrb[245].mxu1 }
 0x75b   :  { %v5501_v38 = vadd.f32 %v5500_v14, %v5413_v17  ;;  %v5575_v28 = vadd.f32 %v5574_v35, %v5415_v63  ;;  %v4773_v53 = vadd.f32 %v4772_v55, %v9209_v58  ;;  %v4966_v26 = vadd.f32 %v4965_v34, %v9209_v58  ;;  %v4774_v40 = vpop.f32.mrb[246].mxu0  ;;  %v4967_v48 = vpop.f32.mrb[246].mxu1 }
 0x75c   :  { %v5096_v47 = vmax.f32 %v4771_v10, 0.0  ;;  %v5098_v39 = vmax.f32 %v4964_v24, 0.0  ;;  %v4775_v56 = vadd.f32 %v4774_v40, %v9211_v51  ;;  %v4968_v13 = vadd.f32 %v4967_v48, %v9211_v51  ;;  %v4776_v62 = vpop.f32.mrb[247].mxu0  ;;  %v4969_v25 = vpop.f32.mrb[247].mxu1 }
 0x75d   :  { %v5097_v52 = vmax.f32 %v4773_v53, 0.0  ;;  %v5099_v42 = vmax.f32 %v4966_v26, 0.0  ;;  %v4777_v49 = vadd.f32 %v4776_v62, %v9211_v51  ;;  %v4970_v36 = vadd.f32 %v4969_v25, %v9211_v51  ;;  %v9471_v2 = vpop.permute.xlu0 %4598  ;;  %v5295_v29 = vpop.permute.xlu1 %5294 }
 0x75e   :  { %v5416_v1 = vmul.f32 %v9435_v37, %v5096_v47  ;;  %v5418_v58 = vmul.f32 %v9435_v37, %v5098_v39  ;;  %v5100_v18 = vmax.f32 %v4775_v56, 0.0  ;;  %v5102_v22 = vmax.f32 %v4968_v13, 0.0 }
 0x75f   :  { %v5417_v4 = vmul.f32 %v9435_v37, %v5097_v52  ;;  %v5419_v41 = vmul.f32 %v9435_v37, %v5099_v42  ;;  %v5101_v15 = vmax.f32 %v4777_v49, 0.0  ;;  %v5103_v12 = vmax.f32 %v4970_v36, 0.0 }
 0x760   :  { %v5465_v21 = vadd.f32 %v5464_v46, %v5416_v1  ;;  %v5539_v33 = vadd.f32 %v5538_v43, %v5418_v58  ;;  %v5420_v5 = vmul.f32 %v5290_v57, %v5100_v18  ;;  %v5422_v45 = vmul.f32 %v5290_v57, %v5102_v22 }
 0x761   :  { %v5502_v51 = vadd.f32 %v5501_v38, %v5417_v4  ;;  %v5576_v50 = vadd.f32 %v5575_v28, %v5419_v41  ;;  %v5421_v60 = vmul.f32 %v5290_v57, %v5101_v15  ;;  %v5423_v61 = vmul.f32 %v5290_v57, %v5103_v12  ;;  %v4780_v23 = vpop.f32.mrb[248].mxu0  ;;  %v4973_v16 = vpop.f32.mrb[248].mxu1 }
 0x762   :  { %v5466_v11 = vadd.f32 %v5465_v21, %v5420_v5  ;;  %v5540_v8 = vadd.f32 %v5539_v33, %v5422_v45  ;;  %v4781_v32 = vadd.f32 %v4780_v23, %v9433_v6  ;;  %v4974_v37 = vadd.f32 %v4973_v16, %v9433_v6  ;;  %v4782_v31 = vpop.f32.mrb[249].mxu0  ;;  %v4975_v44 = vpop.f32.mrb[249].mxu1 }
 0x763   :  { %v5503_v9 = vadd.f32 %v5502_v51, %v5421_v60  ;;  %v5577_v20 = vadd.f32 %v5576_v50, %v5423_v61  ;;  %v4783_v7 = vadd.f32 %v4782_v31, %v9433_v6  ;;  %v4976_v54 = vadd.f32 %v4975_v44, %v9433_v6  ;;  %v4784_v30 = vpop.f32.mrb[250].mxu0  ;;  %v4977_v59 = vpop.f32.mrb[250].mxu1 }
 0x764   :  { %v5104_v0 = vmax.f32 %v4781_v32, 0.0  ;;  %v5106_v57 = vmax.f32 %v4974_v37, 0.0  ;;  %v4785_v14 = vadd.f32 %v4784_v30, %v9453_v19  ;;  %v4978_v35 = vadd.f32 %v4977_v59, %v9453_v19  ;;  %v4786_v17 = vpop.f32.mrb[251].mxu0  ;;  %v4979_v63 = vpop.f32.mrb[251].mxu1 }
 0x765   :  { %v5105_v3 = vmax.f32 %v4783_v7, 0.0  ;;  %v5107_v27 = vmax.f32 %v4976_v54, 0.0  ;;  %v4787_v46 = vadd.f32 %v4786_v17, %v9453_v19  ;;  %v4980_v43 = vadd.f32 %v4979_v63, %v9453_v19  ;;  %v4604_v34 = vpop.permute.xlu0 %4603  ;;  %v5300_v38 = vpop.permute.xlu1 %5299 }
 0x766   :  { %v5424_v10 = vmul.f32 %v5295_v29, %v5104_v0  ;;  %v5426_v24 = vmul.f32 %v5295_v29, %v5106_v57  ;;  %v5108_v55 = vmax.f32 %v4785_v14, 0.0  ;;  %v5110_v6 = vmax.f32 %v4978_v35, 0.0 }
 0x767   :  { %v5425_v28 = vmul.f32 %v5295_v29, %v5105_v3  ;;  %v5427_v53 = vmul.f32 %v5295_v29, %v5107_v27  ;;  %v5109_v26 = vmax.f32 %v4787_v46, 0.0  ;;  %v5111_v40 = vmax.f32 %v4980_v43, 0.0 }
 0x768   :  { %v5467_v48 = vadd.f32 %v5466_v11, %v5424_v10  ;;  %v5541_v47 = vadd.f32 %v5540_v8, %v5426_v24  ;;  %v5428_v39 = vmul.f32 %v5300_v38, %v5108_v55  ;;  %v5430_v56 = vmul.f32 %v5300_v38, %v5110_v6 }
 0x769   :  { %v5504_v13 = vadd.f32 %v5503_v9, %v5425_v28  ;;  %v5578_v62 = vadd.f32 %v5577_v20, %v5427_v53  ;;  %v5429_v25 = vmul.f32 %v5300_v38, %v5109_v26  ;;  %v5431_v52 = vmul.f32 %v5300_v38, %v5111_v40  ;;  %v4790_v42 = vpop.f32.mrb[252].mxu0  ;;  %v4983_v19 = vpop.f32.mrb[252].mxu1 }
 0x76a   :  { %v5468_v49 = vadd.f32 %v5467_v48, %v5428_v39  ;;  %v5542_v36 = vadd.f32 %v5541_v47, %v5430_v56  ;;  %v4791_v1 = vadd.f32 %v4790_v42, %v9471_v2  ;;  %v4984_v58 = vadd.f32 %v4983_v19, %v9471_v2  ;;  %v4792_v18 = vpop.f32.mrb[253].mxu0  ;;  %v4985_v22 = vpop.f32.mrb[253].mxu1 }
 0x76b   :  { %v5505_v4 = vadd.f32 %v5504_v13, %v5429_v25  ;;  %v5579_v41 = vadd.f32 %v5578_v62, %v5431_v52  ;;  %v4793_v15 = vadd.f32 %v4792_v18, %v9471_v2  ;;  %v4986_v12 = vadd.f32 %v4985_v22, %v9471_v2  ;;  %v4794_v29 = vpop.f32.mrb[254].mxu0  ;;  %v4987_v21 = vpop.f32.mrb[254].mxu1 }
 0x76c   :  { %v5112_v33 = vmax.f32 %v4791_v1, 0.0  ;;  %v5114_v5 = vmax.f32 %v4984_v58, 0.0  ;;  %v4795_v45 = vadd.f32 %v4794_v29, %v4604_v34  ;;  %v4988_v51 = vadd.f32 %v4987_v21, %v4604_v34  ;;  %v4796_v50 = vpop.f32.mrb[255].mxu0  ;;  %v4989_v60 = vpop.f32.mrb[255].mxu1 }
 0x76d   :  { %v5305_v61 = vpop.permute.xlu0 %5304  ;;  %v5113_v23 = vmax.f32 %v4793_v15, 0.0  ;;  %v5115_v16 = vmax.f32 %v4986_v12, 0.0  ;;  %v4797_v11 = vadd.f32 %v4796_v50, %v4604_v34  ;;  %v5310_v44 = vpop.permute.xlu1 %5309  ;;  %v4990_v63 = vadd.f32 %v4989_v60, %v4604_v34 }
 0x76e   :  { %v5432_v8 = vmul.f32 %v5305_v61, %v5112_v33  ;;  %v5434_v32 = vmul.f32 %v5305_v61, %v5114_v5  ;;  %v5116_v37 = vmax.f32 %v4795_v45, 0.0  ;;  %v5118_v31 = vmax.f32 %v4988_v51, 0.0 }
 0x76f   :  { %v5433_v9 = vmul.f32 %v5305_v61, %v5113_v23  ;;  %v5435_v20 = vmul.f32 %v5305_v61, %v5115_v16  ;;  %v5117_v2 = vmax.f32 %v4797_v11, 0.0  ;;  %v5119_v43 = vmax.f32 %v4990_v63, 0.0 }
 0x770   :  { %v5469_v7 = vadd.f32 %v5468_v49, %v5432_v8  ;;  %v5543_v54 = vadd.f32 %v5542_v36, %v5434_v32  ;;  %v5436_v30 = vmul.f32 %v5310_v44, %v5116_v37  ;;  %v5438_v59 = vmul.f32 %v5310_v44, %v5118_v31  ;;  %v10588_v49 = vld [vmem:[#allocation13_spill] sm:$0xff] }
 0x771   :  { %v5506_v0 = vadd.f32 %v5505_v4, %v5433_v9  ;;  %v5580_v57 = vadd.f32 %v5579_v41, %v5435_v20  ;;  %v5437_v14 = vmul.f32 %v5310_v44, %v5117_v2  ;;  %v5439_v6 = vmul.f32 %v5310_v44, %v5119_v43  ;;  %v5592_v56 = vpop.permute.xlu0 %5591 }
 0x772   :  { %v5470_v35 = vadd.f32 %v5469_v7, %v5436_v30  ;;  %v5544_v17 = vadd.f32 %v5543_v54, %v5438_v59  ;;  %v5802_v25 = vmov 1966171168   ;;  %v10589_v36 = vsub.s32 0, %v10588_v49 }
 0x773   :  { %v5507_v3 = vadd.f32 %v5506_v0, %v5437_v14  ;;  %v5581_v26 = vadd.f32 %v5580_v57, %v5439_v6  ;;  %v5609_v52 = vunpack.c.l.s4 %v5802_v25  ;;  %v10590_v11 = vlaneseq }
 0x774   :  { %v5471_v27 = vrot.slane %v5470_v35, 4  ;;  %v5545_v46 = vrot.slane %v5544_v17, 4  ;;  %v5597_v1 = vrot.slane %v5592_v56, %v10589_v36 }
 0x775   :  { %v5508_v10 = vrot.slane %v5507_v3, 4  ;;  %v5582_v39 = vrot.slane %v5581_v26, 4  ;;  %v5610_v15 = vunpack.c.0.s8 %v5609_v52  ;;  %vm5633_vm0 = vcmp.lt.s32.totalorder %v10590_v11, 512 }
 0x776   :  { %v5472_v24 = vadd.f32 %v5471_v27, %v5470_v35  ;;  %v5546_v55 = vadd.f32 %v5545_v46, %v5544_v17 }
 0x777   :  { %v5509_v38 = vadd.f32 %v5508_v10, %v5507_v3  ;;  %v5583_v42 = vadd.f32 %v5582_v39, %v5581_v26  ;;  %v5613_v45 = vsub.s32 %v5610_v15, %v10588_v49 }
 0x778   :  { %v5473_v28 = vrot.slane %v5472_v24, 2  ;;  %v5547_v53 = vrot.slane %v5546_v55, 2 }
 0x779   :  { %v5510_v40 = vrot.slane %v5509_v38, 2  ;;  %v5584_v18 = vrot.slane %v5583_v42, 2 }
 0x77a   :  { %v5474_v48 = vadd.f32 %v5473_v28, %v5472_v24  ;;  %v5548_v47 = vadd.f32 %v5547_v53, %v5546_v55 }
 0x77b   :  { %v5511_v13 = vadd.f32 %v5510_v40, %v5509_v38  ;;  %v5585_v12 = vadd.f32 %v5584_v18, %v5583_v42 }
 0x77c   :  { %v5475_v62 = vrot.slane %v5474_v48, 1  ;;  %v5549_v34 = vrot.slane %v5548_v47, 1 }
 0x77d   :  { %v5512_v19 = vrot.slane %v5511_v13, 1  ;;  %v5586_v21 = vrot.slane %v5585_v12, 1 }
 0x77e   :  { %v5476_v58 = vadd.f32 %v5475_v62, %v5474_v48  ;;  %v5550_v41 = vadd.f32 %v5549_v34, %v5548_v47 }
 0x77f   :  { %v5513_v22 = vadd.f32 %v5512_v19, %v5511_v13  ;;  %v5587_v51 = vadd.f32 %v5586_v21, %v5585_v12 }
 0x780   :  { %v5598_v4 = vadd.f32 %v5597_v1, %v5476_v58  ;;  %v5600_v5 = vadd.f32 %v5597_v1, %v5550_v41 }
 0x781   :  { %v5599_v29 = vadd.f32 %v5597_v1, %v5513_v22  ;;  %v5601_v50 = vadd.f32 %v5597_v1, %v5587_v51 }
 0x783   :  { %v5606_v33 = vcombine.low %v5598_v4, %v5599_v29  ;;  %v5607_v61 = vcombine.low %v5600_v5, %v5601_v50 }
 0x785   :  { %v5614_v60 = vrot.slane %v5606_v33, %v5613_v45  ;;  %v5621_v23 = vrot.slane %v5607_v61, %v5613_v45 }
 0x787   :  { %v5622_v16 = vcombine.low %v5614_v60, %v5621_v23 }
 0x789   :  { %v5629_v8 = vrot.slane %v5622_v16, %v5613_v45 }
 0x78b   :  { %5635 = vst.msk [vmem:[%s9504_s13] sm:$0xf] %vm5633_vm0, %v5629_v8 }
 0x78c   :  { %5640 = vsyncmov [#allocation5] }
 0x78f   :  { %s5641_s30 = vpop.sfrf %5640 }
 0x790   :  { %p5734_p0 = scmp.ne.s32.totalorder %s5641_s30, 0 }
 0x792   :  { %5645 = shalt.err (%p5734_p0)  }
 0x793   :  { %5647 = vsyncmov [#allocation5 + $0x1] }
 0x796   :  { %s5648_s14 = vpop.sfrf %5647 }
 0x797   :  { %p5735_p1 = scmp.ne.s32.totalorder %s5648_s14, 0 }
 0x799   :  { %5652 = shalt.err (%p5735_p1)  }
 0x79a   :  { %5654 = vsyncmov [#allocation5 + $0x2] }
 0x79d   :  { %s5655_s6 = vpop.sfrf %5654 }
 0x79e   :  { %p5736_p2 = scmp.ne.s32.totalorder %s5655_s6, 0 }
 0x7a0   :  { %5659 = shalt.err (%p5736_p2)  }

</bundles_post_ra>
